<compile_context>
chip_gen: v5e
topology: v5e:2x2
jax: 0.10.0
libtpu: 0.0.40
codegen_flags: <defaults>
</compile_context>

<pallas_src>
import functools

import jax
import jax.numpy as jnp
from jax import lax
from jax.experimental import pallas as pl
from jax.experimental.pallas import tpu as pltpu


# -----------------------------------------------------------------------------
# small helpers
# -----------------------------------------------------------------------------
def _round_up(x, m):
    return (x + m - 1) // m * m


def _choose_tile(dim, target, multiple):
    """Largest tile <= target that divides `dim` and is a multiple of `multiple`.
    `dim` is assumed to already be a multiple of `multiple` (caller pads)."""
    if dim <= target:
        return dim
    t = (target // multiple) * multiple
    while t > multiple and dim % t != 0:
        t -= multiple
    return t


def _plan_time(T, target=32):
    """Pick (t_block, Tp): timesteps per grid step and (possibly padded) T.
    Prefers a divisor of T <= target; otherwise pads T and the kernel masks
    the tail steps (avoids the t_block==1 cliff for awkward/prime T)."""
    if T <= target:
        return T, T
    best = 1
    for t in range(target, 0, -1):
        if T % t == 0:
            best = t
            break
    if best >= target // 2:
        return best, T
    return target, _round_up(T, target)


# -----------------------------------------------------------------------------
# Tiled matmul + bias kernels (hoisted input projection AND output head).
# Grid (M/tm, N/tn, K/tk); bf16 operands, f32 accumulate; bias fused.
# -----------------------------------------------------------------------------
def _matmul_bias_f32out_kernel(x_ref, w_ref, b_ref, o_ref):
    # f32 output: accumulate directly into the resident output block (no scratch).
    @pl.when(pl.program_id(2) == 0)
    def _():
        o_ref[...] = jnp.broadcast_to(b_ref[...], o_ref.shape)

    o_ref[...] += jnp.dot(x_ref[...], w_ref[...],
                          preferred_element_type=jnp.float32)


def _matmul_bias_acc_kernel(x_ref, w_ref, b_ref, o_ref, acc_ref):
    # Narrow (bf16) output: keep an f32 VMEM accumulator, store on last k step.
    @pl.when(pl.program_id(2) == 0)
    def _():
        acc_ref[...] = jnp.zeros_like(acc_ref)

    acc_ref[...] += jnp.dot(x_ref[...], w_ref[...],
                            preferred_element_type=jnp.float32)

    @pl.when(pl.program_id(2) == pl.num_programs(2) - 1)
    def _():
        o_ref[...] = (acc_ref[...] + b_ref[...]).astype(o_ref.dtype)


def tiled_matmul_bias(x, w, b, *, out_dtype=jnp.float32,
                      tm_target=256, tn_target=512, tk_target=512):
    """x: (M, K) bf16, w: (K, N) bf16, b: (N,) f32 -> (M, N) out_dtype.
    M must be a multiple of 8; K and N multiples of 128 (caller pads)."""
    M, K = x.shape
    _, N = w.shape
    tm = _choose_tile(M, tm_target, 8)      # multiple of 256 when M allows (v6e)
    tn = _choose_tile(N, tn_target, 128)
    tk = _choose_tile(K, tk_target, 128)
    # v7x: make sure at least one 'parallel' grid axis has >= 2 blocks.
    if M // tm == 1 and N // tn == 1 and N > 128:
        tn = _choose_tile(N, max(128, (N // 2 // 128) * 128), 128)

    in_specs = [
        pl.BlockSpec((tm, tk), lambda i, j, k: (i, k)),   # x tile
        pl.BlockSpec((tk, tn), lambda i, j, k: (k, j)),   # w tile
        pl.BlockSpec((1, tn), lambda i, j, k: (0, j)),    # bias tile
    ]
    out_specs = pl.BlockSpec((tm, tn), lambda i, j, k: (i, j))
    cp = pltpu.CompilerParams(
        dimension_semantics=("parallel", "parallel", "arbitrary"),
        vmem_limit_bytes=48 * 1024 * 1024)
    b2 = b.reshape(1, N).astype(jnp.float32)

    if jnp.dtype(out_dtype) == jnp.dtype(jnp.float32):
        return pl.pallas_call(
            _matmul_bias_f32out_kernel,
            out_shape=jax.ShapeDtypeStruct((M, N), jnp.float32),
            grid_spec=pltpu.PrefetchScalarGridSpec(
                num_scalar_prefetch=0, grid=(M // tm, N // tn, K // tk),
                in_specs=in_specs, out_specs=out_specs),
            compiler_params=cp,
        )(x, w, b2)

    return pl.pallas_call(
        _matmul_bias_acc_kernel,
        out_shape=jax.ShapeDtypeStruct((M, N), out_dtype),
        grid_spec=pltpu.PrefetchScalarGridSpec(
            num_scalar_prefetch=0, grid=(M // tm, N // tn, K // tk),
            in_specs=in_specs, out_specs=out_specs,
            scratch_shapes=[pltpu.VMEM((tm, tn), jnp.float32)]),
        compiler_params=cp,
    )(x, w, b2)


# -----------------------------------------------------------------------------
# Recurrent LSTM kernel: one grid step = (batch block, block of timesteps).
# gates_x (precomputed X @ W_ih^T + bias, bf16) is streamed in; only
# h @ W_hh^T (bf16 operands, f32 accumulate) and the f32 gate math run per step.
# h/c state persists in f32 VMEM scratch.
# -----------------------------------------------------------------------------
def _lstm_recurrent_kernel(gx_ref, whh_ref, h0_ref, c0_ref,
                           out_ref, hN_ref, cN_ref, h_s, c_s,
                           *, hidden, t_block, seq_len, padded_len):
    H = hidden
    t_blk = pl.program_id(1)

    @pl.when(t_blk == 0)
    def _():
        h_s[...] = h0_ref[...].astype(jnp.float32)
        c_s[...] = c0_ref[...].astype(jnp.float32)

    base_t = t_blk * t_block

    def step(i, carry):
        gates = gx_ref[i].astype(jnp.float32) + jnp.dot(
            h_s[...].astype(jnp.bfloat16), whh_ref[...],
            preferred_element_type=jnp.float32)
        # PyTorch gate order: input, forget, cell(g), output — 128-lane aligned.
        i_g = jax.nn.sigmoid(gates[:, 0 * H:1 * H])
        f_g = jax.nn.sigmoid(gates[:, 1 * H:2 * H])
        g_g = jnp.tanh(gates[:, 2 * H:3 * H])
        o_g = jax.nn.sigmoid(gates[:, 3 * H:4 * H])
        c_new = f_g * c_s[...] + i_g * g_g
        h_new = o_g * jnp.tanh(c_new)
        if padded_len != seq_len:
            # T was padded: freeze the state on the padded tail steps.
            valid = (base_t + i) < seq_len
            c_new = jnp.where(valid, c_new, c_s[...])
            h_new = jnp.where(valid, h_new, h_s[...])
        c_s[...] = c_new
        h_s[...] = h_new
        out_ref[i] = h_new.astype(out_ref.dtype)
        return carry

    lax.fori_loop(0, t_block, step, 0, unroll=True)

    # Final state written once, on the last time block only.
    @pl.when(t_blk == pl.num_programs(1) - 1)
    def _():
        hN_ref[...] = h_s[...].astype(hN_ref.dtype)
        cN_ref[...] = c_s[...].astype(cN_ref.dtype)


def lstm_recurrence(gates_x, whh_t, h0, c0, *, t_block, seq_len,
                    single_buffer_whh=True):
    """gates_x: (Tp, Bp, 4*Hp) bf16 time-major precomputed gates;
    whh_t: (Hp, 4*Hp) bf16; h0/c0: (Bp, Hp) f32.
    Returns (out (Tp, Bp, Hp) bf16, hN f32, cN f32)."""
    Tp, Bp, G = gates_x.shape
    Hp = G // 4
    n_t = Tp // t_block

    # v7x: split independent batch rows across the two TensorCores.
    if Bp >= 16 and (Bp // 2) % 8 == 0:
        b_block = Bp // 2
    else:
        b_block = Bp
    n_b = Bp // b_block

    # W_hh^T is a constant block (index map never changes): single-buffer it so
    # it is held once in VMEM instead of twice (large H on v7x).
    if single_buffer_whh:
        whh_spec = pl.BlockSpec((Hp, G), lambda b, t: (0, 0),
                                pipeline_mode=pl.Buffered(1))
    else:
        whh_spec = pl.BlockSpec((Hp, G), lambda b, t: (0, 0))

    kernel = functools.partial(_lstm_recurrent_kernel, hidden=Hp,
                               t_block=t_block, seq_len=seq_len, padded_len=Tp)
    out, hN, cN = pl.pallas_call(
        kernel,
        out_shape=(
            jax.ShapeDtypeStruct((Tp, Bp, Hp), jnp.bfloat16),
            jax.ShapeDtypeStruct((Bp, Hp), jnp.float32),
            jax.ShapeDtypeStruct((Bp, Hp), jnp.float32),
        ),
        grid_spec=pltpu.PrefetchScalarGridSpec(
            num_scalar_prefetch=0,
            grid=(n_b, n_t),
            in_specs=[
                pl.BlockSpec((t_block, b_block, G), lambda b, t: (t, b, 0)),
                whh_spec,
                pl.BlockSpec((b_block, Hp), lambda b, t: (b, 0)),   # h0
                pl.BlockSpec((b_block, Hp), lambda b, t: (b, 0)),   # c0
            ],
            out_specs=[
                pl.BlockSpec((t_block, b_block, Hp), lambda b, t: (t, b, 0)),
                pl.BlockSpec((b_block, Hp), lambda b, t: (b, 0)),   # final h
                pl.BlockSpec((b_block, Hp), lambda b, t: (b, 0)),   # final c
            ],
            scratch_shapes=[
                pltpu.VMEM((b_block, Hp), jnp.float32),             # h state
                pltpu.VMEM((b_block, Hp), jnp.float32),             # c state
            ],
        ),
        compiler_params=pltpu.CompilerParams(
            dimension_semantics=("parallel", "arbitrary")),
    )(gates_x, whh_t, h0, c0)
    return out, hN, cN


# -----------------------------------------------------------------------------
# One-time parameter preparation (hoisted out of the per-call forward):
# gate-wise padding so each gate block starts on a 128-lane boundary,
# transposition to (in, 4*Hp) layout, and bf16 cast of matmul operands.
# Padded hidden columns get zero weights/bias => i=f=o=0.5, g=0 there, so the
# padded hidden/cell columns stay exactly 0 and contribute nothing downstream.
# -----------------------------------------------------------------------------
def _pad_gate_weight(w, H, Hp, in_dim, in_pad):
    """PyTorch (4H, in_dim) -> gate-wise padded, transposed (in_pad, 4*Hp)."""
    w4 = w.reshape(4, H, in_dim)
    w4 = jnp.pad(w4, ((0, 0), (0, Hp - H), (0, in_pad - in_dim)))
    return jnp.transpose(w4.reshape(4 * Hp, in_pad))


def _pad_gate_bias(b, H, Hp):
    return jnp.pad(b.reshape(4, H), ((0, 0), (0, Hp - H))).reshape(4 * Hp)


def prepare_params(params, num_layers):
    V, E = params["embed"].shape
    H = params["w_hh_0"].shape[1]
    Hp, Ep, Vp = _round_up(H, 128), _round_up(E, 128), _round_up(V, 128)
    prep = {}
    prep["embed"] = jnp.pad(params["embed"],
                            ((0, 0), (0, Ep - E))).astype(jnp.bfloat16)
    for l in range(num_layers):
        in_dim = E if l == 0 else H
        in_pad = Ep if l == 0 else Hp
        prep[f"wih_t_{l}"] = _pad_gate_weight(
            params[f"w_ih_{l}"], H, Hp, in_dim, in_pad).astype(jnp.bfloat16)
        prep[f"whh_t_{l}"] = _pad_gate_weight(
            params[f"w_hh_{l}"], H, Hp, H, Hp).astype(jnp.bfloat16)
        prep[f"bias_{l}"] = _pad_gate_bias(
            params[f"b_ih_{l}"] + params[f"b_hh_{l}"], H, Hp)          # f32
    prep["w_out_t"] = jnp.transpose(
        jnp.pad(params["w_out"], ((0, Vp - V), (0, Hp - H)))).astype(jnp.bfloat16)
    prep["b_out"] = jnp.pad(params["b_out"], (0, Vp - V))              # f32
    return prep


# -----------------------------------------------------------------------------
# Full model forward == LSTMmodel.forward(x, h)
# -----------------------------------------------------------------------------
def lstm_model_forward(prep, x_ids, h, *, vocab_size, single_buffer_whh=True):
    """prep: prepared params; x_ids: (B, T) int32; h = (h0, c0), each (L, B, H).
    Returns (logits (B*T, V) f32, (hN, cN))."""
    h0_all, c0_all = h
    num_layers, B, H = h0_all.shape
    T = x_ids.shape[1]
    V = vocab_size
    Hp = prep["whh_t_0"].shape[0]

    Bp = _round_up(B, 8)
    t_block, Tp = _plan_time(T)

    # Embedding gather directly in time-major order, already padded + bf16.
    # TODO(synk): replace jnp.take with a Pallas scalar-prefetch gather kernel
    # for large vocab / long T.
    x = jnp.take(prep["embed"], jnp.transpose(x_ids), axis=0)      # (T, B, Ep)
    x = jnp.pad(x, ((0, Tp - T), (0, Bp - B), (0, 0)))             # (Tp, Bp, Ep)

    h_list, c_list = [], []
    for l in range(num_layers):
        in_pad = x.shape[-1]
        # Hoisted input projection: one big MXU matmul over all timesteps,
        # written back in bf16 (it is re-read by the recurrence).
        gates_x = tiled_matmul_bias(x.reshape(Tp * Bp, in_pad),
                                    prep[f"wih_t_{l}"], prep[f"bias_{l}"],
                                    out_dtype=jnp.bfloat16)
        gates_x = gates_x.reshape(Tp, Bp, 4 * Hp)

        h0p = jnp.pad(h0_all[l], ((0, Bp - B), (0, Hp - H)))
        c0p = jnp.pad(c0_all[l], ((0, Bp - B), (0, Hp - H)))
        out, hN, cN = lstm_recurrence(gates_x, prep[f"whh_t_{l}"], h0p, c0p,
                                      t_block=t_block, seq_len=T,
                                      single_buffer_whh=single_buffer_whh)
        x = out                                                     # (Tp,Bp,Hp) bf16
        h_list.append(hN[:B, :H])
        c_list.append(cN[:B, :H])

    # Output head: batch-major flatten (== out.reshape(B*T, H) in PyTorch).
    # TODO(synk): fold this (t,b)->(b,t) permutation into the head matmul's
    # BlockSpec indexing to drop the remaining (bf16) transpose pass.
    out_bth = jnp.transpose(x[:T, :B, :], (1, 0, 2))                # (B, T, Hp)
    flat = out_bth.reshape(B * T, Hp)
    Mp = _round_up(B * T, 8)
    flat = jnp.pad(flat, ((0, Mp - B * T), (0, 0)))
    logits = tiled_matmul_bias(flat, prep["w_out_t"], prep["b_out"],
                               out_dtype=jnp.float32)[:B * T, :V]

    return logits, (jnp.stack(h_list, 0), jnp.stack(c_list, 0))


# -----------------------------------------------------------------------------
# Pure-JAX reference (mirrors nn.LSTM semantics) for a correctness check.
# -----------------------------------------------------------------------------
def _reference_forward(params, x_ids, h):
    hi = lax.Precision.HIGHEST
    h0_all, c0_all = h
    num_layers, B, H = h0_all.shape
    T = x_ids.shape[1]
    x = jnp.take(params["embed"], x_ids, axis=0)                 # (B, T, E)
    h_list, c_list = [], []
    for l in range(num_layers):
        w_ih, w_hh = params[f"w_ih_{l}"], params[f"w_hh_{l}"]
        b = params[f"b_ih_{l}"] + params[f"b_hh_{l}"]
        h_t, c_t = h0_all[l], c0_all[l]
        outs = []
        for t in range(T):
            g = (jnp.dot(x[:, t], w_ih.T, precision=hi)
                 + jnp.dot(h_t, w_hh.T, precision=hi) + b)
            i_g = jax.nn.sigmoid(g[:, 0 * H:1 * H])
            f_g = jax.nn.sigmoid(g[:, 1 * H:2 * H])
            g_g = jnp.tanh(g[:, 2 * H:3 * H])
            o_g = jax.nn.sigmoid(g[:, 3 * H:4 * H])
            c_t = f_g * c_t + i_g * g_g
            h_t = o_g * jnp.tanh(c_t)
            outs.append(h_t)
        x = jnp.stack(outs, axis=1)
        h_list.append(h_t)
        c_list.append(c_t)
    flat = x.reshape(B * T, H)
    logits = jnp.dot(flat, params["w_out"].T, precision=hi) + params["b_out"]
    return logits, (jnp.stack(h_list, 0), jnp.stack(c_list, 0))


# -----------------------------------------------------------------------------
# Deterministic parameter init (shapes match nn.Embedding / nn.LSTM / nn.Linear)
# -----------------------------------------------------------------------------
def init_params(key, vocab_size, embed_size, hidden_size, num_layers):
    params = {}
    keys = jax.random.split(key, 3 + 4 * num_layers)
    k = iter(keys)

    params["embed"] = jax.random.normal(next(k), (vocab_size, embed_size),
                                        jnp.float32) * 0.1

    scale = 1.0 / jnp.sqrt(hidden_size)
    for l in range(num_layers):
        in_sz = embed_size if l == 0 else hidden_size
        params[f"w_ih_{l}"] = jax.random.uniform(
            next(k), (4 * hidden_size, in_sz), jnp.float32, -scale, scale)
        params[f"w_hh_{l}"] = jax.random.uniform(
            next(k), (4 * hidden_size, hidden_size), jnp.float32, -scale, scale)
        params[f"b_ih_{l}"] = jax.random.uniform(
            next(k), (4 * hidden_size,), jnp.float32, -scale, scale)
        params[f"b_hh_{l}"] = jax.random.uniform(
            next(k), (4 * hidden_size,), jnp.float32, -scale, scale)

    params["w_out"] = jax.random.uniform(
        next(k), (vocab_size, hidden_size), jnp.float32, -scale, scale)
    params["b_out"] = jax.random.uniform(
        next(k), (vocab_size,), jnp.float32, -scale, scale)
    return params


if __name__ == "__main__":
    vocab_size, embed_size, hidden_size, num_layers = 32, 16, 32, 2
    B, T = 2, 8

    key = jax.random.PRNGKey(0)
    pkey, xkey = jax.random.split(key)
    params = init_params(pkey, vocab_size, embed_size, hidden_size, num_layers)

    # One-time weight preparation (pad / align / transpose / bf16) — hoisted
    # out of the per-call forward.
    prep = prepare_params(params, num_layers)

    x_ids = jax.random.randint(xkey, (B, T), 0, vocab_size, dtype=jnp.int32)
    h0 = jnp.zeros((num_layers, B, hidden_size), jnp.float32)
    c0 = jnp.zeros((num_layers, B, hidden_size), jnp.float32)

    def run(single_buffer_whh):
        fwd = jax.jit(functools.partial(lstm_model_forward,
                                        vocab_size=vocab_size,
                                        single_buffer_whh=single_buffer_whh))
        out = fwd(prep, x_ids, (h0, c0))
        jax.block_until_ready(out)
        return out

    try:
        logits, (hN, cN) = run(True)
    except Exception:
        # Fallback if this jax build rejects pl.Buffered on a pallas_call
        # BlockSpec: default double-buffering is still correct.
        logits, (hN, cN) = run(False)

    assert logits.shape == (B * T, vocab_size)
    assert hN.shape == (num_layers, B, hidden_size)
    assert cN.shape == (num_layers, B, hidden_size)

    # Numerical check against a pure-f32 (HIGHEST precision) JAX reference.
    # Tolerance is looser than before because matmul operands / streamed
    # activations are bf16 (f32 accumulation); error stays well under 2.5e-2
    # at these scales.
    ref_logits, (ref_h, ref_c) = _reference_forward(params, x_ids, (h0, c0))
    assert jnp.allclose(logits, ref_logits, atol=2.5e-2, rtol=2.5e-2)
    assert jnp.allclose(hN, ref_h, atol=2.5e-2, rtol=2.5e-2)
    assert jnp.allclose(cN, ref_c, atol=2.5e-2, rtol=2.5e-2)

    print("KERNEL_OK")
</pallas_src>

<mosaic_0001>
module attributes {stable_mosaic.version = 11 : i64} {
  func.func @_matmul_bias_f32out_kernel(%arg0: i32, %arg1: i32, %arg2: i32, %arg3: memref<16x128xbf16, #tpu.memory_space<vmem>>, %arg4: memref<128x128xbf16, #tpu.memory_space<vmem>>, %arg5: memref<1x128xf32, #tpu.memory_space<vmem>>, %arg6: memref<16x128xf32, #tpu.memory_space<vmem>>) attributes {dimension_semantics = [#tpu.dimension_semantics<parallel>, #tpu.dimension_semantics<parallel>, #tpu.dimension_semantics<arbitrary>], iteration_bounds = array<i64: 1, 1, 1>, scalar_prefetch = 0 : i64, scratch_operands = 0 : i64, tpu.core_type = #tpu.core_type<tc>, window_params = [{transform_indices = @transform_0, window_bounds = array<i64: 16, 128>}, {transform_indices = @transform_1, window_bounds = array<i64: 128, 128>}, {transform_indices = @transform_2, window_bounds = array<i64: 1, 128>}, {transform_indices = @transform_3, window_bounds = array<i64: 16, 128>}]} {
    %c0_i32 = arith.constant 0 : i32
    %0 = arith.cmpi eq, %arg2, %c0_i32 : i32
    %1 = arith.extui %0 : i1 to i32
    %c0_i32_0 = arith.constant 0 : i32
    %2 = arith.cmpi ne, %1, %c0_i32_0 : i32
    scf.if %2 {
      %c0_8 = arith.constant 0 : index
      %c0_9 = arith.constant 0 : index
      %9 = vector.load %arg5[%c0_8, %c0_9] : memref<1x128xf32, #tpu.memory_space<vmem>>, vector<1x128xf32>
      %10 = vector.shape_cast %9 : vector<1x128xf32> to vector<1x128xf32>
      %11 = vector.broadcast %10 : vector<1x128xf32> to vector<16x128xf32>
      %c0_10 = arith.constant 0 : index
      %c0_11 = arith.constant 0 : index
      %12 = vector.load %arg6[%c0_10, %c0_11] : memref<16x128xf32, #tpu.memory_space<vmem>>, vector<16x128xf32>
      tpu.vector_store %arg6[%c0_10, %c0_11], %11 {strides = array<i32>} : memref<16x128xf32, #tpu.memory_space<vmem>>, vector<16x128xf32>,
    } else {
    }
    %c0 = arith.constant 0 : index
    %c0_1 = arith.constant 0 : index
    %3 = vector.load %arg6[%c0, %c0_1] : memref<16x128xf32, #tpu.memory_space<vmem>>, vector<16x128xf32>
    %c0_2 = arith.constant 0 : index
    %c0_3 = arith.constant 0 : index
    %4 = vector.load %arg3[%c0_2, %c0_3] : memref<16x128xbf16, #tpu.memory_space<vmem>>, vector<16x128xbf16>
    %c0_4 = arith.constant 0 : index
    %c0_5 = arith.constant 0 : index
    %5 = vector.load %arg4[%c0_4, %c0_5] : memref<128x128xbf16, #tpu.memory_space<vmem>>, vector<128x128xbf16>
    %cst = arith.constant dense<0.000000e+00> : vector<16x128xf32>
    %6 = tpu.matmul %4, %5, %cst {dimension_numbers = #tpu.dot_dimension_numbers<[1], [0], [0], [1], [0, 0, 1, 1], [], []>} : vector<16x128xbf16>, vector<128x128xbf16>, vector<16x128xf32> -> vector<16x128xf32>
    %7 = arith.addf %3, %6 : vector<16x128xf32>
    %c0_6 = arith.constant 0 : index
    %c0_7 = arith.constant 0 : index
    %8 = vector.load %arg6[%c0_6, %c0_7] : memref<16x128xf32, #tpu.memory_space<vmem>>, vector<16x128xf32>
    tpu.vector_store %arg6[%c0_6, %c0_7], %7 {strides = array<i32>} : memref<16x128xf32, #tpu.memory_space<vmem>>, vector<16x128xf32>,
    return
  }
  func.func @transform_0(%arg0: i32, %arg1: i32, %arg2: i32) -> (i32, i32) {
    %c0_i32 = arith.constant 0 : i32
    return %arg0, %arg2 : i32, i32
  }
  func.func @transform_1(%arg0: i32, %arg1: i32, %arg2: i32) -> (i32, i32) {
    %c0_i32 = arith.constant 0 : i32
    return %arg2, %arg1 : i32, i32
  }
  func.func @transform_2(%arg0: i32, %arg1: i32, %arg2: i32) -> (i32, i32) {
    %c0_i32 = arith.constant 0 : i32
    %c0_i32_0 = arith.constant 0 : i32
    return %c0_i32, %arg1 : i32, i32
  }
  func.func @transform_3(%arg0: i32, %arg1: i32, %arg2: i32) -> (i32, i32) {
    %c0_i32 = arith.constant 0 : i32
    return %arg0, %arg1 : i32, i32
  }
}

module attributes {stable_mosaic.version = 11 : i64} {
  func.func @_matmul_bias_acc_kernel(%arg0: i32, %arg1: i32, %arg2: i32, %arg3: memref<64x128xbf16, #tpu.memory_space<vmem>>, %arg4: memref<128x256xbf16, #tpu.memory_space<vmem>>, %arg5: memref<1x256xf32, #tpu.memory_space<vmem>>, %arg6: memref<64x256xbf16, #tpu.memory_space<vmem>>, %arg7: memref<64x256xf32, #tpu.memory_space<vmem>>) attributes {dimension_semantics = [#tpu.dimension_semantics<parallel>, #tpu.dimension_semantics<parallel>, #tpu.dimension_semantics<arbitrary>], iteration_bounds = array<i64: 1, 2, 1>, scalar_prefetch = 0 : i64, scratch_operands = 1 : i64, tpu.core_type = #tpu.core_type<tc>, window_params = [{transform_indices = @transform_0, window_bounds = array<i64: 64, 128>}, {transform_indices = @transform_1, window_bounds = array<i64: 128, 256>}, {transform_indices = @transform_2, window_bounds = array<i64: 1, 256>}, {transform_indices = @transform_3, window_bounds = array<i64: 64, 256>}]} {
    %c0_i32 = arith.constant 0 : i32
    %0 = arith.cmpi eq, %arg2, %c0_i32 : i32
    %1 = arith.extui %0 : i1 to i32
    %c0_i32_0 = arith.constant 0 : i32
    %2 = arith.cmpi ne, %1, %c0_i32_0 : i32
    scf.if %2 {
      %cst_10 = arith.constant 0.000000e+00 : f32
      %12 = vector.broadcast %cst_10 : f32 to vector<64x256xf32>
      %c0_11 = arith.constant 0 : index
      %c0_12 = arith.constant 0 : index
      %13 = vector.load %arg7[%c0_11, %c0_12] : memref<64x256xf32, #tpu.memory_space<vmem>>, vector<64x256xf32>
      tpu.vector_store %arg7[%c0_11, %c0_12], %12 {strides = array<i32>} : memref<64x256xf32, #tpu.memory_space<vmem>>, vector<64x256xf32>,
    } else {
    }
    %c0 = arith.constant 0 : index
    %c0_1 = arith.constant 0 : index
    %3 = vector.load %arg7[%c0, %c0_1] : memref<64x256xf32, #tpu.memory_space<vmem>>, vector<64x256xf32>
    %c0_2 = arith.constant 0 : index
    %c0_3 = arith.constant 0 : index
    %4 = vector.load %arg3[%c0_2, %c0_3] : memref<64x128xbf16, #tpu.memory_space<vmem>>, vector<64x128xbf16>
    %c0_4 = arith.constant 0 : index
    %c0_5 = arith.constant 0 : index
    %5 = vector.load %arg4[%c0_4, %c0_5] : memref<128x256xbf16, #tpu.memory_space<vmem>>, vector<128x256xbf16>
    %cst = arith.constant dense<0.000000e+00> : vector<64x256xf32>
    %6 = tpu.matmul %4, %5, %cst {dimension_numbers = #tpu.dot_dimension_numbers<[1], [0], [0], [1], [0, 0, 1, 1], [], []>} : vector<64x128xbf16>, vector<128x256xbf16>, vector<64x256xf32> -> vector<64x256xf32>
    %7 = arith.addf %3, %6 : vector<64x256xf32>
    %c0_6 = arith.constant 0 : index
    %c0_7 = arith.constant 0 : index
    %8 = vector.load %arg7[%c0_6, %c0_7] : memref<64x256xf32, #tpu.memory_space<vmem>>, vector<64x256xf32>
    tpu.vector_store %arg7[%c0_6, %c0_7], %7 {strides = array<i32>} : memref<64x256xf32, #tpu.memory_space<vmem>>, vector<64x256xf32>,
    %c0_i32_8 = arith.constant 0 : i32
    %9 = arith.cmpi eq, %arg2, %c0_i32_8 : i32
    %10 = arith.extui %9 : i1 to i32
    %c0_i32_9 = arith.constant 0 : i32
    %11 = arith.cmpi ne, %10, %c0_i32_9 : i32
    scf.if %11 {
      %c0_10 = arith.constant 0 : index
      %c0_11 = arith.constant 0 : index
      %12 = vector.load %arg7[%c0_10, %c0_11] : memref<64x256xf32, #tpu.memory_space<vmem>>, vector<64x256xf32>
      %c0_12 = arith.constant 0 : index
      %c0_13 = arith.constant 0 : index
      %13 = vector.load %arg5[%c0_12, %c0_13] : memref<1x256xf32, #tpu.memory_space<vmem>>, vector<1x256xf32>
      %14 = vector.broadcast %13 : vector<1x256xf32> to vector<64x256xf32>
      %15 = arith.addf %12, %14 : vector<64x256xf32>
      %16 = arith.truncf %15 : vector<64x256xf32> to vector<64x256xbf16>
      %c0_14 = arith.constant 0 : index
      %c0_15 = arith.constant 0 : index
      %17 = vector.load %arg6[%c0_14, %c0_15] : memref<64x256xbf16, #tpu.memory_space<vmem>>, vector<64x256xbf16>
      tpu.vector_store %arg6[%c0_14, %c0_15], %16 {strides = array<i32>} : memref<64x256xbf16, #tpu.memory_space<vmem>>, vector<64x256xbf16>,
    } else {
    }
    return
  }
  func.func @transform_0(%arg0: i32, %arg1: i32, %arg2: i32) -> (i32, i32) {
    %c0_i32 = arith.constant 0 : i32
    return %arg0, %arg2 : i32, i32
  }
  func.func @transform_1(%arg0: i32, %arg1: i32, %arg2: i32) -> (i32, i32) {
    %c0_i32 = arith.constant 0 : i32
    return %arg2, %arg1 : i32, i32
  }
  func.func @transform_2(%arg0: i32, %arg1: i32, %arg2: i32) -> (i32, i32) {
    %c0_i32 = arith.constant 0 : i32
    %c0_i32_0 = arith.constant 0 : i32
    return %c0_i32, %arg1 : i32, i32
  }
  func.func @transform_3(%arg0: i32, %arg1: i32, %arg2: i32) -> (i32, i32) {
    %c0_i32 = arith.constant 0 : i32
    return %arg0, %arg1 : i32, i32
  }
}

module attributes {stable_mosaic.version = 11 : i64} {
  func.func @_lstm_recurrent_kernel(%arg0: i32, %arg1: i32, %arg2: memref<8x8x512xbf16, #tpu.memory_space<vmem>>, %arg3: memref<128x512xbf16, #tpu.memory_space<vmem>>, %arg4: memref<8x128xf32, #tpu.memory_space<vmem>>, %arg5: memref<8x128xf32, #tpu.memory_space<vmem>>, %arg6: memref<8x8x128xbf16, #tpu.memory_space<vmem>>, %arg7: memref<8x128xf32, #tpu.memory_space<vmem>>, %arg8: memref<8x128xf32, #tpu.memory_space<vmem>>, %arg9: memref<8x128xf32, #tpu.memory_space<vmem>>, %arg10: memref<8x128xf32, #tpu.memory_space<vmem>>) attributes {dimension_semantics = [#tpu.dimension_semantics<parallel>, #tpu.dimension_semantics<arbitrary>], iteration_bounds = array<i64: 1, 1>, scalar_prefetch = 0 : i64, scratch_operands = 2 : i64, tpu.core_type = #tpu.core_type<tc>, window_params = [{transform_indices = @transform_0, window_bounds = array<i64: 8, 8, 512>}, {pipeline_mode = #tpu.pipeline_mode<synchronous>, transform_indices = @transform_1, window_bounds = array<i64: 128, 512>}, {transform_indices = @transform_2, window_bounds = array<i64: 8, 128>}, {transform_indices = @transform_3, window_bounds = array<i64: 8, 128>}, {transform_indices = @transform_4, window_bounds = array<i64: 8, 8, 128>}, {transform_indices = @transform_5, window_bounds = array<i64: 8, 128>}, {transform_indices = @transform_6, window_bounds = array<i64: 8, 128>}]} {
    %c0_i32 = arith.constant 0 : i32
    %0 = arith.cmpi eq, %arg1, %c0_i32 : i32
    %1 = arith.extui %0 : i1 to i32
    %c0_i32_0 = arith.constant 0 : i32
    %2 = arith.cmpi ne, %1, %c0_i32_0 : i32
    scf.if %2 {
      %c0_146 = arith.constant 0 : index
      %c0_147 = arith.constant 0 : index
      %342 = vector.load %arg4[%c0_146, %c0_147] : memref<8x128xf32, #tpu.memory_space<vmem>>, vector<8x128xf32>
      %c0_148 = arith.constant 0 : index
      %c0_149 = arith.constant 0 : index
      %343 = vector.load %arg9[%c0_148, %c0_149] : memref<8x128xf32, #tpu.memory_space<vmem>>, vector<8x128xf32>
      tpu.vector_store %arg9[%c0_148, %c0_149], %342 {strides = array<i32>} : memref<8x128xf32, #tpu.memory_space<vmem>>, vector<8x128xf32>,
      %c0_150 = arith.constant 0 : index
      %c0_151 = arith.constant 0 : index
      %344 = vector.load %arg5[%c0_150, %c0_151] : memref<8x128xf32, #tpu.memory_space<vmem>>, vector<8x128xf32>
      %c0_152 = arith.constant 0 : index
      %c0_153 = arith.constant 0 : index
      %345 = vector.load %arg10[%c0_152, %c0_153] : memref<8x128xf32, #tpu.memory_space<vmem>>, vector<8x128xf32>
      tpu.vector_store %arg10[%c0_152, %c0_153], %344 {strides = array<i32>} : memref<8x128xf32, #tpu.memory_space<vmem>>, vector<8x128xf32>,
    } else {
    }
    %c0_i32_1 = arith.constant 0 : i32
    %3 = arith.index_cast %c0_i32_1 : i32 to index
    %c0 = arith.constant 0 : index
    %c0_2 = arith.constant 0 : index
    %4 = vector.load %arg2[%3, %c0, %c0_2] : memref<8x8x512xbf16, #tpu.memory_space<vmem>>, vector<1x8x512xbf16>
    %5 = vector.shape_cast %4 : vector<1x8x512xbf16> to vector<8x512xbf16>
    %6 = arith.extf %5 : vector<8x512xbf16> to vector<8x512xf32>
    %c0_3 = arith.constant 0 : index
    %c0_4 = arith.constant 0 : index
    %7 = vector.load %arg9[%c0_3, %c0_4] : memref<8x128xf32, #tpu.memory_space<vmem>>, vector<8x128xf32>
    %8 = arith.truncf %7 : vector<8x128xf32> to vector<8x128xbf16>
    %c0_5 = arith.constant 0 : index
    %c0_6 = arith.constant 0 : index
    %9 = vector.load %arg3[%c0_5, %c0_6] : memref<128x512xbf16, #tpu.memory_space<vmem>>, vector<128x512xbf16>
    %cst = arith.constant dense<0.000000e+00> : vector<8x512xf32>
    %10 = tpu.matmul %8, %9, %cst {dimension_numbers = #tpu.dot_dimension_numbers<[1], [0], [0], [1], [0, 0, 1, 1], [], []>} : vector<8x128xbf16>, vector<128x512xbf16>, vector<8x512xf32> -> vector<8x512xf32>
    %11 = arith.addf %6, %10 : vector<8x512xf32>
    %12 = vector.extract_strided_slice %11 {offsets = [0, 0], sizes = [8, 128], strides = [1, 1]} : vector<8x512xf32> to vector<8x128xf32>
    %13 = arith.negf %12 : vector<8x128xf32>
    %14 = math.exp %13 : vector<8x128xf32>
    %cst_7 = arith.constant 1.000000e+00 : f32
    %15 = vector.broadcast %cst_7 : f32 to vector<8x128xf32>
    %16 = arith.addf %15, %14 : vector<8x128xf32>
    %17 = arith.divf %15, %16 : vector<8x128xf32>
    %18 = vector.extract_strided_slice %11 {offsets = [0, 128], sizes = [8, 128], strides = [1, 1]} : vector<8x512xf32> to vector<8x128xf32>
    %19 = arith.negf %18 : vector<8x128xf32>
    %20 = math.exp %19 : vector<8x128xf32>
    %cst_8 = arith.constant 1.000000e+00 : f32
    %21 = vector.broadcast %cst_8 : f32 to vector<8x128xf32>
    %22 = arith.addf %21, %20 : vector<8x128xf32>
    %23 = arith.divf %21, %22 : vector<8x128xf32>
    %24 = vector.extract_strided_slice %11 {offsets = [0, 256], sizes = [8, 128], strides = [1, 1]} : vector<8x512xf32> to vector<8x128xf32>
    %25 = math.tanh %24 : vector<8x128xf32>
    %26 = vector.extract_strided_slice %11 {offsets = [0, 384], sizes = [8, 128], strides = [1, 1]} : vector<8x512xf32> to vector<8x128xf32>
    %27 = arith.negf %26 : vector<8x128xf32>
    %28 = math.exp %27 : vector<8x128xf32>
    %cst_9 = arith.constant 1.000000e+00 : f32
    %29 = vector.broadcast %cst_9 : f32 to vector<8x128xf32>
    %30 = arith.addf %29, %28 : vector<8x128xf32>
    %31 = arith.divf %29, %30 : vector<8x128xf32>
    %c0_10 = arith.constant 0 : index
    %c0_11 = arith.constant 0 : index
    %32 = vector.load %arg10[%c0_10, %c0_11] : memref<8x128xf32, #tpu.memory_space<vmem>>, vector<8x128xf32>
    %33 = arith.mulf %23, %32 : vector<8x128xf32>
    %34 = arith.mulf %17, %25 : vector<8x128xf32>
    %35 = arith.addf %33, %34 : vector<8x128xf32>
    %36 = math.tanh %35 : vector<8x128xf32>
    %37 = arith.mulf %31, %36 : vector<8x128xf32>
    %c0_12 = arith.constant 0 : index
    %c0_13 = arith.constant 0 : index
    %38 = vector.load %arg10[%c0_12, %c0_13] : memref<8x128xf32, #tpu.memory_space<vmem>>, vector<8x128xf32>
    tpu.vector_store %arg10[%c0_12, %c0_13], %35 {strides = array<i32>} : memref<8x128xf32, #tpu.memory_space<vmem>>, vector<8x128xf32>,
    %c0_14 = arith.constant 0 : index
    %c0_15 = arith.constant 0 : index
    %39 = vector.load %arg9[%c0_14, %c0_15] : memref<8x128xf32, #tpu.memory_space<vmem>>, vector<8x128xf32>
    tpu.vector_store %arg9[%c0_14, %c0_15], %37 {strides = array<i32>} : memref<8x128xf32, #tpu.memory_space<vmem>>, vector<8x128xf32>,
    %40 = arith.truncf %37 : vector<8x128xf32> to vector<8x128xbf16>
    %41 = arith.index_cast %c0_i32_1 : i32 to index
    %c0_16 = arith.constant 0 : index
    %c0_17 = arith.constant 0 : index
    %42 = vector.load %arg6[%41, %c0_16, %c0_17] : memref<8x8x128xbf16, #tpu.memory_space<vmem>>, vector<1x8x128xbf16>
    %43 = vector.shape_cast %42 : vector<1x8x128xbf16> to vector<8x128xbf16>
    %44 = vector.shape_cast %40 : vector<8x128xbf16> to vector<1x8x128xbf16>
    tpu.vector_store %arg6[%41, %c0_16, %c0_17], %44 {strides = array<i32>} : memref<8x8x128xbf16, #tpu.memory_space<vmem>>, vector<1x8x128xbf16>,
    %c1_i32 = arith.constant 1 : i32
    %45 = arith.index_cast %c1_i32 : i32 to index
    %c0_18 = arith.constant 0 : index
    %c0_19 = arith.constant 0 : index
    %46 = vector.load %arg2[%45, %c0_18, %c0_19] : memref<8x8x512xbf16, #tpu.memory_space<vmem>>, vector<1x8x512xbf16>
    %47 = vector.shape_cast %46 : vector<1x8x512xbf16> to vector<8x512xbf16>
    %48 = arith.extf %47 : vector<8x512xbf16> to vector<8x512xf32>
    %c0_20 = arith.constant 0 : index
    %c0_21 = arith.constant 0 : index
    %49 = vector.load %arg9[%c0_20, %c0_21] : memref<8x128xf32, #tpu.memory_space<vmem>>, vector<8x128xf32>
    %50 = arith.truncf %49 : vector<8x128xf32> to vector<8x128xbf16>
    %c0_22 = arith.constant 0 : index
    %c0_23 = arith.constant 0 : index
    %51 = vector.load %arg3[%c0_22, %c0_23] : memref<128x512xbf16, #tpu.memory_space<vmem>>, vector<128x512xbf16>
    %cst_24 = arith.constant dense<0.000000e+00> : vector<8x512xf32>
    %52 = tpu.matmul %50, %51, %cst_24 {dimension_numbers = #tpu.dot_dimension_numbers<[1], [0], [0], [1], [0, 0, 1, 1], [], []>} : vector<8x128xbf16>, vector<128x512xbf16>, vector<8x512xf32> -> vector<8x512xf32>
    %53 = arith.addf %48, %52 : vector<8x512xf32>
    %54 = vector.extract_strided_slice %53 {offsets = [0, 0], sizes = [8, 128], strides = [1, 1]} : vector<8x512xf32> to vector<8x128xf32>
    %55 = arith.negf %54 : vector<8x128xf32>
    %56 = math.exp %55 : vector<8x128xf32>
    %cst_25 = arith.constant 1.000000e+00 : f32
    %57 = vector.broadcast %cst_25 : f32 to vector<8x128xf32>
    %58 = arith.addf %57, %56 : vector<8x128xf32>
    %59 = arith.divf %57, %58 : vector<8x128xf32>
    %60 = vector.extract_strided_slice %53 {offsets = [0, 128], sizes = [8, 128], strides = [1, 1]} : vector<8x512xf32> to vector<8x128xf32>
    %61 = arith.negf %60 : vector<8x128xf32>
    %62 = math.exp %61 : vector<8x128xf32>
    %cst_26 = arith.constant 1.000000e+00 : f32
    %63 = vector.broadcast %cst_26 : f32 to vector<8x128xf32>
    %64 = arith.addf %63, %62 : vector<8x128xf32>
    %65 = arith.divf %63, %64 : vector<8x128xf32>
    %66 = vector.extract_strided_slice %53 {offsets = [0, 256], sizes = [8, 128], strides = [1, 1]} : vector<8x512xf32> to vector<8x128xf32>
    %67 = math.tanh %66 : vector<8x128xf32>
    %68 = vector.extract_strided_slice %53 {offsets = [0, 384], sizes = [8, 128], strides = [1, 1]} : vector<8x512xf32> to vector<8x128xf32>
    %69 = arith.negf %68 : vector<8x128xf32>
    %70 = math.exp %69 : vector<8x128xf32>
    %cst_27 = arith.constant 1.000000e+00 : f32
    %71 = vector.broadcast %cst_27 : f32 to vector<8x128xf32>
    %72 = arith.addf %71, %70 : vector<8x128xf32>
    %73 = arith.divf %71, %72 : vector<8x128xf32>
    %c0_28 = arith.constant 0 : index
    %c0_29 = arith.constant 0 : index
    %74 = vector.load %arg10[%c0_28, %c0_29] : memref<8x128xf32, #tpu.memory_space<vmem>>, vector<8x128xf32>
    %75 = arith.mulf %65, %74 : vector<8x128xf32>
    %76 = arith.mulf %59, %67 : vector<8x128xf32>
    %77 = arith.addf %75, %76 : vector<8x128xf32>
    %78 = math.tanh %77 : vector<8x128xf32>
    %79 = arith.mulf %73, %78 : vector<8x128xf32>
    %c0_30 = arith.constant 0 : index
    %c0_31 = arith.constant 0 : index
    %80 = vector.load %arg10[%c0_30, %c0_31] : memref<8x128xf32, #tpu.memory_space<vmem>>, vector<8x128xf32>
    tpu.vector_store %arg10[%c0_30, %c0_31], %77 {strides = array<i32>} : memref<8x128xf32, #tpu.memory_space<vmem>>, vector<8x128xf32>,
    %c0_32 = arith.constant 0 : index
    %c0_33 = arith.constant 0 : index
    %81 = vector.load %arg9[%c0_32, %c0_33] : memref<8x128xf32, #tpu.memory_space<vmem>>, vector<8x128xf32>
    tpu.vector_store %arg9[%c0_32, %c0_33], %79 {strides = array<i32>} : memref<8x128xf32, #tpu.memory_space<vmem>>, vector<8x128xf32>,
    %82 = arith.truncf %79 : vector<8x128xf32> to vector<8x128xbf16>
    %83 = arith.index_cast %c1_i32 : i32 to index
    %c0_34 = arith.constant 0 : index
    %c0_35 = arith.constant 0 : index
    %84 = vector.load %arg6[%83, %c0_34, %c0_35] : memref<8x8x128xbf16, #tpu.memory_space<vmem>>, vector<1x8x128xbf16>
    %85 = vector.shape_cast %84 : vector<1x8x128xbf16> to vector<8x128xbf16>
    %86 = vector.shape_cast %82 : vector<8x128xbf16> to vector<1x8x128xbf16>
    tpu.vector_store %arg6[%83, %c0_34, %c0_35], %86 {strides = array<i32>} : memref<8x8x128xbf16, #tpu.memory_space<vmem>>, vector<1x8x128xbf16>,
    %c2_i32 = arith.constant 2 : i32
    %87 = arith.index_cast %c2_i32 : i32 to index
    %c0_36 = arith.constant 0 : index
    %c0_37 = arith.constant 0 : index
    %88 = vector.load %arg2[%87, %c0_36, %c0_37] : memref<8x8x512xbf16, #tpu.memory_space<vmem>>, vector<1x8x512xbf16>
    %89 = vector.shape_cast %88 : vector<1x8x512xbf16> to vector<8x512xbf16>
    %90 = arith.extf %89 : vector<8x512xbf16> to vector<8x512xf32>
    %c0_38 = arith.constant 0 : index
    %c0_39 = arith.constant 0 : index
    %91 = vector.load %arg9[%c0_38, %c0_39] : memref<8x128xf32, #tpu.memory_space<vmem>>, vector<8x128xf32>
    %92 = arith.truncf %91 : vector<8x128xf32> to vector<8x128xbf16>
    %c0_40 = arith.constant 0 : index
    %c0_41 = arith.constant 0 : index
    %93 = vector.load %arg3[%c0_40, %c0_41] : memref<128x512xbf16, #tpu.memory_space<vmem>>, vector<128x512xbf16>
    %cst_42 = arith.constant dense<0.000000e+00> : vector<8x512xf32>
    %94 = tpu.matmul %92, %93, %cst_42 {dimension_numbers = #tpu.dot_dimension_numbers<[1], [0], [0], [1], [0, 0, 1, 1], [], []>} : vector<8x128xbf16>, vector<128x512xbf16>, vector<8x512xf32> -> vector<8x512xf32>
    %95 = arith.addf %90, %94 : vector<8x512xf32>
    %96 = vector.extract_strided_slice %95 {offsets = [0, 0], sizes = [8, 128], strides = [1, 1]} : vector<8x512xf32> to vector<8x128xf32>
    %97 = arith.negf %96 : vector<8x128xf32>
    %98 = math.exp %97 : vector<8x128xf32>
    %cst_43 = arith.constant 1.000000e+00 : f32
    %99 = vector.broadcast %cst_43 : f32 to vector<8x128xf32>
    %100 = arith.addf %99, %98 : vector<8x128xf32>
    %101 = arith.divf %99, %100 : vector<8x128xf32>
    %102 = vector.extract_strided_slice %95 {offsets = [0, 128], sizes = [8, 128], strides = [1, 1]} : vector<8x512xf32> to vector<8x128xf32>
    %103 = arith.negf %102 : vector<8x128xf32>
    %104 = math.exp %103 : vector<8x128xf32>
    %cst_44 = arith.constant 1.000000e+00 : f32
    %105 = vector.broadcast %cst_44 : f32 to vector<8x128xf32>
    %106 = arith.addf %105, %104 : vector<8x128xf32>
    %107 = arith.divf %105, %106 : vector<8x128xf32>
    %108 = vector.extract_strided_slice %95 {offsets = [0, 256], sizes = [8, 128], strides = [1, 1]} : vector<8x512xf32> to vector<8x128xf32>
    %109 = math.tanh %108 : vector<8x128xf32>
    %110 = vector.extract_strided_slice %95 {offsets = [0, 384], sizes = [8, 128], strides = [1, 1]} : vector<8x512xf32> to vector<8x128xf32>
    %111 = arith.negf %110 : vector<8x128xf32>
    %112 = math.exp %111 : vector<8x128xf32>
    %cst_45 = arith.constant 1.000000e+00 : f32
    %113 = vector.broadcast %cst_45 : f32 to vector<8x128xf32>
    %114 = arith.addf %113, %112 : vector<8x128xf32>
    %115 = arith.divf %113, %114 : vector<8x128xf32>
    %c0_46 = arith.constant 0 : index
    %c0_47 = arith.constant 0 : index
    %116 = vector.load %arg10[%c0_46, %c0_47] : memref<8x128xf32, #tpu.memory_space<vmem>>, vector<8x128xf32>
    %117 = arith.mulf %107, %116 : vector<8x128xf32>
    %118 = arith.mulf %101, %109 : vector<8x128xf32>
    %119 = arith.addf %117, %118 : vector<8x128xf32>
    %120 = math.tanh %119 : vector<8x128xf32>
    %121 = arith.mulf %115, %120 : vector<8x128xf32>
    %c0_48 = arith.constant 0 : index
    %c0_49 = arith.constant 0 : index
    %122 = vector.load %arg10[%c0_48, %c0_49] : memref<8x128xf32, #tpu.memory_space<vmem>>, vector<8x128xf32>
    tpu.vector_store %arg10[%c0_48, %c0_49], %119 {strides = array<i32>} : memref<8x128xf32, #tpu.memory_space<vmem>>, vector<8x128xf32>,
    %c0_50 = arith.constant 0 : index
    %c0_51 = arith.constant 0 : index
    %123 = vector.load %arg9[%c0_50, %c0_51] : memref<8x128xf32, #tpu.memory_space<vmem>>, vector<8x128xf32>
    tpu.vector_store %arg9[%c0_50, %c0_51], %121 {strides = array<i32>} : memref<8x128xf32, #tpu.memory_space<vmem>>, vector<8x128xf32>,
    %124 = arith.truncf %121 : vector<8x128xf32> to vector<8x128xbf16>
    %125 = arith.index_cast %c2_i32 : i32 to index
    %c0_52 = arith.constant 0 : index
    %c0_53 = arith.constant 0 : index
    %126 = vector.load %arg6[%125, %c0_52, %c0_53] : memref<8x8x128xbf16, #tpu.memory_space<vmem>>, vector<1x8x128xbf16>
    %127 = vector.shape_cast %126 : vector<1x8x128xbf16> to vector<8x128xbf16>
    %128 = vector.shape_cast %124 : vector<8x128xbf16> to vector<1x8x128xbf16>
    tpu.vector_store %arg6[%125, %c0_52, %c0_53], %128 {strides = array<i32>} : memref<8x8x128xbf16, #tpu.memory_space<vmem>>, vector<1x8x128xbf16>,
    %c3_i32 = arith.constant 3 : i32
    %129 = arith.index_cast %c3_i32 : i32 to index
    %c0_54 = arith.constant 0 : index
    %c0_55 = arith.constant 0 : index
    %130 = vector.load %arg2[%129, %c0_54, %c0_55] : memref<8x8x512xbf16, #tpu.memory_space<vmem>>, vector<1x8x512xbf16>
    %131 = vector.shape_cast %130 : vector<1x8x512xbf16> to vector<8x512xbf16>
    %132 = arith.extf %131 : vector<8x512xbf16> to vector<8x512xf32>
    %c0_56 = arith.constant 0 : index
    %c0_57 = arith.constant 0 : index
    %133 = vector.load %arg9[%c0_56, %c0_57] : memref<8x128xf32, #tpu.memory_space<vmem>>, vector<8x128xf32>
    %134 = arith.truncf %133 : vector<8x128xf32> to vector<8x128xbf16>
    %c0_58 = arith.constant 0 : index
    %c0_59 = arith.constant 0 : index
    %135 = vector.load %arg3[%c0_58, %c0_59] : memref<128x512xbf16, #tpu.memory_space<vmem>>, vector<128x512xbf16>
    %cst_60 = arith.constant dense<0.000000e+00> : vector<8x512xf32>
    %136 = tpu.matmul %134, %135, %cst_60 {dimension_numbers = #tpu.dot_dimension_numbers<[1], [0], [0], [1], [0, 0, 1, 1], [], []>} : vector<8x128xbf16>, vector<128x512xbf16>, vector<8x512xf32> -> vector<8x512xf32>
    %137 = arith.addf %132, %136 : vector<8x512xf32>
    %138 = vector.extract_strided_slice %137 {offsets = [0, 0], sizes = [8, 128], strides = [1, 1]} : vector<8x512xf32> to vector<8x128xf32>
    %139 = arith.negf %138 : vector<8x128xf32>
    %140 = math.exp %139 : vector<8x128xf32>
    %cst_61 = arith.constant 1.000000e+00 : f32
    %141 = vector.broadcast %cst_61 : f32 to vector<8x128xf32>
    %142 = arith.addf %141, %140 : vector<8x128xf32>
    %143 = arith.divf %141, %142 : vector<8x128xf32>
    %144 = vector.extract_strided_slice %137 {offsets = [0, 128], sizes = [8, 128], strides = [1, 1]} : vector<8x512xf32> to vector<8x128xf32>
    %145 = arith.negf %144 : vector<8x128xf32>
    %146 = math.exp %145 : vector<8x128xf32>
    %cst_62 = arith.constant 1.000000e+00 : f32
    %147 = vector.broadcast %cst_62 : f32 to vector<8x128xf32>
    %148 = arith.addf %147, %146 : vector<8x128xf32>
    %149 = arith.divf %147, %148 : vector<8x128xf32>
    %150 = vector.extract_strided_slice %137 {offsets = [0, 256], sizes = [8, 128], strides = [1, 1]} : vector<8x512xf32> to vector<8x128xf32>
    %151 = math.tanh %150 : vector<8x128xf32>
    %152 = vector.extract_strided_slice %137 {offsets = [0, 384], sizes = [8, 128], strides = [1, 1]} : vector<8x512xf32> to vector<8x128xf32>
    %153 = arith.negf %152 : vector<8x128xf32>
    %154 = math.exp %153 : vector<8x128xf32>
    %cst_63 = arith.constant 1.000000e+00 : f32
    %155 = vector.broadcast %cst_63 : f32 to vector<8x128xf32>
    %156 = arith.addf %155, %154 : vector<8x128xf32>
    %157 = arith.divf %155, %156 : vector<8x128xf32>
    %c0_64 = arith.constant 0 : index
    %c0_65 = arith.constant 0 : index
    %158 = vector.load %arg10[%c0_64, %c0_65] : memref<8x128xf32, #tpu.memory_space<vmem>>, vector<8x128xf32>
    %159 = arith.mulf %149, %158 : vector<8x128xf32>
    %160 = arith.mulf %143, %151 : vector<8x128xf32>
    %161 = arith.addf %159, %160 : vector<8x128xf32>
    %162 = math.tanh %161 : vector<8x128xf32>
    %163 = arith.mulf %157, %162 : vector<8x128xf32>
    %c0_66 = arith.constant 0 : index
    %c0_67 = arith.constant 0 : index
    %164 = vector.load %arg10[%c0_66, %c0_67] : memref<8x128xf32, #tpu.memory_space<vmem>>, vector<8x128xf32>
    tpu.vector_store %arg10[%c0_66, %c0_67], %161 {strides = array<i32>} : memref<8x128xf32, #tpu.memory_space<vmem>>, vector<8x128xf32>,
    %c0_68 = arith.constant 0 : index
    %c0_69 = arith.constant 0 : index
    %165 = vector.load %arg9[%c0_68, %c0_69] : memref<8x128xf32, #tpu.memory_space<vmem>>, vector<8x128xf32>
    tpu.vector_store %arg9[%c0_68, %c0_69], %163 {strides = array<i32>} : memref<8x128xf32, #tpu.memory_space<vmem>>, vector<8x128xf32>,
    %166 = arith.truncf %163 : vector<8x128xf32> to vector<8x128xbf16>
    %167 = arith.index_cast %c3_i32 : i32 to index
    %c0_70 = arith.constant 0 : index
    %c0_71 = arith.constant 0 : index
    %168 = vector.load %arg6[%167, %c0_70, %c0_71] : memref<8x8x128xbf16, #tpu.memory_space<vmem>>, vector<1x8x128xbf16>
    %169 = vector.shape_cast %168 : vector<1x8x128xbf16> to vector<8x128xbf16>
    %170 = vector.shape_cast %166 : vector<8x128xbf16> to vector<1x8x128xbf16>
    tpu.vector_store %arg6[%167, %c0_70, %c0_71], %170 {strides = array<i32>} : memref<8x8x128xbf16, #tpu.memory_space<vmem>>, vector<1x8x128xbf16>,
    %c4_i32 = arith.constant 4 : i32
    %171 = arith.index_cast %c4_i32 : i32 to index
    %c0_72 = arith.constant 0 : index
    %c0_73 = arith.constant 0 : index
    %172 = vector.load %arg2[%171, %c0_72, %c0_73] : memref<8x8x512xbf16, #tpu.memory_space<vmem>>, vector<1x8x512xbf16>
    %173 = vector.shape_cast %172 : vector<1x8x512xbf16> to vector<8x512xbf16>
    %174 = arith.extf %173 : vector<8x512xbf16> to vector<8x512xf32>
    %c0_74 = arith.constant 0 : index
    %c0_75 = arith.constant 0 : index
    %175 = vector.load %arg9[%c0_74, %c0_75] : memref<8x128xf32, #tpu.memory_space<vmem>>, vector<8x128xf32>
    %176 = arith.truncf %175 : vector<8x128xf32> to vector<8x128xbf16>
    %c0_76 = arith.constant 0 : index
    %c0_77 = arith.constant 0 : index
    %177 = vector.load %arg3[%c0_76, %c0_77] : memref<128x512xbf16, #tpu.memory_space<vmem>>, vector<128x512xbf16>
    %cst_78 = arith.constant dense<0.000000e+00> : vector<8x512xf32>
    %178 = tpu.matmul %176, %177, %cst_78 {dimension_numbers = #tpu.dot_dimension_numbers<[1], [0], [0], [1], [0, 0, 1, 1], [], []>} : vector<8x128xbf16>, vector<128x512xbf16>, vector<8x512xf32> -> vector<8x512xf32>
    %179 = arith.addf %174, %178 : vector<8x512xf32>
    %180 = vector.extract_strided_slice %179 {offsets = [0, 0], sizes = [8, 128], strides = [1, 1]} : vector<8x512xf32> to vector<8x128xf32>
    %181 = arith.negf %180 : vector<8x128xf32>
    %182 = math.exp %181 : vector<8x128xf32>
    %cst_79 = arith.constant 1.000000e+00 : f32
    %183 = vector.broadcast %cst_79 : f32 to vector<8x128xf32>
    %184 = arith.addf %183, %182 : vector<8x128xf32>
    %185 = arith.divf %183, %184 : vector<8x128xf32>
    %186 = vector.extract_strided_slice %179 {offsets = [0, 128], sizes = [8, 128], strides = [1, 1]} : vector<8x512xf32> to vector<8x128xf32>
    %187 = arith.negf %186 : vector<8x128xf32>
    %188 = math.exp %187 : vector<8x128xf32>
    %cst_80 = arith.constant 1.000000e+00 : f32
    %189 = vector.broadcast %cst_80 : f32 to vector<8x128xf32>
    %190 = arith.addf %189, %188 : vector<8x128xf32>
    %191 = arith.divf %189, %190 : vector<8x128xf32>
    %192 = vector.extract_strided_slice %179 {offsets = [0, 256], sizes = [8, 128], strides = [1, 1]} : vector<8x512xf32> to vector<8x128xf32>
    %193 = math.tanh %192 : vector<8x128xf32>
    %194 = vector.extract_strided_slice %179 {offsets = [0, 384], sizes = [8, 128], strides = [1, 1]} : vector<8x512xf32> to vector<8x128xf32>
    %195 = arith.negf %194 : vector<8x128xf32>
    %196 = math.exp %195 : vector<8x128xf32>
    %cst_81 = arith.constant 1.000000e+00 : f32
    %197 = vector.broadcast %cst_81 : f32 to vector<8x128xf32>
    %198 = arith.addf %197, %196 : vector<8x128xf32>
    %199 = arith.divf %197, %198 : vector<8x128xf32>
    %c0_82 = arith.constant 0 : index
    %c0_83 = arith.constant 0 : index
    %200 = vector.load %arg10[%c0_82, %c0_83] : memref<8x128xf32, #tpu.memory_space<vmem>>, vector<8x128xf32>
    %201 = arith.mulf %191, %200 : vector<8x128xf32>
    %202 = arith.mulf %185, %193 : vector<8x128xf32>
    %203 = arith.addf %201, %202 : vector<8x128xf32>
    %204 = math.tanh %203 : vector<8x128xf32>
    %205 = arith.mulf %199, %204 : vector<8x128xf32>
    %c0_84 = arith.constant 0 : index
    %c0_85 = arith.constant 0 : index
    %206 = vector.load %arg10[%c0_84, %c0_85] : memref<8x128xf32, #tpu.memory_space<vmem>>, vector<8x128xf32>
    tpu.vector_store %arg10[%c0_84, %c0_85], %203 {strides = array<i32>} : memref<8x128xf32, #tpu.memory_space<vmem>>, vector<8x128xf32>,
    %c0_86 = arith.constant 0 : index
    %c0_87 = arith.constant 0 : index
    %207 = vector.load %arg9[%c0_86, %c0_87] : memref<8x128xf32, #tpu.memory_space<vmem>>, vector<8x128xf32>
    tpu.vector_store %arg9[%c0_86, %c0_87], %205 {strides = array<i32>} : memref<8x128xf32, #tpu.memory_space<vmem>>, vector<8x128xf32>,
    %208 = arith.truncf %205 : vector<8x128xf32> to vector<8x128xbf16>
    %209 = arith.index_cast %c4_i32 : i32 to index
    %c0_88 = arith.constant 0 : index
    %c0_89 = arith.constant 0 : index
    %210 = vector.load %arg6[%209, %c0_88, %c0_89] : memref<8x8x128xbf16, #tpu.memory_space<vmem>>, vector<1x8x128xbf16>
    %211 = vector.shape_cast %210 : vector<1x8x128xbf16> to vector<8x128xbf16>
    %212 = vector.shape_cast %208 : vector<8x128xbf16> to vector<1x8x128xbf16>
    tpu.vector_store %arg6[%209, %c0_88, %c0_89], %212 {strides = array<i32>} : memref<8x8x128xbf16, #tpu.memory_space<vmem>>, vector<1x8x128xbf16>,
    %c5_i32 = arith.constant 5 : i32
    %213 = arith.index_cast %c5_i32 : i32 to index
    %c0_90 = arith.constant 0 : index
    %c0_91 = arith.constant 0 : index
    %214 = vector.load %arg2[%213, %c0_90, %c0_91] : memref<8x8x512xbf16, #tpu.memory_space<vmem>>, vector<1x8x512xbf16>
    %215 = vector.shape_cast %214 : vector<1x8x512xbf16> to vector<8x512xbf16>
    %216 = arith.extf %215 : vector<8x512xbf16> to vector<8x512xf32>
    %c0_92 = arith.constant 0 : index
    %c0_93 = arith.constant 0 : index
    %217 = vector.load %arg9[%c0_92, %c0_93] : memref<8x128xf32, #tpu.memory_space<vmem>>, vector<8x128xf32>
    %218 = arith.truncf %217 : vector<8x128xf32> to vector<8x128xbf16>
    %c0_94 = arith.constant 0 : index
    %c0_95 = arith.constant 0 : index
    %219 = vector.load %arg3[%c0_94, %c0_95] : memref<128x512xbf16, #tpu.memory_space<vmem>>, vector<128x512xbf16>
    %cst_96 = arith.constant dense<0.000000e+00> : vector<8x512xf32>
    %220 = tpu.matmul %218, %219, %cst_96 {dimension_numbers = #tpu.dot_dimension_numbers<[1], [0], [0], [1], [0, 0, 1, 1], [], []>} : vector<8x128xbf16>, vector<128x512xbf16>, vector<8x512xf32> -> vector<8x512xf32>
    %221 = arith.addf %216, %220 : vector<8x512xf32>
    %222 = vector.extract_strided_slice %221 {offsets = [0, 0], sizes = [8, 128], strides = [1, 1]} : vector<8x512xf32> to vector<8x128xf32>
    %223 = arith.negf %222 : vector<8x128xf32>
    %224 = math.exp %223 : vector<8x128xf32>
    %cst_97 = arith.constant 1.000000e+00 : f32
    %225 = vector.broadcast %cst_97 : f32 to vector<8x128xf32>
    %226 = arith.addf %225, %224 : vector<8x128xf32>
    %227 = arith.divf %225, %226 : vector<8x128xf32>
    %228 = vector.extract_strided_slice %221 {offsets = [0, 128], sizes = [8, 128], strides = [1, 1]} : vector<8x512xf32> to vector<8x128xf32>
    %229 = arith.negf %228 : vector<8x128xf32>
    %230 = math.exp %229 : vector<8x128xf32>
    %cst_98 = arith.constant 1.000000e+00 : f32
    %231 = vector.broadcast %cst_98 : f32 to vector<8x128xf32>
    %232 = arith.addf %231, %230 : vector<8x128xf32>
    %233 = arith.divf %231, %232 : vector<8x128xf32>
    %234 = vector.extract_strided_slice %221 {offsets = [0, 256], sizes = [8, 128], strides = [1, 1]} : vector<8x512xf32> to vector<8x128xf32>
    %235 = math.tanh %234 : vector<8x128xf32>
    %236 = vector.extract_strided_slice %221 {offsets = [0, 384], sizes = [8, 128], strides = [1, 1]} : vector<8x512xf32> to vector<8x128xf32>
    %237 = arith.negf %236 : vector<8x128xf32>
    %238 = math.exp %237 : vector<8x128xf32>
    %cst_99 = arith.constant 1.000000e+00 : f32
    %239 = vector.broadcast %cst_99 : f32 to vector<8x128xf32>
    %240 = arith.addf %239, %238 : vector<8x128xf32>
    %241 = arith.divf %239, %240 : vector<8x128xf32>
    %c0_100 = arith.constant 0 : index
    %c0_101 = arith.constant 0 : index
    %242 = vector.load %arg10[%c0_100, %c0_101] : memref<8x128xf32, #tpu.memory_space<vmem>>, vector<8x128xf32>
    %243 = arith.mulf %233, %242 : vector<8x128xf32>
    %244 = arith.mulf %227, %235 : vector<8x128xf32>
    %245 = arith.addf %243, %244 : vector<8x128xf32>
    %246 = math.tanh %245 : vector<8x128xf32>
    %247 = arith.mulf %241, %246 : vector<8x128xf32>
    %c0_102 = arith.constant 0 : index
    %c0_103 = arith.constant 0 : index
    %248 = vector.load %arg10[%c0_102, %c0_103] : memref<8x128xf32, #tpu.memory_space<vmem>>, vector<8x128xf32>
    tpu.vector_store %arg10[%c0_102, %c0_103], %245 {strides = array<i32>} : memref<8x128xf32, #tpu.memory_space<vmem>>, vector<8x128xf32>,
    %c0_104 = arith.constant 0 : index
    %c0_105 = arith.constant 0 : index
    %249 = vector.load %arg9[%c0_104, %c0_105] : memref<8x128xf32, #tpu.memory_space<vmem>>, vector<8x128xf32>
    tpu.vector_store %arg9[%c0_104, %c0_105], %247 {strides = array<i32>} : memref<8x128xf32, #tpu.memory_space<vmem>>, vector<8x128xf32>,
    %250 = arith.truncf %247 : vector<8x128xf32> to vector<8x128xbf16>
    %251 = arith.index_cast %c5_i32 : i32 to index
    %c0_106 = arith.constant 0 : index
    %c0_107 = arith.constant 0 : index
    %252 = vector.load %arg6[%251, %c0_106, %c0_107] : memref<8x8x128xbf16, #tpu.memory_space<vmem>>, vector<1x8x128xbf16>
    %253 = vector.shape_cast %252 : vector<1x8x128xbf16> to vector<8x128xbf16>
    %254 = vector.shape_cast %250 : vector<8x128xbf16> to vector<1x8x128xbf16>
    tpu.vector_store %arg6[%251, %c0_106, %c0_107], %254 {strides = array<i32>} : memref<8x8x128xbf16, #tpu.memory_space<vmem>>, vector<1x8x128xbf16>,
    %c6_i32 = arith.constant 6 : i32
    %255 = arith.index_cast %c6_i32 : i32 to index
    %c0_108 = arith.constant 0 : index
    %c0_109 = arith.constant 0 : index
    %256 = vector.load %arg2[%255, %c0_108, %c0_109] : memref<8x8x512xbf16, #tpu.memory_space<vmem>>, vector<1x8x512xbf16>
    %257 = vector.shape_cast %256 : vector<1x8x512xbf16> to vector<8x512xbf16>
    %258 = arith.extf %257 : vector<8x512xbf16> to vector<8x512xf32>
    %c0_110 = arith.constant 0 : index
    %c0_111 = arith.constant 0 : index
    %259 = vector.load %arg9[%c0_110, %c0_111] : memref<8x128xf32, #tpu.memory_space<vmem>>, vector<8x128xf32>
    %260 = arith.truncf %259 : vector<8x128xf32> to vector<8x128xbf16>
    %c0_112 = arith.constant 0 : index
    %c0_113 = arith.constant 0 : index
    %261 = vector.load %arg3[%c0_112, %c0_113] : memref<128x512xbf16, #tpu.memory_space<vmem>>, vector<128x512xbf16>
    %cst_114 = arith.constant dense<0.000000e+00> : vector<8x512xf32>
    %262 = tpu.matmul %260, %261, %cst_114 {dimension_numbers = #tpu.dot_dimension_numbers<[1], [0], [0], [1], [0, 0, 1, 1], [], []>} : vector<8x128xbf16>, vector<128x512xbf16>, vector<8x512xf32> -> vector<8x512xf32>
    %263 = arith.addf %258, %262 : vector<8x512xf32>
    %264 = vector.extract_strided_slice %263 {offsets = [0, 0], sizes = [8, 128], strides = [1, 1]} : vector<8x512xf32> to vector<8x128xf32>
    %265 = arith.negf %264 : vector<8x128xf32>
    %266 = math.exp %265 : vector<8x128xf32>
    %cst_115 = arith.constant 1.000000e+00 : f32
    %267 = vector.broadcast %cst_115 : f32 to vector<8x128xf32>
    %268 = arith.addf %267, %266 : vector<8x128xf32>
    %269 = arith.divf %267, %268 : vector<8x128xf32>
    %270 = vector.extract_strided_slice %263 {offsets = [0, 128], sizes = [8, 128], strides = [1, 1]} : vector<8x512xf32> to vector<8x128xf32>
    %271 = arith.negf %270 : vector<8x128xf32>
    %272 = math.exp %271 : vector<8x128xf32>
    %cst_116 = arith.constant 1.000000e+00 : f32
    %273 = vector.broadcast %cst_116 : f32 to vector<8x128xf32>
    %274 = arith.addf %273, %272 : vector<8x128xf32>
    %275 = arith.divf %273, %274 : vector<8x128xf32>
    %276 = vector.extract_strided_slice %263 {offsets = [0, 256], sizes = [8, 128], strides = [1, 1]} : vector<8x512xf32> to vector<8x128xf32>
    %277 = math.tanh %276 : vector<8x128xf32>
    %278 = vector.extract_strided_slice %263 {offsets = [0, 384], sizes = [8, 128], strides = [1, 1]} : vector<8x512xf32> to vector<8x128xf32>
    %279 = arith.negf %278 : vector<8x128xf32>
    %280 = math.exp %279 : vector<8x128xf32>
    %cst_117 = arith.constant 1.000000e+00 : f32
    %281 = vector.broadcast %cst_117 : f32 to vector<8x128xf32>
    %282 = arith.addf %281, %280 : vector<8x128xf32>
    %283 = arith.divf %281, %282 : vector<8x128xf32>
    %c0_118 = arith.constant 0 : index
    %c0_119 = arith.constant 0 : index
    %284 = vector.load %arg10[%c0_118, %c0_119] : memref<8x128xf32, #tpu.memory_space<vmem>>, vector<8x128xf32>
    %285 = arith.mulf %275, %284 : vector<8x128xf32>
    %286 = arith.mulf %269, %277 : vector<8x128xf32>
    %287 = arith.addf %285, %286 : vector<8x128xf32>
    %288 = math.tanh %287 : vector<8x128xf32>
    %289 = arith.mulf %283, %288 : vector<8x128xf32>
    %c0_120 = arith.constant 0 : index
    %c0_121 = arith.constant 0 : index
    %290 = vector.load %arg10[%c0_120, %c0_121] : memref<8x128xf32, #tpu.memory_space<vmem>>, vector<8x128xf32>
    tpu.vector_store %arg10[%c0_120, %c0_121], %287 {strides = array<i32>} : memref<8x128xf32, #tpu.memory_space<vmem>>, vector<8x128xf32>,
    %c0_122 = arith.constant 0 : index
    %c0_123 = arith.constant 0 : index
    %291 = vector.load %arg9[%c0_122, %c0_123] : memref<8x128xf32, #tpu.memory_space<vmem>>, vector<8x128xf32>
    tpu.vector_store %arg9[%c0_122, %c0_123], %289 {strides = array<i32>} : memref<8x128xf32, #tpu.memory_space<vmem>>, vector<8x128xf32>,
    %292 = arith.truncf %289 : vector<8x128xf32> to vector<8x128xbf16>
    %293 = arith.index_cast %c6_i32 : i32 to index
    %c0_124 = arith.constant 0 : index
    %c0_125 = arith.constant 0 : index
    %294 = vector.load %arg6[%293, %c0_124, %c0_125] : memref<8x8x128xbf16, #tpu.memory_space<vmem>>, vector<1x8x128xbf16>
    %295 = vector.shape_cast %294 : vector<1x8x128xbf16> to vector<8x128xbf16>
    %296 = vector.shape_cast %292 : vector<8x128xbf16> to vector<1x8x128xbf16>
    tpu.vector_store %arg6[%293, %c0_124, %c0_125], %296 {strides = array<i32>} : memref<8x8x128xbf16, #tpu.memory_space<vmem>>, vector<1x8x128xbf16>,
    %c7_i32 = arith.constant 7 : i32
    %297 = arith.index_cast %c7_i32 : i32 to index
    %c0_126 = arith.constant 0 : index
    %c0_127 = arith.constant 0 : index
    %298 = vector.load %arg2[%297, %c0_126, %c0_127] : memref<8x8x512xbf16, #tpu.memory_space<vmem>>, vector<1x8x512xbf16>
    %299 = vector.shape_cast %298 : vector<1x8x512xbf16> to vector<8x512xbf16>
    %300 = arith.extf %299 : vector<8x512xbf16> to vector<8x512xf32>
    %c0_128 = arith.constant 0 : index
    %c0_129 = arith.constant 0 : index
    %301 = vector.load %arg9[%c0_128, %c0_129] : memref<8x128xf32, #tpu.memory_space<vmem>>, vector<8x128xf32>
    %302 = arith.truncf %301 : vector<8x128xf32> to vector<8x128xbf16>
    %c0_130 = arith.constant 0 : index
    %c0_131 = arith.constant 0 : index
    %303 = vector.load %arg3[%c0_130, %c0_131] : memref<128x512xbf16, #tpu.memory_space<vmem>>, vector<128x512xbf16>
    %cst_132 = arith.constant dense<0.000000e+00> : vector<8x512xf32>
    %304 = tpu.matmul %302, %303, %cst_132 {dimension_numbers = #tpu.dot_dimension_numbers<[1], [0], [0], [1], [0, 0, 1, 1], [], []>} : vector<8x128xbf16>, vector<128x512xbf16>, vector<8x512xf32> -> vector<8x512xf32>
    %305 = arith.addf %300, %304 : vector<8x512xf32>
    %306 = vector.extract_strided_slice %305 {offsets = [0, 0], sizes = [8, 128], strides = [1, 1]} : vector<8x512xf32> to vector<8x128xf32>
    %307 = arith.negf %306 : vector<8x128xf32>
    %308 = math.exp %307 : vector<8x128xf32>
    %cst_133 = arith.constant 1.000000e+00 : f32
    %309 = vector.broadcast %cst_133 : f32 to vector<8x128xf32>
    %310 = arith.addf %309, %308 : vector<8x128xf32>
    %311 = arith.divf %309, %310 : vector<8x128xf32>
    %312 = vector.extract_strided_slice %305 {offsets = [0, 128], sizes = [8, 128], strides = [1, 1]} : vector<8x512xf32> to vector<8x128xf32>
    %313 = arith.negf %312 : vector<8x128xf32>
    %314 = math.exp %313 : vector<8x128xf32>
    %cst_134 = arith.constant 1.000000e+00 : f32
    %315 = vector.broadcast %cst_134 : f32 to vector<8x128xf32>
    %316 = arith.addf %315, %314 : vector<8x128xf32>
    %317 = arith.divf %315, %316 : vector<8x128xf32>
    %318 = vector.extract_strided_slice %305 {offsets = [0, 256], sizes = [8, 128], strides = [1, 1]} : vector<8x512xf32> to vector<8x128xf32>
    %319 = math.tanh %318 : vector<8x128xf32>
    %320 = vector.extract_strided_slice %305 {offsets = [0, 384], sizes = [8, 128], strides = [1, 1]} : vector<8x512xf32> to vector<8x128xf32>
    %321 = arith.negf %320 : vector<8x128xf32>
    %322 = math.exp %321 : vector<8x128xf32>
    %cst_135 = arith.constant 1.000000e+00 : f32
    %323 = vector.broadcast %cst_135 : f32 to vector<8x128xf32>
    %324 = arith.addf %323, %322 : vector<8x128xf32>
    %325 = arith.divf %323, %324 : vector<8x128xf32>
    %c0_136 = arith.constant 0 : index
    %c0_137 = arith.constant 0 : index
    %326 = vector.load %arg10[%c0_136, %c0_137] : memref<8x128xf32, #tpu.memory_space<vmem>>, vector<8x128xf32>
    %327 = arith.mulf %317, %326 : vector<8x128xf32>
    %328 = arith.mulf %311, %319 : vector<8x128xf32>
    %329 = arith.addf %327, %328 : vector<8x128xf32>
    %330 = math.tanh %329 : vector<8x128xf32>
    %331 = arith.mulf %325, %330 : vector<8x128xf32>
    %c0_138 = arith.constant 0 : index
    %c0_139 = arith.constant 0 : index
    %332 = vector.load %arg10[%c0_138, %c0_139] : memref<8x128xf32, #tpu.memory_space<vmem>>, vector<8x128xf32>
    tpu.vector_store %arg10[%c0_138, %c0_139], %329 {strides = array<i32>} : memref<8x128xf32, #tpu.memory_space<vmem>>, vector<8x128xf32>,
    %c0_140 = arith.constant 0 : index
    %c0_141 = arith.constant 0 : index
    %333 = vector.load %arg9[%c0_140, %c0_141] : memref<8x128xf32, #tpu.memory_space<vmem>>, vector<8x128xf32>
    tpu.vector_store %arg9[%c0_140, %c0_141], %331 {strides = array<i32>} : memref<8x128xf32, #tpu.memory_space<vmem>>, vector<8x128xf32>,
    %334 = arith.truncf %331 : vector<8x128xf32> to vector<8x128xbf16>
    %335 = arith.index_cast %c7_i32 : i32 to index
    %c0_142 = arith.constant 0 : index
    %c0_143 = arith.constant 0 : index
    %336 = vector.load %arg6[%335, %c0_142, %c0_143] : memref<8x8x128xbf16, #tpu.memory_space<vmem>>, vector<1x8x128xbf16>
    %337 = vector.shape_cast %336 : vector<1x8x128xbf16> to vector<8x128xbf16>
    %338 = vector.shape_cast %334 : vector<8x128xbf16> to vector<1x8x128xbf16>
    tpu.vector_store %arg6[%335, %c0_142, %c0_143], %338 {strides = array<i32>} : memref<8x8x128xbf16, #tpu.memory_space<vmem>>, vector<1x8x128xbf16>,
    %c8_i32 = arith.constant 8 : i32
    %c0_i32_144 = arith.constant 0 : i32
    %339 = arith.cmpi eq, %arg1, %c0_i32_144 : i32
    %340 = arith.extui %339 : i1 to i32
    %c0_i32_145 = arith.constant 0 : i32
    %341 = arith.cmpi ne, %340, %c0_i32_145 : i32
    scf.if %341 {
      %c0_146 = arith.constant 0 : index
      %c0_147 = arith.constant 0 : index
      %342 = vector.load %arg9[%c0_146, %c0_147] : memref<8x128xf32, #tpu.memory_space<vmem>>, vector<8x128xf32>
      %c0_148 = arith.constant 0 : index
      %c0_149 = arith.constant 0 : index
      %343 = vector.load %arg7[%c0_148, %c0_149] : memref<8x128xf32, #tpu.memory_space<vmem>>, vector<8x128xf32>
      tpu.vector_store %arg7[%c0_148, %c0_149], %342 {strides = array<i32>} : memref<8x128xf32, #tpu.memory_space<vmem>>, vector<8x128xf32>,
      %c0_150 = arith.constant 0 : index
      %c0_151 = arith.constant 0 : index
      %344 = vector.load %arg10[%c0_150, %c0_151] : memref<8x128xf32, #tpu.memory_space<vmem>>, vector<8x128xf32>
      %c0_152 = arith.constant 0 : index
      %c0_153 = arith.constant 0 : index
      %345 = vector.load %arg8[%c0_152, %c0_153] : memref<8x128xf32, #tpu.memory_space<vmem>>, vector<8x128xf32>
      tpu.vector_store %arg8[%c0_152, %c0_153], %344 {strides = array<i32>} : memref<8x128xf32, #tpu.memory_space<vmem>>, vector<8x128xf32>,
    } else {
    }
    return
  }
  func.func @transform_0(%arg0: i32, %arg1: i32) -> (i32, i32, i32) {
    %c0_i32 = arith.constant 0 : i32
    %c0_i32_0 = arith.constant 0 : i32
    return %arg1, %arg0, %c0_i32 : i32, i32, i32
  }
  func.func @transform_1(%arg0: i32, %arg1: i32) -> (i32, i32) {
    %c0_i32 = arith.constant 0 : i32
    %c0_i32_0 = arith.constant 0 : i32
    %c0_i32_1 = arith.constant 0 : i32
    return %c0_i32, %c0_i32_0 : i32, i32
  }
  func.func @transform_2(%arg0: i32, %arg1: i32) -> (i32, i32) {
    %c0_i32 = arith.constant 0 : i32
    %c0_i32_0 = arith.constant 0 : i32
    return %arg0, %c0_i32 : i32, i32
  }
  func.func @transform_3(%arg0: i32, %arg1: i32) -> (i32, i32) {
    %c0_i32 = arith.constant 0 : i32
    %c0_i32_0 = arith.constant 0 : i32
    return %arg0, %c0_i32 : i32, i32
  }
  func.func @transform_4(%arg0: i32, %arg1: i32) -> (i32, i32, i32) {
    %c0_i32 = arith.constant 0 : i32
    %c0_i32_0 = arith.constant 0 : i32
    return %arg1, %arg0, %c0_i32 : i32, i32, i32
  }
  func.func @transform_5(%arg0: i32, %arg1: i32) -> (i32, i32) {
    %c0_i32 = arith.constant 0 : i32
    %c0_i32_0 = arith.constant 0 : i32
    return %arg0, %c0_i32 : i32, i32
  }
  func.func @transform_6(%arg0: i32, %arg1: i32) -> (i32, i32) {
    %c0_i32 = arith.constant 0 : i32
    %c0_i32_0 = arith.constant 0 : i32
    return %arg0, %c0_i32 : i32, i32
  }
}

module attributes {stable_mosaic.version = 11 : i64} {
  func.func @_lstm_recurrent_kernel(%arg0: i32, %arg1: i32, %arg2: memref<8x8x512xbf16, #tpu.memory_space<vmem>>, %arg3: memref<128x512xbf16, #tpu.memory_space<vmem>>, %arg4: memref<8x128xf32, #tpu.memory_space<vmem>>, %arg5: memref<8x128xf32, #tpu.memory_space<vmem>>, %arg6: memref<8x8x128xbf16, #tpu.memory_space<vmem>>, %arg7: memref<8x128xf32, #tpu.memory_space<vmem>>, %arg8: memref<8x128xf32, #tpu.memory_space<vmem>>, %arg9: memref<8x128xf32, #tpu.memory_space<vmem>>, %arg10: memref<8x128xf32, #tpu.memory_space<vmem>>) attributes {dimension_semantics = [#tpu.dimension_semantics<parallel>, #tpu.dimension_semantics<arbitrary>], iteration_bounds = array<i64: 1, 1>, scalar_prefetch = 0 : i64, scratch_operands = 2 : i64, tpu.core_type = #tpu.core_type<tc>, window_params = [{transform_indices = @transform_0, window_bounds = array<i64: 8, 8, 512>}, {pipeline_mode = #tpu.pipeline_mode<synchronous>, transform_indices = @transform_1, window_bounds = array<i64: 128, 512>}, {transform_indices = @transform_2, window_bounds = array<i64: 8, 128>}, {transform_indices = @transform_3, window_bounds = array<i64: 8, 128>}, {transform_indices = @transform_4, window_bounds = array<i64: 8, 8, 128>}, {transform_indices = @transform_5, window_bounds = array<i64: 8, 128>}, {transform_indices = @transform_6, window_bounds = array<i64: 8, 128>}]} {
    %c0_i32 = arith.constant 0 : i32
    %0 = arith.cmpi eq, %arg1, %c0_i32 : i32
    %1 = arith.extui %0 : i1 to i32
    %c0_i32_0 = arith.constant 0 : i32
    %2 = arith.cmpi ne, %1, %c0_i32_0 : i32
    scf.if %2 {
      %c0_146 = arith.constant 0 : index
      %c0_147 = arith.constant 0 : index
      %342 = vector.load %arg4[%c0_146, %c0_147] : memref<8x128xf32, #tpu.memory_space<vmem>>, vector<8x128xf32>
      %c0_148 = arith.constant 0 : index
      %c0_149 = arith.constant 0 : index
      %343 = vector.load %arg9[%c0_148, %c0_149] : memref<8x128xf32, #tpu.memory_space<vmem>>, vector<8x128xf32>
      tpu.vector_store %arg9[%c0_148, %c0_149], %342 {strides = array<i32>} : memref<8x128xf32, #tpu.memory_space<vmem>>, vector<8x128xf32>,
      %c0_150 = arith.constant 0 : index
      %c0_151 = arith.constant 0 : index
      %344 = vector.load %arg5[%c0_150, %c0_151] : memref<8x128xf32, #tpu.memory_space<vmem>>, vector<8x128xf32>
      %c0_152 = arith.constant 0 : index
      %c0_153 = arith.constant 0 : index
      %345 = vector.load %arg10[%c0_152, %c0_153] : memref<8x128xf32, #tpu.memory_space<vmem>>, vector<8x128xf32>
      tpu.vector_store %arg10[%c0_152, %c0_153], %344 {strides = array<i32>} : memref<8x128xf32, #tpu.memory_space<vmem>>, vector<8x128xf32>,
    } else {
    }
    %c0_i32_1 = arith.constant 0 : i32
    %3 = arith.index_cast %c0_i32_1 : i32 to index
    %c0 = arith.constant 0 : index
    %c0_2 = arith.constant 0 : index
    %4 = vector.load %arg2[%3, %c0, %c0_2] : memref<8x8x512xbf16, #tpu.memory_space<vmem>>, vector<1x8x512xbf16>
    %5 = vector.shape_cast %4 : vector<1x8x512xbf16> to vector<8x512xbf16>
    %6 = arith.extf %5 : vector<8x512xbf16> to vector<8x512xf32>
    %c0_3 = arith.constant 0 : index
    %c0_4 = arith.constant 0 : index
    %7 = vector.load %arg9[%c0_3, %c0_4] : memref<8x128xf32, #tpu.memory_space<vmem>>, vector<8x128xf32>
    %8 = arith.truncf %7 : vector<8x128xf32> to vector<8x128xbf16>
    %c0_5 = arith.constant 0 : index
    %c0_6 = arith.constant 0 : index
    %9 = vector.load %arg3[%c0_5, %c0_6] : memref<128x512xbf16, #tpu.memory_space<vmem>>, vector<128x512xbf16>
    %cst = arith.constant dense<0.000000e+00> : vector<8x512xf32>
    %10 = tpu.matmul %8, %9, %cst {dimension_numbers = #tpu.dot_dimension_numbers<[1], [0], [0], [1], [0, 0, 1, 1], [], []>} : vector<8x128xbf16>, vector<128x512xbf16>, vector<8x512xf32> -> vector<8x512xf32>
    %11 = arith.addf %6, %10 : vector<8x512xf32>
    %12 = vector.extract_strided_slice %11 {offsets = [0, 0], sizes = [8, 128], strides = [1, 1]} : vector<8x512xf32> to vector<8x128xf32>
    %13 = arith.negf %12 : vector<8x128xf32>
    %14 = math.exp %13 : vector<8x128xf32>
    %cst_7 = arith.constant 1.000000e+00 : f32
    %15 = vector.broadcast %cst_7 : f32 to vector<8x128xf32>
    %16 = arith.addf %15, %14 : vector<8x128xf32>
    %17 = arith.divf %15, %16 : vector<8x128xf32>
    %18 = vector.extract_strided_slice %11 {offsets = [0, 128], sizes = [8, 128], strides = [1, 1]} : vector<8x512xf32> to vector<8x128xf32>
    %19 = arith.negf %18 : vector<8x128xf32>
    %20 = math.exp %19 : vector<8x128xf32>
    %cst_8 = arith.constant 1.000000e+00 : f32
    %21 = vector.broadcast %cst_8 : f32 to vector<8x128xf32>
    %22 = arith.addf %21, %20 : vector<8x128xf32>
    %23 = arith.divf %21, %22 : vector<8x128xf32>
    %24 = vector.extract_strided_slice %11 {offsets = [0, 256], sizes = [8, 128], strides = [1, 1]} : vector<8x512xf32> to vector<8x128xf32>
    %25 = math.tanh %24 : vector<8x128xf32>
    %26 = vector.extract_strided_slice %11 {offsets = [0, 384], sizes = [8, 128], strides = [1, 1]} : vector<8x512xf32> to vector<8x128xf32>
    %27 = arith.negf %26 : vector<8x128xf32>
    %28 = math.exp %27 : vector<8x128xf32>
    %cst_9 = arith.constant 1.000000e+00 : f32
    %29 = vector.broadcast %cst_9 : f32 to vector<8x128xf32>
    %30 = arith.addf %29, %28 : vector<8x128xf32>
    %31 = arith.divf %29, %30 : vector<8x128xf32>
    %c0_10 = arith.constant 0 : index
    %c0_11 = arith.constant 0 : index
    %32 = vector.load %arg10[%c0_10, %c0_11] : memref<8x128xf32, #tpu.memory_space<vmem>>, vector<8x128xf32>
    %33 = arith.mulf %23, %32 : vector<8x128xf32>
    %34 = arith.mulf %17, %25 : vector<8x128xf32>
    %35 = arith.addf %33, %34 : vector<8x128xf32>
    %36 = math.tanh %35 : vector<8x128xf32>
    %37 = arith.mulf %31, %36 : vector<8x128xf32>
    %c0_12 = arith.constant 0 : index
    %c0_13 = arith.constant 0 : index
    %38 = vector.load %arg10[%c0_12, %c0_13] : memref<8x128xf32, #tpu.memory_space<vmem>>, vector<8x128xf32>
    tpu.vector_store %arg10[%c0_12, %c0_13], %35 {strides = array<i32>} : memref<8x128xf32, #tpu.memory_space<vmem>>, vector<8x128xf32>,
    %c0_14 = arith.constant 0 : index
    %c0_15 = arith.constant 0 : index
    %39 = vector.load %arg9[%c0_14, %c0_15] : memref<8x128xf32, #tpu.memory_space<vmem>>, vector<8x128xf32>
    tpu.vector_store %arg9[%c0_14, %c0_15], %37 {strides = array<i32>} : memref<8x128xf32, #tpu.memory_space<vmem>>, vector<8x128xf32>,
    %40 = arith.truncf %37 : vector<8x128xf32> to vector<8x128xbf16>
    %41 = arith.index_cast %c0_i32_1 : i32 to index
    %c0_16 = arith.constant 0 : index
    %c0_17 = arith.constant 0 : index
    %42 = vector.load %arg6[%41, %c0_16, %c0_17] : memref<8x8x128xbf16, #tpu.memory_space<vmem>>, vector<1x8x128xbf16>
    %43 = vector.shape_cast %42 : vector<1x8x128xbf16> to vector<8x128xbf16>
    %44 = vector.shape_cast %40 : vector<8x128xbf16> to vector<1x8x128xbf16>
    tpu.vector_store %arg6[%41, %c0_16, %c0_17], %44 {strides = array<i32>} : memref<8x8x128xbf16, #tpu.memory_space<vmem>>, vector<1x8x128xbf16>,
    %c1_i32 = arith.constant 1 : i32
    %45 = arith.index_cast %c1_i32 : i32 to index
    %c0_18 = arith.constant 0 : index
    %c0_19 = arith.constant 0 : index
    %46 = vector.load %arg2[%45, %c0_18, %c0_19] : memref<8x8x512xbf16, #tpu.memory_space<vmem>>, vector<1x8x512xbf16>
    %47 = vector.shape_cast %46 : vector<1x8x512xbf16> to vector<8x512xbf16>
    %48 = arith.extf %47 : vector<8x512xbf16> to vector<8x512xf32>
    %c0_20 = arith.constant 0 : index
    %c0_21 = arith.constant 0 : index
    %49 = vector.load %arg9[%c0_20, %c0_21] : memref<8x128xf32, #tpu.memory_space<vmem>>, vector<8x128xf32>
    %50 = arith.truncf %49 : vector<8x128xf32> to vector<8x128xbf16>
    %c0_22 = arith.constant 0 : index
    %c0_23 = arith.constant 0 : index
    %51 = vector.load %arg3[%c0_22, %c0_23] : memref<128x512xbf16, #tpu.memory_space<vmem>>, vector<128x512xbf16>
    %cst_24 = arith.constant dense<0.000000e+00> : vector<8x512xf32>
    %52 = tpu.matmul %50, %51, %cst_24 {dimension_numbers = #tpu.dot_dimension_numbers<[1], [0], [0], [1], [0, 0, 1, 1], [], []>} : vector<8x128xbf16>, vector<128x512xbf16>, vector<8x512xf32> -> vector<8x512xf32>
    %53 = arith.addf %48, %52 : vector<8x512xf32>
    %54 = vector.extract_strided_slice %53 {offsets = [0, 0], sizes = [8, 128], strides = [1, 1]} : vector<8x512xf32> to vector<8x128xf32>
    %55 = arith.negf %54 : vector<8x128xf32>
    %56 = math.exp %55 : vector<8x128xf32>
    %cst_25 = arith.constant 1.000000e+00 : f32
    %57 = vector.broadcast %cst_25 : f32 to vector<8x128xf32>
    %58 = arith.addf %57, %56 : vector<8x128xf32>
    %59 = arith.divf %57, %58 : vector<8x128xf32>
    %60 = vector.extract_strided_slice %53 {offsets = [0, 128], sizes = [8, 128], strides = [1, 1]} : vector<8x512xf32> to vector<8x128xf32>
    %61 = arith.negf %60 : vector<8x128xf32>
    %62 = math.exp %61 : vector<8x128xf32>
    %cst_26 = arith.constant 1.000000e+00 : f32
    %63 = vector.broadcast %cst_26 : f32 to vector<8x128xf32>
    %64 = arith.addf %63, %62 : vector<8x128xf32>
    %65 = arith.divf %63, %64 : vector<8x128xf32>
    %66 = vector.extract_strided_slice %53 {offsets = [0, 256], sizes = [8, 128], strides = [1, 1]} : vector<8x512xf32> to vector<8x128xf32>
    %67 = math.tanh %66 : vector<8x128xf32>
    %68 = vector.extract_strided_slice %53 {offsets = [0, 384], sizes = [8, 128], strides = [1, 1]} : vector<8x512xf32> to vector<8x128xf32>
    %69 = arith.negf %68 : vector<8x128xf32>
    %70 = math.exp %69 : vector<8x128xf32>
    %cst_27 = arith.constant 1.000000e+00 : f32
    %71 = vector.broadcast %cst_27 : f32 to vector<8x128xf32>
    %72 = arith.addf %71, %70 : vector<8x128xf32>
    %73 = arith.divf %71, %72 : vector<8x128xf32>
    %c0_28 = arith.constant 0 : index
    %c0_29 = arith.constant 0 : index
    %74 = vector.load %arg10[%c0_28, %c0_29] : memref<8x128xf32, #tpu.memory_space<vmem>>, vector<8x128xf32>
    %75 = arith.mulf %65, %74 : vector<8x128xf32>
    %76 = arith.mulf %59, %67 : vector<8x128xf32>
    %77 = arith.addf %75, %76 : vector<8x128xf32>
    %78 = math.tanh %77 : vector<8x128xf32>
    %79 = arith.mulf %73, %78 : vector<8x128xf32>
    %c0_30 = arith.constant 0 : index
    %c0_31 = arith.constant 0 : index
    %80 = vector.load %arg10[%c0_30, %c0_31] : memref<8x128xf32, #tpu.memory_space<vmem>>, vector<8x128xf32>
    tpu.vector_store %arg10[%c0_30, %c0_31], %77 {strides = array<i32>} : memref<8x128xf32, #tpu.memory_space<vmem>>, vector<8x128xf32>,
    %c0_32 = arith.constant 0 : index
    %c0_33 = arith.constant 0 : index
    %81 = vector.load %arg9[%c0_32, %c0_33] : memref<8x128xf32, #tpu.memory_space<vmem>>, vector<8x128xf32>
    tpu.vector_store %arg9[%c0_32, %c0_33], %79 {strides = array<i32>} : memref<8x128xf32, #tpu.memory_space<vmem>>, vector<8x128xf32>,
    %82 = arith.truncf %79 : vector<8x128xf32> to vector<8x128xbf16>
    %83 = arith.index_cast %c1_i32 : i32 to index
    %c0_34 = arith.constant 0 : index
    %c0_35 = arith.constant 0 : index
    %84 = vector.load %arg6[%83, %c0_34, %c0_35] : memref<8x8x128xbf16, #tpu.memory_space<vmem>>, vector<1x8x128xbf16>
    %85 = vector.shape_cast %84 : vector<1x8x128xbf16> to vector<8x128xbf16>
    %86 = vector.shape_cast %82 : vector<8x128xbf16> to vector<1x8x128xbf16>
    tpu.vector_store %arg6[%83, %c0_34, %c0_35], %86 {strides = array<i32>} : memref<8x8x128xbf16, #tpu.memory_space<vmem>>, vector<1x8x128xbf16>,
    %c2_i32 = arith.constant 2 : i32
    %87 = arith.index_cast %c2_i32 : i32 to index
    %c0_36 = arith.constant 0 : index
    %c0_37 = arith.constant 0 : index
    %88 = vector.load %arg2[%87, %c0_36, %c0_37] : memref<8x8x512xbf16, #tpu.memory_space<vmem>>, vector<1x8x512xbf16>
    %89 = vector.shape_cast %88 : vector<1x8x512xbf16> to vector<8x512xbf16>
    %90 = arith.extf %89 : vector<8x512xbf16> to vector<8x512xf32>
    %c0_38 = arith.constant 0 : index
    %c0_39 = arith.constant 0 : index
    %91 = vector.load %arg9[%c0_38, %c0_39] : memref<8x128xf32, #tpu.memory_space<vmem>>, vector<8x128xf32>
    %92 = arith.truncf %91 : vector<8x128xf32> to vector<8x128xbf16>
    %c0_40 = arith.constant 0 : index
    %c0_41 = arith.constant 0 : index
    %93 = vector.load %arg3[%c0_40, %c0_41] : memref<128x512xbf16, #tpu.memory_space<vmem>>, vector<128x512xbf16>
    %cst_42 = arith.constant dense<0.000000e+00> : vector<8x512xf32>
    %94 = tpu.matmul %92, %93, %cst_42 {dimension_numbers = #tpu.dot_dimension_numbers<[1], [0], [0], [1], [0, 0, 1, 1], [], []>} : vector<8x128xbf16>, vector<128x512xbf16>, vector<8x512xf32> -> vector<8x512xf32>
    %95 = arith.addf %90, %94 : vector<8x512xf32>
    %96 = vector.extract_strided_slice %95 {offsets = [0, 0], sizes = [8, 128], strides = [1, 1]} : vector<8x512xf32> to vector<8x128xf32>
    %97 = arith.negf %96 : vector<8x128xf32>
    %98 = math.exp %97 : vector<8x128xf32>
    %cst_43 = arith.constant 1.000000e+00 : f32
    %99 = vector.broadcast %cst_43 : f32 to vector<8x128xf32>
    %100 = arith.addf %99, %98 : vector<8x128xf32>
    %101 = arith.divf %99, %100 : vector<8x128xf32>
    %102 = vector.extract_strided_slice %95 {offsets = [0, 128], sizes = [8, 128], strides = [1, 1]} : vector<8x512xf32> to vector<8x128xf32>
    %103 = arith.negf %102 : vector<8x128xf32>
    %104 = math.exp %103 : vector<8x128xf32>
    %cst_44 = arith.constant 1.000000e+00 : f32
    %105 = vector.broadcast %cst_44 : f32 to vector<8x128xf32>
    %106 = arith.addf %105, %104 : vector<8x128xf32>
    %107 = arith.divf %105, %106 : vector<8x128xf32>
    %108 = vector.extract_strided_slice %95 {offsets = [0, 256], sizes = [8, 128], strides = [1, 1]} : vector<8x512xf32> to vector<8x128xf32>
    %109 = math.tanh %108 : vector<8x128xf32>
    %110 = vector.extract_strided_slice %95 {offsets = [0, 384], sizes = [8, 128], strides = [1, 1]} : vector<8x512xf32> to vector<8x128xf32>
    %111 = arith.negf %110 : vector<8x128xf32>
    %112 = math.exp %111 : vector<8x128xf32>
    %cst_45 = arith.constant 1.000000e+00 : f32
    %113 = vector.broadcast %cst_45 : f32 to vector<8x128xf32>
    %114 = arith.addf %113, %112 : vector<8x128xf32>
    %115 = arith.divf %113, %114 : vector<8x128xf32>
    %c0_46 = arith.constant 0 : index
    %c0_47 = arith.constant 0 : index
    %116 = vector.load %arg10[%c0_46, %c0_47] : memref<8x128xf32, #tpu.memory_space<vmem>>, vector<8x128xf32>
    %117 = arith.mulf %107, %116 : vector<8x128xf32>
    %118 = arith.mulf %101, %109 : vector<8x128xf32>
    %119 = arith.addf %117, %118 : vector<8x128xf32>
    %120 = math.tanh %119 : vector<8x128xf32>
    %121 = arith.mulf %115, %120 : vector<8x128xf32>
    %c0_48 = arith.constant 0 : index
    %c0_49 = arith.constant 0 : index
    %122 = vector.load %arg10[%c0_48, %c0_49] : memref<8x128xf32, #tpu.memory_space<vmem>>, vector<8x128xf32>
    tpu.vector_store %arg10[%c0_48, %c0_49], %119 {strides = array<i32>} : memref<8x128xf32, #tpu.memory_space<vmem>>, vector<8x128xf32>,
    %c0_50 = arith.constant 0 : index
    %c0_51 = arith.constant 0 : index
    %123 = vector.load %arg9[%c0_50, %c0_51] : memref<8x128xf32, #tpu.memory_space<vmem>>, vector<8x128xf32>
    tpu.vector_store %arg9[%c0_50, %c0_51], %121 {strides = array<i32>} : memref<8x128xf32, #tpu.memory_space<vmem>>, vector<8x128xf32>,
    %124 = arith.truncf %121 : vector<8x128xf32> to vector<8x128xbf16>
    %125 = arith.index_cast %c2_i32 : i32 to index
    %c0_52 = arith.constant 0 : index
    %c0_53 = arith.constant 0 : index
    %126 = vector.load %arg6[%125, %c0_52, %c0_53] : memref<8x8x128xbf16, #tpu.memory_space<vmem>>, vector<1x8x128xbf16>
    %127 = vector.shape_cast %126 : vector<1x8x128xbf16> to vector<8x128xbf16>
    %128 = vector.shape_cast %124 : vector<8x128xbf16> to vector<1x8x128xbf16>
    tpu.vector_store %arg6[%125, %c0_52, %c0_53], %128 {strides = array<i32>} : memref<8x8x128xbf16, #tpu.memory_space<vmem>>, vector<1x8x128xbf16>,
    %c3_i32 = arith.constant 3 : i32
    %129 = arith.index_cast %c3_i32 : i32 to index
    %c0_54 = arith.constant 0 : index
    %c0_55 = arith.constant 0 : index
    %130 = vector.load %arg2[%129, %c0_54, %c0_55] : memref<8x8x512xbf16, #tpu.memory_space<vmem>>, vector<1x8x512xbf16>
    %131 = vector.shape_cast %130 : vector<1x8x512xbf16> to vector<8x512xbf16>
    %132 = arith.extf %131 : vector<8x512xbf16> to vector<8x512xf32>
    %c0_56 = arith.constant 0 : index
    %c0_57 = arith.constant 0 : index
    %133 = vector.load %arg9[%c0_56, %c0_57] : memref<8x128xf32, #tpu.memory_space<vmem>>, vector<8x128xf32>
    %134 = arith.truncf %133 : vector<8x128xf32> to vector<8x128xbf16>
    %c0_58 = arith.constant 0 : index
    %c0_59 = arith.constant 0 : index
    %135 = vector.load %arg3[%c0_58, %c0_59] : memref<128x512xbf16, #tpu.memory_space<vmem>>, vector<128x512xbf16>
    %cst_60 = arith.constant dense<0.000000e+00> : vector<8x512xf32>
    %136 = tpu.matmul %134, %135, %cst_60 {dimension_numbers = #tpu.dot_dimension_numbers<[1], [0], [0], [1], [0, 0, 1, 1], [], []>} : vector<8x128xbf16>, vector<128x512xbf16>, vector<8x512xf32> -> vector<8x512xf32>
    %137 = arith.addf %132, %136 : vector<8x512xf32>
    %138 = vector.extract_strided_slice %137 {offsets = [0, 0], sizes = [8, 128], strides = [1, 1]} : vector<8x512xf32> to vector<8x128xf32>
    %139 = arith.negf %138 : vector<8x128xf32>
    %140 = math.exp %139 : vector<8x128xf32>
    %cst_61 = arith.constant 1.000000e+00 : f32
    %141 = vector.broadcast %cst_61 : f32 to vector<8x128xf32>
    %142 = arith.addf %141, %140 : vector<8x128xf32>
    %143 = arith.divf %141, %142 : vector<8x128xf32>
    %144 = vector.extract_strided_slice %137 {offsets = [0, 128], sizes = [8, 128], strides = [1, 1]} : vector<8x512xf32> to vector<8x128xf32>
    %145 = arith.negf %144 : vector<8x128xf32>
    %146 = math.exp %145 : vector<8x128xf32>
    %cst_62 = arith.constant 1.000000e+00 : f32
    %147 = vector.broadcast %cst_62 : f32 to vector<8x128xf32>
    %148 = arith.addf %147, %146 : vector<8x128xf32>
    %149 = arith.divf %147, %148 : vector<8x128xf32>
    %150 = vector.extract_strided_slice %137 {offsets = [0, 256], sizes = [8, 128], strides = [1, 1]} : vector<8x512xf32> to vector<8x128xf32>
    %151 = math.tanh %150 : vector<8x128xf32>
    %152 = vector.extract_strided_slice %137 {offsets = [0, 384], sizes = [8, 128], strides = [1, 1]} : vector<8x512xf32> to vector<8x128xf32>
    %153 = arith.negf %152 : vector<8x128xf32>
    %154 = math.exp %153 : vector<8x128xf32>
    %cst_63 = arith.constant 1.000000e+00 : f32
    %155 = vector.broadcast %cst_63 : f32 to vector<8x128xf32>
    %156 = arith.addf %155, %154 : vector<8x128xf32>
    %157 = arith.divf %155, %156 : vector<8x128xf32>
    %c0_64 = arith.constant 0 : index
    %c0_65 = arith.constant 0 : index
    %158 = vector.load %arg10[%c0_64, %c0_65] : memref<8x128xf32, #tpu.memory_space<vmem>>, vector<8x128xf32>
    %159 = arith.mulf %149, %158 : vector<8x128xf32>
    %160 = arith.mulf %143, %151 : vector<8x128xf32>
    %161 = arith.addf %159, %160 : vector<8x128xf32>
    %162 = math.tanh %161 : vector<8x128xf32>
    %163 = arith.mulf %157, %162 : vector<8x128xf32>
    %c0_66 = arith.constant 0 : index
    %c0_67 = arith.constant 0 : index
    %164 = vector.load %arg10[%c0_66, %c0_67] : memref<8x128xf32, #tpu.memory_space<vmem>>, vector<8x128xf32>
    tpu.vector_store %arg10[%c0_66, %c0_67], %161 {strides = array<i32>} : memref<8x128xf32, #tpu.memory_space<vmem>>, vector<8x128xf32>,
    %c0_68 = arith.constant 0 : index
    %c0_69 = arith.constant 0 : index
    %165 = vector.load %arg9[%c0_68, %c0_69] : memref<8x128xf32, #tpu.memory_space<vmem>>, vector<8x128xf32>
    tpu.vector_store %arg9[%c0_68, %c0_69], %163 {strides = array<i32>} : memref<8x128xf32, #tpu.memory_space<vmem>>, vector<8x128xf32>,
    %166 = arith.truncf %163 : vector<8x128xf32> to vector<8x128xbf16>
    %167 = arith.index_cast %c3_i32 : i32 to index
    %c0_70 = arith.constant 0 : index
    %c0_71 = arith.constant 0 : index
    %168 = vector.load %arg6[%167, %c0_70, %c0_71] : memref<8x8x128xbf16, #tpu.memory_space<vmem>>, vector<1x8x128xbf16>
    %169 = vector.shape_cast %168 : vector<1x8x128xbf16> to vector<8x128xbf16>
    %170 = vector.shape_cast %166 : vector<8x128xbf16> to vector<1x8x128xbf16>
    tpu.vector_store %arg6[%167, %c0_70, %c0_71], %170 {strides = array<i32>} : memref<8x8x128xbf16, #tpu.memory_space<vmem>>, vector<1x8x128xbf16>,
    %c4_i32 = arith.constant 4 : i32
    %171 = arith.index_cast %c4_i32 : i32 to index
    %c0_72 = arith.constant 0 : index
    %c0_73 = arith.constant 0 : index
    %172 = vector.load %arg2[%171, %c0_72, %c0_73] : memref<8x8x512xbf16, #tpu.memory_space<vmem>>, vector<1x8x512xbf16>
    %173 = vector.shape_cast %172 : vector<1x8x512xbf16> to vector<8x512xbf16>
    %174 = arith.extf %173 : vector<8x512xbf16> to vector<8x512xf32>
    %c0_74 = arith.constant 0 : index
    %c0_75 = arith.constant 0 : index
    %175 = vector.load %arg9[%c0_74, %c0_75] : memref<8x128xf32, #tpu.memory_space<vmem>>, vector<8x128xf32>
    %176 = arith.truncf %175 : vector<8x128xf32> to vector<8x128xbf16>
    %c0_76 = arith.constant 0 : index
    %c0_77 = arith.constant 0 : index
    %177 = vector.load %arg3[%c0_76, %c0_77] : memref<128x512xbf16, #tpu.memory_space<vmem>>, vector<128x512xbf16>
    %cst_78 = arith.constant dense<0.000000e+00> : vector<8x512xf32>
    %178 = tpu.matmul %176, %177, %cst_78 {dimension_numbers = #tpu.dot_dimension_numbers<[1], [0], [0], [1], [0, 0, 1, 1], [], []>} : vector<8x128xbf16>, vector<128x512xbf16>, vector<8x512xf32> -> vector<8x512xf32>
    %179 = arith.addf %174, %178 : vector<8x512xf32>
    %180 = vector.extract_strided_slice %179 {offsets = [0, 0], sizes = [8, 128], strides = [1, 1]} : vector<8x512xf32> to vector<8x128xf32>
    %181 = arith.negf %180 : vector<8x128xf32>
    %182 = math.exp %181 : vector<8x128xf32>
    %cst_79 = arith.constant 1.000000e+00 : f32
    %183 = vector.broadcast %cst_79 : f32 to vector<8x128xf32>
    %184 = arith.addf %183, %182 : vector<8x128xf32>
    %185 = arith.divf %183, %184 : vector<8x128xf32>
    %186 = vector.extract_strided_slice %179 {offsets = [0, 128], sizes = [8, 128], strides = [1, 1]} : vector<8x512xf32> to vector<8x128xf32>
    %187 = arith.negf %186 : vector<8x128xf32>
    %188 = math.exp %187 : vector<8x128xf32>
    %cst_80 = arith.constant 1.000000e+00 : f32
    %189 = vector.broadcast %cst_80 : f32 to vector<8x128xf32>
    %190 = arith.addf %189, %188 : vector<8x128xf32>
    %191 = arith.divf %189, %190 : vector<8x128xf32>
    %192 = vector.extract_strided_slice %179 {offsets = [0, 256], sizes = [8, 128], strides = [1, 1]} : vector<8x512xf32> to vector<8x128xf32>
    %193 = math.tanh %192 : vector<8x128xf32>
    %194 = vector.extract_strided_slice %179 {offsets = [0, 384], sizes = [8, 128], strides = [1, 1]} : vector<8x512xf32> to vector<8x128xf32>
    %195 = arith.negf %194 : vector<8x128xf32>
    %196 = math.exp %195 : vector<8x128xf32>
    %cst_81 = arith.constant 1.000000e+00 : f32
    %197 = vector.broadcast %cst_81 : f32 to vector<8x128xf32>
    %198 = arith.addf %197, %196 : vector<8x128xf32>
    %199 = arith.divf %197, %198 : vector<8x128xf32>
    %c0_82 = arith.constant 0 : index
    %c0_83 = arith.constant 0 : index
    %200 = vector.load %arg10[%c0_82, %c0_83] : memref<8x128xf32, #tpu.memory_space<vmem>>, vector<8x128xf32>
    %201 = arith.mulf %191, %200 : vector<8x128xf32>
    %202 = arith.mulf %185, %193 : vector<8x128xf32>
    %203 = arith.addf %201, %202 : vector<8x128xf32>
    %204 = math.tanh %203 : vector<8x128xf32>
    %205 = arith.mulf %199, %204 : vector<8x128xf32>
    %c0_84 = arith.constant 0 : index
    %c0_85 = arith.constant 0 : index
    %206 = vector.load %arg10[%c0_84, %c0_85] : memref<8x128xf32, #tpu.memory_space<vmem>>, vector<8x128xf32>
    tpu.vector_store %arg10[%c0_84, %c0_85], %203 {strides = array<i32>} : memref<8x128xf32, #tpu.memory_space<vmem>>, vector<8x128xf32>,
    %c0_86 = arith.constant 0 : index
    %c0_87 = arith.constant 0 : index
    %207 = vector.load %arg9[%c0_86, %c0_87] : memref<8x128xf32, #tpu.memory_space<vmem>>, vector<8x128xf32>
    tpu.vector_store %arg9[%c0_86, %c0_87], %205 {strides = array<i32>} : memref<8x128xf32, #tpu.memory_space<vmem>>, vector<8x128xf32>,
    %208 = arith.truncf %205 : vector<8x128xf32> to vector<8x128xbf16>
    %209 = arith.index_cast %c4_i32 : i32 to index
    %c0_88 = arith.constant 0 : index
    %c0_89 = arith.constant 0 : index
    %210 = vector.load %arg6[%209, %c0_88, %c0_89] : memref<8x8x128xbf16, #tpu.memory_space<vmem>>, vector<1x8x128xbf16>
    %211 = vector.shape_cast %210 : vector<1x8x128xbf16> to vector<8x128xbf16>
    %212 = vector.shape_cast %208 : vector<8x128xbf16> to vector<1x8x128xbf16>
    tpu.vector_store %arg6[%209, %c0_88, %c0_89], %212 {strides = array<i32>} : memref<8x8x128xbf16, #tpu.memory_space<vmem>>, vector<1x8x128xbf16>,
    %c5_i32 = arith.constant 5 : i32
    %213 = arith.index_cast %c5_i32 : i32 to index
    %c0_90 = arith.constant 0 : index
    %c0_91 = arith.constant 0 : index
    %214 = vector.load %arg2[%213, %c0_90, %c0_91] : memref<8x8x512xbf16, #tpu.memory_space<vmem>>, vector<1x8x512xbf16>
    %215 = vector.shape_cast %214 : vector<1x8x512xbf16> to vector<8x512xbf16>
    %216 = arith.extf %215 : vector<8x512xbf16> to vector<8x512xf32>
    %c0_92 = arith.constant 0 : index
    %c0_93 = arith.constant 0 : index
    %217 = vector.load %arg9[%c0_92, %c0_93] : memref<8x128xf32, #tpu.memory_space<vmem>>, vector<8x128xf32>
    %218 = arith.truncf %217 : vector<8x128xf32> to vector<8x128xbf16>
    %c0_94 = arith.constant 0 : index
    %c0_95 = arith.constant 0 : index
    %219 = vector.load %arg3[%c0_94, %c0_95] : memref<128x512xbf16, #tpu.memory_space<vmem>>, vector<128x512xbf16>
    %cst_96 = arith.constant dense<0.000000e+00> : vector<8x512xf32>
    %220 = tpu.matmul %218, %219, %cst_96 {dimension_numbers = #tpu.dot_dimension_numbers<[1], [0], [0], [1], [0, 0, 1, 1], [], []>} : vector<8x128xbf16>, vector<128x512xbf16>, vector<8x512xf32> -> vector<8x512xf32>
    %221 = arith.addf %216, %220 : vector<8x512xf32>
    %222 = vector.extract_strided_slice %221 {offsets = [0, 0], sizes = [8, 128], strides = [1, 1]} : vector<8x512xf32> to vector<8x128xf32>
    %223 = arith.negf %222 : vector<8x128xf32>
    %224 = math.exp %223 : vector<8x128xf32>
    %cst_97 = arith.constant 1.000000e+00 : f32
    %225 = vector.broadcast %cst_97 : f32 to vector<8x128xf32>
    %226 = arith.addf %225, %224 : vector<8x128xf32>
    %227 = arith.divf %225, %226 : vector<8x128xf32>
    %228 = vector.extract_strided_slice %221 {offsets = [0, 128], sizes = [8, 128], strides = [1, 1]} : vector<8x512xf32> to vector<8x128xf32>
    %229 = arith.negf %228 : vector<8x128xf32>
    %230 = math.exp %229 : vector<8x128xf32>
    %cst_98 = arith.constant 1.000000e+00 : f32
    %231 = vector.broadcast %cst_98 : f32 to vector<8x128xf32>
    %232 = arith.addf %231, %230 : vector<8x128xf32>
    %233 = arith.divf %231, %232 : vector<8x128xf32>
    %234 = vector.extract_strided_slice %221 {offsets = [0, 256], sizes = [8, 128], strides = [1, 1]} : vector<8x512xf32> to vector<8x128xf32>
    %235 = math.tanh %234 : vector<8x128xf32>
    %236 = vector.extract_strided_slice %221 {offsets = [0, 384], sizes = [8, 128], strides = [1, 1]} : vector<8x512xf32> to vector<8x128xf32>
    %237 = arith.negf %236 : vector<8x128xf32>
    %238 = math.exp %237 : vector<8x128xf32>
    %cst_99 = arith.constant 1.000000e+00 : f32
    %239 = vector.broadcast %cst_99 : f32 to vector<8x128xf32>
    %240 = arith.addf %239, %238 : vector<8x128xf32>
    %241 = arith.divf %239, %240 : vector<8x128xf32>
    %c0_100 = arith.constant 0 : index
    %c0_101 = arith.constant 0 : index
    %242 = vector.load %arg10[%c0_100, %c0_101] : memref<8x128xf32, #tpu.memory_space<vmem>>, vector<8x128xf32>
    %243 = arith.mulf %233, %242 : vector<8x128xf32>
    %244 = arith.mulf %227, %235 : vector<8x128xf32>
    %245 = arith.addf %243, %244 : vector<8x128xf32>
    %246 = math.tanh %245 : vector<8x128xf32>
    %247 = arith.mulf %241, %246 : vector<8x128xf32>
    %c0_102 = arith.constant 0 : index
    %c0_103 = arith.constant 0 : index
    %248 = vector.load %arg10[%c0_102, %c0_103] : memref<8x128xf32, #tpu.memory_space<vmem>>, vector<8x128xf32>
    tpu.vector_store %arg10[%c0_102, %c0_103], %245 {strides = array<i32>} : memref<8x128xf32, #tpu.memory_space<vmem>>, vector<8x128xf32>,
    %c0_104 = arith.constant 0 : index
    %c0_105 = arith.constant 0 : index
    %249 = vector.load %arg9[%c0_104, %c0_105] : memref<8x128xf32, #tpu.memory_space<vmem>>, vector<8x128xf32>
    tpu.vector_store %arg9[%c0_104, %c0_105], %247 {strides = array<i32>} : memref<8x128xf32, #tpu.memory_space<vmem>>, vector<8x128xf32>,
    %250 = arith.truncf %247 : vector<8x128xf32> to vector<8x128xbf16>
    %251 = arith.index_cast %c5_i32 : i32 to index
    %c0_106 = arith.constant 0 : index
    %c0_107 = arith.constant 0 : index
    %252 = vector.load %arg6[%251, %c0_106, %c0_107] : memref<8x8x128xbf16, #tpu.memory_space<vmem>>, vector<1x8x128xbf16>
    %253 = vector.shape_cast %252 : vector<1x8x128xbf16> to vector<8x128xbf16>
    %254 = vector.shape_cast %250 : vector<8x128xbf16> to vector<1x8x128xbf16>
    tpu.vector_store %arg6[%251, %c0_106, %c0_107], %254 {strides = array<i32>} : memref<8x8x128xbf16, #tpu.memory_space<vmem>>, vector<1x8x128xbf16>,
    %c6_i32 = arith.constant 6 : i32
    %255 = arith.index_cast %c6_i32 : i32 to index
    %c0_108 = arith.constant 0 : index
    %c0_109 = arith.constant 0 : index
    %256 = vector.load %arg2[%255, %c0_108, %c0_109] : memref<8x8x512xbf16, #tpu.memory_space<vmem>>, vector<1x8x512xbf16>
    %257 = vector.shape_cast %256 : vector<1x8x512xbf16> to vector<8x512xbf16>
    %258 = arith.extf %257 : vector<8x512xbf16> to vector<8x512xf32>
    %c0_110 = arith.constant 0 : index
    %c0_111 = arith.constant 0 : index
    %259 = vector.load %arg9[%c0_110, %c0_111] : memref<8x128xf32, #tpu.memory_space<vmem>>, vector<8x128xf32>
    %260 = arith.truncf %259 : vector<8x128xf32> to vector<8x128xbf16>
    %c0_112 = arith.constant 0 : index
    %c0_113 = arith.constant 0 : index
    %261 = vector.load %arg3[%c0_112, %c0_113] : memref<128x512xbf16, #tpu.memory_space<vmem>>, vector<128x512xbf16>
    %cst_114 = arith.constant dense<0.000000e+00> : vector<8x512xf32>
    %262 = tpu.matmul %260, %261, %cst_114 {dimension_numbers = #tpu.dot_dimension_numbers<[1], [0], [0], [1], [0, 0, 1, 1], [], []>} : vector<8x128xbf16>, vector<128x512xbf16>, vector<8x512xf32> -> vector<8x512xf32>
    %263 = arith.addf %258, %262 : vector<8x512xf32>
    %264 = vector.extract_strided_slice %263 {offsets = [0, 0], sizes = [8, 128], strides = [1, 1]} : vector<8x512xf32> to vector<8x128xf32>
    %265 = arith.negf %264 : vector<8x128xf32>
    %266 = math.exp %265 : vector<8x128xf32>
    %cst_115 = arith.constant 1.000000e+00 : f32
    %267 = vector.broadcast %cst_115 : f32 to vector<8x128xf32>
    %268 = arith.addf %267, %266 : vector<8x128xf32>
    %269 = arith.divf %267, %268 : vector<8x128xf32>
    %270 = vector.extract_strided_slice %263 {offsets = [0, 128], sizes = [8, 128], strides = [1, 1]} : vector<8x512xf32> to vector<8x128xf32>
    %271 = arith.negf %270 : vector<8x128xf32>
    %272 = math.exp %271 : vector<8x128xf32>
    %cst_116 = arith.constant 1.000000e+00 : f32
    %273 = vector.broadcast %cst_116 : f32 to vector<8x128xf32>
    %274 = arith.addf %273, %272 : vector<8x128xf32>
    %275 = arith.divf %273, %274 : vector<8x128xf32>
    %276 = vector.extract_strided_slice %263 {offsets = [0, 256], sizes = [8, 128], strides = [1, 1]} : vector<8x512xf32> to vector<8x128xf32>
    %277 = math.tanh %276 : vector<8x128xf32>
    %278 = vector.extract_strided_slice %263 {offsets = [0, 384], sizes = [8, 128], strides = [1, 1]} : vector<8x512xf32> to vector<8x128xf32>
    %279 = arith.negf %278 : vector<8x128xf32>
    %280 = math.exp %279 : vector<8x128xf32>
    %cst_117 = arith.constant 1.000000e+00 : f32
    %281 = vector.broadcast %cst_117 : f32 to vector<8x128xf32>
    %282 = arith.addf %281, %280 : vector<8x128xf32>
    %283 = arith.divf %281, %282 : vector<8x128xf32>
    %c0_118 = arith.constant 0 : index
    %c0_119 = arith.constant 0 : index
    %284 = vector.load %arg10[%c0_118, %c0_119] : memref<8x128xf32, #tpu.memory_space<vmem>>, vector<8x128xf32>
    %285 = arith.mulf %275, %284 : vector<8x128xf32>
    %286 = arith.mulf %269, %277 : vector<8x128xf32>
    %287 = arith.addf %285, %286 : vector<8x128xf32>
    %288 = math.tanh %287 : vector<8x128xf32>
    %289 = arith.mulf %283, %288 : vector<8x128xf32>
    %c0_120 = arith.constant 0 : index
    %c0_121 = arith.constant 0 : index
    %290 = vector.load %arg10[%c0_120, %c0_121] : memref<8x128xf32, #tpu.memory_space<vmem>>, vector<8x128xf32>
    tpu.vector_store %arg10[%c0_120, %c0_121], %287 {strides = array<i32>} : memref<8x128xf32, #tpu.memory_space<vmem>>, vector<8x128xf32>,
    %c0_122 = arith.constant 0 : index
    %c0_123 = arith.constant 0 : index
    %291 = vector.load %arg9[%c0_122, %c0_123] : memref<8x128xf32, #tpu.memory_space<vmem>>, vector<8x128xf32>
    tpu.vector_store %arg9[%c0_122, %c0_123], %289 {strides = array<i32>} : memref<8x128xf32, #tpu.memory_space<vmem>>, vector<8x128xf32>,
    %292 = arith.truncf %289 : vector<8x128xf32> to vector<8x128xbf16>
    %293 = arith.index_cast %c6_i32 : i32 to index
    %c0_124 = arith.constant 0 : index
    %c0_125 = arith.constant 0 : index
    %294 = vector.load %arg6[%293, %c0_124, %c0_125] : memref<8x8x128xbf16, #tpu.memory_space<vmem>>, vector<1x8x128xbf16>
    %295 = vector.shape_cast %294 : vector<1x8x128xbf16> to vector<8x128xbf16>
    %296 = vector.shape_cast %292 : vector<8x128xbf16> to vector<1x8x128xbf16>
    tpu.vector_store %arg6[%293, %c0_124, %c0_125], %296 {strides = array<i32>} : memref<8x8x128xbf16, #tpu.memory_space<vmem>>, vector<1x8x128xbf16>,
    %c7_i32 = arith.constant 7 : i32
    %297 = arith.index_cast %c7_i32 : i32 to index
    %c0_126 = arith.constant 0 : index
    %c0_127 = arith.constant 0 : index
    %298 = vector.load %arg2[%297, %c0_126, %c0_127] : memref<8x8x512xbf16, #tpu.memory_space<vmem>>, vector<1x8x512xbf16>
    %299 = vector.shape_cast %298 : vector<1x8x512xbf16> to vector<8x512xbf16>
    %300 = arith.extf %299 : vector<8x512xbf16> to vector<8x512xf32>
    %c0_128 = arith.constant 0 : index
    %c0_129 = arith.constant 0 : index
    %301 = vector.load %arg9[%c0_128, %c0_129] : memref<8x128xf32, #tpu.memory_space<vmem>>, vector<8x128xf32>
    %302 = arith.truncf %301 : vector<8x128xf32> to vector<8x128xbf16>
    %c0_130 = arith.constant 0 : index
    %c0_131 = arith.constant 0 : index
    %303 = vector.load %arg3[%c0_130, %c0_131] : memref<128x512xbf16, #tpu.memory_space<vmem>>, vector<128x512xbf16>
    %cst_132 = arith.constant dense<0.000000e+00> : vector<8x512xf32>
    %304 = tpu.matmul %302, %303, %cst_132 {dimension_numbers = #tpu.dot_dimension_numbers<[1], [0], [0], [1], [0, 0, 1, 1], [], []>} : vector<8x128xbf16>, vector<128x512xbf16>, vector<8x512xf32> -> vector<8x512xf32>
    %305 = arith.addf %300, %304 : vector<8x512xf32>
    %306 = vector.extract_strided_slice %305 {offsets = [0, 0], sizes = [8, 128], strides = [1, 1]} : vector<8x512xf32> to vector<8x128xf32>
    %307 = arith.negf %306 : vector<8x128xf32>
    %308 = math.exp %307 : vector<8x128xf32>
    %cst_133 = arith.constant 1.000000e+00 : f32
    %309 = vector.broadcast %cst_133 : f32 to vector<8x128xf32>
    %310 = arith.addf %309, %308 : vector<8x128xf32>
    %311 = arith.divf %309, %310 : vector<8x128xf32>
    %312 = vector.extract_strided_slice %305 {offsets = [0, 128], sizes = [8, 128], strides = [1, 1]} : vector<8x512xf32> to vector<8x128xf32>
    %313 = arith.negf %312 : vector<8x128xf32>
    %314 = math.exp %313 : vector<8x128xf32>
    %cst_134 = arith.constant 1.000000e+00 : f32
    %315 = vector.broadcast %cst_134 : f32 to vector<8x128xf32>
    %316 = arith.addf %315, %314 : vector<8x128xf32>
    %317 = arith.divf %315, %316 : vector<8x128xf32>
    %318 = vector.extract_strided_slice %305 {offsets = [0, 256], sizes = [8, 128], strides = [1, 1]} : vector<8x512xf32> to vector<8x128xf32>
    %319 = math.tanh %318 : vector<8x128xf32>
    %320 = vector.extract_strided_slice %305 {offsets = [0, 384], sizes = [8, 128], strides = [1, 1]} : vector<8x512xf32> to vector<8x128xf32>
    %321 = arith.negf %320 : vector<8x128xf32>
    %322 = math.exp %321 : vector<8x128xf32>
    %cst_135 = arith.constant 1.000000e+00 : f32
    %323 = vector.broadcast %cst_135 : f32 to vector<8x128xf32>
    %324 = arith.addf %323, %322 : vector<8x128xf32>
    %325 = arith.divf %323, %324 : vector<8x128xf32>
    %c0_136 = arith.constant 0 : index
    %c0_137 = arith.constant 0 : index
    %326 = vector.load %arg10[%c0_136, %c0_137] : memref<8x128xf32, #tpu.memory_space<vmem>>, vector<8x128xf32>
    %327 = arith.mulf %317, %326 : vector<8x128xf32>
    %328 = arith.mulf %311, %319 : vector<8x128xf32>
    %329 = arith.addf %327, %328 : vector<8x128xf32>
    %330 = math.tanh %329 : vector<8x128xf32>
    %331 = arith.mulf %325, %330 : vector<8x128xf32>
    %c0_138 = arith.constant 0 : index
    %c0_139 = arith.constant 0 : index
    %332 = vector.load %arg10[%c0_138, %c0_139] : memref<8x128xf32, #tpu.memory_space<vmem>>, vector<8x128xf32>
    tpu.vector_store %arg10[%c0_138, %c0_139], %329 {strides = array<i32>} : memref<8x128xf32, #tpu.memory_space<vmem>>, vector<8x128xf32>,
    %c0_140 = arith.constant 0 : index
    %c0_141 = arith.constant 0 : index
    %333 = vector.load %arg9[%c0_140, %c0_141] : memref<8x128xf32, #tpu.memory_space<vmem>>, vector<8x128xf32>
    tpu.vector_store %arg9[%c0_140, %c0_141], %331 {strides = array<i32>} : memref<8x128xf32, #tpu.memory_space<vmem>>, vector<8x128xf32>,
    %334 = arith.truncf %331 : vector<8x128xf32> to vector<8x128xbf16>
    %335 = arith.index_cast %c7_i32 : i32 to index
    %c0_142 = arith.constant 0 : index
    %c0_143 = arith.constant 0 : index
    %336 = vector.load %arg6[%335, %c0_142, %c0_143] : memref<8x8x128xbf16, #tpu.memory_space<vmem>>, vector<1x8x128xbf16>
    %337 = vector.shape_cast %336 : vector<1x8x128xbf16> to vector<8x128xbf16>
    %338 = vector.shape_cast %334 : vector<8x128xbf16> to vector<1x8x128xbf16>
    tpu.vector_store %arg6[%335, %c0_142, %c0_143], %338 {strides = array<i32>} : memref<8x8x128xbf16, #tpu.memory_space<vmem>>, vector<1x8x128xbf16>,
    %c8_i32 = arith.constant 8 : i32
    %c0_i32_144 = arith.constant 0 : i32
    %339 = arith.cmpi eq, %arg1, %c0_i32_144 : i32
    %340 = arith.extui %339 : i1 to i32
    %c0_i32_145 = arith.constant 0 : i32
    %341 = arith.cmpi ne, %340, %c0_i32_145 : i32
    scf.if %341 {
      %c0_146 = arith.constant 0 : index
      %c0_147 = arith.constant 0 : index
      %342 = vector.load %arg9[%c0_146, %c0_147] : memref<8x128xf32, #tpu.memory_space<vmem>>, vector<8x128xf32>
      %c0_148 = arith.constant 0 : index
      %c0_149 = arith.constant 0 : index
      %343 = vector.load %arg7[%c0_148, %c0_149] : memref<8x128xf32, #tpu.memory_space<vmem>>, vector<8x128xf32>
      tpu.vector_store %arg7[%c0_148, %c0_149], %342 {strides = array<i32>} : memref<8x128xf32, #tpu.memory_space<vmem>>, vector<8x128xf32>,
      %c0_150 = arith.constant 0 : index
      %c0_151 = arith.constant 0 : index
      %344 = vector.load %arg10[%c0_150, %c0_151] : memref<8x128xf32, #tpu.memory_space<vmem>>, vector<8x128xf32>
      %c0_152 = arith.constant 0 : index
      %c0_153 = arith.constant 0 : index
      %345 = vector.load %arg8[%c0_152, %c0_153] : memref<8x128xf32, #tpu.memory_space<vmem>>, vector<8x128xf32>
      tpu.vector_store %arg8[%c0_152, %c0_153], %344 {strides = array<i32>} : memref<8x128xf32, #tpu.memory_space<vmem>>, vector<8x128xf32>,
    } else {
    }
    return
  }
  func.func @transform_0(%arg0: i32, %arg1: i32) -> (i32, i32, i32) {
    %c0_i32 = arith.constant 0 : i32
    %c0_i32_0 = arith.constant 0 : i32
    return %arg1, %arg0, %c0_i32 : i32, i32, i32
  }
  func.func @transform_1(%arg0: i32, %arg1: i32) -> (i32, i32) {
    %c0_i32 = arith.constant 0 : i32
    %c0_i32_0 = arith.constant 0 : i32
    %c0_i32_1 = arith.constant 0 : i32
    return %c0_i32, %c0_i32_0 : i32, i32
  }
  func.func @transform_2(%arg0: i32, %arg1: i32) -> (i32, i32) {
    %c0_i32 = arith.constant 0 : i32
    %c0_i32_0 = arith.constant 0 : i32
    return %arg0, %c0_i32 : i32, i32
  }
  func.func @transform_3(%arg0: i32, %arg1: i32) -> (i32, i32) {
    %c0_i32 = arith.constant 0 : i32
    %c0_i32_0 = arith.constant 0 : i32
    return %arg0, %c0_i32 : i32, i32
  }
  func.func @transform_4(%arg0: i32, %arg1: i32) -> (i32, i32, i32) {
    %c0_i32 = arith.constant 0 : i32
    %c0_i32_0 = arith.constant 0 : i32
    return %arg1, %arg0, %c0_i32 : i32, i32, i32
  }
  func.func @transform_5(%arg0: i32, %arg1: i32) -> (i32, i32) {
    %c0_i32 = arith.constant 0 : i32
    %c0_i32_0 = arith.constant 0 : i32
    return %arg0, %c0_i32 : i32, i32
  }
  func.func @transform_6(%arg0: i32, %arg1: i32) -> (i32, i32) {
    %c0_i32 = arith.constant 0 : i32
    %c0_i32_0 = arith.constant 0 : i32
    return %arg0, %c0_i32 : i32, i32
  }
}

module attributes {stable_mosaic.version = 11 : i64} {
  func.func @_matmul_bias_f32out_kernel(%arg0: i32, %arg1: i32, %arg2: i32, %arg3: memref<16x128xbf16, #tpu.memory_space<vmem>>, %arg4: memref<128x128xbf16, #tpu.memory_space<vmem>>, %arg5: memref<1x128xf32, #tpu.memory_space<vmem>>, %arg6: memref<16x128xf32, #tpu.memory_space<vmem>>) attributes {dimension_semantics = [#tpu.dimension_semantics<parallel>, #tpu.dimension_semantics<parallel>, #tpu.dimension_semantics<arbitrary>], iteration_bounds = array<i64: 1, 1, 1>, scalar_prefetch = 0 : i64, scratch_operands = 0 : i64, tpu.core_type = #tpu.core_type<tc>, window_params = [{transform_indices = @transform_0, window_bounds = array<i64: 16, 128>}, {transform_indices = @transform_1, window_bounds = array<i64: 128, 128>}, {transform_indices = @transform_2, window_bounds = array<i64: 1, 128>}, {transform_indices = @transform_3, window_bounds = array<i64: 16, 128>}]} {
    %c0_i32 = arith.constant 0 : i32
    %0 = arith.cmpi eq, %arg2, %c0_i32 : i32
    %1 = arith.extui %0 : i1 to i32
    %c0_i32_0 = arith.constant 0 : i32
    %2 = arith.cmpi ne, %1, %c0_i32_0 : i32
    scf.if %2 {
      %c0_8 = arith.constant 0 : index
      %c0_9 = arith.constant 0 : index
      %9 = vector.load %arg5[%c0_8, %c0_9] : memref<1x128xf32, #tpu.memory_space<vmem>>, vector<1x128xf32>
      %10 = vector.shape_cast %9 : vector<1x128xf32> to vector<1x128xf32>
      %11 = vector.broadcast %10 : vector<1x128xf32> to vector<16x128xf32>
      %c0_10 = arith.constant 0 : index
      %c0_11 = arith.constant 0 : index
      %12 = vector.load %arg6[%c0_10, %c0_11] : memref<16x128xf32, #tpu.memory_space<vmem>>, vector<16x128xf32>
      tpu.vector_store %arg6[%c0_10, %c0_11], %11 {strides = array<i32>} : memref<16x128xf32, #tpu.memory_space<vmem>>, vector<16x128xf32>,
    } else {
    }
    %c0 = arith.constant 0 : index
    %c0_1 = arith.constant 0 : index
    %3 = vector.load %arg6[%c0, %c0_1] : memref<16x128xf32, #tpu.memory_space<vmem>>, vector<16x128xf32>
    %c0_2 = arith.constant 0 : index
    %c0_3 = arith.constant 0 : index
    %4 = vector.load %arg3[%c0_2, %c0_3] : memref<16x128xbf16, #tpu.memory_space<vmem>>, vector<16x128xbf16>
    %c0_4 = arith.constant 0 : index
    %c0_5 = arith.constant 0 : index
    %5 = vector.load %arg4[%c0_4, %c0_5] : memref<128x128xbf16, #tpu.memory_space<vmem>>, vector<128x128xbf16>
    %cst = arith.constant dense<0.000000e+00> : vector<16x128xf32>
    %6 = tpu.matmul %4, %5, %cst {dimension_numbers = #tpu.dot_dimension_numbers<[1], [0], [0], [1], [0, 0, 1, 1], [], []>} : vector<16x128xbf16>, vector<128x128xbf16>, vector<16x128xf32> -> vector<16x128xf32>
    %7 = arith.addf %3, %6 : vector<16x128xf32>
    %c0_6 = arith.constant 0 : index
    %c0_7 = arith.constant 0 : index
    %8 = vector.load %arg6[%c0_6, %c0_7] : memref<16x128xf32, #tpu.memory_space<vmem>>, vector<16x128xf32>
    tpu.vector_store %arg6[%c0_6, %c0_7], %7 {strides = array<i32>} : memref<16x128xf32, #tpu.memory_space<vmem>>, vector<16x128xf32>,
    return
  }
  func.func @transform_0(%arg0: i32, %arg1: i32, %arg2: i32) -> (i32, i32) {
    %c0_i32 = arith.constant 0 : i32
    return %arg0, %arg2 : i32, i32
  }
  func.func @transform_1(%arg0: i32, %arg1: i32, %arg2: i32) -> (i32, i32) {
    %c0_i32 = arith.constant 0 : i32
    return %arg2, %arg1 : i32, i32
  }
  func.func @transform_2(%arg0: i32, %arg1: i32, %arg2: i32) -> (i32, i32) {
    %c0_i32 = arith.constant 0 : i32
    %c0_i32_0 = arith.constant 0 : i32
    return %c0_i32, %arg1 : i32, i32
  }
  func.func @transform_3(%arg0: i32, %arg1: i32, %arg2: i32) -> (i32, i32) {
    %c0_i32 = arith.constant 0 : i32
    return %arg0, %arg1 : i32, i32
  }
}

module attributes {stable_mosaic.version = 11 : i64} {
  func.func @_matmul_bias_acc_kernel(%arg0: i32, %arg1: i32, %arg2: i32, %arg3: memref<64x128xbf16, #tpu.memory_space<vmem>>, %arg4: memref<128x256xbf16, #tpu.memory_space<vmem>>, %arg5: memref<1x256xf32, #tpu.memory_space<vmem>>, %arg6: memref<64x256xbf16, #tpu.memory_space<vmem>>, %arg7: memref<64x256xf32, #tpu.memory_space<vmem>>) attributes {dimension_semantics = [#tpu.dimension_semantics<parallel>, #tpu.dimension_semantics<parallel>, #tpu.dimension_semantics<arbitrary>], iteration_bounds = array<i64: 1, 2, 1>, scalar_prefetch = 0 : i64, scratch_operands = 1 : i64, tpu.core_type = #tpu.core_type<tc>, window_params = [{transform_indices = @transform_0, window_bounds = array<i64: 64, 128>}, {transform_indices = @transform_1, window_bounds = array<i64: 128, 256>}, {transform_indices = @transform_2, window_bounds = array<i64: 1, 256>}, {transform_indices = @transform_3, window_bounds = array<i64: 64, 256>}]} {
    %c0_i32 = arith.constant 0 : i32
    %0 = arith.cmpi eq, %arg2, %c0_i32 : i32
    %1 = arith.extui %0 : i1 to i32
    %c0_i32_0 = arith.constant 0 : i32
    %2 = arith.cmpi ne, %1, %c0_i32_0 : i32
    scf.if %2 {
      %cst_10 = arith.constant 0.000000e+00 : f32
      %12 = vector.broadcast %cst_10 : f32 to vector<64x256xf32>
      %c0_11 = arith.constant 0 : index
      %c0_12 = arith.constant 0 : index
      %13 = vector.load %arg7[%c0_11, %c0_12] : memref<64x256xf32, #tpu.memory_space<vmem>>, vector<64x256xf32>
      tpu.vector_store %arg7[%c0_11, %c0_12], %12 {strides = array<i32>} : memref<64x256xf32, #tpu.memory_space<vmem>>, vector<64x256xf32>,
    } else {
    }
    %c0 = arith.constant 0 : index
    %c0_1 = arith.constant 0 : index
    %3 = vector.load %arg7[%c0, %c0_1] : memref<64x256xf32, #tpu.memory_space<vmem>>, vector<64x256xf32>
    %c0_2 = arith.constant 0 : index
    %c0_3 = arith.constant 0 : index
    %4 = vector.load %arg3[%c0_2, %c0_3] : memref<64x128xbf16, #tpu.memory_space<vmem>>, vector<64x128xbf16>
    %c0_4 = arith.constant 0 : index
    %c0_5 = arith.constant 0 : index
    %5 = vector.load %arg4[%c0_4, %c0_5] : memref<128x256xbf16, #tpu.memory_space<vmem>>, vector<128x256xbf16>
    %cst = arith.constant dense<0.000000e+00> : vector<64x256xf32>
    %6 = tpu.matmul %4, %5, %cst {dimension_numbers = #tpu.dot_dimension_numbers<[1], [0], [0], [1], [0, 0, 1, 1], [], []>} : vector<64x128xbf16>, vector<128x256xbf16>, vector<64x256xf32> -> vector<64x256xf32>
    %7 = arith.addf %3, %6 : vector<64x256xf32>
    %c0_6 = arith.constant 0 : index
    %c0_7 = arith.constant 0 : index
    %8 = vector.load %arg7[%c0_6, %c0_7] : memref<64x256xf32, #tpu.memory_space<vmem>>, vector<64x256xf32>
    tpu.vector_store %arg7[%c0_6, %c0_7], %7 {strides = array<i32>} : memref<64x256xf32, #tpu.memory_space<vmem>>, vector<64x256xf32>,
    %c0_i32_8 = arith.constant 0 : i32
    %9 = arith.cmpi eq, %arg2, %c0_i32_8 : i32
    %10 = arith.extui %9 : i1 to i32
    %c0_i32_9 = arith.constant 0 : i32
    %11 = arith.cmpi ne, %10, %c0_i32_9 : i32
    scf.if %11 {
      %c0_10 = arith.constant 0 : index
      %c0_11 = arith.constant 0 : index
      %12 = vector.load %arg7[%c0_10, %c0_11] : memref<64x256xf32, #tpu.memory_space<vmem>>, vector<64x256xf32>
      %c0_12 = arith.constant 0 : index
      %c0_13 = arith.constant 0 : index
      %13 = vector.load %arg5[%c0_12, %c0_13] : memref<1x256xf32, #tpu.memory_space<vmem>>, vector<1x256xf32>
      %14 = vector.broadcast %13 : vector<1x256xf32> to vector<64x256xf32>
      %15 = arith.addf %12, %14 : vector<64x256xf32>
      %16 = arith.truncf %15 : vector<64x256xf32> to vector<64x256xbf16>
      %c0_14 = arith.constant 0 : index
      %c0_15 = arith.constant 0 : index
      %17 = vector.load %arg6[%c0_14, %c0_15] : memref<64x256xbf16, #tpu.memory_space<vmem>>, vector<64x256xbf16>
      tpu.vector_store %arg6[%c0_14, %c0_15], %16 {strides = array<i32>} : memref<64x256xbf16, #tpu.memory_space<vmem>>, vector<64x256xbf16>,
    } else {
    }
    return
  }
  func.func @transform_0(%arg0: i32, %arg1: i32, %arg2: i32) -> (i32, i32) {
    %c0_i32 = arith.constant 0 : i32
    return %arg0, %arg2 : i32, i32
  }
  func.func @transform_1(%arg0: i32, %arg1: i32, %arg2: i32) -> (i32, i32) {
    %c0_i32 = arith.constant 0 : i32
    return %arg2, %arg1 : i32, i32
  }
  func.func @transform_2(%arg0: i32, %arg1: i32, %arg2: i32) -> (i32, i32) {
    %c0_i32 = arith.constant 0 : i32
    %c0_i32_0 = arith.constant 0 : i32
    return %c0_i32, %arg1 : i32, i32
  }
  func.func @transform_3(%arg0: i32, %arg1: i32, %arg2: i32) -> (i32, i32) {
    %c0_i32 = arith.constant 0 : i32
    return %arg0, %arg1 : i32, i32
  }
}

</mosaic_0001>

<bundles_post_ra>
// kernel: lstm_model_forward.9
= control target key start
LH: loop header
LB: loop body
LE: loop exit
PB: predicated region body
PF: predicated region fallthrough
CT: control target
= control target key end

     0   :  { %s266_s0 = inlined_call_operand.vmem [shape: bf16[16,128], index: 0, kind: input, shape index: {}]   ;;  %s267_s1 = inlined_call_operand.vmem [shape: bf16[128,128], index: 1, kind: input, shape index: {}]   ;;  %s268_s2 = inlined_call_operand.vmem [shape: f32[1,128], index: 2, kind: input, shape index: {}]   ;;  %s269_s3 = inlined_call_operand.hbm [shape: f32[16,128], index: 3, kind: output, shape index: {}]  }
   0x1   :  { %v179_v0 = vld [vmem:[%s267_s1 + $0x38] sm:$0xff]  ;;  %v178_v1 = vld [vmem:[%s267_s1 + $0x30] sm:$0xff] }
   0x2   :  { %99 = vmatpush.bf16.msra.mxu0 %v179_v0 }
   0x3   :  { %8 = vsyncpa [#allocation3], 0  ;;  %v177_v2 = vld [vmem:[%s267_s1 + $0x28] sm:$0xff]  ;;  %v176_v3 = vld [vmem:[%s267_s1 + $0x20] sm:$0xff]  ;;  %s210_s5 = smov [#allocation2]   ;;  %s123_s9 = sshll.u32 %s269_s3, 4  ;;  %s124_s9 = int_to_ptr.hbm [resolvable:$true] %s123_s9 }
   0x4   :  { %v175_v4 = vld [vmem:[%s267_s1 + $0x18] sm:$0xff]  ;;  %v174_v5 = vld [vmem:[%s267_s1 + $0x10] sm:$0xff]  ;;  %v173_v6 = vld [vmem:[%s267_s1 + $0x8] sm:$0xff]  ;;  %s121_s6 = sshll.u32 %s210_s5, 4  ;;  %s122_s6 = int_to_ptr.vmem [resolvable:$true] %s121_s6 }
   0x5   :  { %v172_v7 = vld [vmem:[%s267_s1] sm:$0xff]  ;;  %s212_s1 = smov 8  }
   0x6   :  { %100 = vmatpush.bf16.msra.mxu0 %v178_v1  ;;  %v171_v8 = vld [vmem:[%s266_s0] sm:$0xff]  ;;  %s211_s0 = smov 128  }
   0x7   :  { %v183_v9 = vld [vmem:[%s268_s2] ss:$0 sm:$0xff] }
   0xa   :  { %101 = vmatpush.bf16.msra.mxu0 %v177_v2 }
   0xe   :  { %102 = vmatpush.bf16.msra.mxu0 %v176_v3 }
  0x12   :  { %103 = vmatpush.bf16.msra.mxu0 %v175_v4 }
  0x16   :  { %104 = vmatpush.bf16.msra.mxu0 %v174_v5 }
  0x1a   :  { %105 = vmatpush.bf16.msra.mxu0 %v173_v6 }
  0x1e   :  { %106 = vmatpush.bf16.msra.mxu0 %v172_v7 }
  0x21   :  { %107 = vmatmul.bf16.vlgmr.msra.gmra.mxu0 %v171_v8 }
  0x9e   :  { %v108_v10 = vpop.f32.mrf.mxu0 }
  0x9f   :  { %v113_v11 = vadd.f32 %v183_v9, %v108_v10 }
  0xa1   :  { %115 = vst [vmem:[#allocation2] sm:$0xff] %v113_v11 }
  0xa6   :  { %v110_v12 = vpop.f32.mrf.mxu0 }
  0xa7   :  { %v114_v13 = vadd.f32 %v183_v9, %v110_v12 }
  0xa9   :  { %116 = vst [vmem:[#allocation2 + $0x8] sm:$0xff] %v114_v13 }
  0xaa   :  { %129 = dma.vmem_to_hbm [thread:$0]  %s122_s6, 256, %s124_s9, [#allocation3], %s211_s0, %s211_s0, %s212_s1  }
  0xab   :  { %208 = dma.done.wait [#allocation3], 256  }
  0xac   :  { %209 = vsyncadd [#allocation3], 4294967040 }
  0xad   :  { %134 = vsyncpa [#allocation3], 1 }

// kernel: lstm_model_forward.5
= control target key start
LH: loop header
LB: loop body
LE: loop exit
PB: predicated region body
PF: predicated region fallthrough
CT: control target
= control target key end

     0   :  { %8 = vsyncpa [#allocation4], 0  ;;  %s1224_s0 = inlined_call_operand.vmem [shape: bf16[64,128], index: 0, kind: input, shape index: {}]   ;;  %s1225_s1 = inlined_call_operand.hbm [shape: bf16[128,512], index: 1, kind: input, shape index: {}]   ;;  %s1226_s2 = inlined_call_operand.vmem [shape: f32[1,512], index: 2, kind: input, shape index: {}]   ;;  %s1227_s3 = inlined_call_operand.vmem [shape: bf16[64,512], index: 3, kind: output, shape index: {}]  }
   0x1   :  { %10 = vsyncpa [#allocation4 + $0x1], 0  ;;  %s1058_s12 = smov 0   ;;  %s1060_s13 = smov 0  }
   0x2   :  { %s1062_s14 = smov 0   ;;  %s1064_s15 = smov 0  }
   0x3   :  { %s1066_s16 = smov 0   ;;  %s1068_s17 = smov 0  }
   0x4 LB: > { %s760_s18 = sadd.s32 4294967295, %s1033_s17   ;;  %s31_s19 = sadd.s32 1, %s1029_s16  ;;  %s1033_s17 = sphi %s1068_s17, %s16_s17   ;;  %s1029_s16 = sphi %s1066_s16, %s1235_s16   ;;  %s1025_s15 = sphi %s1064_s15, %s1234_s15   ;;  %s1021_s14 = sphi %s1062_s14, %s1233_s14   ;;  %s1017_s13 = sphi %s1060_s13, %s1232_s13   ;;  %s1013_s12 = sphi %s1058_s12, %s1231_s12  }
   0x5   : > { %p33_p0 = scmp.ge.s32.totalorder %s31_s19, 2  ;;  %s72_s20 = sadd.s32 1, %s1021_s14 }
   0x6   : > { %p79_p1 = scmp.ne.s32.totalorder %s1021_s14, %s1017_s13  ;;  %p80_p2 = scmp.eq.s32.totalorder %s1033_s17, 0 }
   0x7   : > { %s1237_s19 = smov (%p33_p0, %s31_s19), 0  ;;  %p85_p4 = scmp.ne.s32.totalorder %s1017_s13, %s1013_s12 }
   0x8   : > { %p1094_p3 = por %p80_p2, %p79_p1  ;;  %s68_s22 = ssub.s32 %s1029_s16, %s1237_s19 }
   0x9   : > { %p86_p5 = scmp.eq.s32.totalorder %s760_s18, 0  ;;  %p70_p6 = scmp.eq.s32.totalorder %s68_s22, 0 }
   0xa   : > { %p137_p7 = scmp.eq.s32.totalorder %s760_s18, 1  ;;  %p901_p10 = scmp.lt.s32.totalorder %s1033_s17, 2 }
   0xb   : > { %p1101_p8 = por %p86_p5, %p85_p4  ;;  %s175_s26 = sand.u32 1, %s1021_s14  }
   0xc   : > { %s1106_s24 = scalar_select %p70_p6, %s1021_s14, %s72_s20  }
   0xd   : > { %p1108_p9 = por %p137_p7, %p79_p1  ;;  %s857_s27 = sshll.u32 %s1029_s16, 3 }
   0xe   : > { %s765_s28 = sshll.u32 %s175_s26, 7  ;;  %s187_s4 = scalar_lea.hbm %s1225_s1, %s857_s27 }
   0xf   : > { %s188_s5 = sshll.u32 %s187_s4, 4  ;;  %s179_s6 = scalar_lea.vmem [#allocation3], %s765_s28  ;;  %s189_s5 = int_to_ptr.hbm [resolvable:$true] %s188_s5 }
  0x10   : > { %s190_s7 = sshll.u32 %s179_s6, 4  ;;  %p898_p11 = pnand %p901_p10, %p1094_p3  ;;  %s191_s7 = int_to_ptr.vmem [resolvable:$true] %s190_s7 }
  0x11   : > { %p768_p12 = scmp.ge.s32.totalorder %s1033_s17, 1  ;;  %s176_s8 = scalar_lea.sflag [#allocation4], %s175_s26 }
  0x12   : > { %s1035_s9 = smov 256   ;;  %s1036_s10 = smov 128  }
  0x13   : > { %s1037_s11 = smov 8   ;;  %p206_p13 = scmp.lt.s32.totalorder %s1033_s17, 3 }
  0x14   : > { %900 = dma.hbm_to_vmem [thread:$0]  (!%p898_p11), %s189_s5, 2048, %s191_s7, %s176_s8, %s1035_s9, %s1036_s10, %s1037_s11  }
  0x15   : > { %p207_p0 = pnand %p768_p12, %p206_p13 }
  0x16   : > { %s1123_s12 = sand.u32 (!%p207_p0), 1, %s1017_s13  }
  0x17   : > { %210 = sbr.rel (%p207_p0) target bundleno = 233 (0xe9), region = 32  ;;  %s769_s18 = sshll.u32 (!%p207_p0), %s1123_s12, 7 }
  0x18   : > { %s213_s20 = scalar_lea.sflag (!%p207_p0), [#allocation4], %s1123_s12  ;;  %s1127_s22 = scalar_lea.vmem (!%p207_p0), [#allocation3], %s769_s18 }
  0x1c   : > { %1008 = dma.done.wait (%p1101_p8), %s213_s20, 2048  }
  0x1d   : > { %1010 = vsyncadd (%p1101_p8), %s213_s20, 4294965248  ;;  %v846_v0 = vld [vmem:[%s1127_s22 + $0x70] sm:$0xf]  ;;  %v877_v1 = vld [vmem:[%s1127_s22 + $0x74] sm:$0xf0]  ;;  %s771_s5 = sshll.u32 %s1025_s15, 1 }
  0x1e   : > { %v876_v2 = vld [vmem:[%s1127_s22 + $0x74] sm:$0xf]  ;;  %v847_v3 = vor.u32 %v877_v1, %v846_v0  ;;  %v848_v4 = vld [vmem:[%s1127_s22 + $0x78] sm:$0xf0]  ;;  %v838_v5 = vld [vmem:[%s1127_s22 + $0x60] sm:$0xf] }
  0x1f   : > { %v875_v6 = vld [vmem:[%s1127_s22 + $0x64] sm:$0xf0]  ;;  %v851_v7 = vor.u32 %v876_v2, %v848_v4  ;;  %v874_v8 = vld [vmem:[%s1127_s22 + $0x64] sm:$0xf]  ;;  %v840_v9 = vld [vmem:[%s1127_s22 + $0x68] sm:$0xf0] }
  0x20   : > { %433 = vmatpush.bf16.msra.mxu0 %v847_v3  ;;  %879 = vmatpush.bf16.msra.mxu2 %v847_v3  ;;  %v839_v10 = vor.u32 %v875_v6, %v838_v5  ;;  %v843_v11 = vor.u32 %v874_v8, %v840_v9  ;;  %v830_v12 = vld [vmem:[%s1127_s22 + $0x50] sm:$0xf]  ;;  %v873_v13 = vld [vmem:[%s1127_s22 + $0x54] sm:$0xf0]  ;;  %v872_v14 = vld [vmem:[%s1127_s22 + $0x54] sm:$0xf] }
  0x21   : > { %462 = vmatpush.bf16.msra.mxu1 %v851_v7  ;;  %887 = vmatpush.bf16.msra.mxu3 %v851_v7  ;;  %v832_v15 = vld [vmem:[%s1127_s22 + $0x58] sm:$0xf0]  ;;  %v831_v16 = vor.u32 %v873_v13, %v830_v12  ;;  %v822_v18 = vld [vmem:[%s1127_s22 + $0x40] sm:$0xf]  ;;  %v871_v19 = vld [vmem:[%s1127_s22 + $0x44] sm:$0xf0] }
  0x22   : > { %v835_v17 = vor.u32 %v872_v14, %v832_v15  ;;  %v870_v20 = vld [vmem:[%s1127_s22 + $0x44] sm:$0xf]  ;;  %v824_v21 = vld [vmem:[%s1127_s22 + $0x48] sm:$0xf0]  ;;  %v823_v22 = vor.u32 %v871_v19, %v822_v18  ;;  %v814_v24 = vld [vmem:[%s1127_s22 + $0x30] sm:$0xf] }
  0x23   : > { %v827_v23 = vor.u32 %v870_v20, %v824_v21  ;;  %v869_v25 = vld [vmem:[%s1127_s22 + $0x34] sm:$0xf0]  ;;  %v868_v26 = vld [vmem:[%s1127_s22 + $0x34] sm:$0xf]  ;;  %v816_v27 = vld [vmem:[%s1127_s22 + $0x38] sm:$0xf0] }
  0x24   : > { %434 = vmatpush.bf16.msra.mxu0 %v839_v10  ;;  %880 = vmatpush.bf16.msra.mxu2 %v839_v10  ;;  %v815_v28 = vor.u32 %v869_v25, %v814_v24  ;;  %v819_v29 = vor.u32 %v868_v26, %v816_v27  ;;  %v806_v30 = vld [vmem:[%s1127_s22 + $0x20] sm:$0xf]  ;;  %v867_v31 = vld [vmem:[%s1127_s22 + $0x24] sm:$0xf0]  ;;  %v866_v32 = vld [vmem:[%s1127_s22 + $0x24] sm:$0xf] }
  0x25   : > { %463 = vmatpush.bf16.msra.mxu1 %v843_v11  ;;  %888 = vmatpush.bf16.msra.mxu3 %v843_v11  ;;  %v808_v33 = vld [vmem:[%s1127_s22 + $0x28] sm:$0xf0]  ;;  %v807_v34 = vor.u32 %v867_v31, %v806_v30  ;;  %v798_v36 = vld [vmem:[%s1127_s22 + $0x10] sm:$0xf]  ;;  %v865_v37 = vld [vmem:[%s1127_s22 + $0x14] sm:$0xf0] }
  0x26   : > { %v811_v35 = vor.u32 %v866_v32, %v808_v33  ;;  %v864_v38 = vld [vmem:[%s1127_s22 + $0x14] sm:$0xf]  ;;  %v800_v39 = vld [vmem:[%s1127_s22 + $0x18] sm:$0xf0]  ;;  %v799_v40 = vor.u32 %v865_v37, %v798_v36  ;;  %v790_v42 = vld [vmem:[%s1127_s22] sm:$0xf] }
  0x27   : > { %v803_v41 = vor.u32 %v864_v38, %v800_v39  ;;  %v863_v43 = vld [vmem:[%s1127_s22 + $0x4] sm:$0xf0]  ;;  %v862_v44 = vld [vmem:[%s1127_s22 + $0x4] sm:$0xf]  ;;  %v792_v45 = vld [vmem:[%s1127_s22 + $0x8] sm:$0xf0] }
  0x28   : > { %435 = vmatpush.bf16.msra.mxu0 %v831_v16  ;;  %881 = vmatpush.bf16.msra.mxu2 %v831_v16  ;;  %v791_v46 = vor.u32 %v863_v43, %v790_v42  ;;  %v795_v47 = vor.u32 %v862_v44, %v792_v45  ;;  %v858_v48 = vld [vmem:[%s1224_s0] sm:$0xff]  ;;  %v860_v49 = vld [vmem:[%s1224_s0 + $0x10] sm:$0xff]  ;;  %v859_v50 = vld [vmem:[%s1224_s0 + $0x8] sm:$0xff]  ;;  %p263_p1 = scmp.lt.s32.totalorder %s771_s5, 3  ;;  %s770_s9 = sshll.u32 %s1123_s12, 6 }
  0x29   : > { %464 = vmatpush.bf16.msra.mxu1 %v835_v17  ;;  %889 = vmatpush.bf16.msra.mxu3 %v835_v17  ;;  %v861_v51 = vld [vmem:[%s1224_s0 + $0x18] sm:$0xff]  ;;  %s1182_s10 = scalar_lea.vmem [#allocation5], %s770_s9  ;;  %s878_s11 = sshll.u32 (%p1108_p9), %s1025_s15, 3 }
  0x2a   : > { %s1239_s5 = smov (!%p263_p1, %s771_s5), 3  ;;  %s592_s20 = scalar_lea.vmem (%p1108_p9), %s1227_s3, %s878_s11 }
  0x2b   : > { %s265_s8 = scalar_lea.vmem %s1226_s2, %s1239_s5 }
  0x2c   : > { %436 = vmatpush.bf16.msra.mxu0 %v823_v22  ;;  %882 = vmatpush.bf16.msra.mxu2 %v823_v22  ;;  %v542_v52 = vld [vmem:[%s265_s8] sm:$0x3] }
  0x2d   : > { %465 = vmatpush.bf16.msra.mxu1 %v827_v23  ;;  %890 = vmatpush.bf16.msra.mxu3 %v827_v23  ;;  %v544_v53 = vperm.slane %v542_v52, 0  ;;  %v545_v54 = vperm.slane %v542_v52, 1 }
  0x30   : > { %437 = vmatpush.bf16.msra.mxu0 %v815_v28  ;;  %883 = vmatpush.bf16.msra.mxu2 %v815_v28 }
  0x31   : > { %466 = vmatpush.bf16.msra.mxu1 %v819_v29  ;;  %891 = vmatpush.bf16.msra.mxu3 %v819_v29 }
  0x34   : > { %438 = vmatpush.bf16.msra.mxu0 %v807_v34  ;;  %884 = vmatpush.bf16.msra.mxu2 %v807_v34 }
  0x35   : > { %467 = vmatpush.bf16.msra.mxu1 %v811_v35  ;;  %892 = vmatpush.bf16.msra.mxu3 %v811_v35 }
  0x38   : > { %439 = vmatpush.bf16.msra.mxu0 %v799_v40  ;;  %885 = vmatpush.bf16.msra.mxu2 %v799_v40 }
  0x39   : > { %468 = vmatpush.bf16.msra.mxu1 %v803_v41  ;;  %893 = vmatpush.bf16.msra.mxu3 %v803_v41 }
  0x3c   : > { %440 = vmatpush.bf16.msra.mxu0 %v791_v46  ;;  %886 = vmatpush.bf16.msra.mxu2 %v791_v46 }
  0x3d   : > { %469 = vmatpush.bf16.msra.mxu1 %v795_v47  ;;  %894 = vmatpush.bf16.msra.mxu3 %v795_v47 }
  0x3f   : > { %441 = vmatmul.bf16.vlgmr.msra.gmra.mxu0 %v858_v48  ;;  %451 = vmatmul.bf16.vlgmr.msra.gmra.mxu2 %v860_v49 }
  0x40   : > { %470 = vmatmul.bf16.vlgmr.msra.gmra.mxu1 %v858_v48  ;;  %480 = vmatmul.bf16.vlgmr.msra.gmra.mxu3 %v860_v49 }
  0x4f   : > { %446 = vmatmul.bf16.gmra.mxu0 %v859_v50  ;;  %456 = vmatmul.bf16.gmra.mxu2 %v861_v51 }
  0x50   : > { %475 = vmatmul.bf16.gmra.mxu1 %v859_v50  ;;  %485 = vmatmul.bf16.gmra.mxu3 %v861_v51 }
  0xbc   : > { %v442_v55 = vpop.f32.mrf.mxu0 }
  0xbd   : > { %v548_v56 = vadd.f32 %v544_v53, %v442_v55  ;;  %v471_v57 = vpop.f32.mrf.mxu1 }
  0xbe   : > { %v549_v58 = vadd.f32 %v545_v54, %v471_v57 }
  0xc0   : > { %v564_v59 = vpack.c.bf16 %v549_v58, %v548_v56 }
  0xc2   : > { %572 = vst [vmem:[%s1182_s10] sm:$0xff] %v564_v59  ;;  %v452_v60 = vpop.f32.mrf.mxu2 }
  0xc3   : > { %v556_v61 = vadd.f32 %v544_v53, %v452_v60  ;;  %v481_v62 = vpop.f32.mrf.mxu3 }
  0xc4   : > { %v557_v63 = vadd.f32 %v545_v54, %v481_v62  ;;  %v444_v0 = vpop.f32.mrf.mxu0 }
  0xc5   : > { %v550_v1 = vadd.f32 %v544_v53, %v444_v0  ;;  %v473_v2 = vpop.f32.mrf.mxu1 }
  0xc6   : > { %v568_v3 = vpack.c.bf16 %v557_v63, %v556_v61  ;;  %v551_v4 = vadd.f32 %v545_v54, %v473_v2 }
  0xc8   : > { %576 = vst [vmem:[%s1182_s10 + $0x20] sm:$0xff] %v568_v3  ;;  %v565_v5 = vpack.c.bf16 %v551_v4, %v550_v1 }
  0xc9   : > { %v635_v31 = vld [vmem:[%s1182_s10] sm:$0xff] (%p1108_p9) }
  0xca   : > { %573 = vst [vmem:[%s1182_s10 + $0x8] sm:$0xff] %v565_v5  ;;  %v454_v6 = vpop.f32.mrf.mxu2 }
  0xcb   : > { %v558_v7 = vadd.f32 %v544_v53, %v454_v6  ;;  %v483_v8 = vpop.f32.mrf.mxu3  ;;  %636 = vst [vmem:[%s592_s20] sm:$0xff] (%p1108_p9), %v635_v31 }
  0xcc   : > { %v559_v9 = vadd.f32 %v545_v54, %v483_v8  ;;  %v447_v10 = vpop.f32.mrf.mxu0 }
  0xcd   : > { %v552_v11 = vadd.f32 %v544_v53, %v447_v10  ;;  %v476_v12 = vpop.f32.mrf.mxu1 }
  0xce   : > { %v569_v13 = vpack.c.bf16 %v559_v9, %v558_v7  ;;  %v553_v14 = vadd.f32 %v545_v54, %v476_v12 }
  0xcf   : > { %v643_v35 = vld [vmem:[%s1182_s10 + $0x20] sm:$0xff] (%p1108_p9) }
  0xd0   : > { %577 = vst [vmem:[%s1182_s10 + $0x28] sm:$0xff] %v569_v13  ;;  %v566_v15 = vpack.c.bf16 %v553_v14, %v552_v11 }
  0xd1   : > { %v637_v32 = vld [vmem:[%s1182_s10 + $0x8] sm:$0xff] (%p1108_p9)  ;;  %644 = vst [vmem:[%s592_s20 + $0x40] sm:$0xff] (%p1108_p9), %v643_v35 }
  0xd2   : > { %574 = vst [vmem:[%s1182_s10 + $0x10] sm:$0xff] %v566_v15  ;;  %v457_v16 = vpop.f32.mrf.mxu2 }
  0xd3   : > { %v560_v17 = vadd.f32 %v544_v53, %v457_v16  ;;  %v486_v18 = vpop.f32.mrf.mxu3  ;;  %638 = vst [vmem:[%s592_s20 + $0x10] sm:$0xff] (%p1108_p9), %v637_v32 }
  0xd4   : > { %v561_v19 = vadd.f32 %v545_v54, %v486_v18  ;;  %v449_v20 = vpop.f32.mrf.mxu0 }
  0xd5   : > { %v554_v21 = vadd.f32 %v544_v53, %v449_v20  ;;  %v478_v22 = vpop.f32.mrf.mxu1 }
  0xd6   : > { %v570_v23 = vpack.c.bf16 %v561_v19, %v560_v17  ;;  %v555_v24 = vadd.f32 %v545_v54, %v478_v22 }
  0xd7   : > { %v645_v36 = vld [vmem:[%s1182_s10 + $0x28] sm:$0xff] (%p1108_p9) }
  0xd8   : > { %578 = vst [vmem:[%s1182_s10 + $0x30] sm:$0xff] %v570_v23  ;;  %v567_v25 = vpack.c.bf16 %v555_v24, %v554_v21 }
  0xd9   : > { %v639_v33 = vld [vmem:[%s1182_s10 + $0x10] sm:$0xff] (%p1108_p9)  ;;  %646 = vst [vmem:[%s592_s20 + $0x50] sm:$0xff] (%p1108_p9), %v645_v36 }
  0xda   : > { %575 = vst [vmem:[%s1182_s10 + $0x18] sm:$0xff] %v567_v25  ;;  %v459_v26 = vpop.f32.mrf.mxu2 }
  0xdb   : > { %v562_v27 = vadd.f32 %v544_v53, %v459_v26  ;;  %v488_v28 = vpop.f32.mrf.mxu3  ;;  %640 = vst [vmem:[%s592_s20 + $0x20] sm:$0xff] (%p1108_p9), %v639_v33 }
  0xdc   : > { %v563_v29 = vadd.f32 %v545_v54, %v488_v28  ;;  %586 = sbr.rel (!%p1108_p9) target bundleno = 233 (0xe9), region = 48 }
  0xde   : > { %v571_v30 = vpack.c.bf16 %v563_v29, %v562_v27 }
  0xdf   : > { %v647_v37 = vld [vmem:[%s1182_s10 + $0x30] sm:$0xff] (%p1108_p9) }
  0xe0   : > { %579 = vst [vmem:[%s1182_s10 + $0x38] sm:$0xff] %v571_v30 }
  0xe1   : > { %v641_v34 = vld [vmem:[%s1182_s10 + $0x18] sm:$0xff]  ;;  %648 = vst [vmem:[%s592_s20 + $0x60] sm:$0xff] %v647_v37 }
  0xe2   : > { %642 = vst [vmem:[%s592_s20 + $0x30] sm:$0xff] %v641_v34 }
  0xe7   : > { %v649_v38 = vld [vmem:[%s1182_s10 + $0x38] sm:$0xff] }
  0xe8   : > { %650 = vst [vmem:[%s592_s20 + $0x70] sm:$0xff] %v649_v38 }
  0xe9 PF: > { %s16_s17 = sadd.s32 1, %s1033_s17   ;;  %s1231_s12 = smov %s1017_s13 }
  0xea   : > { %p13_p2 = scmp.ge.s32.totalorder %s16_s17, 4   ;;  %s1232_s13 = smov %s1021_s14 }
  0xeb   : > { %s1233_s14 = smov %s1106_s24  ;;  %s1234_s15 = smov %s1029_s16 }
  0xec   : > { %s1235_s16 = smov %s1237_s19  ;;  %15 = sbr.rel (!%p13_p2) target bundleno = 4 (0x4), region = 124 }
  0xf1   :  { %666 = vsyncpa [#allocation4], 1 }
  0xf2   :  { %668 = vsyncpa [#allocation4 + $0x1], 1 }

// kernel: lstm_model_forward.6
= control target key start
LH: loop header
LB: loop body
LE: loop exit
PB: predicated region body
PF: predicated region fallthrough
CT: control target
= control target key end

     0   :  { %12 = vsyncpa [#allocation5], 0  ;;  %s4152_s24 = smov [#allocation4]   ;;  %s4153_s26 = smov 256   ;;  %s4333_s0 = inlined_call_operand.vmem [shape: bf16[8,8,512], index: 0, kind: input, shape index: {}]   ;;  %s4334_s1 = inlined_call_operand.hbm [shape: bf16[128,512], index: 1, kind: input, shape index: {}]   ;;  %s4335_s2 = inlined_call_operand.vmem [shape: f32[8,128], index: 2, kind: input, shape index: {}]   ;;  %s4336_s3 = inlined_call_operand.vmem [shape: f32[8,128], index: 3, kind: input, shape index: {}]   ;;  %s4337_s4 = inlined_call_operand.vmem [shape: bf16[8,8,128], index: 4, kind: output, shape index: {0}]   ;;  %s4338_s5 = inlined_call_operand.vmem [shape: f32[8,128], index: 5, kind: output, shape index: {1}]   ;;  %s4339_s6 = inlined_call_operand.vmem [shape: f32[8,128], index: 6, kind: output, shape index: {2}]  }
   0x1   :  { %s19_s23 = sshll.u32 %s4334_s1, 4  ;;  %s21_s25 = sshll.u32 %s4152_s24, 4  ;;  %s20_s23 = int_to_ptr.hbm [resolvable:$true] %s19_s23  ;;  %s22_s25 = int_to_ptr.vmem [resolvable:$true] %s21_s25 }
   0x2   :  { %s4154_s27 = smov 16  }
   0x3   :  { %27 = dma.hbm_to_vmem [thread:$0]  %s20_s23, 4096, %s22_s25, [#allocation5], %s4153_s26, %s4153_s26, %s4154_s27  }
   0x4   :  { %4150 = dma.done.wait [#allocation5], 4096  }
   0x5   :  { %4151 = vsyncadd [#allocation5], 4294963200  ;;  %v2784_v0 = vld [vmem:[#allocation4 + $0xe0] sm:$0xf]  ;;  %v3769_v1 = vld [vmem:[#allocation4 + $0xec] sm:$0xf0] }
   0x6   :  { %v3767_v2 = vld [vmem:[#allocation4 + $0xe4] sm:$0xf]  ;;  %v2785_v3 = vor.u32 %v3769_v1, %v2784_v0  ;;  %v2786_v4 = vld [vmem:[#allocation4 + $0xf0] sm:$0xf0]  ;;  %v3768_v5 = vld [vmem:[#allocation4 + $0xec] sm:$0xf] }
   0x7   :  { %v2794_v6 = vld [vmem:[#allocation4 + $0xf8] sm:$0xf0]  ;;  %v2789_v7 = vor.u32 %v3767_v2, %v2786_v4  ;;  %v2768_v9 = vld [vmem:[#allocation4 + $0xc0] sm:$0xf]  ;;  %v3765_v10 = vld [vmem:[#allocation4 + $0xcc] sm:$0xf0] }
   0x8   :  { %v2797_v8 = vor.u32 %v3768_v5, %v2794_v6  ;;  %v3763_v11 = vld [vmem:[#allocation4 + $0xc4] sm:$0xf]  ;;  %244 = vmatpush.bf16.msra.mxu0 %v2785_v3  ;;  %v2769_v12 = vor.u32 %v3765_v10, %v2768_v9  ;;  %v2770_v13 = vld [vmem:[#allocation4 + $0xd0] sm:$0xf0]  ;;  %v3764_v14 = vld [vmem:[#allocation4 + $0xcc] sm:$0xf] }
   0x9   :  { %v2778_v15 = vld [vmem:[#allocation4 + $0xd8] sm:$0xf0]  ;;  %257 = vmatpush.bf16.msra.mxu1 %v2789_v7  ;;  %v2773_v16 = vor.u32 %v3763_v11, %v2770_v13  ;;  %v2792_v18 = vld [vmem:[#allocation4 + $0xe8] sm:$0xf]  ;;  %v3770_v19 = vld [vmem:[#allocation4 + $0xf4] sm:$0xf0] }
   0xa   :  { %283 = vmatpush.bf16.msra.mxu3 %v2797_v8  ;;  %v2781_v17 = vor.u32 %v3764_v14, %v2778_v15  ;;  %v2752_v20 = vld [vmem:[#allocation4 + $0xa0] sm:$0xf]  ;;  %v2793_v21 = vor.u32 %v3770_v19, %v2792_v18  ;;  %v3761_v22 = vld [vmem:[#allocation4 + $0xac] sm:$0xf0]  ;;  %v3759_v23 = vld [vmem:[#allocation4 + $0xa4] sm:$0xf] }
   0xb   :  { %v2754_v24 = vld [vmem:[#allocation4 + $0xb0] sm:$0xf0]  ;;  %v3760_v25 = vld [vmem:[#allocation4 + $0xac] sm:$0xf]  ;;  %v2762_v26 = vld [vmem:[#allocation4 + $0xb8] sm:$0xf0]  ;;  %v2753_v28 = vor.u32 %v3761_v22, %v2752_v20 }
   0xc   :  { %v2776_v27 = vld [vmem:[#allocation4 + $0xc8] sm:$0xf]  ;;  %245 = vmatpush.bf16.msra.mxu0 %v2769_v12  ;;  %270 = vmatpush.bf16.msra.mxu2 %v2793_v21  ;;  %v3766_v29 = vld [vmem:[#allocation4 + $0xd4] sm:$0xf0]  ;;  %v2736_v30 = vld [vmem:[#allocation4 + $0x80] sm:$0xf]  ;;  %v2757_v32 = vor.u32 %v3759_v23, %v2754_v24  ;;  %v2765_v33 = vor.u32 %v3760_v25, %v2762_v26 }
   0xd   :  { %v3757_v31 = vld [vmem:[#allocation4 + $0x8c] sm:$0xf0]  ;;  %258 = vmatpush.bf16.msra.mxu1 %v2773_v16  ;;  %v2777_v34 = vor.u32 %v3766_v29, %v2776_v27  ;;  %v3755_v35 = vld [vmem:[#allocation4 + $0x84] sm:$0xf]  ;;  %v2738_v36 = vld [vmem:[#allocation4 + $0x90] sm:$0xf0] }
   0xe   :  { %284 = vmatpush.bf16.msra.mxu3 %v2781_v17  ;;  %v3756_v37 = vld [vmem:[#allocation4 + $0x8c] sm:$0xf]  ;;  %v2746_v38 = vld [vmem:[#allocation4 + $0x98] sm:$0xf0]  ;;  %v2760_v39 = vld [vmem:[#allocation4 + $0xa8] sm:$0xf]  ;;  %v2737_v41 = vor.u32 %v3757_v31, %v2736_v30  ;;  %v2741_v45 = vor.u32 %v3755_v35, %v2738_v36 }
   0xf   :  { %v3762_v40 = vld [vmem:[#allocation4 + $0xb4] sm:$0xf0]  ;;  %v2720_v43 = vld [vmem:[#allocation4 + $0x60] sm:$0xf]  ;;  %v3753_v44 = vld [vmem:[#allocation4 + $0x6c] sm:$0xf0]  ;;  %v2749_v46 = vor.u32 %v3756_v37, %v2746_v38 }
  0x10   :  { %246 = vmatpush.bf16.msra.mxu0 %v2753_v28  ;;  %271 = vmatpush.bf16.msra.mxu2 %v2777_v34  ;;  %v2761_v42 = vor.u32 %v3762_v40, %v2760_v39  ;;  %v3751_v47 = vld [vmem:[#allocation4 + $0x64] sm:$0xf]  ;;  %v2744_v48 = vld [vmem:[#allocation4 + $0x88] sm:$0xf]  ;;  %v3758_v49 = vld [vmem:[#allocation4 + $0x94] sm:$0xf0]  ;;  %v2721_v53 = vor.u32 %v3753_v44, %v2720_v43 }
  0x11   :  { %259 = vmatpush.bf16.msra.mxu1 %v2757_v32  ;;  %v2722_v50 = vld [vmem:[#allocation4 + $0x70] sm:$0xf0]  ;;  %v3752_v51 = vld [vmem:[#allocation4 + $0x6c] sm:$0xf]  ;;  %v2730_v52 = vld [vmem:[#allocation4 + $0x78] sm:$0xf0]  ;;  %v2745_v54 = vor.u32 %v3758_v49, %v2744_v48 }
  0x12   :  { %285 = vmatpush.bf16.msra.mxu3 %v2765_v33  ;;  %v2704_v55 = vld [vmem:[#allocation4 + $0x40] sm:$0xf]  ;;  %v3749_v56 = vld [vmem:[#allocation4 + $0x4c] sm:$0xf0]  ;;  %v2725_v57 = vor.u32 %v3751_v47, %v2722_v50  ;;  %v2733_v58 = vor.u32 %v3752_v51, %v2730_v52  ;;  %v3747_v59 = vld [vmem:[#allocation4 + $0x44] sm:$0xf] }
  0x13   :  { %v2728_v60 = vld [vmem:[#allocation4 + $0x68] sm:$0xf]  ;;  %v3754_v61 = vld [vmem:[#allocation4 + $0x74] sm:$0xf0]  ;;  %v2706_v62 = vld [vmem:[#allocation4 + $0x50] sm:$0xf0]  ;;  %v2705_v1 = vor.u32 %v3749_v56, %v2704_v55 }
  0x14   :  { %247 = vmatpush.bf16.msra.mxu0 %v2737_v41  ;;  %272 = vmatpush.bf16.msra.mxu2 %v2761_v42  ;;  %v3748_v63 = vld [vmem:[#allocation4 + $0x4c] sm:$0xf]  ;;  %v2714_v0 = vld [vmem:[#allocation4 + $0x58] sm:$0xf0]  ;;  %v2729_v2 = vor.u32 %v3754_v61, %v2728_v60  ;;  %v2688_v3 = vld [vmem:[#allocation4 + $0x20] sm:$0xf]  ;;  %v2709_v5 = vor.u32 %v3747_v59, %v2706_v62 }
  0x15   :  { %260 = vmatpush.bf16.msra.mxu1 %v2741_v45  ;;  %v3745_v4 = vld [vmem:[#allocation4 + $0x2c] sm:$0xf0]  ;;  %v2717_v6 = vor.u32 %v3748_v63, %v2714_v0  ;;  %v3743_v7 = vld [vmem:[#allocation4 + $0x24] sm:$0xf]  ;;  %v2712_v8 = vld [vmem:[#allocation4 + $0x48] sm:$0xf] }
  0x16   :  { %286 = vmatpush.bf16.msra.mxu3 %v2749_v46  ;;  %v3750_v9 = vld [vmem:[#allocation4 + $0x54] sm:$0xf0]  ;;  %v2690_v10 = vld [vmem:[#allocation4 + $0x30] sm:$0xf0]  ;;  %v3744_v11 = vld [vmem:[#allocation4 + $0x2c] sm:$0xf]  ;;  %v2689_v13 = vor.u32 %v3745_v4, %v2688_v3 }
  0x17   :  { %v2698_v12 = vld [vmem:[#allocation4 + $0x38] sm:$0xf0]  ;;  %v2713_v14 = vor.u32 %v3750_v9, %v2712_v8  ;;  %v2672_v15 = vld [vmem:[#allocation4] sm:$0xf]  ;;  %v3741_v16 = vld [vmem:[#allocation4 + $0xc] sm:$0xf0]  ;;  %v2693_v17 = vor.u32 %v3743_v7, %v2690_v10 }
  0x18   :  { %248 = vmatpush.bf16.msra.mxu0 %v2721_v53  ;;  %273 = vmatpush.bf16.msra.mxu2 %v2745_v54  ;;  %v2701_v18 = vor.u32 %v3744_v11, %v2698_v12  ;;  %v3739_v19 = vld [vmem:[#allocation4 + $0x4] sm:$0xf]  ;;  %v2696_v20 = vld [vmem:[#allocation4 + $0x28] sm:$0xf]  ;;  %v3746_v21 = vld [vmem:[#allocation4 + $0x34] sm:$0xf0]  ;;  %v2673_v25 = vor.u32 %v3741_v16, %v2672_v15 }
  0x19   :  { %261 = vmatpush.bf16.msra.mxu1 %v2725_v57  ;;  %v2674_v22 = vld [vmem:[#allocation4 + $0x10] sm:$0xf0]  ;;  %v3740_v23 = vld [vmem:[#allocation4 + $0xc] sm:$0xf]  ;;  %v2682_v24 = vld [vmem:[#allocation4 + $0x18] sm:$0xf0]  ;;  %v2697_v27 = vor.u32 %v3746_v21, %v2696_v20 }
  0x1a   :  { %287 = vmatpush.bf16.msra.mxu3 %v2733_v58  ;;  %v40_v26 = vld [vmem:[%s4335_s2] sm:$0xff]  ;;  %v2677_v28 = vor.u32 %v3739_v19, %v2674_v22  ;;  %v2685_v29 = vor.u32 %v3740_v23, %v2682_v24  ;;  %v2680_v30 = vld [vmem:[#allocation4 + $0x8] sm:$0xf]  ;;  %v3742_v31 = vld [vmem:[#allocation4 + $0x14] sm:$0xf0] }
  0x1b   :  { %v51_v32 = vpack.c.bf16 %v40_v26, %v40_v26  ;;  %v2681_v33 = vor.u32 %v3742_v31, %v2680_v30  ;;  %v2917_v34 = vld [vmem:[#allocation4 + $0xe0] sm:$0xf]  ;;  %v3801_v35 = vld [vmem:[#allocation4 + $0xec] sm:$0xf0]  ;;  %v3799_v36 = vld [vmem:[#allocation4 + $0xe4] sm:$0xf] }
  0x1c   :  { %249 = vmatpush.bf16.msra.mxu0 %v2705_v1  ;;  %274 = vmatpush.bf16.msra.mxu2 %v2729_v2  ;;  %v2918_v37 = vor.u32 %v3801_v35, %v2917_v34  ;;  %v2919_v38 = vld [vmem:[#allocation4 + $0xf0] sm:$0xf0]  ;;  %v2925_v39 = vld [vmem:[#allocation4 + $0xe8] sm:$0xf]  ;;  %v3802_v40 = vld [vmem:[#allocation4 + $0xf4] sm:$0xf0] }
  0x1d   :  { %262 = vmatpush.bf16.msra.mxu1 %v2709_v5  ;;  %v2922_v41 = vor.u32 %v3799_v36, %v2919_v38  ;;  %v2926_v42 = vor.u32 %v3802_v40, %v2925_v39  ;;  %v3800_v43 = vld [vmem:[#allocation4 + $0xec] sm:$0xf]  ;;  %v2927_v44 = vld [vmem:[#allocation4 + $0xf8] sm:$0xf0]  ;;  %v2901_v46 = vld [vmem:[#allocation4 + $0xc0] sm:$0xf] }
  0x1e   :  { %288 = vmatpush.bf16.msra.mxu3 %v2717_v6  ;;  %v2930_v45 = vor.u32 %v3800_v43, %v2927_v44  ;;  %v3797_v47 = vld [vmem:[#allocation4 + $0xcc] sm:$0xf0]  ;;  %v3795_v48 = vld [vmem:[#allocation4 + $0xc4] sm:$0xf]  ;;  %v2903_v50 = vld [vmem:[#allocation4 + $0xd0] sm:$0xf0] }
  0x1f   :  { %v2902_v49 = vor.u32 %v3797_v47, %v2901_v46  ;;  %v2909_v51 = vld [vmem:[#allocation4 + $0xc8] sm:$0xf]  ;;  %v3798_v52 = vld [vmem:[#allocation4 + $0xd4] sm:$0xf0]  ;;  %v2906_v53 = vor.u32 %v3795_v48, %v2903_v50  ;;  %v3796_v55 = vld [vmem:[#allocation4 + $0xcc] sm:$0xf] }
  0x20   :  { %250 = vmatpush.bf16.msra.mxu0 %v2689_v13  ;;  %275 = vmatpush.bf16.msra.mxu2 %v2713_v14  ;;  %v2910_v54 = vor.u32 %v3798_v52, %v2909_v51  ;;  %v2911_v56 = vld [vmem:[#allocation4 + $0xd8] sm:$0xf0]  ;;  %v2885_v58 = vld [vmem:[#allocation4 + $0xa0] sm:$0xf]  ;;  %v3793_v59 = vld [vmem:[#allocation4 + $0xac] sm:$0xf0] }
  0x21   :  { %263 = vmatpush.bf16.msra.mxu1 %v2693_v17  ;;  %v2914_v57 = vor.u32 %v3796_v55, %v2911_v56  ;;  %v3791_v60 = vld [vmem:[#allocation4 + $0xa4] sm:$0xf]  ;;  %v2886_v61 = vor.u32 %v3793_v59, %v2885_v58  ;;  %v2887_v62 = vld [vmem:[#allocation4 + $0xb0] sm:$0xf0]  ;;  %v2893_v63 = vld [vmem:[#allocation4 + $0xa8] sm:$0xf] }
  0x22   :  { %289 = vmatpush.bf16.msra.mxu3 %v2701_v18  ;;  %v3794_v0 = vld [vmem:[#allocation4 + $0xb4] sm:$0xf0]  ;;  %v2890_v1 = vor.u32 %v3791_v60, %v2887_v62  ;;  %v3792_v3 = vld [vmem:[#allocation4 + $0xac] sm:$0xf]  ;;  %v2895_v4 = vld [vmem:[#allocation4 + $0xb8] sm:$0xf0] }
  0x23   :  { %v2894_v2 = vor.u32 %v3794_v0, %v2893_v63  ;;  %v44_v5 = vld [vmem:[%s4333_s0] sm:$0xff]  ;;  %v2898_v6 = vor.u32 %v3792_v3, %v2895_v4  ;;  %v3789_v8 = vld [vmem:[#allocation4 + $0x8c] sm:$0xf0]  ;;  %v2871_v11 = vld [vmem:[#allocation4 + $0x90] sm:$0xf0] }
  0x24   :  { %251 = vmatpush.bf16.msra.mxu0 %v2673_v25  ;;  %276 = vmatpush.bf16.msra.mxu2 %v2697_v27  ;;  %v2869_v7 = vld [vmem:[#allocation4 + $0x80] sm:$0xf]  ;;  %v3787_v9 = vld [vmem:[#allocation4 + $0x84] sm:$0xf]  ;;  %v2877_v12 = vld [vmem:[#allocation4 + $0x88] sm:$0xf]  ;;  %v46_v18 = vunpack.c.l.bf16 %v44_v5  ;;  %v47_v20 = vunpack.c.h.bf16 %v44_v5 }
  0x25   :  { %264 = vmatpush.bf16.msra.mxu1 %v2677_v28  ;;  %v2870_v10 = vor.u32 %v3789_v8, %v2869_v7  ;;  %v3790_v13 = vld [vmem:[#allocation4 + $0x94] sm:$0xf0]  ;;  %v2874_v14 = vor.u32 %v3787_v9, %v2871_v11  ;;  %v3788_v16 = vld [vmem:[#allocation4 + $0x8c] sm:$0xf]  ;;  %v2879_v17 = vld [vmem:[#allocation4 + $0x98] sm:$0xf0] }
  0x26   :  { %290 = vmatpush.bf16.msra.mxu3 %v2685_v29  ;;  %v2878_v15 = vor.u32 %v3790_v13, %v2877_v12  ;;  %v2882_v19 = vor.u32 %v3788_v16, %v2879_v17  ;;  %v2853_v21 = vld [vmem:[#allocation4 + $0x60] sm:$0xf]  ;;  %v3785_v22 = vld [vmem:[#allocation4 + $0x6c] sm:$0xf0]  ;;  %v3783_v23 = vld [vmem:[#allocation4 + $0x64] sm:$0xf] }
  0x27   :  { %252 = vmatmul.bf16.vlgmr.msra.gmra.mxu0 %v51_v32  ;;  %v2854_v24 = vor.u32 %v3785_v22, %v2853_v21  ;;  %v2855_v25 = vld [vmem:[#allocation4 + $0x70] sm:$0xf0]  ;;  %v2861_v26 = vld [vmem:[#allocation4 + $0x68] sm:$0xf]  ;;  %v3786_v29 = vld [vmem:[#allocation4 + $0x74] sm:$0xf0] }
  0x28   :  { %265 = vmatmul.bf16.vlgmr.msra.gmra.mxu1 %v51_v32  ;;  %277 = vmatpush.bf16.msra.mxu2 %v2681_v33  ;;  %v2858_v28 = vor.u32 %v3783_v23, %v2855_v25  ;;  %v3784_v30 = vld [vmem:[#allocation4 + $0x6c] sm:$0xf]  ;;  %v2863_v31 = vld [vmem:[#allocation4 + $0x78] sm:$0xf0]  ;;  %v2862_v35 = vor.u32 %v3786_v29, %v2861_v26  ;;  %v2837_v38 = vld [vmem:[#allocation4 + $0x40] sm:$0xf] }
  0x29   :  { %291 = vmatmul.bf16.vlgmr.msra.gmra.mxu3 %v51_v32  ;;  %569 = vmatpush.bf16.msrb.mxu0 %v2918_v37  ;;  %v4202_v34 = vld [vmem:[%s4333_s0 + $0x8] sm:$0xff]  ;;  %v2866_v36 = vor.u32 %v3784_v30, %v2863_v31  ;;  %v3781_v39 = vld [vmem:[#allocation4 + $0x4c] sm:$0xf0]  ;;  %v3779_v40 = vld [vmem:[#allocation4 + $0x44] sm:$0xf] }
  0x2a   :  { %582 = vmatpush.bf16.msrb.mxu1 %v2922_v41  ;;  %608 = vmatpush.bf16.msrb.mxu3 %v2930_v45  ;;  %v2839_v43 = vld [vmem:[#allocation4 + $0x50] sm:$0xf0]  ;;  %v2845_v44 = vld [vmem:[#allocation4 + $0x48] sm:$0xf]  ;;  %v49_v46 = vunpack.c.h.bf16 %v4202_v34  ;;  %v3782_v48 = vld [vmem:[#allocation4 + $0x54] sm:$0xf0]  ;;  %v48_v23 = vunpack.c.l.bf16 %v4202_v34 }
  0x2b   :  { %278 = vmatmul.bf16.vlgmr.msra.gmra.mxu2 %v51_v32  ;;  %v2842_v47 = vor.u32 %v3779_v40, %v2839_v43  ;;  %v2846_v50 = vor.u32 %v3782_v48, %v2845_v44  ;;  %v2847_v51 = vld [vmem:[#allocation4 + $0x58] sm:$0xf0]  ;;  %v2821_v52 = vld [vmem:[#allocation4 + $0x20] sm:$0xf]  ;;  %v3775_v56 = vld [vmem:[#allocation4 + $0x24] sm:$0xf] }
  0x2c   :  { %595 = vmatpush.bf16.msrb.mxu2 %v2926_v42  ;;  %v2838_v42 = vor.u32 %v3781_v39, %v2837_v38  ;;  %v2829_v58 = vld [vmem:[#allocation4 + $0x28] sm:$0xf]  ;;  %v3776_v62 = vld [vmem:[#allocation4 + $0x2c] sm:$0xf]  ;;  %v2831_v63 = vld [vmem:[#allocation4 + $0x38] sm:$0xf0] }
  0x2d   :  { %570 = vmatpush.bf16.msrb.mxu0 %v2902_v49  ;;  %v3780_v49 = vld [vmem:[#allocation4 + $0x4c] sm:$0xf]  ;;  %v2834_v3 = vor.u32 %v3776_v62, %v2831_v63  ;;  %v2805_v4 = vld [vmem:[#allocation4] sm:$0xf]  ;;  %v3773_v5 = vld [vmem:[#allocation4 + $0xc] sm:$0xf0] }
  0x2e   :  { %583 = vmatpush.bf16.msrb.mxu1 %v2906_v53  ;;  %609 = vmatpush.bf16.msrb.mxu3 %v2914_v57  ;;  %v3777_v53 = vld [vmem:[#allocation4 + $0x2c] sm:$0xf0]  ;;  %v2823_v57 = vld [vmem:[#allocation4 + $0x30] sm:$0xf0]  ;;  %v2806_v8 = vor.u32 %v3773_v5, %v2805_v4  ;;  %v3774_v11 = vld [vmem:[#allocation4 + $0x14] sm:$0xf0] }
  0x2f   :  { %v2822_v55 = vor.u32 %v3777_v53, %v2821_v52  ;;  %v2826_v60 = vor.u32 %v3775_v56, %v2823_v57  ;;  %v2807_v9 = vld [vmem:[#allocation4 + $0x10] sm:$0xf0]  ;;  %v42_v48 = vld [vmem:[%s4336_s3] sm:$0xff]  ;;  %v3833_v4 = vld [vmem:[#allocation4 + $0xec] sm:$0xf0] }
  0x30   :  { %596 = vmatpush.bf16.msrb.mxu2 %v2910_v54  ;;  %v2850_v54 = vor.u32 %v3780_v49, %v2847_v51  ;;  %v3831_v5 = vld [vmem:[#allocation4 + $0xe4] sm:$0xf] }
  0x31   :  { %571 = vmatpush.bf16.msrb.mxu0 %v2886_v61  ;;  %v3778_v61 = vld [vmem:[#allocation4 + $0x34] sm:$0xf0] }
  0x32   :  { %584 = vmatpush.bf16.msrb.mxu1 %v2890_v1  ;;  %610 = vmatpush.bf16.msrb.mxu3 %v2898_v6  ;;  %v3771_v6 = vld [vmem:[#allocation4 + $0x4] sm:$0xf] }
  0x33   :  { %v2810_v13 = vor.u32 %v3771_v6, %v2807_v9  ;;  %v3834_v9 = vld [vmem:[#allocation4 + $0xf4] sm:$0xf0] }
  0x34   :  { %597 = vmatpush.bf16.msrb.mxu2 %v2894_v2  ;;  %v2830_v2 = vor.u32 %v3778_v61, %v2829_v58 }
  0x35   :  { %572 = vmatpush.bf16.msrb.mxu0 %v2870_v10  ;;  %v2813_v10 = vld [vmem:[#allocation4 + $0x8] sm:$0xf] }
  0x36   :  { %585 = vmatpush.bf16.msrb.mxu1 %v2874_v14  ;;  %611 = vmatpush.bf16.msrb.mxu3 %v2882_v19  ;;  %v3772_v14 = vld [vmem:[#allocation4 + $0xc] sm:$0xf] }
  0x38   :  { %598 = vmatpush.bf16.msrb.mxu2 %v2878_v15  ;;  %v2815_v15 = vld [vmem:[#allocation4 + $0x18] sm:$0xf0] }
  0x39   :  { %573 = vmatpush.bf16.msrb.mxu0 %v2854_v24  ;;  %v2818_v21 = vor.u32 %v3772_v14, %v2815_v15  ;;  %v3035_v15 = vld [vmem:[#allocation4 + $0xc0] sm:$0xf] }
  0x3a   :  { %586 = vmatpush.bf16.msrb.mxu1 %v2858_v28  ;;  %612 = vmatpush.bf16.msrb.mxu3 %v2866_v36 }
  0x3c   :  { %599 = vmatpush.bf16.msrb.mxu2 %v2862_v35 }
  0x3d   :  { %574 = vmatpush.bf16.msrb.mxu0 %v2838_v42 }
  0x3e   :  { %587 = vmatpush.bf16.msrb.mxu1 %v2842_v47  ;;  %613 = vmatpush.bf16.msrb.mxu3 %v2850_v54 }
  0x40   :  { %600 = vmatpush.bf16.msrb.mxu2 %v2846_v50 }
  0x41   :  { %575 = vmatpush.bf16.msrb.mxu0 %v2822_v55 }
  0x42   :  { %588 = vmatpush.bf16.msrb.mxu1 %v2826_v60  ;;  %614 = vmatpush.bf16.msrb.mxu3 %v2834_v3  ;;  %v3051_v3 = vld [vmem:[#allocation4 + $0xe0] sm:$0xf] }
  0x43   :  { %v3052_v6 = vor.u32 %v3833_v4, %v3051_v3  ;;  %v2997_v3 = vld [vmem:[#allocation4 + $0x78] sm:$0xf0] }
  0x44   :  { %601 = vmatpush.bf16.msrb.mxu2 %v2830_v2 }
  0x45   :  { %576 = vmatpush.bf16.msrb.mxu0 %v2806_v8  ;;  %v3059_v8 = vld [vmem:[#allocation4 + $0xe8] sm:$0xf] }
  0x46   :  { %589 = vmatpush.bf16.msrb.mxu1 %v2810_v13  ;;  %615 = vmatpush.bf16.msrb.mxu3 %v2818_v21  ;;  %v3061_v13 = vld [vmem:[#allocation4 + $0xf8] sm:$0xf0]  ;;  %v3830_v21 = vld [vmem:[#allocation4 + $0xd4] sm:$0xf0] }
  0x49   :  { %895 = vmatpush.bf16.msra.mxu0 %v3052_v6  ;;  %v4221_v6 = vld [vmem:[%s4333_s0 + $0x18] sm:$0xff] }
  0xa4   :  { %v253_v27 = vpop.f32.mrf.mxu0 }
  0xa5   :  { %v296_v32 = vadd.f32 %v253_v27, %v46_v18  ;;  %v266_v33 = vpop.f32.mrf.mxu1  ;;  %v2814_v18 = vor.u32 %v3774_v11, %v2813_v10  ;;  %v3060_v11 = vor.u32 %v3834_v9, %v3059_v8  ;;  %v2971_v8 = vld [vmem:[#allocation4 + $0x40] sm:$0xf]  ;;  %v3813_v9 = vld [vmem:[#allocation4 + $0x4c] sm:$0xf0] }
  0xa6   :  { %v297_v37 = vadd.f32 %v266_v33, %v47_v20 }
  0xa7   :  { %v2798_v41 = vmul.f32 -1.442695, %v296_v32  ;;  %602 = vmatpush.bf16.msrb.mxu2 %v2814_v18 }
  0xa8   :  { %v2799_v45 = vmul.f32 -1.442695, %v297_v37 }
  0xa9   :  { %3998 = vpow2.f32 %v2798_v41 }
  0xaa   :  { %4000 = vpow2.f32 %v2799_v45 }
  0xab   :  { %921 = vmatpush.bf16.msra.mxu2 %v3060_v11 }
  0xac   :  { %v292_v59 = vpop.f32.mrf.mxu3  ;;  %v255_v1 = vpop.f32.mrf.mxu0 }
  0xad   :  { %v299_v0 = vadd.f32 %v292_v59, %v49_v46  ;;  %v268_v7 = vpop.f32.mrf.mxu1 }
  0xae   :  { %v279_v17 = vpop.f32.mrf.mxu2  ;;  %v3053_v7 = vld [vmem:[#allocation4 + $0xf0] sm:$0xf0] }
  0xaf   :  { %v2800_v12 = vmul.f32 -1.442695, %v299_v0  ;;  %v3999_v16 = vpop.eup %3998  ;;  %v298_v26 = vadd.f32 %v279_v17, %v48_v23  ;;  %v3056_v10 = vor.u32 %v3831_v5, %v3053_v7  ;;  %v3827_v17 = vld [vmem:[#allocation4 + $0xc4] sm:$0xf] }
  0xb0   :  { %v4001_v19 = vpop.eup %4000  ;;  %v303_v20 = vadd.f32 1.0, %v3999_v16  ;;  %v3829_v16 = vld [vmem:[#allocation4 + $0xcc] sm:$0xf0] }
  0xb1   :  { %4002 = vpow2.f32 %v2800_v12  ;;  %v322_v22 = vadd.f32 1.0, %v4001_v19  ;;  %v3832_v12 = vld [vmem:[#allocation4 + $0xec] sm:$0xf]  ;;  %908 = vmatpush.bf16.msra.mxu1 %v3056_v10  ;;  %v3036_v18 = vor.u32 %v3829_v16, %v3035_v15  ;;  %v3037_v19 = vld [vmem:[#allocation4 + $0xd0] sm:$0xf0]  ;;  %v374_v15 = vunpack.c.h.bf16 %v4221_v6 }
  0xb2   :  { %4004 = vrcp.f32 %v303_v20  ;;  %v315_v36 = vand.u32 2147483648, %v303_v20  ;;  %v313_v38 = vand.u32 2147483647, %v303_v20  ;;  %vm309_vm2 = vweird.f32 %v303_v20  ;;  %v3811_v10 = vld [vmem:[#allocation4 + $0x44] sm:$0xf] }
  0xb3   :  { %4006 = vrcp.f32 %v322_v22  ;;  %v334_v37 = vand.u32 2147483648, %v322_v22  ;;  %v332_v40 = vand.u32 2147483647, %v322_v22  ;;  %vm328_vm3 = vweird.f32 %v322_v22  ;;  %896 = vmatpush.bf16.msra.mxu0 %v3036_v18  ;;  %v3814_v18 = vld [vmem:[#allocation4 + $0x54] sm:$0xf0] }
  0xb4   :  { %v294_v24 = vpop.f32.mrf.mxu3  ;;  %v316_v45 = vor.u32 1.1754944e-38, %v315_v36  ;;  %vm314_vm6 = vcmp.eq.f32.partialorder %v313_v38, 8.507059e+37  ;;  %v3064_v14 = vor.u32 %v3832_v12, %v3061_v13  ;;  %v2801_v38 = vld [vmem:[%s4333_s0 + $0x10] sm:$0xff]  ;;  %v2972_v13 = vor.u32 %v3813_v9, %v2971_v8 }
  0xb5   :  { %v335_v47 = vor.u32 1.1754944e-38, %v334_v37  ;;  %vm333_vm7 = vcmp.eq.f32.partialorder %v332_v40, 8.507059e+37  ;;  %v3828_v24 = vld [vmem:[#allocation4 + $0xcc] sm:$0xf]  ;;  %v3003_v40 = vld [vmem:[#allocation4 + $0x80] sm:$0xf] }
  0xb6   :  { %v281_v28 = vpop.f32.mrf.mxu2  ;;  %934 = vmatpush.bf16.msra.mxu3 %v3064_v14  ;;  %v3824_v37 = vld [vmem:[#allocation4 + $0xac] sm:$0xf]  ;;  %v2973_v14 = vld [vmem:[#allocation4 + $0x50] sm:$0xf0] }
  0xb7   :  { %v4003_v25 = vpop.eup %4002  ;;  %v3825_v28 = vld [vmem:[#allocation4 + $0xac] sm:$0xf0]  ;;  %v2976_v16 = vor.u32 %v3811_v10, %v2973_v14 }
  0xb8   :  { %v342_v27 = vadd.f32 1.0, %v4003_v25  ;;  %v4005_v29 = vpop.eup %4004  ;;  %v3045_v25 = vld [vmem:[#allocation4 + $0xd8] sm:$0xf0] }
  0xb9   :  { %v4007_v30 = vpop.eup %4006  ;;  %v305_v31 = vmul.f32 %v4005_v29, %v303_v20  ;;  %vm310_vm0 = vweird.f32 %v4005_v29  ;;  %v3043_v20 = vld [vmem:[#allocation4 + $0xc8] sm:$0xf] }
  0xba   :  { %4008 = vrcp.f32 %v342_v27  ;;  %v324_v32 = vmul.f32 %v4007_v30, %v322_v22  ;;  %vm329_vm1 = vweird.f32 %v4007_v30  ;;  %vm311_vm4 = vmor %vm309_vm2, %vm310_vm0  ;;  %v354_v59 = vand.u32 2147483648, %v342_v27 }
  0xbb   :  { %4010 = vtanh.f32 %v298_v26  ;;  %v306_v33 = vsub.f32 1.0, %v305_v31  ;;  %vm330_vm5 = vmor %vm328_vm3, %vm329_vm1  ;;  %vm348_vm9 = vweird.f32 %v342_v27  ;;  %v352_v60 = vand.u32 2147483647, %v342_v27  ;;  %v3021_v31 = vld [vmem:[#allocation4 + $0xb0] sm:$0xf0] }
  0xbc   :  { %v325_v35 = vsub.f32 1.0, %v324_v32  ;;  %v355_v62 = vor.u32 1.1754944e-38, %v354_v59  ;;  %v3040_v22 = vor.u32 %v3827_v17, %v3037_v19  ;;  %v3044_v23 = vor.u32 %v3830_v21, %v3043_v20  ;;  %v3027_v32 = vld [vmem:[#allocation4 + $0xa8] sm:$0xf]  ;;  %v2989_v59 = vld [vmem:[#allocation4 + $0x70] sm:$0xf0] }
  0xbd   :  { %v307_v34 = vmul.f32 %v4005_v29, %v306_v33  ;;  %vm353_vm11 = vcmp.eq.f32.partialorder %v352_v60, 8.507059e+37  ;;  %v3048_v26 = vor.u32 %v3828_v24, %v3045_v25  ;;  %v3826_v33 = vld [vmem:[#allocation4 + $0xb4] sm:$0xf0]  ;;  %v2995_v60 = vld [vmem:[#allocation4 + $0x68] sm:$0xf] }
  0xbe   :  { %v326_v39 = vmul.f32 %v4007_v30, %v325_v35  ;;  %909 = vmatpush.bf16.msra.mxu1 %v3040_v22  ;;  %922 = vmatpush.bf16.msra.mxu2 %v3044_v23  ;;  %v3028_v36 = vor.u32 %v3826_v33, %v3027_v32  ;;  %v2979_v17 = vld [vmem:[#allocation4 + $0x48] sm:$0xf]  ;;  %v3812_v19 = vld [vmem:[#allocation4 + $0x4c] sm:$0xf]  ;;  %v2981_v21 = vld [vmem:[#allocation4 + $0x58] sm:$0xf0] }
  0xbf   :  { %v308_v42 = vadd.f32 %v4005_v29, %v307_v34  ;;  %935 = vmatpush.bf16.msra.mxu3 %v3048_v26  ;;  %v3029_v34 = vld [vmem:[#allocation4 + $0xb8] sm:$0xf0]  ;;  %v2980_v20 = vor.u32 %v3814_v18, %v2979_v17  ;;  %v2955_v22 = vld [vmem:[#allocation4 + $0x20] sm:$0xf]  ;;  %v3809_v23 = vld [vmem:[#allocation4 + $0x2c] sm:$0xf0]  ;;  %v2984_v24 = vor.u32 %v3812_v19, %v2981_v21 }
  0xc0   :  { %v4009_v41 = vpop.eup %4008  ;;  %v327_v46 = vadd.f32 %v4007_v30, %v326_v39  ;;  %v3032_v39 = vor.u32 %v3824_v37, %v3029_v34  ;;  %v2956_v25 = vor.u32 %v3809_v23, %v2955_v22  ;;  %v3807_v26 = vld [vmem:[#allocation4 + $0x24] sm:$0xf]  ;;  %v3810_v32 = vld [vmem:[#allocation4 + $0x34] sm:$0xf0]  ;;  %v3808_v33 = vld [vmem:[#allocation4 + $0x2c] sm:$0xf] }
  0xc1   :  { %v4011_v43 = vpop.eup %4010  ;;  %v344_v44 = vmul.f32 %v4009_v41, %v342_v27  ;;  %v312_v49 = vsel %vm311_vm4, %v4005_v29, %v308_v42  ;;  %vm349_vm8 = vweird.f32 %v4009_v41  ;;  %v3019_v27 = vld [vmem:[#allocation4 + $0xa0] sm:$0xf]  ;;  %v3823_v29 = vld [vmem:[#allocation4 + $0xa4] sm:$0xf] }
  0xc2   :  { %v317_v51 = vsel %vm314_vm6, %v316_v45, %v312_v49  ;;  %v331_v52 = vsel %vm330_vm5, %v4007_v30, %v327_v46  ;;  %vm350_vm10 = vmor %vm348_vm9, %vm349_vm8  ;;  %v3020_v30 = vor.u32 %v3825_v28, %v3019_v27  ;;  %v3024_v35 = vor.u32 %v3823_v29, %v3021_v31  ;;  %923 = vmatpush.bf16.msra.mxu2 %v3028_v36  ;;  %v3819_v42 = vld [vmem:[#allocation4 + $0x84] sm:$0xf]  ;;  %v3011_v45 = vld [vmem:[#allocation4 + $0x88] sm:$0xf] }
  0xc3   :  { %v345_v50 = vsub.f32 1.0, %v344_v44  ;;  %v336_v53 = vsel %vm333_vm7, %v335_v47, %v331_v52  ;;  %v360_v54 = vmul.f32 %v4011_v43, %v317_v51  ;;  %936 = vmatpush.bf16.msra.mxu3 %v3032_v39  ;;  %v3005_v44 = vld [vmem:[#allocation4 + $0x90] sm:$0xf0]  ;;  %v3822_v46 = vld [vmem:[#allocation4 + $0x94] sm:$0xf0]  ;;  %v371_v51 = vunpack.c.l.bf16 %v2801_v38 }
  0xc4   :  { %v359_v56 = vmul.f32 %v336_v53, %v42_v48  ;;  %897 = vmatpush.bf16.msra.mxu0 %v3020_v30  ;;  %910 = vmatpush.bf16.msra.mxu1 %v3024_v35  ;;  %v3008_v47 = vor.u32 %v3819_v42, %v3005_v44  ;;  %v3012_v48 = vor.u32 %v3822_v46, %v3011_v45  ;;  %v3820_v49 = vld [vmem:[#allocation4 + $0x8c] sm:$0xf]  ;;  %v372_v52 = vunpack.c.h.bf16 %v2801_v38  ;;  %v2957_v27 = vld [vmem:[#allocation4 + $0x30] sm:$0xf0]  ;;  %v2963_v28 = vld [vmem:[#allocation4 + $0x28] sm:$0xf] }
  0xc5   :  { %v346_v55 = vmul.f32 %v4009_v41, %v345_v50  ;;  %v3013_v50 = vld [vmem:[#allocation4 + $0x98] sm:$0xf0]  ;;  %v2960_v31 = vor.u32 %v3807_v26, %v2957_v27  ;;  %v2964_v38 = vor.u32 %v3810_v32, %v2963_v28  ;;  %v3803_v42 = vld [vmem:[#allocation4 + $0x4] sm:$0xf]  ;;  %v2941_v44 = vld [vmem:[#allocation4 + $0x10] sm:$0xf0] }
  0xc6   :  { %v4209_v57 = vadd.f32 %v360_v54, %v359_v56  ;;  %v3016_v53 = vor.u32 %v3820_v49, %v3013_v50  ;;  %924 = vmatpush.bf16.msra.mxu2 %v3012_v48  ;;  %v2987_v54 = vld [vmem:[#allocation4 + $0x60] sm:$0xf]  ;;  %v3815_v56 = vld [vmem:[#allocation4 + $0x64] sm:$0xf]  ;;  %v2965_v35 = vld [vmem:[#allocation4 + $0x38] sm:$0xf0]  ;;  %v2944_v48 = vor.u32 %v3803_v42, %v2941_v44 }
  0xc7   :  { %v347_v58 = vadd.f32 %v4009_v41, %v346_v55  ;;  %v3817_v55 = vld [vmem:[#allocation4 + $0x6c] sm:$0xf0]  ;;  %v2968_v39 = vor.u32 %v3808_v33, %v2965_v35  ;;  %v2947_v45 = vld [vmem:[#allocation4 + $0x8] sm:$0xf]  ;;  %v3806_v46 = vld [vmem:[#allocation4 + $0x14] sm:$0xf0] }
  0xc8   :  { %4012 = vtanh.f32 %v4209_v57  ;;  %911 = vmatpush.bf16.msra.mxu1 %v3008_v47  ;;  %937 = vmatpush.bf16.msra.mxu3 %v3016_v53  ;;  %v3804_v49 = vld [vmem:[#allocation4 + $0xc] sm:$0xf]  ;;  %v2949_v50 = vld [vmem:[#allocation4 + $0x18] sm:$0xf0]  ;;  %v3866_v42 = vld [vmem:[#allocation4 + $0xf4] sm:$0xf0] }
  0xc9   :  { %v351_v61 = vsel %vm350_vm10, %v4009_v41, %v347_v58  ;;  %v3821_v41 = vld [vmem:[#allocation4 + $0x8c] sm:$0xf0]  ;;  %v2988_v58 = vor.u32 %v3817_v55, %v2987_v54  ;;  %v2952_v55 = vor.u32 %v3804_v49, %v2949_v50  ;;  %v3859_v50 = vld [vmem:[#allocation4 + $0xc4] sm:$0xf] }
  0xca   :  { %v356_v0 = vsel %vm353_vm11, %v355_v62, %v351_v61  ;;  %v3004_v43 = vor.u32 %v3821_v41, %v3003_v40  ;;  %v3818_v61 = vld [vmem:[#allocation4 + $0x74] sm:$0xf0]  ;;  %v2939_v40 = vld [vmem:[#allocation4] sm:$0xf]  ;;  %v3805_v41 = vld [vmem:[#allocation4 + $0xc] sm:$0xf0] }
  0xcb   :  { %v3861_v49 = vld [vmem:[#allocation4 + $0xcc] sm:$0xf0] }
  0xcc   :  { %898 = vmatpush.bf16.msra.mxu0 %v3004_v43  ;;  %v2940_v43 = vor.u32 %v3805_v41, %v2939_v40  ;;  %v3187_v40 = vld [vmem:[#allocation4 + $0xf0] sm:$0xf0]  ;;  %v3193_v41 = vld [vmem:[#allocation4 + $0xe8] sm:$0xf] }
  0xcd   :  { %v3194_v44 = vor.u32 %v3866_v42, %v3193_v41  ;;  %v3105_v41 = vld [vmem:[#allocation4 + $0x40] sm:$0xf]  ;;  %v3845_v42 = vld [vmem:[#allocation4 + $0x4c] sm:$0xf0] }
  0xce   :  { %v4013_v63 = vpop.eup %4012 }
  0xcf   :  { %v363_v1 = vmul.f32 %v4013_v63, %v356_v0  ;;  %v2992_v0 = vor.u32 %v3815_v56, %v2989_v59 }
  0xd0   :  { %899 = vmatpush.bf16.msra.mxu0 %v2988_v58 }
  0xd1   :  { %v366_v2 = vpack.c.bf16 %v363_v1, %v363_v1  ;;  %v2996_v1 = vor.u32 %v3818_v61, %v2995_v60  ;;  %912 = vmatpush.bf16.msra.mxu1 %v2992_v0  ;;  %v373_v60 = vunpack.c.l.bf16 %v4221_v6 }
  0xd3   :  { %367 = vst [vmem:[%s4337_s4] sm:$0xf] %v366_v2  ;;  %577 = vmatmul.bf16.vlgmr.msrb.gmra.mxu0 %v366_v2  ;;  %590 = vmatmul.bf16.vlgmr.msrb.gmra.mxu1 %v366_v2 }
  0xd4   :  { %603 = vmatmul.bf16.vlgmr.msrb.gmra.mxu2 %v366_v2  ;;  %616 = vmatmul.bf16.vlgmr.msrb.gmra.mxu3 %v366_v2  ;;  %v3816_v2 = vld [vmem:[#allocation4 + $0x6c] sm:$0xf] }
  0xd5   :  { %v3000_v7 = vor.u32 %v3816_v2, %v2997_v3  ;;  %925 = vmatpush.bf16.msra.mxu2 %v2996_v1  ;;  %900 = vmatpush.bf16.msra.mxu0 %v2972_v13 }
  0xd6   :  { %913 = vmatpush.bf16.msra.mxu1 %v2976_v16 }
  0xd7   :  { %938 = vmatpush.bf16.msra.mxu3 %v3000_v7 }
  0xd9   :  { %926 = vmatpush.bf16.msra.mxu2 %v2980_v20  ;;  %901 = vmatpush.bf16.msra.mxu0 %v2956_v25 }
  0xda   :  { %914 = vmatpush.bf16.msra.mxu1 %v2960_v31 }
  0xdb   :  { %939 = vmatpush.bf16.msra.mxu3 %v2984_v24 }
  0xdd   :  { %927 = vmatpush.bf16.msra.mxu2 %v2964_v38  ;;  %902 = vmatpush.bf16.msra.mxu0 %v2940_v43  ;;  %v3863_v38 = vld [vmem:[#allocation4 + $0xe4] sm:$0xf] }
  0xde   :  { %915 = vmatpush.bf16.msra.mxu1 %v2944_v48  ;;  %v3190_v43 = vor.u32 %v3863_v38, %v3187_v40  ;;  %v3169_v48 = vld [vmem:[#allocation4 + $0xc0] sm:$0xf] }
  0xdf   :  { %940 = vmatpush.bf16.msra.mxu3 %v2968_v39 }
  0xe2   :  { %1234 = vmatpush.bf16.msrb.mxu1 %v3190_v43  ;;  %v3843_v43 = vld [vmem:[#allocation4 + $0x44] sm:$0xf] }
  0xe3   :  { %941 = vmatpush.bf16.msra.mxu3 %v2952_v55 }
 0x150   :  { %v578_v62 = vpop.f32.mrf.mxu0  ;;  %v591_v63 = vpop.f32.mrf.mxu1 }
 0x151   :  { %v621_v4 = vadd.f32 %v578_v62, %v371_v51  ;;  %v622_v5 = vadd.f32 %v591_v63, %v372_v52  ;;  %v2948_v52 = vor.u32 %v3806_v46, %v2947_v45  ;;  %v3864_v45 = vld [vmem:[#allocation4 + $0xec] sm:$0xf]  ;;  %v3195_v46 = vld [vmem:[#allocation4 + $0xf8] sm:$0xf0] }
 0x153   :  { %v2931_v11 = vmul.f32 -1.442695, %v621_v4  ;;  %v2932_v12 = vmul.f32 -1.442695, %v622_v5  ;;  %928 = vmatpush.bf16.msra.mxu2 %v2948_v52  ;;  %v3171_v52 = vld [vmem:[#allocation4 + $0xd0] sm:$0xf0] }
 0x154   :  { %v3174_v55 = vor.u32 %v3859_v50, %v3171_v52  ;;  %v3113_v50 = vld [vmem:[#allocation4 + $0x48] sm:$0xf]  ;;  %v3844_v52 = vld [vmem:[#allocation4 + $0x4c] sm:$0xf] }
 0x155   :  { %4014 = vpow2.f32 %v2931_v11 }
 0x156   :  { %4016 = vpow2.f32 %v2932_v12  ;;  %1235 = vmatpush.bf16.msrb.mxu1 %v3174_v55  ;;  %v3089_v55 = vld [vmem:[#allocation4 + $0x20] sm:$0xf] }
 0x157   :  { %v604_v29 = vpop.f32.mrf.mxu2  ;;  %v617_v30 = vpop.f32.mrf.mxu3  ;;  %1247 = vmatpush.bf16.msrb.mxu2 %v3194_v44 }
 0x158   :  { %v624_v36 = vadd.f32 %v617_v30, %v374_v15  ;;  %v580_v37 = vpop.f32.mrf.mxu0  ;;  %v593_v34 = vpop.f32.mrf.mxu1  ;;  %v623_v0 = vadd.f32 %v604_v29, %v373_v60 }
 0x159   :  { %v3865_v34 = vld [vmem:[#allocation4 + $0xec] sm:$0xf0] }
 0x15a   :  { %v2933_v47 = vmul.f32 -1.442695, %v624_v36 }
 0x15b   :  { %v4015_v51 = vpop.eup %4014 }
 0x15c   :  { %v4017_v53 = vpop.eup %4016  ;;  %v628_v54 = vadd.f32 1.0, %v4015_v51  ;;  %4018 = vpow2.f32 %v2933_v47  ;;  %v3198_v47 = vor.u32 %v3864_v45, %v3195_v46  ;;  %v3170_v51 = vor.u32 %v3861_v49, %v3169_v48 }
 0x15d   :  { %v647_v56 = vadd.f32 1.0, %v4017_v53  ;;  %v3177_v53 = vld [vmem:[#allocation4 + $0xc8] sm:$0xf]  ;;  %v3106_v46 = vor.u32 %v3845_v42, %v3105_v41 }
 0x15e   :  { %4020 = vrcp.f32 %v628_v54  ;;  %v640_v7 = vand.u32 2147483648, %v628_v54  ;;  %v638_v10 = vand.u32 2147483647, %v628_v54  ;;  %vm634_vm14 = vweird.f32 %v628_v54  ;;  %1260 = vmatpush.bf16.msrb.mxu3 %v3198_v47  ;;  %v3107_v47 = vld [vmem:[#allocation4 + $0x50] sm:$0xf0] }
 0x15f   :  { %4022 = vrcp.f32 %v647_v56  ;;  %v606_v58 = vpop.f32.mrf.mxu2  ;;  %v619_v59 = vpop.f32.mrf.mxu3  ;;  %v659_v8 = vand.u32 2147483648, %v647_v56  ;;  %v657_v6 = vand.u32 2147483647, %v647_v56  ;;  %vm653_vm15 = vweird.f32 %v647_v56 }
 0x160   :  { %v641_v14 = vor.u32 1.1754944e-38, %v640_v7  ;;  %vm639_vm2 = vcmp.eq.f32.partialorder %v638_v10, 8.507059e+37  ;;  %v3860_v58 = vld [vmem:[#allocation4 + $0xcc] sm:$0xf]  ;;  %v3179_v59 = vld [vmem:[#allocation4 + $0xd8] sm:$0xf0]  ;;  %v3110_v49 = vor.u32 %v3843_v43, %v3107_v47 }
 0x161   :  { %v660_v17 = vor.u32 1.1754944e-38, %v659_v8  ;;  %vm658_vm3 = vcmp.eq.f32.partialorder %v657_v6, 8.507059e+37  ;;  %v3182_v60 = vor.u32 %v3860_v58, %v3179_v59  ;;  %v3856_v7 = vld [vmem:[#allocation4 + $0xac] sm:$0xf]  ;;  %v3163_v8 = vld [vmem:[#allocation4 + $0xb8] sm:$0xf0] }
 0x162   :  { %v4019_v61 = vpop.eup %4018  ;;  %v3166_v10 = vor.u32 %v3856_v7, %v3163_v8  ;;  %v3853_v6 = vld [vmem:[#allocation4 + $0x8c] sm:$0xf0] }
 0x163   :  { %v667_v62 = vadd.f32 1.0, %v4019_v61  ;;  %v3153_v61 = vld [vmem:[#allocation4 + $0xa0] sm:$0xf]  ;;  %1261 = vmatpush.bf16.msrb.mxu3 %v3182_v60  ;;  %v3839_v60 = vld [vmem:[#allocation4 + $0x24] sm:$0xf] }
 0x164   :  { %v4021_v63 = vpop.eup %4020 }
 0x165   :  { %v4023_v1 = vpop.eup %4022  ;;  %v630_v2 = vmul.f32 %v4021_v63, %v628_v54  ;;  %4024 = vrcp.f32 %v667_v62  ;;  %vm635_vm12 = vweird.f32 %v4021_v63  ;;  %v679_v29 = vand.u32 2147483648, %v667_v62  ;;  %v3862_v54 = vld [vmem:[#allocation4 + $0xd4] sm:$0xf0] }
 0x166   :  { %v649_v3 = vmul.f32 %v4023_v1, %v647_v56  ;;  %4026 = vtanh.f32 %v623_v0  ;;  %vm654_vm13 = vweird.f32 %v4023_v1  ;;  %vm636_vm0 = vmor %vm634_vm14, %vm635_vm12  ;;  %vm673_vm5 = vweird.f32 %v667_v62 }
 0x167   :  { %v631_v4 = vsub.f32 1.0, %v630_v2  ;;  %vm655_vm1 = vmor %vm653_vm15, %vm654_vm13  ;;  %v677_v30 = vand.u32 2147483647, %v667_v62  ;;  %v680_v32 = vor.u32 1.1754944e-38, %v679_v29  ;;  %v3178_v56 = vor.u32 %v3862_v54, %v3177_v53  ;;  %v3161_v2 = vld [vmem:[#allocation4 + $0xa8] sm:$0xf]  ;;  %1262 = vmatpush.bf16.msrb.mxu3 %v3166_v10 }
 0x168   :  { %v650_v5 = vsub.f32 1.0, %v649_v3  ;;  %v3858_v3 = vld [vmem:[#allocation4 + $0xb4] sm:$0xf0]  ;;  %v3123_v29 = vld [vmem:[#allocation4 + $0x70] sm:$0xf0] }
 0x169   :  { %v632_v9 = vmul.f32 %v4021_v63, %v631_v4  ;;  %vm678_vm7 = vcmp.eq.f32.partialorder %v677_v30, 8.507059e+37  ;;  %1248 = vmatpush.bf16.msrb.mxu2 %v3178_v56  ;;  %v3129_v30 = vld [vmem:[#allocation4 + $0x68] sm:$0xf]  ;;  %v3115_v54 = vld [vmem:[#allocation4 + $0x58] sm:$0xf0] }
 0x16a   :  { %v651_v11 = vmul.f32 %v4023_v1, %v650_v5  ;;  %v3162_v5 = vor.u32 %v3858_v3, %v3161_v2  ;;  %v3841_v56 = vld [vmem:[#allocation4 + $0x2c] sm:$0xf0]  ;;  %v3118_v58 = vor.u32 %v3844_v52, %v3115_v54  ;;  %v3842_v2 = vld [vmem:[#allocation4 + $0x34] sm:$0xf0]  ;;  %v3840_v3 = vld [vmem:[#allocation4 + $0x2c] sm:$0xf] }
 0x16b   :  { %v4025_v12 = vpop.eup %4024  ;;  %v633_v13 = vadd.f32 %v4021_v63, %v632_v9  ;;  %v2935_v9 = vld [vmem:[%s4333_s0 + $0x20] sm:$0xff]  ;;  %v3090_v59 = vor.u32 %v3841_v56, %v3089_v55 }
 0x16c   :  { %v652_v15 = vadd.f32 %v4023_v1, %v651_v11  ;;  %v669_v16 = vmul.f32 %v4025_v12, %v667_v62  ;;  %v4027_v19 = vpop.eup %4026  ;;  %vm674_vm4 = vweird.f32 %v4025_v12  ;;  %v3857_v62 = vld [vmem:[#allocation4 + $0xac] sm:$0xf0]  ;;  %v3137_v11 = vld [vmem:[#allocation4 + $0x80] sm:$0xf] }
 0x16d   :  { %v637_v18 = vsel %vm636_vm0, %v4021_v63, %v633_v13  ;;  %vm675_vm6 = vmor %vm673_vm5, %vm674_vm4  ;;  %v3855_v63 = vld [vmem:[#allocation4 + $0xa4] sm:$0xf]  ;;  %v3154_v0 = vor.u32 %v3857_v62, %v3153_v61  ;;  %1249 = vmatpush.bf16.msrb.mxu2 %v3162_v5  ;;  %v3138_v13 = vor.u32 %v3853_v6, %v3137_v11  ;;  %v3091_v61 = vld [vmem:[#allocation4 + $0x30] sm:$0xf0] }
 0x16e   :  { %v642_v20 = vsel %vm639_vm2, %v641_v14, %v637_v18  ;;  %v656_v21 = vsel %vm655_vm1, %v4023_v1, %v652_v15  ;;  %v670_v22 = vsub.f32 1.0, %v669_v16  ;;  %v3155_v1 = vld [vmem:[#allocation4 + $0xb0] sm:$0xf0]  ;;  %v3145_v15 = vld [vmem:[#allocation4 + $0x88] sm:$0xf] }
 0x16f   :  { %v661_v23 = vsel %vm658_vm3, %v660_v17, %v656_v21  ;;  %v685_v24 = vmul.f32 %v4027_v19, %v642_v20  ;;  %v3158_v4 = vor.u32 %v3855_v63, %v3155_v1  ;;  %v3139_v14 = vld [vmem:[#allocation4 + $0x90] sm:$0xf0]  ;;  %v3854_v16 = vld [vmem:[#allocation4 + $0x94] sm:$0xf0]  ;;  %v3852_v19 = vld [vmem:[#allocation4 + $0x8c] sm:$0xf]  ;;  %v697_v21 = vunpack.c.l.bf16 %v2935_v9 }
 0x170   :  { %v684_v25 = vmul.f32 %v661_v23, %v4209_v57  ;;  %v671_v26 = vmul.f32 %v4025_v12, %v670_v22  ;;  %v3185_v57 = vld [vmem:[#allocation4 + $0xe0] sm:$0xf]  ;;  %v3146_v18 = vor.u32 %v3854_v16, %v3145_v15  ;;  %v3147_v20 = vld [vmem:[#allocation4 + $0x98] sm:$0xf0]  ;;  %v698_v22 = vunpack.c.h.bf16 %v2935_v9  ;;  %v3097_v62 = vld [vmem:[#allocation4 + $0x28] sm:$0xf] }
 0x171   :  { %v3186_v39 = vor.u32 %v3865_v34, %v3185_v57  ;;  %1236 = vmatpush.bf16.msrb.mxu1 %v3158_v4  ;;  %v3150_v23 = vor.u32 %v3852_v19, %v3147_v20  ;;  %v3131_v57 = vld [vmem:[#allocation4 + $0x78] sm:$0xf0]  ;;  %v3094_v1 = vor.u32 %v3839_v60, %v3091_v61  ;;  %v3098_v9 = vor.u32 %v3842_v2, %v3097_v62  ;;  %v3073_v11 = vld [vmem:[#allocation4] sm:$0xf]  ;;  %v3837_v6 = vld [vmem:[#allocation4 + $0xc] sm:$0xf0] }
 0x172   :  { %v4226_v27 = vadd.f32 %v685_v24, %v684_v25  ;;  %v672_v28 = vadd.f32 %v4025_v12, %v671_v26  ;;  %1250 = vmatpush.bf16.msrb.mxu2 %v3146_v18  ;;  %v3121_v24 = vld [vmem:[#allocation4 + $0x60] sm:$0xf]  ;;  %v3849_v25 = vld [vmem:[#allocation4 + $0x6c] sm:$0xf0]  ;;  %v3847_v26 = vld [vmem:[#allocation4 + $0x64] sm:$0xf] }
 0x173   :  { %1221 = vmatpush.bf16.msrb.mxu0 %v3186_v39  ;;  %1263 = vmatpush.bf16.msrb.mxu3 %v3150_v23  ;;  %v4238_v39 = vld [vmem:[%s4333_s0 + $0x28] sm:$0xff]  ;;  %v3099_v4 = vld [vmem:[#allocation4 + $0x38] sm:$0xf0]  ;;  %v3838_v16 = vld [vmem:[#allocation4 + $0x14] sm:$0xf0] }
 0x174   :  { %4028 = vtanh.f32 %v4226_v27  ;;  %v676_v31 = vsel %vm675_vm6, %v4025_v12, %v672_v28  ;;  %v3851_v12 = vld [vmem:[#allocation4 + $0x84] sm:$0xf]  ;;  %v3122_v28 = vor.u32 %v3849_v25, %v3121_v24  ;;  %v700_v48 = vunpack.c.h.bf16 %v4238_v39  ;;  %v3081_v15 = vld [vmem:[#allocation4 + $0x8] sm:$0xf]  ;;  %v3836_v19 = vld [vmem:[#allocation4 + $0xc] sm:$0xf] }
 0x175   :  { %v681_v35 = vsel %vm678_vm7, %v680_v32, %v676_v31  ;;  %v3142_v17 = vor.u32 %v3851_v12, %v3139_v14  ;;  %v3850_v31 = vld [vmem:[#allocation4 + $0x74] sm:$0xf0]  ;;  %v3102_v10 = vor.u32 %v3840_v3, %v3099_v4  ;;  %v3835_v12 = vld [vmem:[#allocation4 + $0x4] sm:$0xf]  ;;  %v3075_v14 = vld [vmem:[#allocation4 + $0x10] sm:$0xf0] }
 0x176   :  { %v3078_v18 = vor.u32 %v3835_v12, %v3075_v14  ;;  %v3083_v20 = vld [vmem:[#allocation4 + $0x18] sm:$0xf0]  ;;  %v3898_v12 = vld [vmem:[#allocation4 + $0xf4] sm:$0xf0] }
 0x177   :  { %1222 = vmatpush.bf16.msrb.mxu0 %v3170_v51  ;;  %1237 = vmatpush.bf16.msrb.mxu1 %v3142_v17  ;;  %v3846_v51 = vld [vmem:[#allocation4 + $0x54] sm:$0xf0]  ;;  %v3086_v25 = vor.u32 %v3836_v19, %v3083_v20  ;;  %v3893_v19 = vld [vmem:[#allocation4 + $0xcc] sm:$0xf0]  ;;  %v3891_v20 = vld [vmem:[#allocation4 + $0xc4] sm:$0xf] }
 0x178   :  { %v3114_v53 = vor.u32 %v3846_v51, %v3113_v50 }
 0x17a   :  { %v4029_v33 = vpop.eup %4028 }
 0x17b   :  { %v688_v36 = vmul.f32 %v4029_v33, %v681_v35  ;;  %1223 = vmatpush.bf16.msrb.mxu0 %v3154_v0  ;;  %v3126_v35 = vor.u32 %v3847_v26, %v3123_v29 }
 0x17d   :  { %v691_v37 = vpack.c.bf16 %v688_v36, %v688_v36  ;;  %v3130_v36 = vor.u32 %v3850_v31, %v3129_v30  ;;  %1238 = vmatpush.bf16.msrb.mxu1 %v3126_v35  ;;  %v699_v30 = vunpack.c.l.bf16 %v4238_v39 }
 0x17f   :  { %2934 = vst [vmem:[%s4337_s4 + $0x4] sm:$0xf] %v691_v37  ;;  %903 = vmatmul.bf16.vlgmr.msra.gmra.mxu0 %v691_v37  ;;  %916 = vmatmul.bf16.vlgmr.msra.gmra.mxu1 %v691_v37 }
 0x180   :  { %929 = vmatmul.bf16.vlgmr.msra.gmra.mxu2 %v691_v37  ;;  %942 = vmatmul.bf16.vlgmr.msra.gmra.mxu3 %v691_v37  ;;  %v3848_v37 = vld [vmem:[#allocation4 + $0x6c] sm:$0xf] }
 0x181   :  { %1224 = vmatpush.bf16.msrb.mxu0 %v3138_v13  ;;  %v3134_v40 = vor.u32 %v3848_v37, %v3131_v57  ;;  %1251 = vmatpush.bf16.msrb.mxu2 %v3130_v36  ;;  %v3074_v13 = vor.u32 %v3837_v6, %v3073_v11  ;;  %v3321_v11 = vld [vmem:[#allocation4 + $0xf0] sm:$0xf0]  ;;  %v3327_v6 = vld [vmem:[#allocation4 + $0xe8] sm:$0xf] }
 0x182   :  { %1239 = vmatpush.bf16.msrb.mxu1 %v3110_v49  ;;  %v3328_v14 = vor.u32 %v3898_v12, %v3327_v6  ;;  %v3239_v6 = vld [vmem:[#allocation4 + $0x40] sm:$0xf]  ;;  %v3877_v12 = vld [vmem:[#allocation4 + $0x4c] sm:$0xf0] }
 0x183   :  { %1264 = vmatpush.bf16.msrb.mxu3 %v3134_v40 }
 0x185   :  { %1225 = vmatpush.bf16.msrb.mxu0 %v3122_v28  ;;  %1252 = vmatpush.bf16.msrb.mxu2 %v3114_v53 }
 0x186   :  { %1240 = vmatpush.bf16.msrb.mxu1 %v3094_v1 }
 0x187   :  { %1265 = vmatpush.bf16.msrb.mxu3 %v3118_v58 }
 0x189   :  { %1226 = vmatpush.bf16.msrb.mxu0 %v3106_v46  ;;  %1253 = vmatpush.bf16.msrb.mxu2 %v3098_v9  ;;  %v3895_v9 = vld [vmem:[#allocation4 + $0xe4] sm:$0xf] }
 0x18a   :  { %1241 = vmatpush.bf16.msrb.mxu1 %v3078_v18  ;;  %v3303_v18 = vld [vmem:[#allocation4 + $0xc0] sm:$0xf] }
 0x18b   :  { %1266 = vmatpush.bf16.msrb.mxu3 %v3102_v10 }
 0x18d   :  { %1227 = vmatpush.bf16.msrb.mxu0 %v3090_v59 }
 0x18f   :  { %1267 = vmatpush.bf16.msrb.mxu3 %v3086_v25 }
 0x191   :  { %1228 = vmatpush.bf16.msrb.mxu0 %v3074_v13  ;;  %v3324_v13 = vor.u32 %v3895_v9, %v3321_v11 }
 0x193   :  { %1560 = vmatpush.bf16.msra.mxu1 %v3324_v13  ;;  %v3875_v13 = vld [vmem:[#allocation4 + $0x44] sm:$0xf] }
 0x1fc   :  { %v904_v32 = vpop.f32.mrf.mxu0  ;;  %v917_v33 = vpop.f32.mrf.mxu1 }
 0x1fd   :  { %v947_v34 = vadd.f32 %v904_v32, %v697_v21  ;;  %v948_v38 = vadd.f32 %v917_v33, %v698_v22  ;;  %v3082_v22 = vor.u32 %v3838_v16, %v3081_v15  ;;  %v3896_v15 = vld [vmem:[#allocation4 + $0xec] sm:$0xf]  ;;  %v3329_v16 = vld [vmem:[#allocation4 + $0xf8] sm:$0xf0] }
 0x1ff   :  { %v3065_v44 = vmul.f32 -1.442695, %v947_v34  ;;  %v3066_v45 = vmul.f32 -1.442695, %v948_v38  ;;  %1254 = vmatpush.bf16.msrb.mxu2 %v3082_v22  ;;  %v3305_v22 = vld [vmem:[#allocation4 + $0xd0] sm:$0xf0] }
 0x200   :  { %v3308_v25 = vor.u32 %v3891_v20, %v3305_v22  ;;  %v3247_v20 = vld [vmem:[#allocation4 + $0x48] sm:$0xf]  ;;  %v3876_v22 = vld [vmem:[#allocation4 + $0x4c] sm:$0xf] }
 0x201   :  { %4030 = vpow2.f32 %v3065_v44 }
 0x202   :  { %4032 = vpow2.f32 %v3066_v45  ;;  %1561 = vmatpush.bf16.msra.mxu1 %v3308_v25  ;;  %v3223_v25 = vld [vmem:[#allocation4 + $0x20] sm:$0xf] }
 0x203   :  { %v930_v63 = vpop.f32.mrf.mxu2  ;;  %v943_v0 = vpop.f32.mrf.mxu3  ;;  %1573 = vmatpush.bf16.msra.mxu2 %v3328_v14 }
 0x204   :  { %v950_v5 = vadd.f32 %v943_v0, %v700_v48  ;;  %v906_v7 = vpop.f32.mrf.mxu0  ;;  %v919_v8 = vpop.f32.mrf.mxu1  ;;  %v949_v35 = vadd.f32 %v930_v63, %v699_v30 }
 0x205   :  { %v3897_v8 = vld [vmem:[#allocation4 + $0xec] sm:$0xf0] }
 0x206   :  { %v3067_v17 = vmul.f32 -1.442695, %v950_v5 }
 0x207   :  { %v4031_v21 = vpop.eup %4030 }
 0x208   :  { %v4033_v23 = vpop.eup %4032  ;;  %v954_v24 = vadd.f32 1.0, %v4031_v21  ;;  %4034 = vpow2.f32 %v3067_v17  ;;  %v3332_v17 = vor.u32 %v3896_v15, %v3329_v16  ;;  %v3304_v21 = vor.u32 %v3893_v19, %v3303_v18 }
 0x209   :  { %v973_v26 = vadd.f32 1.0, %v4033_v23  ;;  %v3311_v23 = vld [vmem:[#allocation4 + $0xc8] sm:$0xf]  ;;  %v3240_v16 = vor.u32 %v3877_v12, %v3239_v6 }
 0x20a   :  { %4036 = vrcp.f32 %v954_v24  ;;  %v966_v40 = vand.u32 2147483648, %v954_v24  ;;  %v964_v43 = vand.u32 2147483647, %v954_v24  ;;  %vm960_vm10 = vweird.f32 %v954_v24  ;;  %1586 = vmatpush.bf16.msra.mxu3 %v3332_v17  ;;  %v3241_v17 = vld [vmem:[#allocation4 + $0x50] sm:$0xf0] }
 0x20b   :  { %4038 = vrcp.f32 %v973_v26  ;;  %v932_v28 = vpop.f32.mrf.mxu2  ;;  %v945_v29 = vpop.f32.mrf.mxu3  ;;  %v985_v41 = vand.u32 2147483648, %v973_v26  ;;  %v983_v39 = vand.u32 2147483647, %v973_v26  ;;  %vm979_vm11 = vweird.f32 %v973_v26 }
 0x20c   :  { %v967_v47 = vor.u32 1.1754944e-38, %v966_v40  ;;  %vm965_vm14 = vcmp.eq.f32.partialorder %v964_v43, 8.507059e+37  ;;  %v3892_v28 = vld [vmem:[#allocation4 + $0xcc] sm:$0xf]  ;;  %v3313_v29 = vld [vmem:[#allocation4 + $0xd8] sm:$0xf0]  ;;  %v3244_v19 = vor.u32 %v3875_v13, %v3241_v17 }
 0x20d   :  { %v986_v50 = vor.u32 1.1754944e-38, %v985_v41  ;;  %vm984_vm15 = vcmp.eq.f32.partialorder %v983_v39, 8.507059e+37  ;;  %v3316_v30 = vor.u32 %v3892_v28, %v3313_v29  ;;  %v3888_v40 = vld [vmem:[#allocation4 + $0xac] sm:$0xf]  ;;  %v3297_v41 = vld [vmem:[#allocation4 + $0xb8] sm:$0xf0] }
 0x20e   :  { %v4035_v31 = vpop.eup %4034  ;;  %v3300_v43 = vor.u32 %v3888_v40, %v3297_v41  ;;  %v3885_v39 = vld [vmem:[#allocation4 + $0x8c] sm:$0xf0] }
 0x20f   :  { %v993_v32 = vadd.f32 1.0, %v4035_v31  ;;  %v3287_v31 = vld [vmem:[#allocation4 + $0xa0] sm:$0xf]  ;;  %1587 = vmatpush.bf16.msra.mxu3 %v3316_v30  ;;  %v3871_v30 = vld [vmem:[#allocation4 + $0x24] sm:$0xf] }
 0x210   :  { %v4037_v33 = vpop.eup %4036 }
 0x211   :  { %v4039_v36 = vpop.eup %4038  ;;  %v956_v37 = vmul.f32 %v4037_v33, %v954_v24  ;;  %4040 = vrcp.f32 %v993_v32  ;;  %vm961_vm8 = vweird.f32 %v4037_v33  ;;  %v1005_v63 = vand.u32 2147483648, %v993_v32  ;;  %v3894_v24 = vld [vmem:[#allocation4 + $0xd4] sm:$0xf0] }
 0x212   :  { %v975_v57 = vmul.f32 %v4039_v36, %v973_v26  ;;  %4042 = vtanh.f32 %v949_v35  ;;  %vm980_vm9 = vweird.f32 %v4039_v36  ;;  %vm962_vm12 = vmor %vm960_vm10, %vm961_vm8  ;;  %vm999_vm1 = vweird.f32 %v993_v32 }
 0x213   :  { %v957_v34 = vsub.f32 1.0, %v956_v37  ;;  %vm981_vm13 = vmor %vm979_vm11, %vm980_vm9  ;;  %v1003_v0 = vand.u32 2147483647, %v993_v32  ;;  %v1006_v2 = vor.u32 1.1754944e-38, %v1005_v63  ;;  %v3312_v26 = vor.u32 %v3894_v24, %v3311_v23  ;;  %v3295_v37 = vld [vmem:[#allocation4 + $0xa8] sm:$0xf]  ;;  %1588 = vmatpush.bf16.msra.mxu3 %v3300_v43 }
 0x214   :  { %v976_v38 = vsub.f32 1.0, %v975_v57  ;;  %v3890_v57 = vld [vmem:[#allocation4 + $0xb4] sm:$0xf0]  ;;  %v3257_v63 = vld [vmem:[#allocation4 + $0x70] sm:$0xf0] }
 0x215   :  { %v958_v42 = vmul.f32 %v4037_v33, %v957_v34  ;;  %vm1004_vm3 = vcmp.eq.f32.partialorder %v1003_v0, 8.507059e+37  ;;  %1574 = vmatpush.bf16.msra.mxu2 %v3312_v26  ;;  %v3263_v0 = vld [vmem:[#allocation4 + $0x68] sm:$0xf]  ;;  %v3249_v24 = vld [vmem:[#allocation4 + $0x58] sm:$0xf0] }
 0x216   :  { %v977_v44 = vmul.f32 %v4039_v36, %v976_v38  ;;  %v3296_v38 = vor.u32 %v3890_v57, %v3295_v37  ;;  %v3873_v26 = vld [vmem:[#allocation4 + $0x2c] sm:$0xf0]  ;;  %v3252_v28 = vor.u32 %v3876_v22, %v3249_v24  ;;  %v3874_v37 = vld [vmem:[#allocation4 + $0x34] sm:$0xf0]  ;;  %v3872_v57 = vld [vmem:[#allocation4 + $0x2c] sm:$0xf] }
 0x217   :  { %v4041_v45 = vpop.eup %4040  ;;  %v959_v46 = vadd.f32 %v4037_v33, %v958_v42  ;;  %v3069_v42 = vld [vmem:[%s4333_s0 + $0x30] sm:$0xff]  ;;  %v3224_v29 = vor.u32 %v3873_v26, %v3223_v25 }
 0x218   :  { %v978_v48 = vadd.f32 %v4039_v36, %v977_v44  ;;  %v995_v49 = vmul.f32 %v4041_v45, %v993_v32  ;;  %v4043_v52 = vpop.eup %4042  ;;  %vm1000_vm0 = vweird.f32 %v4041_v45  ;;  %v3889_v32 = vld [vmem:[#allocation4 + $0xac] sm:$0xf0]  ;;  %v3271_v44 = vld [vmem:[#allocation4 + $0x80] sm:$0xf] }
 0x219   :  { %v963_v51 = vsel %vm962_vm12, %v4037_v33, %v959_v46  ;;  %vm1001_vm2 = vmor %vm999_vm1, %vm1000_vm0  ;;  %v3887_v33 = vld [vmem:[#allocation4 + $0xa4] sm:$0xf]  ;;  %v3288_v35 = vor.u32 %v3889_v32, %v3287_v31  ;;  %1575 = vmatpush.bf16.msra.mxu2 %v3296_v38  ;;  %v3272_v46 = vor.u32 %v3885_v39, %v3271_v44  ;;  %v3225_v31 = vld [vmem:[#allocation4 + $0x30] sm:$0xf0] }
 0x21a   :  { %v968_v53 = vsel %vm965_vm14, %v967_v47, %v963_v51  ;;  %v982_v54 = vsel %vm981_vm13, %v4039_v36, %v978_v48  ;;  %v996_v55 = vsub.f32 1.0, %v995_v49  ;;  %v3289_v36 = vld [vmem:[#allocation4 + $0xb0] sm:$0xf0]  ;;  %v3279_v48 = vld [vmem:[#allocation4 + $0x88] sm:$0xf] }
 0x21b   :  { %v987_v56 = vsel %vm984_vm15, %v986_v50, %v982_v54  ;;  %v1011_v58 = vmul.f32 %v4043_v52, %v968_v53  ;;  %v3292_v34 = vor.u32 %v3887_v33, %v3289_v36  ;;  %v3273_v47 = vld [vmem:[#allocation4 + $0x90] sm:$0xf0]  ;;  %v3886_v49 = vld [vmem:[#allocation4 + $0x94] sm:$0xf0]  ;;  %v3884_v52 = vld [vmem:[#allocation4 + $0x8c] sm:$0xf]  ;;  %v1023_v54 = vunpack.c.l.bf16 %v3069_v42 }
 0x21c   :  { %v1010_v59 = vmul.f32 %v987_v56, %v4226_v27  ;;  %v997_v60 = vmul.f32 %v4041_v45, %v996_v55  ;;  %v3319_v27 = vld [vmem:[#allocation4 + $0xe0] sm:$0xf]  ;;  %v3280_v51 = vor.u32 %v3886_v49, %v3279_v48  ;;  %v3281_v53 = vld [vmem:[#allocation4 + $0x98] sm:$0xf0]  ;;  %v1024_v55 = vunpack.c.h.bf16 %v3069_v42  ;;  %v3231_v32 = vld [vmem:[#allocation4 + $0x28] sm:$0xf] }
 0x21d   :  { %v3320_v10 = vor.u32 %v3897_v8, %v3319_v27  ;;  %1562 = vmatpush.bf16.msra.mxu1 %v3292_v34  ;;  %v3284_v56 = vor.u32 %v3884_v52, %v3281_v53  ;;  %v3265_v27 = vld [vmem:[#allocation4 + $0x78] sm:$0xf0]  ;;  %v3228_v36 = vor.u32 %v3871_v30, %v3225_v31  ;;  %v3232_v42 = vor.u32 %v3874_v37, %v3231_v32  ;;  %v3207_v44 = vld [vmem:[#allocation4] sm:$0xf]  ;;  %v3869_v39 = vld [vmem:[#allocation4 + $0xc] sm:$0xf0] }
 0x21e   :  { %v4243_v61 = vadd.f32 %v1011_v58, %v1010_v59  ;;  %v998_v62 = vadd.f32 %v4041_v45, %v997_v60  ;;  %1576 = vmatpush.bf16.msra.mxu2 %v3280_v51  ;;  %v3255_v58 = vld [vmem:[#allocation4 + $0x60] sm:$0xf]  ;;  %v3881_v59 = vld [vmem:[#allocation4 + $0x6c] sm:$0xf0]  ;;  %v3879_v60 = vld [vmem:[#allocation4 + $0x64] sm:$0xf] }
 0x21f   :  { %1547 = vmatpush.bf16.msra.mxu0 %v3320_v10  ;;  %1589 = vmatpush.bf16.msra.mxu3 %v3284_v56  ;;  %v4255_v10 = vld [vmem:[%s4333_s0 + $0x38] sm:$0xff]  ;;  %v3215_v48 = vld [vmem:[#allocation4 + $0x8] sm:$0xf]  ;;  %v3868_v52 = vld [vmem:[#allocation4 + $0xc] sm:$0xf] }
 0x220   :  { %4044 = vtanh.f32 %v4243_v61  ;;  %v1002_v1 = vsel %vm1001_vm2, %v4041_v45, %v998_v62  ;;  %v3883_v45 = vld [vmem:[#allocation4 + $0x84] sm:$0xf]  ;;  %v3256_v62 = vor.u32 %v3881_v59, %v3255_v58  ;;  %v1026_v18 = vunpack.c.h.bf16 %v4255_v10  ;;  %v3233_v34 = vld [vmem:[#allocation4 + $0x38] sm:$0xf0]  ;;  %v3870_v49 = vld [vmem:[#allocation4 + $0x14] sm:$0xf0] }
 0x221   :  { %v1007_v4 = vsel %vm1004_vm3, %v1006_v2, %v1002_v1  ;;  %v3276_v50 = vor.u32 %v3883_v45, %v3273_v47  ;;  %v3882_v1 = vld [vmem:[#allocation4 + $0x74] sm:$0xf0]  ;;  %v3236_v43 = vor.u32 %v3872_v57, %v3233_v34  ;;  %v3867_v45 = vld [vmem:[#allocation4 + $0x4] sm:$0xf]  ;;  %v3209_v47 = vld [vmem:[#allocation4 + $0x10] sm:$0xf0] }
 0x222   :  { %v3212_v51 = vor.u32 %v3867_v45, %v3209_v47  ;;  %v3217_v53 = vld [vmem:[#allocation4 + $0x18] sm:$0xf0]  ;;  %v3930_v45 = vld [vmem:[#allocation4 + $0xf4] sm:$0xf0] }
 0x223   :  { %1548 = vmatpush.bf16.msra.mxu0 %v3304_v21  ;;  %1563 = vmatpush.bf16.msra.mxu1 %v3276_v50  ;;  %v3878_v21 = vld [vmem:[#allocation4 + $0x54] sm:$0xf0]  ;;  %v3220_v59 = vor.u32 %v3868_v52, %v3217_v53  ;;  %v3925_v52 = vld [vmem:[#allocation4 + $0xcc] sm:$0xf0]  ;;  %v3923_v53 = vld [vmem:[#allocation4 + $0xc4] sm:$0xf] }
 0x224   :  { %v3248_v23 = vor.u32 %v3878_v21, %v3247_v20 }
 0x226   :  { %v4045_v3 = vpop.eup %4044 }
 0x227   :  { %v1014_v5 = vmul.f32 %v4045_v3, %v1007_v4  ;;  %1549 = vmatpush.bf16.msra.mxu0 %v3288_v35  ;;  %v3260_v4 = vor.u32 %v3879_v60, %v3257_v63 }
 0x229   :  { %v1017_v7 = vpack.c.bf16 %v1014_v5, %v1014_v5  ;;  %v3264_v5 = vor.u32 %v3882_v1, %v3263_v0  ;;  %1564 = vmatpush.bf16.msra.mxu1 %v3260_v4  ;;  %v1025_v0 = vunpack.c.l.bf16 %v4255_v10 }
 0x22b   :  { %3068 = vst [vmem:[%s4337_s4 + $0x8] sm:$0xf] %v1017_v7  ;;  %1229 = vmatmul.bf16.vlgmr.msrb.gmra.mxu0 %v1017_v7  ;;  %1242 = vmatmul.bf16.vlgmr.msrb.gmra.mxu1 %v1017_v7 }
 0x22c   :  { %1255 = vmatmul.bf16.vlgmr.msrb.gmra.mxu2 %v1017_v7  ;;  %1268 = vmatmul.bf16.vlgmr.msrb.gmra.mxu3 %v1017_v7  ;;  %v3880_v7 = vld [vmem:[#allocation4 + $0x6c] sm:$0xf] }
 0x22d   :  { %1550 = vmatpush.bf16.msra.mxu0 %v3272_v46  ;;  %v3268_v11 = vor.u32 %v3880_v7, %v3265_v27  ;;  %1577 = vmatpush.bf16.msra.mxu2 %v3264_v5  ;;  %v3208_v46 = vor.u32 %v3869_v39, %v3207_v44  ;;  %v3455_v44 = vld [vmem:[#allocation4 + $0xf0] sm:$0xf0]  ;;  %v3461_v39 = vld [vmem:[#allocation4 + $0xe8] sm:$0xf] }
 0x22e   :  { %1565 = vmatpush.bf16.msra.mxu1 %v3244_v19  ;;  %v3462_v47 = vor.u32 %v3930_v45, %v3461_v39  ;;  %v3373_v39 = vld [vmem:[#allocation4 + $0x40] sm:$0xf]  ;;  %v3909_v45 = vld [vmem:[#allocation4 + $0x4c] sm:$0xf0] }
 0x22f   :  { %1590 = vmatpush.bf16.msra.mxu3 %v3268_v11 }
 0x231   :  { %1551 = vmatpush.bf16.msra.mxu0 %v3256_v62  ;;  %1578 = vmatpush.bf16.msra.mxu2 %v3248_v23 }
 0x232   :  { %1566 = vmatpush.bf16.msra.mxu1 %v3228_v36 }
 0x233   :  { %1591 = vmatpush.bf16.msra.mxu3 %v3252_v28 }
 0x235   :  { %1552 = vmatpush.bf16.msra.mxu0 %v3240_v16  ;;  %1579 = vmatpush.bf16.msra.mxu2 %v3232_v42  ;;  %v3927_v42 = vld [vmem:[#allocation4 + $0xe4] sm:$0xf] }
 0x236   :  { %1567 = vmatpush.bf16.msra.mxu1 %v3212_v51  ;;  %v3437_v51 = vld [vmem:[#allocation4 + $0xc0] sm:$0xf] }
 0x237   :  { %1592 = vmatpush.bf16.msra.mxu3 %v3236_v43 }
 0x239   :  { %1553 = vmatpush.bf16.msra.mxu0 %v3224_v29 }
 0x23b   :  { %1593 = vmatpush.bf16.msra.mxu3 %v3220_v59 }
 0x23d   :  { %1554 = vmatpush.bf16.msra.mxu0 %v3208_v46  ;;  %v3458_v46 = vor.u32 %v3927_v42, %v3455_v44 }
 0x23f   :  { %1886 = vmatpush.bf16.msrb.mxu1 %v3458_v46  ;;  %v3907_v46 = vld [vmem:[#allocation4 + $0x44] sm:$0xf] }
 0x2a8   :  { %v1230_v2 = vpop.f32.mrf.mxu0  ;;  %v1243_v3 = vpop.f32.mrf.mxu1 }
 0x2a9   :  { %v1273_v8 = vadd.f32 %v1230_v2, %v1023_v54  ;;  %v1274_v9 = vadd.f32 %v1243_v3, %v1024_v55  ;;  %v3216_v55 = vor.u32 %v3870_v49, %v3215_v48  ;;  %v3928_v48 = vld [vmem:[#allocation4 + $0xec] sm:$0xf]  ;;  %v3463_v49 = vld [vmem:[#allocation4 + $0xf8] sm:$0xf0] }
 0x2ab   :  { %v3199_v14 = vmul.f32 -1.442695, %v1273_v8  ;;  %v3200_v15 = vmul.f32 -1.442695, %v1274_v9  ;;  %1580 = vmatpush.bf16.msra.mxu2 %v3216_v55  ;;  %v3439_v55 = vld [vmem:[#allocation4 + $0xd0] sm:$0xf0] }
 0x2ac   :  { %v3442_v59 = vor.u32 %v3923_v53, %v3439_v55  ;;  %v3381_v53 = vld [vmem:[#allocation4 + $0x48] sm:$0xf]  ;;  %v3908_v55 = vld [vmem:[#allocation4 + $0x4c] sm:$0xf] }
 0x2ad   :  { %4046 = vpow2.f32 %v3199_v14 }
 0x2ae   :  { %4048 = vpow2.f32 %v3200_v15  ;;  %1887 = vmatpush.bf16.msrb.mxu1 %v3442_v59  ;;  %v3357_v59 = vld [vmem:[#allocation4 + $0x20] sm:$0xf] }
 0x2af   :  { %v1256_v33 = vpop.f32.mrf.mxu2  ;;  %v1269_v35 = vpop.f32.mrf.mxu3  ;;  %1899 = vmatpush.bf16.msrb.mxu2 %v3462_v47 }
 0x2b0   :  { %v1276_v38 = vadd.f32 %v1269_v35, %v1026_v18  ;;  %v1232_v40 = vpop.f32.mrf.mxu0  ;;  %v1245_v41 = vpop.f32.mrf.mxu1  ;;  %v1275_v4 = vadd.f32 %v1256_v33, %v1025_v0 }
 0x2b1   :  { %v3929_v41 = vld [vmem:[#allocation4 + $0xec] sm:$0xf0] }
 0x2b2   :  { %v3201_v50 = vmul.f32 -1.442695, %v1276_v38 }
 0x2b3   :  { %v4047_v54 = vpop.eup %4046 }
 0x2b4   :  { %v4049_v56 = vpop.eup %4048  ;;  %v1280_v58 = vadd.f32 1.0, %v4047_v54  ;;  %4050 = vpow2.f32 %v3201_v50  ;;  %v3466_v50 = vor.u32 %v3928_v48, %v3463_v49  ;;  %v3438_v54 = vor.u32 %v3925_v52, %v3437_v51 }
 0x2b5   :  { %v1299_v60 = vadd.f32 1.0, %v4049_v56  ;;  %v3445_v56 = vld [vmem:[#allocation4 + $0xc8] sm:$0xf]  ;;  %v3374_v49 = vor.u32 %v3909_v45, %v3373_v39 }
 0x2b6   :  { %4052 = vrcp.f32 %v1280_v58  ;;  %v1292_v11 = vand.u32 2147483648, %v1280_v58  ;;  %v1290_v13 = vand.u32 2147483647, %v1280_v58  ;;  %vm1286_vm6 = vweird.f32 %v1280_v58  ;;  %1912 = vmatpush.bf16.msrb.mxu3 %v3466_v50  ;;  %v3375_v50 = vld [vmem:[#allocation4 + $0x50] sm:$0xf0] }
 0x2b7   :  { %4054 = vrcp.f32 %v1299_v60  ;;  %v1258_v62 = vpop.f32.mrf.mxu2  ;;  %v1271_v63 = vpop.f32.mrf.mxu3  ;;  %v1311_v6 = vand.u32 2147483648, %v1299_v60  ;;  %v1309_v10 = vand.u32 2147483647, %v1299_v60  ;;  %vm1305_vm7 = vweird.f32 %v1299_v60 }
 0x2b8   :  { %v1293_v17 = vor.u32 1.1754944e-38, %v1292_v11  ;;  %vm1291_vm10 = vcmp.eq.f32.partialorder %v1290_v13, 8.507059e+37  ;;  %v3924_v62 = vld [vmem:[#allocation4 + $0xcc] sm:$0xf]  ;;  %v3447_v63 = vld [vmem:[#allocation4 + $0xd8] sm:$0xf0]  ;;  %v3378_v52 = vor.u32 %v3907_v46, %v3375_v50 }
 0x2b9   :  { %v1312_v20 = vor.u32 1.1754944e-38, %v1311_v6  ;;  %vm1310_vm11 = vcmp.eq.f32.partialorder %v1309_v10, 8.507059e+37  ;;  %v3450_v0 = vor.u32 %v3924_v62, %v3447_v63  ;;  %v3920_v11 = vld [vmem:[#allocation4 + $0xac] sm:$0xf]  ;;  %v3431_v6 = vld [vmem:[#allocation4 + $0xb8] sm:$0xf0] }
 0x2ba   :  { %v4051_v1 = vpop.eup %4050  ;;  %v3434_v13 = vor.u32 %v3920_v11, %v3431_v6  ;;  %v3917_v10 = vld [vmem:[#allocation4 + $0x8c] sm:$0xf0] }
 0x2bb   :  { %v1319_v2 = vadd.f32 1.0, %v4051_v1  ;;  %v3421_v1 = vld [vmem:[#allocation4 + $0xa0] sm:$0xf]  ;;  %1913 = vmatpush.bf16.msrb.mxu3 %v3450_v0  ;;  %v3903_v0 = vld [vmem:[#allocation4 + $0x24] sm:$0xf] }
 0x2bc   :  { %v4053_v3 = vpop.eup %4052 }
 0x2bd   :  { %v4055_v5 = vpop.eup %4054  ;;  %v1282_v7 = vmul.f32 %v4053_v3, %v1280_v58  ;;  %4056 = vrcp.f32 %v1319_v2  ;;  %vm1287_vm4 = vweird.f32 %v4053_v3  ;;  %v1331_v33 = vand.u32 2147483648, %v1319_v2  ;;  %v3926_v58 = vld [vmem:[#allocation4 + $0xd4] sm:$0xf0] }
 0x2be   :  { %v1301_v27 = vmul.f32 %v4055_v5, %v1299_v60  ;;  %4058 = vtanh.f32 %v1275_v4  ;;  %vm1306_vm5 = vweird.f32 %v4055_v5  ;;  %vm1288_vm8 = vmor %vm1286_vm6, %vm1287_vm4  ;;  %vm1325_vm13 = vweird.f32 %v1319_v2 }
 0x2bf   :  { %v1283_v8 = vsub.f32 1.0, %v1282_v7  ;;  %vm1307_vm9 = vmor %vm1305_vm7, %vm1306_vm5  ;;  %v1329_v35 = vand.u32 2147483647, %v1319_v2  ;;  %v1332_v37 = vor.u32 1.1754944e-38, %v1331_v33  ;;  %v3446_v60 = vor.u32 %v3926_v58, %v3445_v56  ;;  %v3429_v7 = vld [vmem:[#allocation4 + $0xa8] sm:$0xf]  ;;  %1914 = vmatpush.bf16.msrb.mxu3 %v3434_v13 }
 0x2c0   :  { %v1302_v9 = vsub.f32 1.0, %v1301_v27  ;;  %v3922_v27 = vld [vmem:[#allocation4 + $0xb4] sm:$0xf0]  ;;  %v3391_v33 = vld [vmem:[#allocation4 + $0x70] sm:$0xf0] }
 0x2c1   :  { %v1284_v12 = vmul.f32 %v4053_v3, %v1283_v8  ;;  %vm1330_vm15 = vcmp.eq.f32.partialorder %v1329_v35, 8.507059e+37  ;;  %1900 = vmatpush.bf16.msrb.mxu2 %v3446_v60  ;;  %v3397_v35 = vld [vmem:[#allocation4 + $0x68] sm:$0xf]  ;;  %v3383_v58 = vld [vmem:[#allocation4 + $0x58] sm:$0xf0] }
 0x2c2   :  { %v1303_v14 = vmul.f32 %v4055_v5, %v1302_v9  ;;  %v3430_v9 = vor.u32 %v3922_v27, %v3429_v7  ;;  %v3905_v60 = vld [vmem:[#allocation4 + $0x2c] sm:$0xf0]  ;;  %v3386_v62 = vor.u32 %v3908_v55, %v3383_v58  ;;  %v3906_v7 = vld [vmem:[#allocation4 + $0x34] sm:$0xf0]  ;;  %v3904_v27 = vld [vmem:[#allocation4 + $0x2c] sm:$0xf] }
 0x2c3   :  { %v4057_v15 = vpop.eup %4056  ;;  %v1285_v16 = vadd.f32 %v4053_v3, %v1284_v12  ;;  %v3203_v12 = vld [vmem:[%s4333_s0 + $0x40] sm:$0xff]  ;;  %v3358_v63 = vor.u32 %v3905_v60, %v3357_v59 }
 0x2c4   :  { %v1304_v18 = vadd.f32 %v4055_v5, %v1303_v14  ;;  %v1321_v19 = vmul.f32 %v4057_v15, %v1319_v2  ;;  %v4059_v22 = vpop.eup %4058  ;;  %vm1326_vm12 = vweird.f32 %v4057_v15  ;;  %v3921_v2 = vld [vmem:[#allocation4 + $0xac] sm:$0xf0]  ;;  %v3405_v14 = vld [vmem:[#allocation4 + $0x80] sm:$0xf] }
 0x2c5   :  { %v1289_v21 = vsel %vm1288_vm8, %v4053_v3, %v1285_v16  ;;  %vm1327_vm14 = vmor %vm1325_vm13, %vm1326_vm12  ;;  %v3919_v3 = vld [vmem:[#allocation4 + $0xa4] sm:$0xf]  ;;  %v3422_v4 = vor.u32 %v3921_v2, %v3421_v1  ;;  %1901 = vmatpush.bf16.msrb.mxu2 %v3430_v9  ;;  %v3406_v16 = vor.u32 %v3917_v10, %v3405_v14  ;;  %v3359_v1 = vld [vmem:[#allocation4 + $0x30] sm:$0xf0] }
 0x2c6   :  { %v1294_v23 = vsel %vm1291_vm10, %v1293_v17, %v1289_v21  ;;  %v1308_v24 = vsel %vm1307_vm9, %v4055_v5, %v1304_v18  ;;  %v1322_v25 = vsub.f32 1.0, %v1321_v19  ;;  %v3423_v5 = vld [vmem:[#allocation4 + $0xb0] sm:$0xf0]  ;;  %v3413_v18 = vld [vmem:[#allocation4 + $0x88] sm:$0xf] }
 0x2c7   :  { %v1313_v26 = vsel %vm1310_vm11, %v1312_v20, %v1308_v24  ;;  %v1337_v28 = vmul.f32 %v4059_v22, %v1294_v23  ;;  %v3426_v8 = vor.u32 %v3919_v3, %v3423_v5  ;;  %v3407_v17 = vld [vmem:[#allocation4 + $0x90] sm:$0xf0]  ;;  %v3918_v19 = vld [vmem:[#allocation4 + $0x94] sm:$0xf0]  ;;  %v3916_v22 = vld [vmem:[#allocation4 + $0x8c] sm:$0xf]  ;;  %v1349_v24 = vunpack.c.l.bf16 %v3203_v12 }
 0x2c8   :  { %v1336_v29 = vmul.f32 %v1313_v26, %v4243_v61  ;;  %v1323_v30 = vmul.f32 %v4057_v15, %v1322_v25  ;;  %v3453_v61 = vld [vmem:[#allocation4 + $0xe0] sm:$0xf]  ;;  %v3414_v21 = vor.u32 %v3918_v19, %v3413_v18  ;;  %v3415_v23 = vld [vmem:[#allocation4 + $0x98] sm:$0xf0]  ;;  %v1350_v25 = vunpack.c.h.bf16 %v3203_v12  ;;  %v3365_v2 = vld [vmem:[#allocation4 + $0x28] sm:$0xf] }
 0x2c9   :  { %v3454_v43 = vor.u32 %v3929_v41, %v3453_v61  ;;  %1888 = vmatpush.bf16.msrb.mxu1 %v3426_v8  ;;  %v3418_v26 = vor.u32 %v3916_v22, %v3415_v23  ;;  %v3399_v61 = vld [vmem:[#allocation4 + $0x78] sm:$0xf0]  ;;  %v3362_v5 = vor.u32 %v3903_v0, %v3359_v1  ;;  %v3366_v12 = vor.u32 %v3906_v7, %v3365_v2  ;;  %v3341_v14 = vld [vmem:[#allocation4] sm:$0xf]  ;;  %v3901_v10 = vld [vmem:[#allocation4 + $0xc] sm:$0xf0] }
 0x2ca   :  { %v4260_v31 = vadd.f32 %v1337_v28, %v1336_v29  ;;  %v1324_v32 = vadd.f32 %v4057_v15, %v1323_v30  ;;  %1902 = vmatpush.bf16.msrb.mxu2 %v3414_v21  ;;  %v3389_v28 = vld [vmem:[#allocation4 + $0x60] sm:$0xf]  ;;  %v3913_v29 = vld [vmem:[#allocation4 + $0x6c] sm:$0xf0]  ;;  %v3911_v30 = vld [vmem:[#allocation4 + $0x64] sm:$0xf] }
 0x2cb   :  { %1873 = vmatpush.bf16.msrb.mxu0 %v3454_v43  ;;  %1915 = vmatpush.bf16.msrb.mxu3 %v3418_v26  ;;  %v4272_v43 = vld [vmem:[%s4333_s0 + $0x48] sm:$0xff]  ;;  %v3367_v8 = vld [vmem:[#allocation4 + $0x38] sm:$0xf0]  ;;  %v3902_v19 = vld [vmem:[#allocation4 + $0x14] sm:$0xf0] }
 0x2cc   :  { %4060 = vtanh.f32 %v4260_v31  ;;  %v1328_v36 = vsel %vm1327_vm14, %v4057_v15, %v1324_v32  ;;  %v3915_v15 = vld [vmem:[#allocation4 + $0x84] sm:$0xf]  ;;  %v3390_v32 = vor.u32 %v3913_v29, %v3389_v28  ;;  %v1352_v51 = vunpack.c.h.bf16 %v4272_v43  ;;  %v3349_v18 = vld [vmem:[#allocation4 + $0x8] sm:$0xf]  ;;  %v3900_v22 = vld [vmem:[#allocation4 + $0xc] sm:$0xf] }
 0x2cd   :  { %v1333_v34 = vsel %vm1330_vm15, %v1332_v37, %v1328_v36  ;;  %v3410_v20 = vor.u32 %v3915_v15, %v3407_v17  ;;  %v3914_v36 = vld [vmem:[#allocation4 + $0x74] sm:$0xf0]  ;;  %v3370_v13 = vor.u32 %v3904_v27, %v3367_v8  ;;  %v3899_v15 = vld [vmem:[#allocation4 + $0x4] sm:$0xf]  ;;  %v3343_v17 = vld [vmem:[#allocation4 + $0x10] sm:$0xf0] }
 0x2ce   :  { %v3346_v21 = vor.u32 %v3899_v15, %v3343_v17  ;;  %v3351_v23 = vld [vmem:[#allocation4 + $0x18] sm:$0xf0]  ;;  %v3962_v15 = vld [vmem:[#allocation4 + $0xf4] sm:$0xf0] }
 0x2cf   :  { %1874 = vmatpush.bf16.msrb.mxu0 %v3438_v54  ;;  %1889 = vmatpush.bf16.msrb.mxu1 %v3410_v20  ;;  %v3910_v54 = vld [vmem:[#allocation4 + $0x54] sm:$0xf0]  ;;  %v3354_v29 = vor.u32 %v3900_v22, %v3351_v23  ;;  %v3957_v22 = vld [vmem:[#allocation4 + $0xcc] sm:$0xf0]  ;;  %v3955_v23 = vld [vmem:[#allocation4 + $0xc4] sm:$0xf] }
 0x2d0   :  { %v3382_v56 = vor.u32 %v3910_v54, %v3381_v53 }
 0x2d2   :  { %v4061_v57 = vpop.eup %4060 }
 0x2d3   :  { %v1340_v38 = vmul.f32 %v4061_v57, %v1333_v34  ;;  %1875 = vmatpush.bf16.msrb.mxu0 %v3422_v4  ;;  %v3394_v34 = vor.u32 %v3911_v30, %v3391_v33 }
 0x2d5   :  { %v1343_v40 = vpack.c.bf16 %v1340_v38, %v1340_v38  ;;  %v3398_v38 = vor.u32 %v3914_v36, %v3397_v35  ;;  %1890 = vmatpush.bf16.msrb.mxu1 %v3394_v34  ;;  %v1351_v35 = vunpack.c.l.bf16 %v4272_v43 }
 0x2d7   :  { %3202 = vst [vmem:[%s4337_s4 + $0xc] sm:$0xf] %v1343_v40  ;;  %1555 = vmatmul.bf16.vlgmr.msra.gmra.mxu0 %v1343_v40  ;;  %1568 = vmatmul.bf16.vlgmr.msra.gmra.mxu1 %v1343_v40 }
 0x2d8   :  { %1581 = vmatmul.bf16.vlgmr.msra.gmra.mxu2 %v1343_v40  ;;  %1594 = vmatmul.bf16.vlgmr.msra.gmra.mxu3 %v1343_v40  ;;  %v3912_v40 = vld [vmem:[#allocation4 + $0x6c] sm:$0xf] }
 0x2d9   :  { %1876 = vmatpush.bf16.msrb.mxu0 %v3406_v16  ;;  %v3402_v44 = vor.u32 %v3912_v40, %v3399_v61  ;;  %1903 = vmatpush.bf16.msrb.mxu2 %v3398_v38  ;;  %v3342_v16 = vor.u32 %v3901_v10, %v3341_v14  ;;  %v3589_v14 = vld [vmem:[#allocation4 + $0xf0] sm:$0xf0]  ;;  %v3595_v10 = vld [vmem:[#allocation4 + $0xe8] sm:$0xf] }
 0x2da   :  { %1891 = vmatpush.bf16.msrb.mxu1 %v3378_v52  ;;  %v3596_v17 = vor.u32 %v3962_v15, %v3595_v10  ;;  %v3507_v10 = vld [vmem:[#allocation4 + $0x40] sm:$0xf]  ;;  %v3941_v15 = vld [vmem:[#allocation4 + $0x4c] sm:$0xf0] }
 0x2db   :  { %1916 = vmatpush.bf16.msrb.mxu3 %v3402_v44 }
 0x2dd   :  { %1877 = vmatpush.bf16.msrb.mxu0 %v3390_v32  ;;  %1904 = vmatpush.bf16.msrb.mxu2 %v3382_v56 }
 0x2de   :  { %1892 = vmatpush.bf16.msrb.mxu1 %v3362_v5 }
 0x2df   :  { %1917 = vmatpush.bf16.msrb.mxu3 %v3386_v62 }
 0x2e1   :  { %1878 = vmatpush.bf16.msrb.mxu0 %v3374_v49  ;;  %1905 = vmatpush.bf16.msrb.mxu2 %v3366_v12  ;;  %v3959_v12 = vld [vmem:[#allocation4 + $0xe4] sm:$0xf] }
 0x2e2   :  { %1893 = vmatpush.bf16.msrb.mxu1 %v3346_v21  ;;  %v3571_v21 = vld [vmem:[#allocation4 + $0xc0] sm:$0xf] }
 0x2e3   :  { %1918 = vmatpush.bf16.msrb.mxu3 %v3370_v13 }
 0x2e5   :  { %1879 = vmatpush.bf16.msrb.mxu0 %v3358_v63 }
 0x2e7   :  { %1919 = vmatpush.bf16.msrb.mxu3 %v3354_v29 }
 0x2e9   :  { %1880 = vmatpush.bf16.msrb.mxu0 %v3342_v16  ;;  %v3592_v16 = vor.u32 %v3959_v12, %v3589_v14 }
 0x2eb   :  { %2212 = vmatpush.bf16.msra.mxu1 %v3592_v16  ;;  %v3939_v16 = vld [vmem:[#allocation4 + $0x44] sm:$0xf] }
 0x354   :  { %v1556_v37 = vpop.f32.mrf.mxu0  ;;  %v1569_v57 = vpop.f32.mrf.mxu1 }
 0x355   :  { %v1599_v41 = vadd.f32 %v1556_v37, %v1349_v24  ;;  %v1600_v42 = vadd.f32 %v1569_v57, %v1350_v25  ;;  %v3350_v25 = vor.u32 %v3902_v19, %v3349_v18  ;;  %v3960_v18 = vld [vmem:[#allocation4 + $0xec] sm:$0xf]  ;;  %v3597_v19 = vld [vmem:[#allocation4 + $0xf8] sm:$0xf0] }
 0x357   :  { %v3333_v47 = vmul.f32 -1.442695, %v1599_v41  ;;  %v3334_v48 = vmul.f32 -1.442695, %v1600_v42  ;;  %1906 = vmatpush.bf16.msrb.mxu2 %v3350_v25  ;;  %v3573_v25 = vld [vmem:[#allocation4 + $0xd0] sm:$0xf0] }
 0x358   :  { %v3576_v29 = vor.u32 %v3955_v23, %v3573_v25  ;;  %v3515_v23 = vld [vmem:[#allocation4 + $0x48] sm:$0xf]  ;;  %v3940_v25 = vld [vmem:[#allocation4 + $0x4c] sm:$0xf] }
 0x359   :  { %4062 = vpow2.f32 %v3333_v47 }
 0x35a   :  { %4064 = vpow2.f32 %v3334_v48  ;;  %2213 = vmatpush.bf16.msra.mxu1 %v3576_v29  ;;  %v3491_v29 = vld [vmem:[#allocation4 + $0x20] sm:$0xf] }
 0x35b   :  { %v1582_v3 = vpop.f32.mrf.mxu2  ;;  %v1595_v4 = vpop.f32.mrf.mxu3  ;;  %2225 = vmatpush.bf16.msra.mxu2 %v3596_v17 }
 0x35c   :  { %v1602_v9 = vadd.f32 %v1595_v4, %v1352_v51  ;;  %v1558_v11 = vpop.f32.mrf.mxu0  ;;  %v1571_v6 = vpop.f32.mrf.mxu1  ;;  %v1601_v34 = vadd.f32 %v1582_v3, %v1351_v35 }
 0x35d   :  { %v3961_v6 = vld [vmem:[#allocation4 + $0xec] sm:$0xf0] }
 0x35e   :  { %v3335_v20 = vmul.f32 -1.442695, %v1602_v9 }
 0x35f   :  { %v4063_v24 = vpop.eup %4062 }
 0x360   :  { %v4065_v26 = vpop.eup %4064  ;;  %v1606_v28 = vadd.f32 1.0, %v4063_v24  ;;  %4066 = vpow2.f32 %v3335_v20  ;;  %v3600_v20 = vor.u32 %v3960_v18, %v3597_v19  ;;  %v3572_v24 = vor.u32 %v3957_v22, %v3571_v21 }
 0x361   :  { %v1625_v30 = vadd.f32 1.0, %v4065_v26  ;;  %v3579_v26 = vld [vmem:[#allocation4 + $0xc8] sm:$0xf]  ;;  %v3508_v19 = vor.u32 %v3941_v15, %v3507_v10 }
 0x362   :  { %4068 = vrcp.f32 %v1606_v28  ;;  %v1618_v44 = vand.u32 2147483648, %v1606_v28  ;;  %v1616_v46 = vand.u32 2147483647, %v1606_v28  ;;  %vm1612_vm2 = vweird.f32 %v1606_v28  ;;  %2238 = vmatpush.bf16.msra.mxu3 %v3600_v20  ;;  %v3509_v20 = vld [vmem:[#allocation4 + $0x50] sm:$0xf0] }
 0x363   :  { %4070 = vrcp.f32 %v1625_v30  ;;  %v1584_v32 = vpop.f32.mrf.mxu2  ;;  %v1597_v33 = vpop.f32.mrf.mxu3  ;;  %v1637_v39 = vand.u32 2147483648, %v1625_v30  ;;  %v1635_v43 = vand.u32 2147483647, %v1625_v30  ;;  %vm1631_vm3 = vweird.f32 %v1625_v30 }
 0x364   :  { %v1619_v50 = vor.u32 1.1754944e-38, %v1618_v44  ;;  %vm1617_vm6 = vcmp.eq.f32.partialorder %v1616_v46, 8.507059e+37  ;;  %v3956_v32 = vld [vmem:[#allocation4 + $0xcc] sm:$0xf]  ;;  %v3581_v33 = vld [vmem:[#allocation4 + $0xd8] sm:$0xf0]  ;;  %v3512_v22 = vor.u32 %v3939_v16, %v3509_v20 }
 0x365   :  { %v1638_v53 = vor.u32 1.1754944e-38, %v1637_v39  ;;  %vm1636_vm7 = vcmp.eq.f32.partialorder %v1635_v43, 8.507059e+37  ;;  %v3584_v35 = vor.u32 %v3956_v32, %v3581_v33  ;;  %v3952_v44 = vld [vmem:[#allocation4 + $0xac] sm:$0xf]  ;;  %v3565_v39 = vld [vmem:[#allocation4 + $0xb8] sm:$0xf0] }
 0x366   :  { %v4067_v36 = vpop.eup %4066  ;;  %v3568_v46 = vor.u32 %v3952_v44, %v3565_v39  ;;  %v3949_v43 = vld [vmem:[#allocation4 + $0x8c] sm:$0xf0] }
 0x367   :  { %v1645_v37 = vadd.f32 1.0, %v4067_v36  ;;  %v3555_v36 = vld [vmem:[#allocation4 + $0xa0] sm:$0xf]  ;;  %2239 = vmatpush.bf16.msra.mxu3 %v3584_v35  ;;  %v3935_v35 = vld [vmem:[#allocation4 + $0x24] sm:$0xf] }
 0x368   :  { %v4069_v57 = vpop.eup %4068 }
 0x369   :  { %v4071_v38 = vpop.eup %4070  ;;  %v1608_v40 = vmul.f32 %v4069_v57, %v1606_v28  ;;  %4072 = vrcp.f32 %v1645_v37  ;;  %vm1613_vm0 = vweird.f32 %v4069_v57  ;;  %v1657_v3 = vand.u32 2147483648, %v1645_v37  ;;  %v3958_v28 = vld [vmem:[#allocation4 + $0xd4] sm:$0xf0] }
 0x36a   :  { %v1627_v61 = vmul.f32 %v4071_v38, %v1625_v30  ;;  %4074 = vtanh.f32 %v1601_v34  ;;  %vm1632_vm1 = vweird.f32 %v4071_v38  ;;  %vm1614_vm4 = vmor %vm1612_vm2, %vm1613_vm0  ;;  %vm1651_vm9 = vweird.f32 %v1645_v37 }
 0x36b   :  { %v1609_v41 = vsub.f32 1.0, %v1608_v40  ;;  %vm1633_vm5 = vmor %vm1631_vm3, %vm1632_vm1  ;;  %v1655_v4 = vand.u32 2147483647, %v1645_v37  ;;  %v1658_v7 = vor.u32 1.1754944e-38, %v1657_v3  ;;  %v3580_v30 = vor.u32 %v3958_v28, %v3579_v26  ;;  %v3563_v40 = vld [vmem:[#allocation4 + $0xa8] sm:$0xf]  ;;  %2240 = vmatpush.bf16.msra.mxu3 %v3568_v46 }
 0x36c   :  { %v1628_v42 = vsub.f32 1.0, %v1627_v61  ;;  %v3954_v61 = vld [vmem:[#allocation4 + $0xb4] sm:$0xf0]  ;;  %v3525_v3 = vld [vmem:[#allocation4 + $0x70] sm:$0xf0] }
 0x36d   :  { %v1610_v45 = vmul.f32 %v4069_v57, %v1609_v41  ;;  %vm1656_vm11 = vcmp.eq.f32.partialorder %v1655_v4, 8.507059e+37  ;;  %2226 = vmatpush.bf16.msra.mxu2 %v3580_v30  ;;  %v3531_v4 = vld [vmem:[#allocation4 + $0x68] sm:$0xf]  ;;  %v3517_v28 = vld [vmem:[#allocation4 + $0x58] sm:$0xf0] }
 0x36e   :  { %v1629_v47 = vmul.f32 %v4071_v38, %v1628_v42  ;;  %v3564_v42 = vor.u32 %v3954_v61, %v3563_v40  ;;  %v3937_v30 = vld [vmem:[#allocation4 + $0x2c] sm:$0xf0]  ;;  %v3520_v32 = vor.u32 %v3940_v25, %v3517_v28  ;;  %v3938_v40 = vld [vmem:[#allocation4 + $0x34] sm:$0xf0]  ;;  %v3936_v61 = vld [vmem:[#allocation4 + $0x2c] sm:$0xf] }
 0x36f   :  { %v4073_v48 = vpop.eup %4072  ;;  %v1611_v49 = vadd.f32 %v4069_v57, %v1610_v45  ;;  %v3337_v45 = vld [vmem:[%s4333_s0 + $0x50] sm:$0xff]  ;;  %v3492_v33 = vor.u32 %v3937_v30, %v3491_v29 }
 0x370   :  { %v1630_v51 = vadd.f32 %v4071_v38, %v1629_v47  ;;  %v1647_v52 = vmul.f32 %v4073_v48, %v1645_v37  ;;  %v4075_v55 = vpop.eup %4074  ;;  %vm1652_vm8 = vweird.f32 %v4073_v48  ;;  %v3953_v37 = vld [vmem:[#allocation4 + $0xac] sm:$0xf0]  ;;  %v3539_v47 = vld [vmem:[#allocation4 + $0x80] sm:$0xf] }
 0x371   :  { %v1615_v54 = vsel %vm1614_vm4, %v4069_v57, %v1611_v49  ;;  %vm1653_vm10 = vmor %vm1651_vm9, %vm1652_vm8  ;;  %v3951_v57 = vld [vmem:[#allocation4 + $0xa4] sm:$0xf]  ;;  %v3556_v34 = vor.u32 %v3953_v37, %v3555_v36  ;;  %2227 = vmatpush.bf16.msra.mxu2 %v3564_v42  ;;  %v3540_v49 = vor.u32 %v3949_v43, %v3539_v47  ;;  %v3493_v36 = vld [vmem:[#allocation4 + $0x30] sm:$0xf0] }
 0x372   :  { %v1620_v56 = vsel %vm1617_vm6, %v1619_v50, %v1615_v54  ;;  %v1634_v58 = vsel %vm1633_vm5, %v4071_v38, %v1630_v51  ;;  %v1648_v59 = vsub.f32 1.0, %v1647_v52  ;;  %v3557_v38 = vld [vmem:[#allocation4 + $0xb0] sm:$0xf0]  ;;  %v3547_v51 = vld [vmem:[#allocation4 + $0x88] sm:$0xf] }
 0x373   :  { %v1639_v60 = vsel %vm1636_vm7, %v1638_v53, %v1634_v58  ;;  %v1663_v62 = vmul.f32 %v4075_v55, %v1620_v56  ;;  %v3560_v41 = vor.u32 %v3951_v57, %v3557_v38  ;;  %v3541_v50 = vld [vmem:[#allocation4 + $0x90] sm:$0xf0]  ;;  %v3950_v52 = vld [vmem:[#allocation4 + $0x94] sm:$0xf0]  ;;  %v3948_v55 = vld [vmem:[#allocation4 + $0x8c] sm:$0xf]  ;;  %v1675_v58 = vunpack.c.l.bf16 %v3337_v45 }
 0x374   :  { %v1662_v63 = vmul.f32 %v1639_v60, %v4260_v31  ;;  %v1649_v0 = vmul.f32 %v4073_v48, %v1648_v59  ;;  %v3587_v31 = vld [vmem:[#allocation4 + $0xe0] sm:$0xf]  ;;  %v3548_v54 = vor.u32 %v3950_v52, %v3547_v51  ;;  %v3549_v56 = vld [vmem:[#allocation4 + $0x98] sm:$0xf0]  ;;  %v1676_v59 = vunpack.c.h.bf16 %v3337_v45  ;;  %v3499_v37 = vld [vmem:[#allocation4 + $0x28] sm:$0xf] }
 0x375   :  { %v3588_v13 = vor.u32 %v3961_v6, %v3587_v31  ;;  %2214 = vmatpush.bf16.msra.mxu1 %v3560_v41  ;;  %v3552_v60 = vor.u32 %v3948_v55, %v3549_v56  ;;  %v3533_v31 = vld [vmem:[#allocation4 + $0x78] sm:$0xf0]  ;;  %v3496_v38 = vor.u32 %v3935_v35, %v3493_v36  ;;  %v3500_v45 = vor.u32 %v3938_v40, %v3499_v37  ;;  %v3475_v47 = vld [vmem:[#allocation4] sm:$0xf]  ;;  %v3933_v43 = vld [vmem:[#allocation4 + $0xc] sm:$0xf0] }
 0x376   :  { %v4277_v1 = vadd.f32 %v1663_v62, %v1662_v63  ;;  %v1650_v2 = vadd.f32 %v4073_v48, %v1649_v0  ;;  %2228 = vmatpush.bf16.msra.mxu2 %v3548_v54  ;;  %v3523_v62 = vld [vmem:[#allocation4 + $0x60] sm:$0xf]  ;;  %v3945_v63 = vld [vmem:[#allocation4 + $0x6c] sm:$0xf0]  ;;  %v3943_v0 = vld [vmem:[#allocation4 + $0x64] sm:$0xf] }
 0x377   :  { %2199 = vmatpush.bf16.msra.mxu0 %v3588_v13  ;;  %2241 = vmatpush.bf16.msra.mxu3 %v3552_v60  ;;  %v4289_v13 = vld [vmem:[%s4333_s0 + $0x58] sm:$0xff]  ;;  %v3483_v51 = vld [vmem:[#allocation4 + $0x8] sm:$0xf]  ;;  %v3932_v55 = vld [vmem:[#allocation4 + $0xc] sm:$0xf] }
 0x378   :  { %4076 = vtanh.f32 %v4277_v1  ;;  %v1654_v5 = vsel %vm1653_vm10, %v4073_v48, %v1650_v2  ;;  %v3947_v48 = vld [vmem:[#allocation4 + $0x84] sm:$0xf]  ;;  %v3524_v2 = vor.u32 %v3945_v63, %v3523_v62  ;;  %v1678_v21 = vunpack.c.h.bf16 %v4289_v13  ;;  %v3501_v41 = vld [vmem:[#allocation4 + $0x38] sm:$0xf0]  ;;  %v3934_v52 = vld [vmem:[#allocation4 + $0x14] sm:$0xf0] }
 0x379   :  { %v1659_v8 = vsel %vm1656_vm11, %v1658_v7, %v1654_v5  ;;  %v3544_v53 = vor.u32 %v3947_v48, %v3541_v50  ;;  %v3946_v5 = vld [vmem:[#allocation4 + $0x74] sm:$0xf0]  ;;  %v3504_v46 = vor.u32 %v3936_v61, %v3501_v41  ;;  %v3931_v48 = vld [vmem:[#allocation4 + $0x4] sm:$0xf]  ;;  %v3477_v50 = vld [vmem:[#allocation4 + $0x10] sm:$0xf0] }
 0x37a   :  { %v3480_v54 = vor.u32 %v3931_v48, %v3477_v50  ;;  %v3485_v56 = vld [vmem:[#allocation4 + $0x18] sm:$0xf0]  ;;  %v3994_v48 = vld [vmem:[#allocation4 + $0xf4] sm:$0xf0] }
 0x37b   :  { %2200 = vmatpush.bf16.msra.mxu0 %v3572_v24  ;;  %2215 = vmatpush.bf16.msra.mxu1 %v3544_v53  ;;  %v3942_v24 = vld [vmem:[#allocation4 + $0x54] sm:$0xf0]  ;;  %v3488_v63 = vor.u32 %v3932_v55, %v3485_v56  ;;  %v3989_v55 = vld [vmem:[#allocation4 + $0xcc] sm:$0xf0]  ;;  %v3987_v56 = vld [vmem:[#allocation4 + $0xc4] sm:$0xf] }
 0x37c   :  { %v3516_v26 = vor.u32 %v3942_v24, %v3515_v23 }
 0x37e   :  { %v4077_v27 = vpop.eup %4076 }
 0x37f   :  { %v1666_v9 = vmul.f32 %v4077_v27, %v1659_v8  ;;  %2201 = vmatpush.bf16.msra.mxu0 %v3556_v34  ;;  %v3528_v8 = vor.u32 %v3943_v0, %v3525_v3 }
 0x381   :  { %v1669_v11 = vpack.c.bf16 %v1666_v9, %v1666_v9  ;;  %v3532_v9 = vor.u32 %v3946_v5, %v3531_v4  ;;  %2216 = vmatpush.bf16.msra.mxu1 %v3528_v8  ;;  %v1677_v4 = vunpack.c.l.bf16 %v4289_v13 }
 0x383   :  { %3336 = vst [vmem:[%s4337_s4 + $0x10] sm:$0xf] %v1669_v11  ;;  %1881 = vmatmul.bf16.vlgmr.msrb.gmra.mxu0 %v1669_v11  ;;  %1894 = vmatmul.bf16.vlgmr.msrb.gmra.mxu1 %v1669_v11 }
 0x384   :  { %1907 = vmatmul.bf16.vlgmr.msrb.gmra.mxu2 %v1669_v11  ;;  %1920 = vmatmul.bf16.vlgmr.msrb.gmra.mxu3 %v1669_v11  ;;  %v3944_v11 = vld [vmem:[#allocation4 + $0x6c] sm:$0xf] }
 0x385   :  { %2202 = vmatpush.bf16.msra.mxu0 %v3540_v49  ;;  %v3536_v14 = vor.u32 %v3944_v11, %v3533_v31  ;;  %2229 = vmatpush.bf16.msra.mxu2 %v3532_v9  ;;  %v3476_v49 = vor.u32 %v3933_v43, %v3475_v47  ;;  %v3723_v47 = vld [vmem:[#allocation4 + $0xf0] sm:$0xf0]  ;;  %v3729_v43 = vld [vmem:[#allocation4 + $0xe8] sm:$0xf] }
 0x386   :  { %2217 = vmatpush.bf16.msra.mxu1 %v3512_v22  ;;  %v3730_v50 = vor.u32 %v3994_v48, %v3729_v43  ;;  %v3641_v43 = vld [vmem:[#allocation4 + $0x40] sm:$0xf]  ;;  %v3973_v48 = vld [vmem:[#allocation4 + $0x4c] sm:$0xf0] }
 0x387   :  { %2242 = vmatpush.bf16.msra.mxu3 %v3536_v14 }
 0x389   :  { %2203 = vmatpush.bf16.msra.mxu0 %v3524_v2  ;;  %2230 = vmatpush.bf16.msra.mxu2 %v3516_v26 }
 0x38a   :  { %2218 = vmatpush.bf16.msra.mxu1 %v3496_v38 }
 0x38b   :  { %2243 = vmatpush.bf16.msra.mxu3 %v3520_v32 }
 0x38d   :  { %2204 = vmatpush.bf16.msra.mxu0 %v3508_v19  ;;  %2231 = vmatpush.bf16.msra.mxu2 %v3500_v45  ;;  %v3991_v45 = vld [vmem:[#allocation4 + $0xe4] sm:$0xf] }
 0x38e   :  { %2219 = vmatpush.bf16.msra.mxu1 %v3480_v54  ;;  %v3705_v54 = vld [vmem:[#allocation4 + $0xc0] sm:$0xf] }
 0x38f   :  { %2244 = vmatpush.bf16.msra.mxu3 %v3504_v46 }
 0x391   :  { %2205 = vmatpush.bf16.msra.mxu0 %v3492_v33 }
 0x393   :  { %2245 = vmatpush.bf16.msra.mxu3 %v3488_v63 }
 0x395   :  { %2206 = vmatpush.bf16.msra.mxu0 %v3476_v49  ;;  %v3726_v49 = vor.u32 %v3991_v45, %v3723_v47 }
 0x397   :  { %2538 = vmatpush.bf16.msrb.mxu1 %v3726_v49  ;;  %v3971_v49 = vld [vmem:[#allocation4 + $0x44] sm:$0xf] }
 0x400   :  { %v1882_v7 = vpop.f32.mrf.mxu0  ;;  %v1895_v27 = vpop.f32.mrf.mxu1 }
 0x401   :  { %v1925_v6 = vadd.f32 %v1882_v7, %v1675_v58  ;;  %v1926_v12 = vadd.f32 %v1895_v27, %v1676_v59  ;;  %v3484_v59 = vor.u32 %v3934_v52, %v3483_v51  ;;  %v3992_v51 = vld [vmem:[#allocation4 + $0xec] sm:$0xf]  ;;  %v3731_v52 = vld [vmem:[#allocation4 + $0xf8] sm:$0xf0] }
 0x403   :  { %v3467_v17 = vmul.f32 -1.442695, %v1925_v6  ;;  %v3468_v18 = vmul.f32 -1.442695, %v1926_v12  ;;  %2232 = vmatpush.bf16.msra.mxu2 %v3484_v59  ;;  %v3707_v59 = vld [vmem:[#allocation4 + $0xd0] sm:$0xf0] }
 0x404   :  { %v3710_v63 = vor.u32 %v3987_v56, %v3707_v59  ;;  %v3649_v56 = vld [vmem:[#allocation4 + $0x48] sm:$0xf]  ;;  %v3972_v59 = vld [vmem:[#allocation4 + $0x4c] sm:$0xf] }
 0x405   :  { %4078 = vpow2.f32 %v3467_v17 }
 0x406   :  { %4080 = vpow2.f32 %v3468_v18  ;;  %2539 = vmatpush.bf16.msrb.mxu1 %v3710_v63  ;;  %v3625_v63 = vld [vmem:[#allocation4 + $0x20] sm:$0xf] }
 0x407   :  { %v1908_v57 = vpop.f32.mrf.mxu2  ;;  %v1921_v34 = vpop.f32.mrf.mxu3  ;;  %2551 = vmatpush.bf16.msrb.mxu2 %v3730_v50 }
 0x408   :  { %v1928_v42 = vadd.f32 %v1921_v34, %v1678_v21  ;;  %v1884_v44 = vpop.f32.mrf.mxu0  ;;  %v1897_v39 = vpop.f32.mrf.mxu1  ;;  %v1927_v8 = vadd.f32 %v1908_v57, %v1677_v4 }
 0x409   :  { %v3993_v39 = vld [vmem:[#allocation4 + $0xec] sm:$0xf0] }
 0x40a   :  { %v3469_v53 = vmul.f32 -1.442695, %v1928_v42 }
 0x40b   :  { %v4079_v58 = vpop.eup %4078 }
 0x40c   :  { %v4081_v60 = vpop.eup %4080  ;;  %v1932_v62 = vadd.f32 1.0, %v4079_v58  ;;  %4082 = vpow2.f32 %v3469_v53  ;;  %v3734_v53 = vor.u32 %v3992_v51, %v3731_v52  ;;  %v3706_v58 = vor.u32 %v3989_v55, %v3705_v54 }
 0x40d   :  { %v1951_v0 = vadd.f32 1.0, %v4081_v60  ;;  %v3713_v60 = vld [vmem:[#allocation4 + $0xc8] sm:$0xf]  ;;  %v3642_v52 = vor.u32 %v3973_v48, %v3641_v43 }
 0x40e   :  { %4084 = vrcp.f32 %v1932_v62  ;;  %v1944_v14 = vand.u32 2147483648, %v1932_v62  ;;  %v1942_v16 = vand.u32 2147483647, %v1932_v62  ;;  %vm1938_vm14 = vweird.f32 %v1932_v62  ;;  %2564 = vmatpush.bf16.msrb.mxu3 %v3734_v53  ;;  %v3643_v53 = vld [vmem:[#allocation4 + $0x50] sm:$0xf0] }
 0x40f   :  { %4086 = vrcp.f32 %v1951_v0  ;;  %v1910_v2 = vpop.f32.mrf.mxu2  ;;  %v1923_v3 = vpop.f32.mrf.mxu3  ;;  %v1963_v10 = vand.u32 2147483648, %v1951_v0  ;;  %v1961_v13 = vand.u32 2147483647, %v1951_v0  ;;  %vm1957_vm15 = vweird.f32 %v1951_v0 }
 0x410   :  { %v1945_v20 = vor.u32 1.1754944e-38, %v1944_v14  ;;  %vm1943_vm2 = vcmp.eq.f32.partialorder %v1942_v16, 8.507059e+37  ;;  %v3988_v2 = vld [vmem:[#allocation4 + $0xcc] sm:$0xf]  ;;  %v3715_v3 = vld [vmem:[#allocation4 + $0xd8] sm:$0xf0]  ;;  %v3646_v55 = vor.u32 %v3971_v49, %v3643_v53 }
 0x411   :  { %v1964_v23 = vor.u32 1.1754944e-38, %v1963_v10  ;;  %vm1962_vm3 = vcmp.eq.f32.partialorder %v1961_v13, 8.507059e+37  ;;  %v3718_v4 = vor.u32 %v3988_v2, %v3715_v3  ;;  %v3984_v14 = vld [vmem:[#allocation4 + $0xac] sm:$0xf]  ;;  %v3699_v10 = vld [vmem:[#allocation4 + $0xb8] sm:$0xf0] }
 0x412   :  { %v4083_v5 = vpop.eup %4082  ;;  %v3702_v16 = vor.u32 %v3984_v14, %v3699_v10  ;;  %v3981_v13 = vld [vmem:[#allocation4 + $0x8c] sm:$0xf0] }
 0x413   :  { %v1971_v7 = vadd.f32 1.0, %v4083_v5  ;;  %v3689_v5 = vld [vmem:[#allocation4 + $0xa0] sm:$0xf]  ;;  %2565 = vmatpush.bf16.msrb.mxu3 %v3718_v4  ;;  %v3967_v4 = vld [vmem:[#allocation4 + $0x24] sm:$0xf] }
 0x414   :  { %v4085_v27 = vpop.eup %4084 }
 0x415   :  { %v4087_v9 = vpop.eup %4086  ;;  %v1934_v11 = vmul.f32 %v4085_v27, %v1932_v62  ;;  %4088 = vrcp.f32 %v1971_v7  ;;  %vm1939_vm12 = vweird.f32 %v4085_v27  ;;  %v1983_v57 = vand.u32 2147483648, %v1971_v7  ;;  %v3990_v62 = vld [vmem:[#allocation4 + $0xd4] sm:$0xf0] }
 0x416   :  { %v1953_v31 = vmul.f32 %v4087_v9, %v1951_v0  ;;  %4090 = vtanh.f32 %v1927_v8  ;;  %vm1958_vm13 = vweird.f32 %v4087_v9  ;;  %vm1940_vm0 = vmor %vm1938_vm14, %vm1939_vm12  ;;  %vm1977_vm5 = vweird.f32 %v1971_v7 }
 0x417   :  { %v1935_v6 = vsub.f32 1.0, %v1934_v11  ;;  %vm1959_vm1 = vmor %vm1957_vm15, %vm1958_vm13  ;;  %v1981_v34 = vand.u32 2147483647, %v1971_v7  ;;  %v1984_v40 = vor.u32 1.1754944e-38, %v1983_v57  ;;  %v3714_v0 = vor.u32 %v3990_v62, %v3713_v60  ;;  %v3697_v11 = vld [vmem:[#allocation4 + $0xa8] sm:$0xf]  ;;  %2566 = vmatpush.bf16.msrb.mxu3 %v3702_v16 }
 0x418   :  { %v1954_v12 = vsub.f32 1.0, %v1953_v31  ;;  %v3986_v31 = vld [vmem:[#allocation4 + $0xb4] sm:$0xf0]  ;;  %v3659_v57 = vld [vmem:[#allocation4 + $0x70] sm:$0xf0] }
 0x419   :  { %v1936_v15 = vmul.f32 %v4085_v27, %v1935_v6  ;;  %vm1982_vm7 = vcmp.eq.f32.partialorder %v1981_v34, 8.507059e+37  ;;  %2552 = vmatpush.bf16.msrb.mxu2 %v3714_v0  ;;  %v3665_v34 = vld [vmem:[#allocation4 + $0x68] sm:$0xf]  ;;  %v3651_v62 = vld [vmem:[#allocation4 + $0x58] sm:$0xf0] }
 0x41a   :  { %v1955_v17 = vmul.f32 %v4087_v9, %v1954_v12  ;;  %v3698_v12 = vor.u32 %v3986_v31, %v3697_v11  ;;  %v3969_v0 = vld [vmem:[#allocation4 + $0x2c] sm:$0xf0]  ;;  %v3654_v2 = vor.u32 %v3972_v59, %v3651_v62  ;;  %v3970_v11 = vld [vmem:[#allocation4 + $0x34] sm:$0xf0]  ;;  %v3968_v31 = vld [vmem:[#allocation4 + $0x2c] sm:$0xf] }
 0x41b   :  { %v4089_v18 = vpop.eup %4088  ;;  %v1937_v19 = vadd.f32 %v4085_v27, %v1936_v15  ;;  %v3471_v15 = vld [vmem:[%s4333_s0 + $0x60] sm:$0xff]  ;;  %v3626_v3 = vor.u32 %v3969_v0, %v3625_v63 }
 0x41c   :  { %v1956_v21 = vadd.f32 %v4087_v9, %v1955_v17  ;;  %v1973_v22 = vmul.f32 %v4089_v18, %v1971_v7  ;;  %v4091_v25 = vpop.eup %4090  ;;  %vm1978_vm4 = vweird.f32 %v4089_v18  ;;  %v3985_v7 = vld [vmem:[#allocation4 + $0xac] sm:$0xf0]  ;;  %v3673_v17 = vld [vmem:[#allocation4 + $0x80] sm:$0xf] }
 0x41d   :  { %v1941_v24 = vsel %vm1940_vm0, %v4085_v27, %v1937_v19  ;;  %vm1979_vm6 = vmor %vm1977_vm5, %vm1978_vm4  ;;  %v3983_v27 = vld [vmem:[#allocation4 + $0xa4] sm:$0xf]  ;;  %v3690_v8 = vor.u32 %v3985_v7, %v3689_v5  ;;  %2553 = vmatpush.bf16.msrb.mxu2 %v3698_v12  ;;  %v3674_v19 = vor.u32 %v3981_v13, %v3673_v17  ;;  %v3627_v5 = vld [vmem:[#allocation4 + $0x30] sm:$0xf0] }
 0x41e   :  { %v1946_v26 = vsel %vm1943_vm2, %v1945_v20, %v1941_v24  ;;  %v1960_v28 = vsel %vm1959_vm1, %v4087_v9, %v1956_v21  ;;  %v1974_v29 = vsub.f32 1.0, %v1973_v22  ;;  %v3691_v9 = vld [vmem:[#allocation4 + $0xb0] sm:$0xf0]  ;;  %v3681_v21 = vld [vmem:[#allocation4 + $0x88] sm:$0xf] }
 0x41f   :  { %v1965_v30 = vsel %vm1962_vm3, %v1964_v23, %v1960_v28  ;;  %v1989_v32 = vmul.f32 %v4091_v25, %v1946_v26  ;;  %v3694_v6 = vor.u32 %v3983_v27, %v3691_v9  ;;  %v3675_v20 = vld [vmem:[#allocation4 + $0x90] sm:$0xf0]  ;;  %v3982_v22 = vld [vmem:[#allocation4 + $0x94] sm:$0xf0]  ;;  %v3980_v25 = vld [vmem:[#allocation4 + $0x8c] sm:$0xf]  ;;  %v2001_v28 = vunpack.c.l.bf16 %v3471_v15 }
 0x420   :  { %v1988_v33 = vmul.f32 %v1965_v30, %v4277_v1  ;;  %v1975_v35 = vmul.f32 %v4089_v18, %v1974_v29  ;;  %v3721_v1 = vld [vmem:[#allocation4 + $0xe0] sm:$0xf]  ;;  %v3682_v24 = vor.u32 %v3982_v22, %v3681_v21  ;;  %v3683_v26 = vld [vmem:[#allocation4 + $0x98] sm:$0xf0]  ;;  %v2002_v29 = vunpack.c.h.bf16 %v3471_v15  ;;  %v3633_v7 = vld [vmem:[#allocation4 + $0x28] sm:$0xf] }
 0x421   :  { %v3722_v46 = vor.u32 %v3993_v39, %v3721_v1  ;;  %2540 = vmatpush.bf16.msrb.mxu1 %v3694_v6  ;;  %v3686_v30 = vor.u32 %v3980_v25, %v3683_v26  ;;  %v3667_v1 = vld [vmem:[#allocation4 + $0x78] sm:$0xf0]  ;;  %v3630_v9 = vor.u32 %v3967_v4, %v3627_v5  ;;  %v3634_v15 = vor.u32 %v3970_v11, %v3633_v7  ;;  %v3609_v17 = vld [vmem:[#allocation4] sm:$0xf]  ;;  %v3965_v13 = vld [vmem:[#allocation4 + $0xc] sm:$0xf0] }
 0x422   :  { %v4294_v36 = vadd.f32 %v1989_v32, %v1988_v33  ;;  %v1976_v37 = vadd.f32 %v4089_v18, %v1975_v35  ;;  %2554 = vmatpush.bf16.msrb.mxu2 %v3682_v24  ;;  %v3657_v32 = vld [vmem:[#allocation4 + $0x60] sm:$0xf]  ;;  %v3977_v33 = vld [vmem:[#allocation4 + $0x6c] sm:$0xf0]  ;;  %v3975_v35 = vld [vmem:[#allocation4 + $0x64] sm:$0xf] }
 0x423   :  { %2525 = vmatpush.bf16.msrb.mxu0 %v3722_v46  ;;  %2567 = vmatpush.bf16.msrb.mxu3 %v3686_v30  ;;  %v4306_v46 = vld [vmem:[%s4333_s0 + $0x68] sm:$0xff]  ;;  %v3635_v6 = vld [vmem:[#allocation4 + $0x38] sm:$0xf0]  ;;  %v3966_v22 = vld [vmem:[#allocation4 + $0x14] sm:$0xf0] }
 0x424   :  { %4092 = vtanh.f32 %v4294_v36  ;;  %v1980_v38 = vsel %vm1979_vm6, %v4089_v18, %v1976_v37  ;;  %v3979_v18 = vld [vmem:[#allocation4 + $0x84] sm:$0xf]  ;;  %v3658_v37 = vor.u32 %v3977_v33, %v3657_v32  ;;  %v2004_v54 = vunpack.c.h.bf16 %v4306_v46  ;;  %v3617_v21 = vld [vmem:[#allocation4 + $0x8] sm:$0xf]  ;;  %v3964_v25 = vld [vmem:[#allocation4 + $0xc] sm:$0xf] }
 0x425   :  { %v1985_v41 = vsel %vm1982_vm7, %v1984_v40, %v1980_v38  ;;  %v3678_v23 = vor.u32 %v3979_v18, %v3675_v20  ;;  %v3978_v38 = vld [vmem:[#allocation4 + $0x74] sm:$0xf0]  ;;  %v3638_v16 = vor.u32 %v3968_v31, %v3635_v6  ;;  %v3963_v18 = vld [vmem:[#allocation4 + $0x4] sm:$0xf]  ;;  %v3611_v20 = vld [vmem:[#allocation4 + $0x10] sm:$0xf0] }
 0x426   :  { %v3614_v24 = vor.u32 %v3963_v18, %v3611_v20  ;;  %v3619_v26 = vld [vmem:[#allocation4 + $0x18] sm:$0xf0] }
 0x427   :  { %2526 = vmatpush.bf16.msrb.mxu0 %v3706_v58  ;;  %2541 = vmatpush.bf16.msrb.mxu1 %v3678_v23  ;;  %v3974_v58 = vld [vmem:[#allocation4 + $0x54] sm:$0xf0]  ;;  %v3622_v33 = vor.u32 %v3964_v25, %v3619_v26 }
 0x428   :  { %v3650_v60 = vor.u32 %v3974_v58, %v3649_v56 }
 0x42a   :  { %v4093_v61 = vpop.eup %4092 }
 0x42b   :  { %v1992_v42 = vmul.f32 %v4093_v61, %v1985_v41  ;;  %2527 = vmatpush.bf16.msrb.mxu0 %v3690_v8  ;;  %v3662_v41 = vor.u32 %v3975_v35, %v3659_v57 }
 0x42d   :  { %v1995_v44 = vpack.c.bf16 %v1992_v42, %v1992_v42  ;;  %v3666_v42 = vor.u32 %v3978_v38, %v3665_v34  ;;  %2542 = vmatpush.bf16.msrb.mxu1 %v3662_v41  ;;  %v2003_v34 = vunpack.c.l.bf16 %v4306_v46 }
 0x42f   :  { %3470 = vst [vmem:[%s4337_s4 + $0x14] sm:$0xf] %v1995_v44  ;;  %2207 = vmatmul.bf16.vlgmr.msra.gmra.mxu0 %v1995_v44  ;;  %2220 = vmatmul.bf16.vlgmr.msra.gmra.mxu1 %v1995_v44 }
 0x430   :  { %2233 = vmatmul.bf16.vlgmr.msra.gmra.mxu2 %v1995_v44  ;;  %2246 = vmatmul.bf16.vlgmr.msra.gmra.mxu3 %v1995_v44  ;;  %v3976_v44 = vld [vmem:[#allocation4 + $0x6c] sm:$0xf] }
 0x431   :  { %2528 = vmatpush.bf16.msrb.mxu0 %v3674_v19  ;;  %v3670_v47 = vor.u32 %v3976_v44, %v3667_v1  ;;  %2555 = vmatpush.bf16.msrb.mxu2 %v3666_v42  ;;  %v3610_v19 = vor.u32 %v3965_v13, %v3609_v17 }
 0x432   :  { %2543 = vmatpush.bf16.msrb.mxu1 %v3646_v55 }
 0x433   :  { %2568 = vmatpush.bf16.msrb.mxu3 %v3670_v47 }
 0x435   :  { %2529 = vmatpush.bf16.msrb.mxu0 %v3658_v37  ;;  %2556 = vmatpush.bf16.msrb.mxu2 %v3650_v60 }
 0x436   :  { %2544 = vmatpush.bf16.msrb.mxu1 %v3630_v9 }
 0x437   :  { %2569 = vmatpush.bf16.msrb.mxu3 %v3654_v2 }
 0x439   :  { %2530 = vmatpush.bf16.msrb.mxu0 %v3642_v52  ;;  %2557 = vmatpush.bf16.msrb.mxu2 %v3634_v15 }
 0x43a   :  { %2545 = vmatpush.bf16.msrb.mxu1 %v3614_v24 }
 0x43b   :  { %2570 = vmatpush.bf16.msrb.mxu3 %v3638_v16 }
 0x43d   :  { %2531 = vmatpush.bf16.msrb.mxu0 %v3626_v3 }
 0x43f   :  { %2571 = vmatpush.bf16.msrb.mxu3 %v3622_v33 }
 0x441   :  { %2532 = vmatpush.bf16.msrb.mxu0 %v3610_v19  ;;  %v3606_v19 = vld [vmem:[%s4333_s0 + $0x78] sm:$0xff] }
 0x4ac   :  { %v2208_v40 = vpop.f32.mrf.mxu0  ;;  %v2221_v61 = vpop.f32.mrf.mxu1 }
 0x4ad   :  { %v2251_v39 = vadd.f32 %v2208_v40, %v2001_v28  ;;  %v2252_v45 = vadd.f32 %v2221_v61, %v2002_v29  ;;  %v3618_v29 = vor.u32 %v3966_v22, %v3617_v21  ;;  %v2330_v22 = vunpack.c.h.bf16 %v3606_v19 }
 0x4af   :  { %v3601_v50 = vmul.f32 -1.442695, %v2251_v39  ;;  %v3602_v51 = vmul.f32 -1.442695, %v2252_v45  ;;  %2558 = vmatpush.bf16.msrb.mxu2 %v3618_v29 }
 0x4b1   :  { %4094 = vpow2.f32 %v3601_v50 }
 0x4b2   :  { %4096 = vpow2.f32 %v3602_v51 }
 0x4b3   :  { %v2234_v27 = vpop.f32.mrf.mxu2  ;;  %v2247_v8 = vpop.f32.mrf.mxu3 }
 0x4b4   :  { %v2254_v12 = vadd.f32 %v2247_v8, %v2004_v54  ;;  %v2210_v14 = vpop.f32.mrf.mxu0  ;;  %v2223_v10 = vpop.f32.mrf.mxu1  ;;  %v2253_v41 = vadd.f32 %v2234_v27, %v2003_v34  ;;  %v2329_v34 = vunpack.c.l.bf16 %v3606_v19 }
 0x4b6   :  { %v3603_v23 = vmul.f32 -1.442695, %v2254_v12 }
 0x4b7   :  { %v4095_v28 = vpop.eup %4094 }
 0x4b8   :  { %v4097_v30 = vpop.eup %4096  ;;  %v2258_v32 = vadd.f32 1.0, %v4095_v28  ;;  %4098 = vpow2.f32 %v3603_v23 }
 0x4b9   :  { %v2277_v35 = vadd.f32 1.0, %v4097_v30 }
 0x4ba   :  { %4100 = vrcp.f32 %v2258_v32  ;;  %v2270_v47 = vand.u32 2147483648, %v2258_v32  ;;  %v2268_v49 = vand.u32 2147483647, %v2258_v32  ;;  %vm2264_vm10 = vweird.f32 %v2258_v32 }
 0x4bb   :  { %4102 = vrcp.f32 %v2277_v35  ;;  %v2236_v37 = vpop.f32.mrf.mxu2  ;;  %v2249_v57 = vpop.f32.mrf.mxu3  ;;  %v2289_v43 = vand.u32 2147483648, %v2277_v35  ;;  %v2287_v46 = vand.u32 2147483647, %v2277_v35  ;;  %vm2283_vm11 = vweird.f32 %v2277_v35 }
 0x4bc   :  { %v2271_v53 = vor.u32 1.1754944e-38, %v2270_v47  ;;  %vm2269_vm14 = vcmp.eq.f32.partialorder %v2268_v49, 8.507059e+37 }
 0x4bd   :  { %v2290_v56 = vor.u32 1.1754944e-38, %v2289_v43  ;;  %vm2288_vm15 = vcmp.eq.f32.partialorder %v2287_v46, 8.507059e+37 }
 0x4be   :  { %v4099_v38 = vpop.eup %4098 }
 0x4bf   :  { %v2297_v40 = vadd.f32 1.0, %v4099_v38 }
 0x4c0   :  { %v4101_v61 = vpop.eup %4100 }
 0x4c1   :  { %v4103_v42 = vpop.eup %4102  ;;  %v2260_v44 = vmul.f32 %v4101_v61, %v2258_v32  ;;  %4104 = vrcp.f32 %v2297_v40  ;;  %vm2265_vm8 = vweird.f32 %v4101_v61  ;;  %v2309_v27 = vand.u32 2147483648, %v2297_v40 }
 0x4c2   :  { %v2279_v1 = vmul.f32 %v4103_v42, %v2277_v35  ;;  %4106 = vtanh.f32 %v2253_v41  ;;  %vm2284_vm9 = vweird.f32 %v4103_v42  ;;  %vm2266_vm12 = vmor %vm2264_vm10, %vm2265_vm8  ;;  %vm2303_vm1 = vweird.f32 %v2297_v40 }
 0x4c3   :  { %v2261_v39 = vsub.f32 1.0, %v2260_v44  ;;  %vm2285_vm13 = vmor %vm2283_vm11, %vm2284_vm9  ;;  %v2307_v8 = vand.u32 2147483647, %v2297_v40  ;;  %v2310_v11 = vor.u32 1.1754944e-38, %v2309_v27 }
 0x4c4   :  { %v2280_v45 = vsub.f32 1.0, %v2279_v1 }
 0x4c5   :  { %v2262_v48 = vmul.f32 %v4101_v61, %v2261_v39  ;;  %vm2308_vm3 = vcmp.eq.f32.partialorder %v2307_v8, 8.507059e+37 }
 0x4c6   :  { %v2281_v50 = vmul.f32 %v4103_v42, %v2280_v45 }
 0x4c7   :  { %v4105_v51 = vpop.eup %4104  ;;  %v2263_v52 = vadd.f32 %v4101_v61, %v2262_v48 }
 0x4c8   :  { %v2282_v54 = vadd.f32 %v4103_v42, %v2281_v50  ;;  %v2299_v55 = vmul.f32 %v4105_v51, %v2297_v40  ;;  %v4107_v59 = vpop.eup %4106  ;;  %vm2304_vm0 = vweird.f32 %v4105_v51 }
 0x4c9   :  { %v2267_v58 = vsel %vm2266_vm12, %v4101_v61, %v2263_v52  ;;  %vm2305_vm2 = vmor %vm2303_vm1, %vm2304_vm0 }
 0x4ca   :  { %v2272_v60 = vsel %vm2269_vm14, %v2271_v53, %v2267_v58  ;;  %v2286_v62 = vsel %vm2285_vm13, %v4103_v42, %v2282_v54  ;;  %v2300_v63 = vsub.f32 1.0, %v2299_v55 }
 0x4cb   :  { %v2291_v0 = vsel %vm2288_vm15, %v2290_v56, %v2286_v62  ;;  %v2315_v2 = vmul.f32 %v4107_v59, %v2272_v60 }
 0x4cc   :  { %v2314_v3 = vmul.f32 %v2291_v0, %v4294_v36  ;;  %v2301_v4 = vmul.f32 %v4105_v51, %v2300_v63  ;;  %v3605_v36 = vld [vmem:[%s4333_s0 + $0x70] sm:$0xff] }
 0x4cd   :  { %v2327_v10 = vunpack.c.l.bf16 %v3605_v36  ;;  %v2328_v15 = vunpack.c.h.bf16 %v3605_v36 }
 0x4ce   :  { %v4311_v5 = vadd.f32 %v2315_v2, %v2314_v3  ;;  %v2302_v7 = vadd.f32 %v4105_v51, %v2301_v4 }
 0x4d0   :  { %4108 = vtanh.f32 %v4311_v5  ;;  %v2306_v9 = vsel %vm2305_vm2, %v4105_v51, %v2302_v7 }
 0x4d1   :  { %v2311_v6 = vsel %vm2308_vm3, %v2310_v11, %v2306_v9 }
 0x4d6   :  { %v4109_v31 = vpop.eup %4108 }
 0x4d7   :  { %v2318_v12 = vmul.f32 %v4109_v31, %v2311_v6 }
 0x4d9   :  { %v2321_v14 = vpack.c.bf16 %v2318_v12, %v2318_v12 }
 0x4db   :  { %3604 = vst [vmem:[%s4337_s4 + $0x18] sm:$0xf] %v2321_v14  ;;  %2533 = vmatmul.bf16.vlgmr.msrb.gmra.mxu0 %v2321_v14  ;;  %2546 = vmatmul.bf16.vlgmr.msrb.gmra.mxu1 %v2321_v14 }
 0x4dc   :  { %2559 = vmatmul.bf16.vlgmr.msrb.gmra.mxu2 %v2321_v14  ;;  %2572 = vmatmul.bf16.vlgmr.msrb.gmra.mxu3 %v2321_v14 }
 0x558   :  { %v2534_v16 = vpop.f32.mrf.mxu0  ;;  %v2547_v17 = vpop.f32.mrf.mxu1 }
 0x559   :  { %v2577_v13 = vadd.f32 %v2534_v16, %v2327_v10  ;;  %v2578_v18 = vadd.f32 %v2547_v17, %v2328_v15 }
 0x55b   :  { %v3735_v20 = vmul.f32 -1.442695, %v2577_v13  ;;  %v3736_v21 = vmul.f32 -1.442695, %v2578_v18 }
 0x55d   :  { %4110 = vpow2.f32 %v3735_v20 }
 0x55e   :  { %4112 = vpow2.f32 %v3736_v21 }
 0x55f   :  { %v2560_v23 = vpop.f32.mrf.mxu2  ;;  %v2573_v24 = vpop.f32.mrf.mxu3 }
 0x560   :  { %v2580_v25 = vadd.f32 %v2573_v24, %v2330_v22  ;;  %v2536_v26 = vpop.f32.mrf.mxu0  ;;  %v2549_v28 = vpop.f32.mrf.mxu1  ;;  %v2579_v41 = vadd.f32 %v2560_v23, %v2329_v34 }
 0x562   :  { %v3737_v29 = vmul.f32 -1.442695, %v2580_v25 }
 0x563   :  { %v4111_v30 = vpop.eup %4110 }
 0x564   :  { %v4113_v32 = vpop.eup %4112  ;;  %v2584_v33 = vadd.f32 1.0, %v4111_v30  ;;  %4114 = vpow2.f32 %v3737_v29 }
 0x565   :  { %v2603_v35 = vadd.f32 1.0, %v4113_v32 }
 0x566   :  { %4116 = vrcp.f32 %v2584_v33  ;;  %v2596_v47 = vand.u32 2147483648, %v2584_v33  ;;  %v2594_v49 = vand.u32 2147483647, %v2584_v33  ;;  %vm2590_vm6 = vweird.f32 %v2584_v33 }
 0x567   :  { %4118 = vrcp.f32 %v2603_v35  ;;  %v2562_v37 = vpop.f32.mrf.mxu2  ;;  %v2575_v57 = vpop.f32.mrf.mxu3  ;;  %v2615_v43 = vand.u32 2147483648, %v2603_v35  ;;  %v2613_v46 = vand.u32 2147483647, %v2603_v35  ;;  %vm2609_vm7 = vweird.f32 %v2603_v35 }
 0x568   :  { %v2597_v53 = vor.u32 1.1754944e-38, %v2596_v47  ;;  %vm2595_vm10 = vcmp.eq.f32.partialorder %v2594_v49, 8.507059e+37 }
 0x569   :  { %v2616_v56 = vor.u32 1.1754944e-38, %v2615_v43  ;;  %vm2614_vm11 = vcmp.eq.f32.partialorder %v2613_v46, 8.507059e+37 }
 0x56a   :  { %v4115_v38 = vpop.eup %4114 }
 0x56b   :  { %v2623_v40 = vadd.f32 1.0, %v4115_v38 }
 0x56c   :  { %v4117_v61 = vpop.eup %4116 }
 0x56d   :  { %v4119_v42 = vpop.eup %4118  ;;  %v2586_v44 = vmul.f32 %v4117_v61, %v2584_v33  ;;  %4120 = vrcp.f32 %v2623_v40  ;;  %vm2591_vm4 = vweird.f32 %v4117_v61  ;;  %v2635_v8 = vand.u32 2147483648, %v2623_v40 }
 0x56e   :  { %v2605_v1 = vmul.f32 %v4119_v42, %v2603_v35  ;;  %4122 = vtanh.f32 %v2579_v41  ;;  %vm2610_vm5 = vweird.f32 %v4119_v42  ;;  %vm2592_vm8 = vmor %vm2590_vm6, %vm2591_vm4  ;;  %vm2629_vm13 = vweird.f32 %v2623_v40 }
 0x56f   :  { %v2587_v39 = vsub.f32 1.0, %v2586_v44  ;;  %vm2611_vm9 = vmor %vm2609_vm7, %vm2610_vm5  ;;  %v2633_v9 = vand.u32 2147483647, %v2623_v40  ;;  %v2636_v31 = vor.u32 1.1754944e-38, %v2635_v8 }
 0x570   :  { %v2606_v45 = vsub.f32 1.0, %v2605_v1 }
 0x571   :  { %v2588_v48 = vmul.f32 %v4117_v61, %v2587_v39  ;;  %vm2634_vm15 = vcmp.eq.f32.partialorder %v2633_v9, 8.507059e+37 }
 0x572   :  { %v2607_v50 = vmul.f32 %v4119_v42, %v2606_v45 }
 0x573   :  { %v4121_v51 = vpop.eup %4120  ;;  %v2589_v52 = vadd.f32 %v4117_v61, %v2588_v48 }
 0x574   :  { %v2608_v54 = vadd.f32 %v4119_v42, %v2607_v50  ;;  %v2625_v55 = vmul.f32 %v4121_v51, %v2623_v40  ;;  %v4123_v59 = vpop.eup %4122  ;;  %vm2630_vm12 = vweird.f32 %v4121_v51 }
 0x575   :  { %v2593_v58 = vsel %vm2592_vm8, %v4117_v61, %v2589_v52  ;;  %vm2631_vm14 = vmor %vm2629_vm13, %vm2630_vm12 }
 0x576   :  { %v2598_v60 = vsel %vm2595_vm10, %v2597_v53, %v2593_v58  ;;  %v2612_v62 = vsel %vm2611_vm9, %v4119_v42, %v2608_v54  ;;  %v2626_v63 = vsub.f32 1.0, %v2625_v55 }
 0x577   :  { %v2617_v0 = vsel %vm2614_vm11, %v2616_v56, %v2612_v62  ;;  %v2641_v2 = vmul.f32 %v4123_v59, %v2598_v60 }
 0x578   :  { %v2640_v3 = vmul.f32 %v2617_v0, %v4311_v5  ;;  %v2627_v4 = vmul.f32 %v4121_v51, %v2626_v63 }
 0x57a   :  { %v2642_v7 = vadd.f32 %v2641_v2, %v2640_v3  ;;  %v2628_v27 = vadd.f32 %v4121_v51, %v2627_v4 }
 0x57c   :  { %4124 = vtanh.f32 %v2642_v7  ;;  %2656 = vst [vmem:[%s4339_s6] sm:$0xff] %v2642_v7  ;;  %v2632_v11 = vsel %vm2631_vm14, %v4121_v51, %v2628_v27 }
 0x57d   :  { %v2637_v12 = vsel %vm2634_vm15, %v2636_v31, %v2632_v11 }
 0x582   :  { %v4125_v6 = vpop.eup %4124 }
 0x583   :  { %v2644_v14 = vmul.f32 %v4125_v6, %v2637_v12 }
 0x585   :  { %v2647_v5 = vpack.c.bf16 %v2644_v14, %v2644_v14  ;;  %2654 = vst [vmem:[%s4338_s5] sm:$0xff] %v2644_v14 }
 0x587   :  { %3738 = vst [vmem:[%s4337_s4 + $0x1c] sm:$0xf] %v2647_v5 }
 0x588   :  { %2669 = vsyncpa [#allocation5], 1 }

// kernel: lstm_model_forward.9
= control target key start
LH: loop header
LB: loop body
LE: loop exit
PB: predicated region body
PF: predicated region fallthrough
CT: control target
= control target key end

     0   :  { %s266_s0 = inlined_call_operand.vmem [shape: bf16[16,128], index: 0, kind: input, shape index: {}]   ;;  %s267_s1 = inlined_call_operand.vmem [shape: bf16[128,128], index: 1, kind: input, shape index: {}]   ;;  %s268_s2 = inlined_call_operand.vmem [shape: f32[1,128], index: 2, kind: input, shape index: {}]   ;;  %s269_s3 = inlined_call_operand.hbm [shape: f32[16,128], index: 3, kind: output, shape index: {}]  }
   0x1   :  { %v179_v0 = vld [vmem:[%s267_s1 + $0x38] sm:$0xff]  ;;  %v178_v1 = vld [vmem:[%s267_s1 + $0x30] sm:$0xff] }
   0x2   :  { %99 = vmatpush.bf16.msra.mxu0 %v179_v0 }
   0x3   :  { %8 = vsyncpa [#allocation3], 0  ;;  %v177_v2 = vld [vmem:[%s267_s1 + $0x28] sm:$0xff]  ;;  %v176_v3 = vld [vmem:[%s267_s1 + $0x20] sm:$0xff]  ;;  %s210_s5 = smov [#allocation2]   ;;  %s123_s9 = sshll.u32 %s269_s3, 4  ;;  %s124_s9 = int_to_ptr.hbm [resolvable:$true] %s123_s9 }
   0x4   :  { %v175_v4 = vld [vmem:[%s267_s1 + $0x18] sm:$0xff]  ;;  %v174_v5 = vld [vmem:[%s267_s1 + $0x10] sm:$0xff]  ;;  %v173_v6 = vld [vmem:[%s267_s1 + $0x8] sm:$0xff]  ;;  %s121_s6 = sshll.u32 %s210_s5, 4  ;;  %s122_s6 = int_to_ptr.vmem [resolvable:$true] %s121_s6 }
   0x5   :  { %v172_v7 = vld [vmem:[%s267_s1] sm:$0xff]  ;;  %s212_s1 = smov 8  }
   0x6   :  { %100 = vmatpush.bf16.msra.mxu0 %v178_v1  ;;  %v171_v8 = vld [vmem:[%s266_s0] sm:$0xff]  ;;  %s211_s0 = smov 128  }
   0x7   :  { %v183_v9 = vld [vmem:[%s268_s2] ss:$0 sm:$0xff] }
   0xa   :  { %101 = vmatpush.bf16.msra.mxu0 %v177_v2 }
   0xe   :  { %102 = vmatpush.bf16.msra.mxu0 %v176_v3 }
  0x12   :  { %103 = vmatpush.bf16.msra.mxu0 %v175_v4 }
  0x16   :  { %104 = vmatpush.bf16.msra.mxu0 %v174_v5 }
  0x1a   :  { %105 = vmatpush.bf16.msra.mxu0 %v173_v6 }
  0x1e   :  { %106 = vmatpush.bf16.msra.mxu0 %v172_v7 }
  0x21   :  { %107 = vmatmul.bf16.vlgmr.msra.gmra.mxu0 %v171_v8 }
  0x9e   :  { %v108_v10 = vpop.f32.mrf.mxu0 }
  0x9f   :  { %v113_v11 = vadd.f32 %v183_v9, %v108_v10 }
  0xa1   :  { %115 = vst [vmem:[#allocation2] sm:$0xff] %v113_v11 }
  0xa6   :  { %v110_v12 = vpop.f32.mrf.mxu0 }
  0xa7   :  { %v114_v13 = vadd.f32 %v183_v9, %v110_v12 }
  0xa9   :  { %116 = vst [vmem:[#allocation2 + $0x8] sm:$0xff] %v114_v13 }
  0xaa   :  { %129 = dma.vmem_to_hbm [thread:$0]  %s122_s6, 256, %s124_s9, [#allocation3], %s211_s0, %s211_s0, %s212_s1  }
  0xab   :  { %208 = dma.done.wait [#allocation3], 256  }
  0xac   :  { %209 = vsyncadd [#allocation3], 4294967040 }
  0xad   :  { %134 = vsyncpa [#allocation3], 1 }

// kernel: lstm_model_forward.5
= control target key start
LH: loop header
LB: loop body
LE: loop exit
PB: predicated region body
PF: predicated region fallthrough
CT: control target
= control target key end

     0   :  { %8 = vsyncpa [#allocation4], 0  ;;  %s1224_s0 = inlined_call_operand.vmem [shape: bf16[64,128], index: 0, kind: input, shape index: {}]   ;;  %s1225_s1 = inlined_call_operand.hbm [shape: bf16[128,512], index: 1, kind: input, shape index: {}]   ;;  %s1226_s2 = inlined_call_operand.vmem [shape: f32[1,512], index: 2, kind: input, shape index: {}]   ;;  %s1227_s3 = inlined_call_operand.vmem [shape: bf16[64,512], index: 3, kind: output, shape index: {}]  }
   0x1   :  { %10 = vsyncpa [#allocation4 + $0x1], 0  ;;  %s1058_s12 = smov 0   ;;  %s1060_s13 = smov 0  }
   0x2   :  { %s1062_s14 = smov 0   ;;  %s1064_s15 = smov 0  }
   0x3   :  { %s1066_s16 = smov 0   ;;  %s1068_s17 = smov 0  }
   0x4 LB: > { %s760_s18 = sadd.s32 4294967295, %s1033_s17   ;;  %s31_s19 = sadd.s32 1, %s1029_s16  ;;  %s1033_s17 = sphi %s1068_s17, %s16_s17   ;;  %s1029_s16 = sphi %s1066_s16, %s1235_s16   ;;  %s1025_s15 = sphi %s1064_s15, %s1234_s15   ;;  %s1021_s14 = sphi %s1062_s14, %s1233_s14   ;;  %s1017_s13 = sphi %s1060_s13, %s1232_s13   ;;  %s1013_s12 = sphi %s1058_s12, %s1231_s12  }
   0x5   : > { %p33_p0 = scmp.ge.s32.totalorder %s31_s19, 2  ;;  %s72_s20 = sadd.s32 1, %s1021_s14 }
   0x6   : > { %p79_p1 = scmp.ne.s32.totalorder %s1021_s14, %s1017_s13  ;;  %p80_p2 = scmp.eq.s32.totalorder %s1033_s17, 0 }
   0x7   : > { %s1237_s19 = smov (%p33_p0, %s31_s19), 0  ;;  %p85_p4 = scmp.ne.s32.totalorder %s1017_s13, %s1013_s12 }
   0x8   : > { %p1094_p3 = por %p80_p2, %p79_p1  ;;  %s68_s22 = ssub.s32 %s1029_s16, %s1237_s19 }
   0x9   : > { %p86_p5 = scmp.eq.s32.totalorder %s760_s18, 0  ;;  %p70_p6 = scmp.eq.s32.totalorder %s68_s22, 0 }
   0xa   : > { %p137_p7 = scmp.eq.s32.totalorder %s760_s18, 1  ;;  %p901_p10 = scmp.lt.s32.totalorder %s1033_s17, 2 }
   0xb   : > { %p1101_p8 = por %p86_p5, %p85_p4  ;;  %s175_s26 = sand.u32 1, %s1021_s14  }
   0xc   : > { %s1106_s24 = scalar_select %p70_p6, %s1021_s14, %s72_s20  }
   0xd   : > { %p1108_p9 = por %p137_p7, %p79_p1  ;;  %s857_s27 = sshll.u32 %s1029_s16, 3 }
   0xe   : > { %s765_s28 = sshll.u32 %s175_s26, 7  ;;  %s187_s4 = scalar_lea.hbm %s1225_s1, %s857_s27 }
   0xf   : > { %s188_s5 = sshll.u32 %s187_s4, 4  ;;  %s179_s6 = scalar_lea.vmem [#allocation3], %s765_s28  ;;  %s189_s5 = int_to_ptr.hbm [resolvable:$true] %s188_s5 }
  0x10   : > { %s190_s7 = sshll.u32 %s179_s6, 4  ;;  %p898_p11 = pnand %p901_p10, %p1094_p3  ;;  %s191_s7 = int_to_ptr.vmem [resolvable:$true] %s190_s7 }
  0x11   : > { %p768_p12 = scmp.ge.s32.totalorder %s1033_s17, 1  ;;  %s176_s8 = scalar_lea.sflag [#allocation4], %s175_s26 }
  0x12   : > { %s1035_s9 = smov 256   ;;  %s1036_s10 = smov 128  }
  0x13   : > { %s1037_s11 = smov 8   ;;  %p206_p13 = scmp.lt.s32.totalorder %s1033_s17, 3 }
  0x14   : > { %900 = dma.hbm_to_vmem [thread:$0]  (!%p898_p11), %s189_s5, 2048, %s191_s7, %s176_s8, %s1035_s9, %s1036_s10, %s1037_s11  }
  0x15   : > { %p207_p0 = pnand %p768_p12, %p206_p13 }
  0x16   : > { %s1123_s12 = sand.u32 (!%p207_p0), 1, %s1017_s13  }
  0x17   : > { %210 = sbr.rel (%p207_p0) target bundleno = 233 (0xe9), region = 32  ;;  %s769_s18 = sshll.u32 (!%p207_p0), %s1123_s12, 7 }
  0x18   : > { %s213_s20 = scalar_lea.sflag (!%p207_p0), [#allocation4], %s1123_s12  ;;  %s1127_s22 = scalar_lea.vmem (!%p207_p0), [#allocation3], %s769_s18 }
  0x1c   : > { %1008 = dma.done.wait (%p1101_p8), %s213_s20, 2048  }
  0x1d   : > { %1010 = vsyncadd (%p1101_p8), %s213_s20, 4294965248  ;;  %v846_v0 = vld [vmem:[%s1127_s22 + $0x70] sm:$0xf]  ;;  %v877_v1 = vld [vmem:[%s1127_s22 + $0x74] sm:$0xf0]  ;;  %s771_s5 = sshll.u32 %s1025_s15, 1 }
  0x1e   : > { %v876_v2 = vld [vmem:[%s1127_s22 + $0x74] sm:$0xf]  ;;  %v847_v3 = vor.u32 %v877_v1, %v846_v0  ;;  %v848_v4 = vld [vmem:[%s1127_s22 + $0x78] sm:$0xf0]  ;;  %v838_v5 = vld [vmem:[%s1127_s22 + $0x60] sm:$0xf] }
  0x1f   : > { %v875_v6 = vld [vmem:[%s1127_s22 + $0x64] sm:$0xf0]  ;;  %v851_v7 = vor.u32 %v876_v2, %v848_v4  ;;  %v874_v8 = vld [vmem:[%s1127_s22 + $0x64] sm:$0xf]  ;;  %v840_v9 = vld [vmem:[%s1127_s22 + $0x68] sm:$0xf0] }
  0x20   : > { %433 = vmatpush.bf16.msra.mxu0 %v847_v3  ;;  %879 = vmatpush.bf16.msra.mxu2 %v847_v3  ;;  %v839_v10 = vor.u32 %v875_v6, %v838_v5  ;;  %v843_v11 = vor.u32 %v874_v8, %v840_v9  ;;  %v830_v12 = vld [vmem:[%s1127_s22 + $0x50] sm:$0xf]  ;;  %v873_v13 = vld [vmem:[%s1127_s22 + $0x54] sm:$0xf0]  ;;  %v872_v14 = vld [vmem:[%s1127_s22 + $0x54] sm:$0xf] }
  0x21   : > { %462 = vmatpush.bf16.msra.mxu1 %v851_v7  ;;  %887 = vmatpush.bf16.msra.mxu3 %v851_v7  ;;  %v832_v15 = vld [vmem:[%s1127_s22 + $0x58] sm:$0xf0]  ;;  %v831_v16 = vor.u32 %v873_v13, %v830_v12  ;;  %v822_v18 = vld [vmem:[%s1127_s22 + $0x40] sm:$0xf]  ;;  %v871_v19 = vld [vmem:[%s1127_s22 + $0x44] sm:$0xf0] }
  0x22   : > { %v835_v17 = vor.u32 %v872_v14, %v832_v15  ;;  %v870_v20 = vld [vmem:[%s1127_s22 + $0x44] sm:$0xf]  ;;  %v824_v21 = vld [vmem:[%s1127_s22 + $0x48] sm:$0xf0]  ;;  %v823_v22 = vor.u32 %v871_v19, %v822_v18  ;;  %v814_v24 = vld [vmem:[%s1127_s22 + $0x30] sm:$0xf] }
  0x23   : > { %v827_v23 = vor.u32 %v870_v20, %v824_v21  ;;  %v869_v25 = vld [vmem:[%s1127_s22 + $0x34] sm:$0xf0]  ;;  %v868_v26 = vld [vmem:[%s1127_s22 + $0x34] sm:$0xf]  ;;  %v816_v27 = vld [vmem:[%s1127_s22 + $0x38] sm:$0xf0] }
  0x24   : > { %434 = vmatpush.bf16.msra.mxu0 %v839_v10  ;;  %880 = vmatpush.bf16.msra.mxu2 %v839_v10  ;;  %v815_v28 = vor.u32 %v869_v25, %v814_v24  ;;  %v819_v29 = vor.u32 %v868_v26, %v816_v27  ;;  %v806_v30 = vld [vmem:[%s1127_s22 + $0x20] sm:$0xf]  ;;  %v867_v31 = vld [vmem:[%s1127_s22 + $0x24] sm:$0xf0]  ;;  %v866_v32 = vld [vmem:[%s1127_s22 + $0x24] sm:$0xf] }
  0x25   : > { %463 = vmatpush.bf16.msra.mxu1 %v843_v11  ;;  %888 = vmatpush.bf16.msra.mxu3 %v843_v11  ;;  %v808_v33 = vld [vmem:[%s1127_s22 + $0x28] sm:$0xf0]  ;;  %v807_v34 = vor.u32 %v867_v31, %v806_v30  ;;  %v798_v36 = vld [vmem:[%s1127_s22 + $0x10] sm:$0xf]  ;;  %v865_v37 = vld [vmem:[%s1127_s22 + $0x14] sm:$0xf0] }
  0x26   : > { %v811_v35 = vor.u32 %v866_v32, %v808_v33  ;;  %v864_v38 = vld [vmem:[%s1127_s22 + $0x14] sm:$0xf]  ;;  %v800_v39 = vld [vmem:[%s1127_s22 + $0x18] sm:$0xf0]  ;;  %v799_v40 = vor.u32 %v865_v37, %v798_v36  ;;  %v790_v42 = vld [vmem:[%s1127_s22] sm:$0xf] }
  0x27   : > { %v803_v41 = vor.u32 %v864_v38, %v800_v39  ;;  %v863_v43 = vld [vmem:[%s1127_s22 + $0x4] sm:$0xf0]  ;;  %v862_v44 = vld [vmem:[%s1127_s22 + $0x4] sm:$0xf]  ;;  %v792_v45 = vld [vmem:[%s1127_s22 + $0x8] sm:$0xf0] }
  0x28   : > { %435 = vmatpush.bf16.msra.mxu0 %v831_v16  ;;  %881 = vmatpush.bf16.msra.mxu2 %v831_v16  ;;  %v791_v46 = vor.u32 %v863_v43, %v790_v42  ;;  %v795_v47 = vor.u32 %v862_v44, %v792_v45  ;;  %v858_v48 = vld [vmem:[%s1224_s0] sm:$0xff]  ;;  %v860_v49 = vld [vmem:[%s1224_s0 + $0x10] sm:$0xff]  ;;  %v859_v50 = vld [vmem:[%s1224_s0 + $0x8] sm:$0xff]  ;;  %p263_p1 = scmp.lt.s32.totalorder %s771_s5, 3  ;;  %s770_s9 = sshll.u32 %s1123_s12, 6 }
  0x29   : > { %464 = vmatpush.bf16.msra.mxu1 %v835_v17  ;;  %889 = vmatpush.bf16.msra.mxu3 %v835_v17  ;;  %v861_v51 = vld [vmem:[%s1224_s0 + $0x18] sm:$0xff]  ;;  %s1182_s10 = scalar_lea.vmem [#allocation5], %s770_s9  ;;  %s878_s11 = sshll.u32 (%p1108_p9), %s1025_s15, 3 }
  0x2a   : > { %s1239_s5 = smov (!%p263_p1, %s771_s5), 3  ;;  %s592_s20 = scalar_lea.vmem (%p1108_p9), %s1227_s3, %s878_s11 }
  0x2b   : > { %s265_s8 = scalar_lea.vmem %s1226_s2, %s1239_s5 }
  0x2c   : > { %436 = vmatpush.bf16.msra.mxu0 %v823_v22  ;;  %882 = vmatpush.bf16.msra.mxu2 %v823_v22  ;;  %v542_v52 = vld [vmem:[%s265_s8] sm:$0x3] }
  0x2d   : > { %465 = vmatpush.bf16.msra.mxu1 %v827_v23  ;;  %890 = vmatpush.bf16.msra.mxu3 %v827_v23  ;;  %v544_v53 = vperm.slane %v542_v52, 0  ;;  %v545_v54 = vperm.slane %v542_v52, 1 }
  0x30   : > { %437 = vmatpush.bf16.msra.mxu0 %v815_v28  ;;  %883 = vmatpush.bf16.msra.mxu2 %v815_v28 }
  0x31   : > { %466 = vmatpush.bf16.msra.mxu1 %v819_v29  ;;  %891 = vmatpush.bf16.msra.mxu3 %v819_v29 }
  0x34   : > { %438 = vmatpush.bf16.msra.mxu0 %v807_v34  ;;  %884 = vmatpush.bf16.msra.mxu2 %v807_v34 }
  0x35   : > { %467 = vmatpush.bf16.msra.mxu1 %v811_v35  ;;  %892 = vmatpush.bf16.msra.mxu3 %v811_v35 }
  0x38   : > { %439 = vmatpush.bf16.msra.mxu0 %v799_v40  ;;  %885 = vmatpush.bf16.msra.mxu2 %v799_v40 }
  0x39   : > { %468 = vmatpush.bf16.msra.mxu1 %v803_v41  ;;  %893 = vmatpush.bf16.msra.mxu3 %v803_v41 }
  0x3c   : > { %440 = vmatpush.bf16.msra.mxu0 %v791_v46  ;;  %886 = vmatpush.bf16.msra.mxu2 %v791_v46 }
  0x3d   : > { %469 = vmatpush.bf16.msra.mxu1 %v795_v47  ;;  %894 = vmatpush.bf16.msra.mxu3 %v795_v47 }
  0x3f   : > { %441 = vmatmul.bf16.vlgmr.msra.gmra.mxu0 %v858_v48  ;;  %451 = vmatmul.bf16.vlgmr.msra.gmra.mxu2 %v860_v49 }
  0x40   : > { %470 = vmatmul.bf16.vlgmr.msra.gmra.mxu1 %v858_v48  ;;  %480 = vmatmul.bf16.vlgmr.msra.gmra.mxu3 %v860_v49 }
  0x4f   : > { %446 = vmatmul.bf16.gmra.mxu0 %v859_v50  ;;  %456 = vmatmul.bf16.gmra.mxu2 %v861_v51 }
  0x50   : > { %475 = vmatmul.bf16.gmra.mxu1 %v859_v50  ;;  %485 = vmatmul.bf16.gmra.mxu3 %v861_v51 }
  0xbc   : > { %v442_v55 = vpop.f32.mrf.mxu0 }
  0xbd   : > { %v548_v56 = vadd.f32 %v544_v53, %v442_v55  ;;  %v471_v57 = vpop.f32.mrf.mxu1 }
  0xbe   : > { %v549_v58 = vadd.f32 %v545_v54, %v471_v57 }
  0xc0   : > { %v564_v59 = vpack.c.bf16 %v549_v58, %v548_v56 }
  0xc2   : > { %572 = vst [vmem:[%s1182_s10] sm:$0xff] %v564_v59  ;;  %v452_v60 = vpop.f32.mrf.mxu2 }
  0xc3   : > { %v556_v61 = vadd.f32 %v544_v53, %v452_v60  ;;  %v481_v62 = vpop.f32.mrf.mxu3 }
  0xc4   : > { %v557_v63 = vadd.f32 %v545_v54, %v481_v62  ;;  %v444_v0 = vpop.f32.mrf.mxu0 }
  0xc5   : > { %v550_v1 = vadd.f32 %v544_v53, %v444_v0  ;;  %v473_v2 = vpop.f32.mrf.mxu1 }
  0xc6   : > { %v568_v3 = vpack.c.bf16 %v557_v63, %v556_v61  ;;  %v551_v4 = vadd.f32 %v545_v54, %v473_v2 }
  0xc8   : > { %576 = vst [vmem:[%s1182_s10 + $0x20] sm:$0xff] %v568_v3  ;;  %v565_v5 = vpack.c.bf16 %v551_v4, %v550_v1 }
  0xc9   : > { %v635_v31 = vld [vmem:[%s1182_s10] sm:$0xff] (%p1108_p9) }
  0xca   : > { %573 = vst [vmem:[%s1182_s10 + $0x8] sm:$0xff] %v565_v5  ;;  %v454_v6 = vpop.f32.mrf.mxu2 }
  0xcb   : > { %v558_v7 = vadd.f32 %v544_v53, %v454_v6  ;;  %v483_v8 = vpop.f32.mrf.mxu3  ;;  %636 = vst [vmem:[%s592_s20] sm:$0xff] (%p1108_p9), %v635_v31 }
  0xcc   : > { %v559_v9 = vadd.f32 %v545_v54, %v483_v8  ;;  %v447_v10 = vpop.f32.mrf.mxu0 }
  0xcd   : > { %v552_v11 = vadd.f32 %v544_v53, %v447_v10  ;;  %v476_v12 = vpop.f32.mrf.mxu1 }
  0xce   : > { %v569_v13 = vpack.c.bf16 %v559_v9, %v558_v7  ;;  %v553_v14 = vadd.f32 %v545_v54, %v476_v12 }
  0xcf   : > { %v643_v35 = vld [vmem:[%s1182_s10 + $0x20] sm:$0xff] (%p1108_p9) }
  0xd0   : > { %577 = vst [vmem:[%s1182_s10 + $0x28] sm:$0xff] %v569_v13  ;;  %v566_v15 = vpack.c.bf16 %v553_v14, %v552_v11 }
  0xd1   : > { %v637_v32 = vld [vmem:[%s1182_s10 + $0x8] sm:$0xff] (%p1108_p9)  ;;  %644 = vst [vmem:[%s592_s20 + $0x40] sm:$0xff] (%p1108_p9), %v643_v35 }
  0xd2   : > { %574 = vst [vmem:[%s1182_s10 + $0x10] sm:$0xff] %v566_v15  ;;  %v457_v16 = vpop.f32.mrf.mxu2 }
  0xd3   : > { %v560_v17 = vadd.f32 %v544_v53, %v457_v16  ;;  %v486_v18 = vpop.f32.mrf.mxu3  ;;  %638 = vst [vmem:[%s592_s20 + $0x10] sm:$0xff] (%p1108_p9), %v637_v32 }
  0xd4   : > { %v561_v19 = vadd.f32 %v545_v54, %v486_v18  ;;  %v449_v20 = vpop.f32.mrf.mxu0 }
  0xd5   : > { %v554_v21 = vadd.f32 %v544_v53, %v449_v20  ;;  %v478_v22 = vpop.f32.mrf.mxu1 }
  0xd6   : > { %v570_v23 = vpack.c.bf16 %v561_v19, %v560_v17  ;;  %v555_v24 = vadd.f32 %v545_v54, %v478_v22 }
  0xd7   : > { %v645_v36 = vld [vmem:[%s1182_s10 + $0x28] sm:$0xff] (%p1108_p9) }
  0xd8   : > { %578 = vst [vmem:[%s1182_s10 + $0x30] sm:$0xff] %v570_v23  ;;  %v567_v25 = vpack.c.bf16 %v555_v24, %v554_v21 }
  0xd9   : > { %v639_v33 = vld [vmem:[%s1182_s10 + $0x10] sm:$0xff] (%p1108_p9)  ;;  %646 = vst [vmem:[%s592_s20 + $0x50] sm:$0xff] (%p1108_p9), %v645_v36 }
  0xda   : > { %575 = vst [vmem:[%s1182_s10 + $0x18] sm:$0xff] %v567_v25  ;;  %v459_v26 = vpop.f32.mrf.mxu2 }
  0xdb   : > { %v562_v27 = vadd.f32 %v544_v53, %v459_v26  ;;  %v488_v28 = vpop.f32.mrf.mxu3  ;;  %640 = vst [vmem:[%s592_s20 + $0x20] sm:$0xff] (%p1108_p9), %v639_v33 }
  0xdc   : > { %v563_v29 = vadd.f32 %v545_v54, %v488_v28  ;;  %586 = sbr.rel (!%p1108_p9) target bundleno = 233 (0xe9), region = 48 }
  0xde   : > { %v571_v30 = vpack.c.bf16 %v563_v29, %v562_v27 }
  0xdf   : > { %v647_v37 = vld [vmem:[%s1182_s10 + $0x30] sm:$0xff] (%p1108_p9) }
  0xe0   : > { %579 = vst [vmem:[%s1182_s10 + $0x38] sm:$0xff] %v571_v30 }
  0xe1   : > { %v641_v34 = vld [vmem:[%s1182_s10 + $0x18] sm:$0xff]  ;;  %648 = vst [vmem:[%s592_s20 + $0x60] sm:$0xff] %v647_v37 }
  0xe2   : > { %642 = vst [vmem:[%s592_s20 + $0x30] sm:$0xff] %v641_v34 }
  0xe7   : > { %v649_v38 = vld [vmem:[%s1182_s10 + $0x38] sm:$0xff] }
  0xe8   : > { %650 = vst [vmem:[%s592_s20 + $0x70] sm:$0xff] %v649_v38 }
  0xe9 PF: > { %s16_s17 = sadd.s32 1, %s1033_s17   ;;  %s1231_s12 = smov %s1017_s13 }
  0xea   : > { %p13_p2 = scmp.ge.s32.totalorder %s16_s17, 4   ;;  %s1232_s13 = smov %s1021_s14 }
  0xeb   : > { %s1233_s14 = smov %s1106_s24  ;;  %s1234_s15 = smov %s1029_s16 }
  0xec   : > { %s1235_s16 = smov %s1237_s19  ;;  %15 = sbr.rel (!%p13_p2) target bundleno = 4 (0x4), region = 124 }
  0xf1   :  { %666 = vsyncpa [#allocation4], 1 }
  0xf2   :  { %668 = vsyncpa [#allocation4 + $0x1], 1 }

// kernel: lstm_model_forward.6
= control target key start
LH: loop header
LB: loop body
LE: loop exit
PB: predicated region body
PF: predicated region fallthrough
CT: control target
= control target key end

     0   :  { %12 = vsyncpa [#allocation5], 0  ;;  %s4152_s24 = smov [#allocation4]   ;;  %s4153_s26 = smov 256   ;;  %s4333_s0 = inlined_call_operand.vmem [shape: bf16[8,8,512], index: 0, kind: input, shape index: {}]   ;;  %s4334_s1 = inlined_call_operand.hbm [shape: bf16[128,512], index: 1, kind: input, shape index: {}]   ;;  %s4335_s2 = inlined_call_operand.vmem [shape: f32[8,128], index: 2, kind: input, shape index: {}]   ;;  %s4336_s3 = inlined_call_operand.vmem [shape: f32[8,128], index: 3, kind: input, shape index: {}]   ;;  %s4337_s4 = inlined_call_operand.vmem [shape: bf16[8,8,128], index: 4, kind: output, shape index: {0}]   ;;  %s4338_s5 = inlined_call_operand.vmem [shape: f32[8,128], index: 5, kind: output, shape index: {1}]   ;;  %s4339_s6 = inlined_call_operand.vmem [shape: f32[8,128], index: 6, kind: output, shape index: {2}]  }
   0x1   :  { %s19_s23 = sshll.u32 %s4334_s1, 4  ;;  %s21_s25 = sshll.u32 %s4152_s24, 4  ;;  %s20_s23 = int_to_ptr.hbm [resolvable:$true] %s19_s23  ;;  %s22_s25 = int_to_ptr.vmem [resolvable:$true] %s21_s25 }
   0x2   :  { %s4154_s27 = smov 16  }
   0x3   :  { %27 = dma.hbm_to_vmem [thread:$0]  %s20_s23, 4096, %s22_s25, [#allocation5], %s4153_s26, %s4153_s26, %s4154_s27  }
   0x4   :  { %4150 = dma.done.wait [#allocation5], 4096  }
   0x5   :  { %4151 = vsyncadd [#allocation5], 4294963200  ;;  %v2784_v0 = vld [vmem:[#allocation4 + $0xe0] sm:$0xf]  ;;  %v3769_v1 = vld [vmem:[#allocation4 + $0xec] sm:$0xf0] }
   0x6   :  { %v3767_v2 = vld [vmem:[#allocation4 + $0xe4] sm:$0xf]  ;;  %v2785_v3 = vor.u32 %v3769_v1, %v2784_v0  ;;  %v2786_v4 = vld [vmem:[#allocation4 + $0xf0] sm:$0xf0]  ;;  %v3768_v5 = vld [vmem:[#allocation4 + $0xec] sm:$0xf] }
   0x7   :  { %v2794_v6 = vld [vmem:[#allocation4 + $0xf8] sm:$0xf0]  ;;  %v2789_v7 = vor.u32 %v3767_v2, %v2786_v4  ;;  %v2768_v9 = vld [vmem:[#allocation4 + $0xc0] sm:$0xf]  ;;  %v3765_v10 = vld [vmem:[#allocation4 + $0xcc] sm:$0xf0] }
   0x8   :  { %v2797_v8 = vor.u32 %v3768_v5, %v2794_v6  ;;  %v3763_v11 = vld [vmem:[#allocation4 + $0xc4] sm:$0xf]  ;;  %244 = vmatpush.bf16.msra.mxu0 %v2785_v3  ;;  %v2769_v12 = vor.u32 %v3765_v10, %v2768_v9  ;;  %v2770_v13 = vld [vmem:[#allocation4 + $0xd0] sm:$0xf0]  ;;  %v3764_v14 = vld [vmem:[#allocation4 + $0xcc] sm:$0xf] }
   0x9   :  { %v2778_v15 = vld [vmem:[#allocation4 + $0xd8] sm:$0xf0]  ;;  %257 = vmatpush.bf16.msra.mxu1 %v2789_v7  ;;  %v2773_v16 = vor.u32 %v3763_v11, %v2770_v13  ;;  %v2792_v18 = vld [vmem:[#allocation4 + $0xe8] sm:$0xf]  ;;  %v3770_v19 = vld [vmem:[#allocation4 + $0xf4] sm:$0xf0] }
   0xa   :  { %283 = vmatpush.bf16.msra.mxu3 %v2797_v8  ;;  %v2781_v17 = vor.u32 %v3764_v14, %v2778_v15  ;;  %v2752_v20 = vld [vmem:[#allocation4 + $0xa0] sm:$0xf]  ;;  %v2793_v21 = vor.u32 %v3770_v19, %v2792_v18  ;;  %v3761_v22 = vld [vmem:[#allocation4 + $0xac] sm:$0xf0]  ;;  %v3759_v23 = vld [vmem:[#allocation4 + $0xa4] sm:$0xf] }
   0xb   :  { %v2754_v24 = vld [vmem:[#allocation4 + $0xb0] sm:$0xf0]  ;;  %v3760_v25 = vld [vmem:[#allocation4 + $0xac] sm:$0xf]  ;;  %v2762_v26 = vld [vmem:[#allocation4 + $0xb8] sm:$0xf0]  ;;  %v2753_v28 = vor.u32 %v3761_v22, %v2752_v20 }
   0xc   :  { %v2776_v27 = vld [vmem:[#allocation4 + $0xc8] sm:$0xf]  ;;  %245 = vmatpush.bf16.msra.mxu0 %v2769_v12  ;;  %270 = vmatpush.bf16.msra.mxu2 %v2793_v21  ;;  %v3766_v29 = vld [vmem:[#allocation4 + $0xd4] sm:$0xf0]  ;;  %v2736_v30 = vld [vmem:[#allocation4 + $0x80] sm:$0xf]  ;;  %v2757_v32 = vor.u32 %v3759_v23, %v2754_v24  ;;  %v2765_v33 = vor.u32 %v3760_v25, %v2762_v26 }
   0xd   :  { %v3757_v31 = vld [vmem:[#allocation4 + $0x8c] sm:$0xf0]  ;;  %258 = vmatpush.bf16.msra.mxu1 %v2773_v16  ;;  %v2777_v34 = vor.u32 %v3766_v29, %v2776_v27  ;;  %v3755_v35 = vld [vmem:[#allocation4 + $0x84] sm:$0xf]  ;;  %v2738_v36 = vld [vmem:[#allocation4 + $0x90] sm:$0xf0] }
   0xe   :  { %284 = vmatpush.bf16.msra.mxu3 %v2781_v17  ;;  %v3756_v37 = vld [vmem:[#allocation4 + $0x8c] sm:$0xf]  ;;  %v2746_v38 = vld [vmem:[#allocation4 + $0x98] sm:$0xf0]  ;;  %v2760_v39 = vld [vmem:[#allocation4 + $0xa8] sm:$0xf]  ;;  %v2737_v41 = vor.u32 %v3757_v31, %v2736_v30  ;;  %v2741_v45 = vor.u32 %v3755_v35, %v2738_v36 }
   0xf   :  { %v3762_v40 = vld [vmem:[#allocation4 + $0xb4] sm:$0xf0]  ;;  %v2720_v43 = vld [vmem:[#allocation4 + $0x60] sm:$0xf]  ;;  %v3753_v44 = vld [vmem:[#allocation4 + $0x6c] sm:$0xf0]  ;;  %v2749_v46 = vor.u32 %v3756_v37, %v2746_v38 }
  0x10   :  { %246 = vmatpush.bf16.msra.mxu0 %v2753_v28  ;;  %271 = vmatpush.bf16.msra.mxu2 %v2777_v34  ;;  %v2761_v42 = vor.u32 %v3762_v40, %v2760_v39  ;;  %v3751_v47 = vld [vmem:[#allocation4 + $0x64] sm:$0xf]  ;;  %v2744_v48 = vld [vmem:[#allocation4 + $0x88] sm:$0xf]  ;;  %v3758_v49 = vld [vmem:[#allocation4 + $0x94] sm:$0xf0]  ;;  %v2721_v53 = vor.u32 %v3753_v44, %v2720_v43 }
  0x11   :  { %259 = vmatpush.bf16.msra.mxu1 %v2757_v32  ;;  %v2722_v50 = vld [vmem:[#allocation4 + $0x70] sm:$0xf0]  ;;  %v3752_v51 = vld [vmem:[#allocation4 + $0x6c] sm:$0xf]  ;;  %v2730_v52 = vld [vmem:[#allocation4 + $0x78] sm:$0xf0]  ;;  %v2745_v54 = vor.u32 %v3758_v49, %v2744_v48 }
  0x12   :  { %285 = vmatpush.bf16.msra.mxu3 %v2765_v33  ;;  %v2704_v55 = vld [vmem:[#allocation4 + $0x40] sm:$0xf]  ;;  %v3749_v56 = vld [vmem:[#allocation4 + $0x4c] sm:$0xf0]  ;;  %v2725_v57 = vor.u32 %v3751_v47, %v2722_v50  ;;  %v2733_v58 = vor.u32 %v3752_v51, %v2730_v52  ;;  %v3747_v59 = vld [vmem:[#allocation4 + $0x44] sm:$0xf] }
  0x13   :  { %v2728_v60 = vld [vmem:[#allocation4 + $0x68] sm:$0xf]  ;;  %v3754_v61 = vld [vmem:[#allocation4 + $0x74] sm:$0xf0]  ;;  %v2706_v62 = vld [vmem:[#allocation4 + $0x50] sm:$0xf0]  ;;  %v2705_v1 = vor.u32 %v3749_v56, %v2704_v55 }
  0x14   :  { %247 = vmatpush.bf16.msra.mxu0 %v2737_v41  ;;  %272 = vmatpush.bf16.msra.mxu2 %v2761_v42  ;;  %v3748_v63 = vld [vmem:[#allocation4 + $0x4c] sm:$0xf]  ;;  %v2714_v0 = vld [vmem:[#allocation4 + $0x58] sm:$0xf0]  ;;  %v2729_v2 = vor.u32 %v3754_v61, %v2728_v60  ;;  %v2688_v3 = vld [vmem:[#allocation4 + $0x20] sm:$0xf]  ;;  %v2709_v5 = vor.u32 %v3747_v59, %v2706_v62 }
  0x15   :  { %260 = vmatpush.bf16.msra.mxu1 %v2741_v45  ;;  %v3745_v4 = vld [vmem:[#allocation4 + $0x2c] sm:$0xf0]  ;;  %v2717_v6 = vor.u32 %v3748_v63, %v2714_v0  ;;  %v3743_v7 = vld [vmem:[#allocation4 + $0x24] sm:$0xf]  ;;  %v2712_v8 = vld [vmem:[#allocation4 + $0x48] sm:$0xf] }
  0x16   :  { %286 = vmatpush.bf16.msra.mxu3 %v2749_v46  ;;  %v3750_v9 = vld [vmem:[#allocation4 + $0x54] sm:$0xf0]  ;;  %v2690_v10 = vld [vmem:[#allocation4 + $0x30] sm:$0xf0]  ;;  %v3744_v11 = vld [vmem:[#allocation4 + $0x2c] sm:$0xf]  ;;  %v2689_v13 = vor.u32 %v3745_v4, %v2688_v3 }
  0x17   :  { %v2698_v12 = vld [vmem:[#allocation4 + $0x38] sm:$0xf0]  ;;  %v2713_v14 = vor.u32 %v3750_v9, %v2712_v8  ;;  %v2672_v15 = vld [vmem:[#allocation4] sm:$0xf]  ;;  %v3741_v16 = vld [vmem:[#allocation4 + $0xc] sm:$0xf0]  ;;  %v2693_v17 = vor.u32 %v3743_v7, %v2690_v10 }
  0x18   :  { %248 = vmatpush.bf16.msra.mxu0 %v2721_v53  ;;  %273 = vmatpush.bf16.msra.mxu2 %v2745_v54  ;;  %v2701_v18 = vor.u32 %v3744_v11, %v2698_v12  ;;  %v3739_v19 = vld [vmem:[#allocation4 + $0x4] sm:$0xf]  ;;  %v2696_v20 = vld [vmem:[#allocation4 + $0x28] sm:$0xf]  ;;  %v3746_v21 = vld [vmem:[#allocation4 + $0x34] sm:$0xf0]  ;;  %v2673_v25 = vor.u32 %v3741_v16, %v2672_v15 }
  0x19   :  { %261 = vmatpush.bf16.msra.mxu1 %v2725_v57  ;;  %v2674_v22 = vld [vmem:[#allocation4 + $0x10] sm:$0xf0]  ;;  %v3740_v23 = vld [vmem:[#allocation4 + $0xc] sm:$0xf]  ;;  %v2682_v24 = vld [vmem:[#allocation4 + $0x18] sm:$0xf0]  ;;  %v2697_v27 = vor.u32 %v3746_v21, %v2696_v20 }
  0x1a   :  { %287 = vmatpush.bf16.msra.mxu3 %v2733_v58  ;;  %v40_v26 = vld [vmem:[%s4335_s2] sm:$0xff]  ;;  %v2677_v28 = vor.u32 %v3739_v19, %v2674_v22  ;;  %v2685_v29 = vor.u32 %v3740_v23, %v2682_v24  ;;  %v2680_v30 = vld [vmem:[#allocation4 + $0x8] sm:$0xf]  ;;  %v3742_v31 = vld [vmem:[#allocation4 + $0x14] sm:$0xf0] }
  0x1b   :  { %v51_v32 = vpack.c.bf16 %v40_v26, %v40_v26  ;;  %v2681_v33 = vor.u32 %v3742_v31, %v2680_v30  ;;  %v2917_v34 = vld [vmem:[#allocation4 + $0xe0] sm:$0xf]  ;;  %v3801_v35 = vld [vmem:[#allocation4 + $0xec] sm:$0xf0]  ;;  %v3799_v36 = vld [vmem:[#allocation4 + $0xe4] sm:$0xf] }
  0x1c   :  { %249 = vmatpush.bf16.msra.mxu0 %v2705_v1  ;;  %274 = vmatpush.bf16.msra.mxu2 %v2729_v2  ;;  %v2918_v37 = vor.u32 %v3801_v35, %v2917_v34  ;;  %v2919_v38 = vld [vmem:[#allocation4 + $0xf0] sm:$0xf0]  ;;  %v2925_v39 = vld [vmem:[#allocation4 + $0xe8] sm:$0xf]  ;;  %v3802_v40 = vld [vmem:[#allocation4 + $0xf4] sm:$0xf0] }
  0x1d   :  { %262 = vmatpush.bf16.msra.mxu1 %v2709_v5  ;;  %v2922_v41 = vor.u32 %v3799_v36, %v2919_v38  ;;  %v2926_v42 = vor.u32 %v3802_v40, %v2925_v39  ;;  %v3800_v43 = vld [vmem:[#allocation4 + $0xec] sm:$0xf]  ;;  %v2927_v44 = vld [vmem:[#allocation4 + $0xf8] sm:$0xf0]  ;;  %v2901_v46 = vld [vmem:[#allocation4 + $0xc0] sm:$0xf] }
  0x1e   :  { %288 = vmatpush.bf16.msra.mxu3 %v2717_v6  ;;  %v2930_v45 = vor.u32 %v3800_v43, %v2927_v44  ;;  %v3797_v47 = vld [vmem:[#allocation4 + $0xcc] sm:$0xf0]  ;;  %v3795_v48 = vld [vmem:[#allocation4 + $0xc4] sm:$0xf]  ;;  %v2903_v50 = vld [vmem:[#allocation4 + $0xd0] sm:$0xf0] }
  0x1f   :  { %v2902_v49 = vor.u32 %v3797_v47, %v2901_v46  ;;  %v2909_v51 = vld [vmem:[#allocation4 + $0xc8] sm:$0xf]  ;;  %v3798_v52 = vld [vmem:[#allocation4 + $0xd4] sm:$0xf0]  ;;  %v2906_v53 = vor.u32 %v3795_v48, %v2903_v50  ;;  %v3796_v55 = vld [vmem:[#allocation4 + $0xcc] sm:$0xf] }
  0x20   :  { %250 = vmatpush.bf16.msra.mxu0 %v2689_v13  ;;  %275 = vmatpush.bf16.msra.mxu2 %v2713_v14  ;;  %v2910_v54 = vor.u32 %v3798_v52, %v2909_v51  ;;  %v2911_v56 = vld [vmem:[#allocation4 + $0xd8] sm:$0xf0]  ;;  %v2885_v58 = vld [vmem:[#allocation4 + $0xa0] sm:$0xf]  ;;  %v3793_v59 = vld [vmem:[#allocation4 + $0xac] sm:$0xf0] }
  0x21   :  { %263 = vmatpush.bf16.msra.mxu1 %v2693_v17  ;;  %v2914_v57 = vor.u32 %v3796_v55, %v2911_v56  ;;  %v3791_v60 = vld [vmem:[#allocation4 + $0xa4] sm:$0xf]  ;;  %v2886_v61 = vor.u32 %v3793_v59, %v2885_v58  ;;  %v2887_v62 = vld [vmem:[#allocation4 + $0xb0] sm:$0xf0]  ;;  %v2893_v63 = vld [vmem:[#allocation4 + $0xa8] sm:$0xf] }
  0x22   :  { %289 = vmatpush.bf16.msra.mxu3 %v2701_v18  ;;  %v3794_v0 = vld [vmem:[#allocation4 + $0xb4] sm:$0xf0]  ;;  %v2890_v1 = vor.u32 %v3791_v60, %v2887_v62  ;;  %v3792_v3 = vld [vmem:[#allocation4 + $0xac] sm:$0xf]  ;;  %v2895_v4 = vld [vmem:[#allocation4 + $0xb8] sm:$0xf0] }
  0x23   :  { %v2894_v2 = vor.u32 %v3794_v0, %v2893_v63  ;;  %v44_v5 = vld [vmem:[%s4333_s0] sm:$0xff]  ;;  %v2898_v6 = vor.u32 %v3792_v3, %v2895_v4  ;;  %v3789_v8 = vld [vmem:[#allocation4 + $0x8c] sm:$0xf0]  ;;  %v2871_v11 = vld [vmem:[#allocation4 + $0x90] sm:$0xf0] }
  0x24   :  { %251 = vmatpush.bf16.msra.mxu0 %v2673_v25  ;;  %276 = vmatpush.bf16.msra.mxu2 %v2697_v27  ;;  %v2869_v7 = vld [vmem:[#allocation4 + $0x80] sm:$0xf]  ;;  %v3787_v9 = vld [vmem:[#allocation4 + $0x84] sm:$0xf]  ;;  %v2877_v12 = vld [vmem:[#allocation4 + $0x88] sm:$0xf]  ;;  %v46_v18 = vunpack.c.l.bf16 %v44_v5  ;;  %v47_v20 = vunpack.c.h.bf16 %v44_v5 }
  0x25   :  { %264 = vmatpush.bf16.msra.mxu1 %v2677_v28  ;;  %v2870_v10 = vor.u32 %v3789_v8, %v2869_v7  ;;  %v3790_v13 = vld [vmem:[#allocation4 + $0x94] sm:$0xf0]  ;;  %v2874_v14 = vor.u32 %v3787_v9, %v2871_v11  ;;  %v3788_v16 = vld [vmem:[#allocation4 + $0x8c] sm:$0xf]  ;;  %v2879_v17 = vld [vmem:[#allocation4 + $0x98] sm:$0xf0] }
  0x26   :  { %290 = vmatpush.bf16.msra.mxu3 %v2685_v29  ;;  %v2878_v15 = vor.u32 %v3790_v13, %v2877_v12  ;;  %v2882_v19 = vor.u32 %v3788_v16, %v2879_v17  ;;  %v2853_v21 = vld [vmem:[#allocation4 + $0x60] sm:$0xf]  ;;  %v3785_v22 = vld [vmem:[#allocation4 + $0x6c] sm:$0xf0]  ;;  %v3783_v23 = vld [vmem:[#allocation4 + $0x64] sm:$0xf] }
  0x27   :  { %252 = vmatmul.bf16.vlgmr.msra.gmra.mxu0 %v51_v32  ;;  %v2854_v24 = vor.u32 %v3785_v22, %v2853_v21  ;;  %v2855_v25 = vld [vmem:[#allocation4 + $0x70] sm:$0xf0]  ;;  %v2861_v26 = vld [vmem:[#allocation4 + $0x68] sm:$0xf]  ;;  %v3786_v29 = vld [vmem:[#allocation4 + $0x74] sm:$0xf0] }
  0x28   :  { %265 = vmatmul.bf16.vlgmr.msra.gmra.mxu1 %v51_v32  ;;  %277 = vmatpush.bf16.msra.mxu2 %v2681_v33  ;;  %v2858_v28 = vor.u32 %v3783_v23, %v2855_v25  ;;  %v3784_v30 = vld [vmem:[#allocation4 + $0x6c] sm:$0xf]  ;;  %v2863_v31 = vld [vmem:[#allocation4 + $0x78] sm:$0xf0]  ;;  %v2862_v35 = vor.u32 %v3786_v29, %v2861_v26  ;;  %v2837_v38 = vld [vmem:[#allocation4 + $0x40] sm:$0xf] }
  0x29   :  { %291 = vmatmul.bf16.vlgmr.msra.gmra.mxu3 %v51_v32  ;;  %569 = vmatpush.bf16.msrb.mxu0 %v2918_v37  ;;  %v4202_v34 = vld [vmem:[%s4333_s0 + $0x8] sm:$0xff]  ;;  %v2866_v36 = vor.u32 %v3784_v30, %v2863_v31  ;;  %v3781_v39 = vld [vmem:[#allocation4 + $0x4c] sm:$0xf0]  ;;  %v3779_v40 = vld [vmem:[#allocation4 + $0x44] sm:$0xf] }
  0x2a   :  { %582 = vmatpush.bf16.msrb.mxu1 %v2922_v41  ;;  %608 = vmatpush.bf16.msrb.mxu3 %v2930_v45  ;;  %v2839_v43 = vld [vmem:[#allocation4 + $0x50] sm:$0xf0]  ;;  %v2845_v44 = vld [vmem:[#allocation4 + $0x48] sm:$0xf]  ;;  %v49_v46 = vunpack.c.h.bf16 %v4202_v34  ;;  %v3782_v48 = vld [vmem:[#allocation4 + $0x54] sm:$0xf0]  ;;  %v48_v23 = vunpack.c.l.bf16 %v4202_v34 }
  0x2b   :  { %278 = vmatmul.bf16.vlgmr.msra.gmra.mxu2 %v51_v32  ;;  %v2842_v47 = vor.u32 %v3779_v40, %v2839_v43  ;;  %v2846_v50 = vor.u32 %v3782_v48, %v2845_v44  ;;  %v2847_v51 = vld [vmem:[#allocation4 + $0x58] sm:$0xf0]  ;;  %v2821_v52 = vld [vmem:[#allocation4 + $0x20] sm:$0xf]  ;;  %v3775_v56 = vld [vmem:[#allocation4 + $0x24] sm:$0xf] }
  0x2c   :  { %595 = vmatpush.bf16.msrb.mxu2 %v2926_v42  ;;  %v2838_v42 = vor.u32 %v3781_v39, %v2837_v38  ;;  %v2829_v58 = vld [vmem:[#allocation4 + $0x28] sm:$0xf]  ;;  %v3776_v62 = vld [vmem:[#allocation4 + $0x2c] sm:$0xf]  ;;  %v2831_v63 = vld [vmem:[#allocation4 + $0x38] sm:$0xf0] }
  0x2d   :  { %570 = vmatpush.bf16.msrb.mxu0 %v2902_v49  ;;  %v3780_v49 = vld [vmem:[#allocation4 + $0x4c] sm:$0xf]  ;;  %v2834_v3 = vor.u32 %v3776_v62, %v2831_v63  ;;  %v2805_v4 = vld [vmem:[#allocation4] sm:$0xf]  ;;  %v3773_v5 = vld [vmem:[#allocation4 + $0xc] sm:$0xf0] }
  0x2e   :  { %583 = vmatpush.bf16.msrb.mxu1 %v2906_v53  ;;  %609 = vmatpush.bf16.msrb.mxu3 %v2914_v57  ;;  %v3777_v53 = vld [vmem:[#allocation4 + $0x2c] sm:$0xf0]  ;;  %v2823_v57 = vld [vmem:[#allocation4 + $0x30] sm:$0xf0]  ;;  %v2806_v8 = vor.u32 %v3773_v5, %v2805_v4  ;;  %v3774_v11 = vld [vmem:[#allocation4 + $0x14] sm:$0xf0] }
  0x2f   :  { %v2822_v55 = vor.u32 %v3777_v53, %v2821_v52  ;;  %v2826_v60 = vor.u32 %v3775_v56, %v2823_v57  ;;  %v2807_v9 = vld [vmem:[#allocation4 + $0x10] sm:$0xf0]  ;;  %v42_v48 = vld [vmem:[%s4336_s3] sm:$0xff]  ;;  %v3833_v4 = vld [vmem:[#allocation4 + $0xec] sm:$0xf0] }
  0x30   :  { %596 = vmatpush.bf16.msrb.mxu2 %v2910_v54  ;;  %v2850_v54 = vor.u32 %v3780_v49, %v2847_v51  ;;  %v3831_v5 = vld [vmem:[#allocation4 + $0xe4] sm:$0xf] }
  0x31   :  { %571 = vmatpush.bf16.msrb.mxu0 %v2886_v61  ;;  %v3778_v61 = vld [vmem:[#allocation4 + $0x34] sm:$0xf0] }
  0x32   :  { %584 = vmatpush.bf16.msrb.mxu1 %v2890_v1  ;;  %610 = vmatpush.bf16.msrb.mxu3 %v2898_v6  ;;  %v3771_v6 = vld [vmem:[#allocation4 + $0x4] sm:$0xf] }
  0x33   :  { %v2810_v13 = vor.u32 %v3771_v6, %v2807_v9  ;;  %v3834_v9 = vld [vmem:[#allocation4 + $0xf4] sm:$0xf0] }
  0x34   :  { %597 = vmatpush.bf16.msrb.mxu2 %v2894_v2  ;;  %v2830_v2 = vor.u32 %v3778_v61, %v2829_v58 }
  0x35   :  { %572 = vmatpush.bf16.msrb.mxu0 %v2870_v10  ;;  %v2813_v10 = vld [vmem:[#allocation4 + $0x8] sm:$0xf] }
  0x36   :  { %585 = vmatpush.bf16.msrb.mxu1 %v2874_v14  ;;  %611 = vmatpush.bf16.msrb.mxu3 %v2882_v19  ;;  %v3772_v14 = vld [vmem:[#allocation4 + $0xc] sm:$0xf] }
  0x38   :  { %598 = vmatpush.bf16.msrb.mxu2 %v2878_v15  ;;  %v2815_v15 = vld [vmem:[#allocation4 + $0x18] sm:$0xf0] }
  0x39   :  { %573 = vmatpush.bf16.msrb.mxu0 %v2854_v24  ;;  %v2818_v21 = vor.u32 %v3772_v14, %v2815_v15  ;;  %v3035_v15 = vld [vmem:[#allocation4 + $0xc0] sm:$0xf] }
  0x3a   :  { %586 = vmatpush.bf16.msrb.mxu1 %v2858_v28  ;;  %612 = vmatpush.bf16.msrb.mxu3 %v2866_v36 }
  0x3c   :  { %599 = vmatpush.bf16.msrb.mxu2 %v2862_v35 }
  0x3d   :  { %574 = vmatpush.bf16.msrb.mxu0 %v2838_v42 }
  0x3e   :  { %587 = vmatpush.bf16.msrb.mxu1 %v2842_v47  ;;  %613 = vmatpush.bf16.msrb.mxu3 %v2850_v54 }
  0x40   :  { %600 = vmatpush.bf16.msrb.mxu2 %v2846_v50 }
  0x41   :  { %575 = vmatpush.bf16.msrb.mxu0 %v2822_v55 }
  0x42   :  { %588 = vmatpush.bf16.msrb.mxu1 %v2826_v60  ;;  %614 = vmatpush.bf16.msrb.mxu3 %v2834_v3  ;;  %v3051_v3 = vld [vmem:[#allocation4 + $0xe0] sm:$0xf] }
  0x43   :  { %v3052_v6 = vor.u32 %v3833_v4, %v3051_v3  ;;  %v2997_v3 = vld [vmem:[#allocation4 + $0x78] sm:$0xf0] }
  0x44   :  { %601 = vmatpush.bf16.msrb.mxu2 %v2830_v2 }
  0x45   :  { %576 = vmatpush.bf16.msrb.mxu0 %v2806_v8  ;;  %v3059_v8 = vld [vmem:[#allocation4 + $0xe8] sm:$0xf] }
  0x46   :  { %589 = vmatpush.bf16.msrb.mxu1 %v2810_v13  ;;  %615 = vmatpush.bf16.msrb.mxu3 %v2818_v21  ;;  %v3061_v13 = vld [vmem:[#allocation4 + $0xf8] sm:$0xf0]  ;;  %v3830_v21 = vld [vmem:[#allocation4 + $0xd4] sm:$0xf0] }
  0x49   :  { %895 = vmatpush.bf16.msra.mxu0 %v3052_v6  ;;  %v4221_v6 = vld [vmem:[%s4333_s0 + $0x18] sm:$0xff] }
  0xa4   :  { %v253_v27 = vpop.f32.mrf.mxu0 }
  0xa5   :  { %v296_v32 = vadd.f32 %v253_v27, %v46_v18  ;;  %v266_v33 = vpop.f32.mrf.mxu1  ;;  %v2814_v18 = vor.u32 %v3774_v11, %v2813_v10  ;;  %v3060_v11 = vor.u32 %v3834_v9, %v3059_v8  ;;  %v2971_v8 = vld [vmem:[#allocation4 + $0x40] sm:$0xf]  ;;  %v3813_v9 = vld [vmem:[#allocation4 + $0x4c] sm:$0xf0] }
  0xa6   :  { %v297_v37 = vadd.f32 %v266_v33, %v47_v20 }
  0xa7   :  { %v2798_v41 = vmul.f32 -1.442695, %v296_v32  ;;  %602 = vmatpush.bf16.msrb.mxu2 %v2814_v18 }
  0xa8   :  { %v2799_v45 = vmul.f32 -1.442695, %v297_v37 }
  0xa9   :  { %3998 = vpow2.f32 %v2798_v41 }
  0xaa   :  { %4000 = vpow2.f32 %v2799_v45 }
  0xab   :  { %921 = vmatpush.bf16.msra.mxu2 %v3060_v11 }
  0xac   :  { %v292_v59 = vpop.f32.mrf.mxu3  ;;  %v255_v1 = vpop.f32.mrf.mxu0 }
  0xad   :  { %v299_v0 = vadd.f32 %v292_v59, %v49_v46  ;;  %v268_v7 = vpop.f32.mrf.mxu1 }
  0xae   :  { %v279_v17 = vpop.f32.mrf.mxu2  ;;  %v3053_v7 = vld [vmem:[#allocation4 + $0xf0] sm:$0xf0] }
  0xaf   :  { %v2800_v12 = vmul.f32 -1.442695, %v299_v0  ;;  %v3999_v16 = vpop.eup %3998  ;;  %v298_v26 = vadd.f32 %v279_v17, %v48_v23  ;;  %v3056_v10 = vor.u32 %v3831_v5, %v3053_v7  ;;  %v3827_v17 = vld [vmem:[#allocation4 + $0xc4] sm:$0xf] }
  0xb0   :  { %v4001_v19 = vpop.eup %4000  ;;  %v303_v20 = vadd.f32 1.0, %v3999_v16  ;;  %v3829_v16 = vld [vmem:[#allocation4 + $0xcc] sm:$0xf0] }
  0xb1   :  { %4002 = vpow2.f32 %v2800_v12  ;;  %v322_v22 = vadd.f32 1.0, %v4001_v19  ;;  %v3832_v12 = vld [vmem:[#allocation4 + $0xec] sm:$0xf]  ;;  %908 = vmatpush.bf16.msra.mxu1 %v3056_v10  ;;  %v3036_v18 = vor.u32 %v3829_v16, %v3035_v15  ;;  %v3037_v19 = vld [vmem:[#allocation4 + $0xd0] sm:$0xf0]  ;;  %v374_v15 = vunpack.c.h.bf16 %v4221_v6 }
  0xb2   :  { %4004 = vrcp.f32 %v303_v20  ;;  %v315_v36 = vand.u32 2147483648, %v303_v20  ;;  %v313_v38 = vand.u32 2147483647, %v303_v20  ;;  %vm309_vm2 = vweird.f32 %v303_v20  ;;  %v3811_v10 = vld [vmem:[#allocation4 + $0x44] sm:$0xf] }
  0xb3   :  { %4006 = vrcp.f32 %v322_v22  ;;  %v334_v37 = vand.u32 2147483648, %v322_v22  ;;  %v332_v40 = vand.u32 2147483647, %v322_v22  ;;  %vm328_vm3 = vweird.f32 %v322_v22  ;;  %896 = vmatpush.bf16.msra.mxu0 %v3036_v18  ;;  %v3814_v18 = vld [vmem:[#allocation4 + $0x54] sm:$0xf0] }
  0xb4   :  { %v294_v24 = vpop.f32.mrf.mxu3  ;;  %v316_v45 = vor.u32 1.1754944e-38, %v315_v36  ;;  %vm314_vm6 = vcmp.eq.f32.partialorder %v313_v38, 8.507059e+37  ;;  %v3064_v14 = vor.u32 %v3832_v12, %v3061_v13  ;;  %v2801_v38 = vld [vmem:[%s4333_s0 + $0x10] sm:$0xff]  ;;  %v2972_v13 = vor.u32 %v3813_v9, %v2971_v8 }
  0xb5   :  { %v335_v47 = vor.u32 1.1754944e-38, %v334_v37  ;;  %vm333_vm7 = vcmp.eq.f32.partialorder %v332_v40, 8.507059e+37  ;;  %v3828_v24 = vld [vmem:[#allocation4 + $0xcc] sm:$0xf]  ;;  %v3003_v40 = vld [vmem:[#allocation4 + $0x80] sm:$0xf] }
  0xb6   :  { %v281_v28 = vpop.f32.mrf.mxu2  ;;  %934 = vmatpush.bf16.msra.mxu3 %v3064_v14  ;;  %v3824_v37 = vld [vmem:[#allocation4 + $0xac] sm:$0xf]  ;;  %v2973_v14 = vld [vmem:[#allocation4 + $0x50] sm:$0xf0] }
  0xb7   :  { %v4003_v25 = vpop.eup %4002  ;;  %v3825_v28 = vld [vmem:[#allocation4 + $0xac] sm:$0xf0]  ;;  %v2976_v16 = vor.u32 %v3811_v10, %v2973_v14 }
  0xb8   :  { %v342_v27 = vadd.f32 1.0, %v4003_v25  ;;  %v4005_v29 = vpop.eup %4004  ;;  %v3045_v25 = vld [vmem:[#allocation4 + $0xd8] sm:$0xf0] }
  0xb9   :  { %v4007_v30 = vpop.eup %4006  ;;  %v305_v31 = vmul.f32 %v4005_v29, %v303_v20  ;;  %vm310_vm0 = vweird.f32 %v4005_v29  ;;  %v3043_v20 = vld [vmem:[#allocation4 + $0xc8] sm:$0xf] }
  0xba   :  { %4008 = vrcp.f32 %v342_v27  ;;  %v324_v32 = vmul.f32 %v4007_v30, %v322_v22  ;;  %vm329_vm1 = vweird.f32 %v4007_v30  ;;  %vm311_vm4 = vmor %vm309_vm2, %vm310_vm0  ;;  %v354_v59 = vand.u32 2147483648, %v342_v27 }
  0xbb   :  { %4010 = vtanh.f32 %v298_v26  ;;  %v306_v33 = vsub.f32 1.0, %v305_v31  ;;  %vm330_vm5 = vmor %vm328_vm3, %vm329_vm1  ;;  %vm348_vm9 = vweird.f32 %v342_v27  ;;  %v352_v60 = vand.u32 2147483647, %v342_v27  ;;  %v3021_v31 = vld [vmem:[#allocation4 + $0xb0] sm:$0xf0] }
  0xbc   :  { %v325_v35 = vsub.f32 1.0, %v324_v32  ;;  %v355_v62 = vor.u32 1.1754944e-38, %v354_v59  ;;  %v3040_v22 = vor.u32 %v3827_v17, %v3037_v19  ;;  %v3044_v23 = vor.u32 %v3830_v21, %v3043_v20  ;;  %v3027_v32 = vld [vmem:[#allocation4 + $0xa8] sm:$0xf]  ;;  %v2989_v59 = vld [vmem:[#allocation4 + $0x70] sm:$0xf0] }
  0xbd   :  { %v307_v34 = vmul.f32 %v4005_v29, %v306_v33  ;;  %vm353_vm11 = vcmp.eq.f32.partialorder %v352_v60, 8.507059e+37  ;;  %v3048_v26 = vor.u32 %v3828_v24, %v3045_v25  ;;  %v3826_v33 = vld [vmem:[#allocation4 + $0xb4] sm:$0xf0]  ;;  %v2995_v60 = vld [vmem:[#allocation4 + $0x68] sm:$0xf] }
  0xbe   :  { %v326_v39 = vmul.f32 %v4007_v30, %v325_v35  ;;  %909 = vmatpush.bf16.msra.mxu1 %v3040_v22  ;;  %922 = vmatpush.bf16.msra.mxu2 %v3044_v23  ;;  %v3028_v36 = vor.u32 %v3826_v33, %v3027_v32  ;;  %v2979_v17 = vld [vmem:[#allocation4 + $0x48] sm:$0xf]  ;;  %v3812_v19 = vld [vmem:[#allocation4 + $0x4c] sm:$0xf]  ;;  %v2981_v21 = vld [vmem:[#allocation4 + $0x58] sm:$0xf0] }
  0xbf   :  { %v308_v42 = vadd.f32 %v4005_v29, %v307_v34  ;;  %935 = vmatpush.bf16.msra.mxu3 %v3048_v26  ;;  %v3029_v34 = vld [vmem:[#allocation4 + $0xb8] sm:$0xf0]  ;;  %v2980_v20 = vor.u32 %v3814_v18, %v2979_v17  ;;  %v2955_v22 = vld [vmem:[#allocation4 + $0x20] sm:$0xf]  ;;  %v3809_v23 = vld [vmem:[#allocation4 + $0x2c] sm:$0xf0]  ;;  %v2984_v24 = vor.u32 %v3812_v19, %v2981_v21 }
  0xc0   :  { %v4009_v41 = vpop.eup %4008  ;;  %v327_v46 = vadd.f32 %v4007_v30, %v326_v39  ;;  %v3032_v39 = vor.u32 %v3824_v37, %v3029_v34  ;;  %v2956_v25 = vor.u32 %v3809_v23, %v2955_v22  ;;  %v3807_v26 = vld [vmem:[#allocation4 + $0x24] sm:$0xf]  ;;  %v3810_v32 = vld [vmem:[#allocation4 + $0x34] sm:$0xf0]  ;;  %v3808_v33 = vld [vmem:[#allocation4 + $0x2c] sm:$0xf] }
  0xc1   :  { %v4011_v43 = vpop.eup %4010  ;;  %v344_v44 = vmul.f32 %v4009_v41, %v342_v27  ;;  %v312_v49 = vsel %vm311_vm4, %v4005_v29, %v308_v42  ;;  %vm349_vm8 = vweird.f32 %v4009_v41  ;;  %v3019_v27 = vld [vmem:[#allocation4 + $0xa0] sm:$0xf]  ;;  %v3823_v29 = vld [vmem:[#allocation4 + $0xa4] sm:$0xf] }
  0xc2   :  { %v317_v51 = vsel %vm314_vm6, %v316_v45, %v312_v49  ;;  %v331_v52 = vsel %vm330_vm5, %v4007_v30, %v327_v46  ;;  %vm350_vm10 = vmor %vm348_vm9, %vm349_vm8  ;;  %v3020_v30 = vor.u32 %v3825_v28, %v3019_v27  ;;  %v3024_v35 = vor.u32 %v3823_v29, %v3021_v31  ;;  %923 = vmatpush.bf16.msra.mxu2 %v3028_v36  ;;  %v3819_v42 = vld [vmem:[#allocation4 + $0x84] sm:$0xf]  ;;  %v3011_v45 = vld [vmem:[#allocation4 + $0x88] sm:$0xf] }
  0xc3   :  { %v345_v50 = vsub.f32 1.0, %v344_v44  ;;  %v336_v53 = vsel %vm333_vm7, %v335_v47, %v331_v52  ;;  %v360_v54 = vmul.f32 %v4011_v43, %v317_v51  ;;  %936 = vmatpush.bf16.msra.mxu3 %v3032_v39  ;;  %v3005_v44 = vld [vmem:[#allocation4 + $0x90] sm:$0xf0]  ;;  %v3822_v46 = vld [vmem:[#allocation4 + $0x94] sm:$0xf0]  ;;  %v371_v51 = vunpack.c.l.bf16 %v2801_v38 }
  0xc4   :  { %v359_v56 = vmul.f32 %v336_v53, %v42_v48  ;;  %897 = vmatpush.bf16.msra.mxu0 %v3020_v30  ;;  %910 = vmatpush.bf16.msra.mxu1 %v3024_v35  ;;  %v3008_v47 = vor.u32 %v3819_v42, %v3005_v44  ;;  %v3012_v48 = vor.u32 %v3822_v46, %v3011_v45  ;;  %v3820_v49 = vld [vmem:[#allocation4 + $0x8c] sm:$0xf]  ;;  %v372_v52 = vunpack.c.h.bf16 %v2801_v38  ;;  %v2957_v27 = vld [vmem:[#allocation4 + $0x30] sm:$0xf0]  ;;  %v2963_v28 = vld [vmem:[#allocation4 + $0x28] sm:$0xf] }
  0xc5   :  { %v346_v55 = vmul.f32 %v4009_v41, %v345_v50  ;;  %v3013_v50 = vld [vmem:[#allocation4 + $0x98] sm:$0xf0]  ;;  %v2960_v31 = vor.u32 %v3807_v26, %v2957_v27  ;;  %v2964_v38 = vor.u32 %v3810_v32, %v2963_v28  ;;  %v3803_v42 = vld [vmem:[#allocation4 + $0x4] sm:$0xf]  ;;  %v2941_v44 = vld [vmem:[#allocation4 + $0x10] sm:$0xf0] }
  0xc6   :  { %v4209_v57 = vadd.f32 %v360_v54, %v359_v56  ;;  %v3016_v53 = vor.u32 %v3820_v49, %v3013_v50  ;;  %924 = vmatpush.bf16.msra.mxu2 %v3012_v48  ;;  %v2987_v54 = vld [vmem:[#allocation4 + $0x60] sm:$0xf]  ;;  %v3815_v56 = vld [vmem:[#allocation4 + $0x64] sm:$0xf]  ;;  %v2965_v35 = vld [vmem:[#allocation4 + $0x38] sm:$0xf0]  ;;  %v2944_v48 = vor.u32 %v3803_v42, %v2941_v44 }
  0xc7   :  { %v347_v58 = vadd.f32 %v4009_v41, %v346_v55  ;;  %v3817_v55 = vld [vmem:[#allocation4 + $0x6c] sm:$0xf0]  ;;  %v2968_v39 = vor.u32 %v3808_v33, %v2965_v35  ;;  %v2947_v45 = vld [vmem:[#allocation4 + $0x8] sm:$0xf]  ;;  %v3806_v46 = vld [vmem:[#allocation4 + $0x14] sm:$0xf0] }
  0xc8   :  { %4012 = vtanh.f32 %v4209_v57  ;;  %911 = vmatpush.bf16.msra.mxu1 %v3008_v47  ;;  %937 = vmatpush.bf16.msra.mxu3 %v3016_v53  ;;  %v3804_v49 = vld [vmem:[#allocation4 + $0xc] sm:$0xf]  ;;  %v2949_v50 = vld [vmem:[#allocation4 + $0x18] sm:$0xf0]  ;;  %v3866_v42 = vld [vmem:[#allocation4 + $0xf4] sm:$0xf0] }
  0xc9   :  { %v351_v61 = vsel %vm350_vm10, %v4009_v41, %v347_v58  ;;  %v3821_v41 = vld [vmem:[#allocation4 + $0x8c] sm:$0xf0]  ;;  %v2988_v58 = vor.u32 %v3817_v55, %v2987_v54  ;;  %v2952_v55 = vor.u32 %v3804_v49, %v2949_v50  ;;  %v3859_v50 = vld [vmem:[#allocation4 + $0xc4] sm:$0xf] }
  0xca   :  { %v356_v0 = vsel %vm353_vm11, %v355_v62, %v351_v61  ;;  %v3004_v43 = vor.u32 %v3821_v41, %v3003_v40  ;;  %v3818_v61 = vld [vmem:[#allocation4 + $0x74] sm:$0xf0]  ;;  %v2939_v40 = vld [vmem:[#allocation4] sm:$0xf]  ;;  %v3805_v41 = vld [vmem:[#allocation4 + $0xc] sm:$0xf0] }
  0xcb   :  { %v3861_v49 = vld [vmem:[#allocation4 + $0xcc] sm:$0xf0] }
  0xcc   :  { %898 = vmatpush.bf16.msra.mxu0 %v3004_v43  ;;  %v2940_v43 = vor.u32 %v3805_v41, %v2939_v40  ;;  %v3187_v40 = vld [vmem:[#allocation4 + $0xf0] sm:$0xf0]  ;;  %v3193_v41 = vld [vmem:[#allocation4 + $0xe8] sm:$0xf] }
  0xcd   :  { %v3194_v44 = vor.u32 %v3866_v42, %v3193_v41  ;;  %v3105_v41 = vld [vmem:[#allocation4 + $0x40] sm:$0xf]  ;;  %v3845_v42 = vld [vmem:[#allocation4 + $0x4c] sm:$0xf0] }
  0xce   :  { %v4013_v63 = vpop.eup %4012 }
  0xcf   :  { %v363_v1 = vmul.f32 %v4013_v63, %v356_v0  ;;  %v2992_v0 = vor.u32 %v3815_v56, %v2989_v59 }
  0xd0   :  { %899 = vmatpush.bf16.msra.mxu0 %v2988_v58 }
  0xd1   :  { %v366_v2 = vpack.c.bf16 %v363_v1, %v363_v1  ;;  %v2996_v1 = vor.u32 %v3818_v61, %v2995_v60  ;;  %912 = vmatpush.bf16.msra.mxu1 %v2992_v0  ;;  %v373_v60 = vunpack.c.l.bf16 %v4221_v6 }
  0xd3   :  { %367 = vst [vmem:[%s4337_s4] sm:$0xf] %v366_v2  ;;  %577 = vmatmul.bf16.vlgmr.msrb.gmra.mxu0 %v366_v2  ;;  %590 = vmatmul.bf16.vlgmr.msrb.gmra.mxu1 %v366_v2 }
  0xd4   :  { %603 = vmatmul.bf16.vlgmr.msrb.gmra.mxu2 %v366_v2  ;;  %616 = vmatmul.bf16.vlgmr.msrb.gmra.mxu3 %v366_v2  ;;  %v3816_v2 = vld [vmem:[#allocation4 + $0x6c] sm:$0xf] }
  0xd5   :  { %v3000_v7 = vor.u32 %v3816_v2, %v2997_v3  ;;  %925 = vmatpush.bf16.msra.mxu2 %v2996_v1  ;;  %900 = vmatpush.bf16.msra.mxu0 %v2972_v13 }
  0xd6   :  { %913 = vmatpush.bf16.msra.mxu1 %v2976_v16 }
  0xd7   :  { %938 = vmatpush.bf16.msra.mxu3 %v3000_v7 }
  0xd9   :  { %926 = vmatpush.bf16.msra.mxu2 %v2980_v20  ;;  %901 = vmatpush.bf16.msra.mxu0 %v2956_v25 }
  0xda   :  { %914 = vmatpush.bf16.msra.mxu1 %v2960_v31 }
  0xdb   :  { %939 = vmatpush.bf16.msra.mxu3 %v2984_v24 }
  0xdd   :  { %927 = vmatpush.bf16.msra.mxu2 %v2964_v38  ;;  %902 = vmatpush.bf16.msra.mxu0 %v2940_v43  ;;  %v3863_v38 = vld [vmem:[#allocation4 + $0xe4] sm:$0xf] }
  0xde   :  { %915 = vmatpush.bf16.msra.mxu1 %v2944_v48  ;;  %v3190_v43 = vor.u32 %v3863_v38, %v3187_v40  ;;  %v3169_v48 = vld [vmem:[#allocation4 + $0xc0] sm:$0xf] }
  0xdf   :  { %940 = vmatpush.bf16.msra.mxu3 %v2968_v39 }
  0xe2   :  { %1234 = vmatpush.bf16.msrb.mxu1 %v3190_v43  ;;  %v3843_v43 = vld [vmem:[#allocation4 + $0x44] sm:$0xf] }
  0xe3   :  { %941 = vmatpush.bf16.msra.mxu3 %v2952_v55 }
 0x150   :  { %v578_v62 = vpop.f32.mrf.mxu0  ;;  %v591_v63 = vpop.f32.mrf.mxu1 }
 0x151   :  { %v621_v4 = vadd.f32 %v578_v62, %v371_v51  ;;  %v622_v5 = vadd.f32 %v591_v63, %v372_v52  ;;  %v2948_v52 = vor.u32 %v3806_v46, %v2947_v45  ;;  %v3864_v45 = vld [vmem:[#allocation4 + $0xec] sm:$0xf]  ;;  %v3195_v46 = vld [vmem:[#allocation4 + $0xf8] sm:$0xf0] }
 0x153   :  { %v2931_v11 = vmul.f32 -1.442695, %v621_v4  ;;  %v2932_v12 = vmul.f32 -1.442695, %v622_v5  ;;  %928 = vmatpush.bf16.msra.mxu2 %v2948_v52  ;;  %v3171_v52 = vld [vmem:[#allocation4 + $0xd0] sm:$0xf0] }
 0x154   :  { %v3174_v55 = vor.u32 %v3859_v50, %v3171_v52  ;;  %v3113_v50 = vld [vmem:[#allocation4 + $0x48] sm:$0xf]  ;;  %v3844_v52 = vld [vmem:[#allocation4 + $0x4c] sm:$0xf] }
 0x155   :  { %4014 = vpow2.f32 %v2931_v11 }
 0x156   :  { %4016 = vpow2.f32 %v2932_v12  ;;  %1235 = vmatpush.bf16.msrb.mxu1 %v3174_v55  ;;  %v3089_v55 = vld [vmem:[#allocation4 + $0x20] sm:$0xf] }
 0x157   :  { %v604_v29 = vpop.f32.mrf.mxu2  ;;  %v617_v30 = vpop.f32.mrf.mxu3  ;;  %1247 = vmatpush.bf16.msrb.mxu2 %v3194_v44 }
 0x158   :  { %v624_v36 = vadd.f32 %v617_v30, %v374_v15  ;;  %v580_v37 = vpop.f32.mrf.mxu0  ;;  %v593_v34 = vpop.f32.mrf.mxu1  ;;  %v623_v0 = vadd.f32 %v604_v29, %v373_v60 }
 0x159   :  { %v3865_v34 = vld [vmem:[#allocation4 + $0xec] sm:$0xf0] }
 0x15a   :  { %v2933_v47 = vmul.f32 -1.442695, %v624_v36 }
 0x15b   :  { %v4015_v51 = vpop.eup %4014 }
 0x15c   :  { %v4017_v53 = vpop.eup %4016  ;;  %v628_v54 = vadd.f32 1.0, %v4015_v51  ;;  %4018 = vpow2.f32 %v2933_v47  ;;  %v3198_v47 = vor.u32 %v3864_v45, %v3195_v46  ;;  %v3170_v51 = vor.u32 %v3861_v49, %v3169_v48 }
 0x15d   :  { %v647_v56 = vadd.f32 1.0, %v4017_v53  ;;  %v3177_v53 = vld [vmem:[#allocation4 + $0xc8] sm:$0xf]  ;;  %v3106_v46 = vor.u32 %v3845_v42, %v3105_v41 }
 0x15e   :  { %4020 = vrcp.f32 %v628_v54  ;;  %v640_v7 = vand.u32 2147483648, %v628_v54  ;;  %v638_v10 = vand.u32 2147483647, %v628_v54  ;;  %vm634_vm14 = vweird.f32 %v628_v54  ;;  %1260 = vmatpush.bf16.msrb.mxu3 %v3198_v47  ;;  %v3107_v47 = vld [vmem:[#allocation4 + $0x50] sm:$0xf0] }
 0x15f   :  { %4022 = vrcp.f32 %v647_v56  ;;  %v606_v58 = vpop.f32.mrf.mxu2  ;;  %v619_v59 = vpop.f32.mrf.mxu3  ;;  %v659_v8 = vand.u32 2147483648, %v647_v56  ;;  %v657_v6 = vand.u32 2147483647, %v647_v56  ;;  %vm653_vm15 = vweird.f32 %v647_v56 }
 0x160   :  { %v641_v14 = vor.u32 1.1754944e-38, %v640_v7  ;;  %vm639_vm2 = vcmp.eq.f32.partialorder %v638_v10, 8.507059e+37  ;;  %v3860_v58 = vld [vmem:[#allocation4 + $0xcc] sm:$0xf]  ;;  %v3179_v59 = vld [vmem:[#allocation4 + $0xd8] sm:$0xf0]  ;;  %v3110_v49 = vor.u32 %v3843_v43, %v3107_v47 }
 0x161   :  { %v660_v17 = vor.u32 1.1754944e-38, %v659_v8  ;;  %vm658_vm3 = vcmp.eq.f32.partialorder %v657_v6, 8.507059e+37  ;;  %v3182_v60 = vor.u32 %v3860_v58, %v3179_v59  ;;  %v3856_v7 = vld [vmem:[#allocation4 + $0xac] sm:$0xf]  ;;  %v3163_v8 = vld [vmem:[#allocation4 + $0xb8] sm:$0xf0] }
 0x162   :  { %v4019_v61 = vpop.eup %4018  ;;  %v3166_v10 = vor.u32 %v3856_v7, %v3163_v8  ;;  %v3853_v6 = vld [vmem:[#allocation4 + $0x8c] sm:$0xf0] }
 0x163   :  { %v667_v62 = vadd.f32 1.0, %v4019_v61  ;;  %v3153_v61 = vld [vmem:[#allocation4 + $0xa0] sm:$0xf]  ;;  %1261 = vmatpush.bf16.msrb.mxu3 %v3182_v60  ;;  %v3839_v60 = vld [vmem:[#allocation4 + $0x24] sm:$0xf] }
 0x164   :  { %v4021_v63 = vpop.eup %4020 }
 0x165   :  { %v4023_v1 = vpop.eup %4022  ;;  %v630_v2 = vmul.f32 %v4021_v63, %v628_v54  ;;  %4024 = vrcp.f32 %v667_v62  ;;  %vm635_vm12 = vweird.f32 %v4021_v63  ;;  %v679_v29 = vand.u32 2147483648, %v667_v62  ;;  %v3862_v54 = vld [vmem:[#allocation4 + $0xd4] sm:$0xf0] }
 0x166   :  { %v649_v3 = vmul.f32 %v4023_v1, %v647_v56  ;;  %4026 = vtanh.f32 %v623_v0  ;;  %vm654_vm13 = vweird.f32 %v4023_v1  ;;  %vm636_vm0 = vmor %vm634_vm14, %vm635_vm12  ;;  %vm673_vm5 = vweird.f32 %v667_v62 }
 0x167   :  { %v631_v4 = vsub.f32 1.0, %v630_v2  ;;  %vm655_vm1 = vmor %vm653_vm15, %vm654_vm13  ;;  %v677_v30 = vand.u32 2147483647, %v667_v62  ;;  %v680_v32 = vor.u32 1.1754944e-38, %v679_v29  ;;  %v3178_v56 = vor.u32 %v3862_v54, %v3177_v53  ;;  %v3161_v2 = vld [vmem:[#allocation4 + $0xa8] sm:$0xf]  ;;  %1262 = vmatpush.bf16.msrb.mxu3 %v3166_v10 }
 0x168   :  { %v650_v5 = vsub.f32 1.0, %v649_v3  ;;  %v3858_v3 = vld [vmem:[#allocation4 + $0xb4] sm:$0xf0]  ;;  %v3123_v29 = vld [vmem:[#allocation4 + $0x70] sm:$0xf0] }
 0x169   :  { %v632_v9 = vmul.f32 %v4021_v63, %v631_v4  ;;  %vm678_vm7 = vcmp.eq.f32.partialorder %v677_v30, 8.507059e+37  ;;  %1248 = vmatpush.bf16.msrb.mxu2 %v3178_v56  ;;  %v3129_v30 = vld [vmem:[#allocation4 + $0x68] sm:$0xf]  ;;  %v3115_v54 = vld [vmem:[#allocation4 + $0x58] sm:$0xf0] }
 0x16a   :  { %v651_v11 = vmul.f32 %v4023_v1, %v650_v5  ;;  %v3162_v5 = vor.u32 %v3858_v3, %v3161_v2  ;;  %v3841_v56 = vld [vmem:[#allocation4 + $0x2c] sm:$0xf0]  ;;  %v3118_v58 = vor.u32 %v3844_v52, %v3115_v54  ;;  %v3842_v2 = vld [vmem:[#allocation4 + $0x34] sm:$0xf0]  ;;  %v3840_v3 = vld [vmem:[#allocation4 + $0x2c] sm:$0xf] }
 0x16b   :  { %v4025_v12 = vpop.eup %4024  ;;  %v633_v13 = vadd.f32 %v4021_v63, %v632_v9  ;;  %v2935_v9 = vld [vmem:[%s4333_s0 + $0x20] sm:$0xff]  ;;  %v3090_v59 = vor.u32 %v3841_v56, %v3089_v55 }
 0x16c   :  { %v652_v15 = vadd.f32 %v4023_v1, %v651_v11  ;;  %v669_v16 = vmul.f32 %v4025_v12, %v667_v62  ;;  %v4027_v19 = vpop.eup %4026  ;;  %vm674_vm4 = vweird.f32 %v4025_v12  ;;  %v3857_v62 = vld [vmem:[#allocation4 + $0xac] sm:$0xf0]  ;;  %v3137_v11 = vld [vmem:[#allocation4 + $0x80] sm:$0xf] }
 0x16d   :  { %v637_v18 = vsel %vm636_vm0, %v4021_v63, %v633_v13  ;;  %vm675_vm6 = vmor %vm673_vm5, %vm674_vm4  ;;  %v3855_v63 = vld [vmem:[#allocation4 + $0xa4] sm:$0xf]  ;;  %v3154_v0 = vor.u32 %v3857_v62, %v3153_v61  ;;  %1249 = vmatpush.bf16.msrb.mxu2 %v3162_v5  ;;  %v3138_v13 = vor.u32 %v3853_v6, %v3137_v11  ;;  %v3091_v61 = vld [vmem:[#allocation4 + $0x30] sm:$0xf0] }
 0x16e   :  { %v642_v20 = vsel %vm639_vm2, %v641_v14, %v637_v18  ;;  %v656_v21 = vsel %vm655_vm1, %v4023_v1, %v652_v15  ;;  %v670_v22 = vsub.f32 1.0, %v669_v16  ;;  %v3155_v1 = vld [vmem:[#allocation4 + $0xb0] sm:$0xf0]  ;;  %v3145_v15 = vld [vmem:[#allocation4 + $0x88] sm:$0xf] }
 0x16f   :  { %v661_v23 = vsel %vm658_vm3, %v660_v17, %v656_v21  ;;  %v685_v24 = vmul.f32 %v4027_v19, %v642_v20  ;;  %v3158_v4 = vor.u32 %v3855_v63, %v3155_v1  ;;  %v3139_v14 = vld [vmem:[#allocation4 + $0x90] sm:$0xf0]  ;;  %v3854_v16 = vld [vmem:[#allocation4 + $0x94] sm:$0xf0]  ;;  %v3852_v19 = vld [vmem:[#allocation4 + $0x8c] sm:$0xf]  ;;  %v697_v21 = vunpack.c.l.bf16 %v2935_v9 }
 0x170   :  { %v684_v25 = vmul.f32 %v661_v23, %v4209_v57  ;;  %v671_v26 = vmul.f32 %v4025_v12, %v670_v22  ;;  %v3185_v57 = vld [vmem:[#allocation4 + $0xe0] sm:$0xf]  ;;  %v3146_v18 = vor.u32 %v3854_v16, %v3145_v15  ;;  %v3147_v20 = vld [vmem:[#allocation4 + $0x98] sm:$0xf0]  ;;  %v698_v22 = vunpack.c.h.bf16 %v2935_v9  ;;  %v3097_v62 = vld [vmem:[#allocation4 + $0x28] sm:$0xf] }
 0x171   :  { %v3186_v39 = vor.u32 %v3865_v34, %v3185_v57  ;;  %1236 = vmatpush.bf16.msrb.mxu1 %v3158_v4  ;;  %v3150_v23 = vor.u32 %v3852_v19, %v3147_v20  ;;  %v3131_v57 = vld [vmem:[#allocation4 + $0x78] sm:$0xf0]  ;;  %v3094_v1 = vor.u32 %v3839_v60, %v3091_v61  ;;  %v3098_v9 = vor.u32 %v3842_v2, %v3097_v62  ;;  %v3073_v11 = vld [vmem:[#allocation4] sm:$0xf]  ;;  %v3837_v6 = vld [vmem:[#allocation4 + $0xc] sm:$0xf0] }
 0x172   :  { %v4226_v27 = vadd.f32 %v685_v24, %v684_v25  ;;  %v672_v28 = vadd.f32 %v4025_v12, %v671_v26  ;;  %1250 = vmatpush.bf16.msrb.mxu2 %v3146_v18  ;;  %v3121_v24 = vld [vmem:[#allocation4 + $0x60] sm:$0xf]  ;;  %v3849_v25 = vld [vmem:[#allocation4 + $0x6c] sm:$0xf0]  ;;  %v3847_v26 = vld [vmem:[#allocation4 + $0x64] sm:$0xf] }
 0x173   :  { %1221 = vmatpush.bf16.msrb.mxu0 %v3186_v39  ;;  %1263 = vmatpush.bf16.msrb.mxu3 %v3150_v23  ;;  %v4238_v39 = vld [vmem:[%s4333_s0 + $0x28] sm:$0xff]  ;;  %v3099_v4 = vld [vmem:[#allocation4 + $0x38] sm:$0xf0]  ;;  %v3838_v16 = vld [vmem:[#allocation4 + $0x14] sm:$0xf0] }
 0x174   :  { %4028 = vtanh.f32 %v4226_v27  ;;  %v676_v31 = vsel %vm675_vm6, %v4025_v12, %v672_v28  ;;  %v3851_v12 = vld [vmem:[#allocation4 + $0x84] sm:$0xf]  ;;  %v3122_v28 = vor.u32 %v3849_v25, %v3121_v24  ;;  %v700_v48 = vunpack.c.h.bf16 %v4238_v39  ;;  %v3081_v15 = vld [vmem:[#allocation4 + $0x8] sm:$0xf]  ;;  %v3836_v19 = vld [vmem:[#allocation4 + $0xc] sm:$0xf] }
 0x175   :  { %v681_v35 = vsel %vm678_vm7, %v680_v32, %v676_v31  ;;  %v3142_v17 = vor.u32 %v3851_v12, %v3139_v14  ;;  %v3850_v31 = vld [vmem:[#allocation4 + $0x74] sm:$0xf0]  ;;  %v3102_v10 = vor.u32 %v3840_v3, %v3099_v4  ;;  %v3835_v12 = vld [vmem:[#allocation4 + $0x4] sm:$0xf]  ;;  %v3075_v14 = vld [vmem:[#allocation4 + $0x10] sm:$0xf0] }
 0x176   :  { %v3078_v18 = vor.u32 %v3835_v12, %v3075_v14  ;;  %v3083_v20 = vld [vmem:[#allocation4 + $0x18] sm:$0xf0]  ;;  %v3898_v12 = vld [vmem:[#allocation4 + $0xf4] sm:$0xf0] }
 0x177   :  { %1222 = vmatpush.bf16.msrb.mxu0 %v3170_v51  ;;  %1237 = vmatpush.bf16.msrb.mxu1 %v3142_v17  ;;  %v3846_v51 = vld [vmem:[#allocation4 + $0x54] sm:$0xf0]  ;;  %v3086_v25 = vor.u32 %v3836_v19, %v3083_v20  ;;  %v3893_v19 = vld [vmem:[#allocation4 + $0xcc] sm:$0xf0]  ;;  %v3891_v20 = vld [vmem:[#allocation4 + $0xc4] sm:$0xf] }
 0x178   :  { %v3114_v53 = vor.u32 %v3846_v51, %v3113_v50 }
 0x17a   :  { %v4029_v33 = vpop.eup %4028 }
 0x17b   :  { %v688_v36 = vmul.f32 %v4029_v33, %v681_v35  ;;  %1223 = vmatpush.bf16.msrb.mxu0 %v3154_v0  ;;  %v3126_v35 = vor.u32 %v3847_v26, %v3123_v29 }
 0x17d   :  { %v691_v37 = vpack.c.bf16 %v688_v36, %v688_v36  ;;  %v3130_v36 = vor.u32 %v3850_v31, %v3129_v30  ;;  %1238 = vmatpush.bf16.msrb.mxu1 %v3126_v35  ;;  %v699_v30 = vunpack.c.l.bf16 %v4238_v39 }
 0x17f   :  { %2934 = vst [vmem:[%s4337_s4 + $0x4] sm:$0xf] %v691_v37  ;;  %903 = vmatmul.bf16.vlgmr.msra.gmra.mxu0 %v691_v37  ;;  %916 = vmatmul.bf16.vlgmr.msra.gmra.mxu1 %v691_v37 }
 0x180   :  { %929 = vmatmul.bf16.vlgmr.msra.gmra.mxu2 %v691_v37  ;;  %942 = vmatmul.bf16.vlgmr.msra.gmra.mxu3 %v691_v37  ;;  %v3848_v37 = vld [vmem:[#allocation4 + $0x6c] sm:$0xf] }
 0x181   :  { %1224 = vmatpush.bf16.msrb.mxu0 %v3138_v13  ;;  %v3134_v40 = vor.u32 %v3848_v37, %v3131_v57  ;;  %1251 = vmatpush.bf16.msrb.mxu2 %v3130_v36  ;;  %v3074_v13 = vor.u32 %v3837_v6, %v3073_v11  ;;  %v3321_v11 = vld [vmem:[#allocation4 + $0xf0] sm:$0xf0]  ;;  %v3327_v6 = vld [vmem:[#allocation4 + $0xe8] sm:$0xf] }
 0x182   :  { %1239 = vmatpush.bf16.msrb.mxu1 %v3110_v49  ;;  %v3328_v14 = vor.u32 %v3898_v12, %v3327_v6  ;;  %v3239_v6 = vld [vmem:[#allocation4 + $0x40] sm:$0xf]  ;;  %v3877_v12 = vld [vmem:[#allocation4 + $0x4c] sm:$0xf0] }
 0x183   :  { %1264 = vmatpush.bf16.msrb.mxu3 %v3134_v40 }
 0x185   :  { %1225 = vmatpush.bf16.msrb.mxu0 %v3122_v28  ;;  %1252 = vmatpush.bf16.msrb.mxu2 %v3114_v53 }
 0x186   :  { %1240 = vmatpush.bf16.msrb.mxu1 %v3094_v1 }
 0x187   :  { %1265 = vmatpush.bf16.msrb.mxu3 %v3118_v58 }
 0x189   :  { %1226 = vmatpush.bf16.msrb.mxu0 %v3106_v46  ;;  %1253 = vmatpush.bf16.msrb.mxu2 %v3098_v9  ;;  %v3895_v9 = vld [vmem:[#allocation4 + $0xe4] sm:$0xf] }
 0x18a   :  { %1241 = vmatpush.bf16.msrb.mxu1 %v3078_v18  ;;  %v3303_v18 = vld [vmem:[#allocation4 + $0xc0] sm:$0xf] }
 0x18b   :  { %1266 = vmatpush.bf16.msrb.mxu3 %v3102_v10 }
 0x18d   :  { %1227 = vmatpush.bf16.msrb.mxu0 %v3090_v59 }
 0x18f   :  { %1267 = vmatpush.bf16.msrb.mxu3 %v3086_v25 }
 0x191   :  { %1228 = vmatpush.bf16.msrb.mxu0 %v3074_v13  ;;  %v3324_v13 = vor.u32 %v3895_v9, %v3321_v11 }
 0x193   :  { %1560 = vmatpush.bf16.msra.mxu1 %v3324_v13  ;;  %v3875_v13 = vld [vmem:[#allocation4 + $0x44] sm:$0xf] }
 0x1fc   :  { %v904_v32 = vpop.f32.mrf.mxu0  ;;  %v917_v33 = vpop.f32.mrf.mxu1 }
 0x1fd   :  { %v947_v34 = vadd.f32 %v904_v32, %v697_v21  ;;  %v948_v38 = vadd.f32 %v917_v33, %v698_v22  ;;  %v3082_v22 = vor.u32 %v3838_v16, %v3081_v15  ;;  %v3896_v15 = vld [vmem:[#allocation4 + $0xec] sm:$0xf]  ;;  %v3329_v16 = vld [vmem:[#allocation4 + $0xf8] sm:$0xf0] }
 0x1ff   :  { %v3065_v44 = vmul.f32 -1.442695, %v947_v34  ;;  %v3066_v45 = vmul.f32 -1.442695, %v948_v38  ;;  %1254 = vmatpush.bf16.msrb.mxu2 %v3082_v22  ;;  %v3305_v22 = vld [vmem:[#allocation4 + $0xd0] sm:$0xf0] }
 0x200   :  { %v3308_v25 = vor.u32 %v3891_v20, %v3305_v22  ;;  %v3247_v20 = vld [vmem:[#allocation4 + $0x48] sm:$0xf]  ;;  %v3876_v22 = vld [vmem:[#allocation4 + $0x4c] sm:$0xf] }
 0x201   :  { %4030 = vpow2.f32 %v3065_v44 }
 0x202   :  { %4032 = vpow2.f32 %v3066_v45  ;;  %1561 = vmatpush.bf16.msra.mxu1 %v3308_v25  ;;  %v3223_v25 = vld [vmem:[#allocation4 + $0x20] sm:$0xf] }
 0x203   :  { %v930_v63 = vpop.f32.mrf.mxu2  ;;  %v943_v0 = vpop.f32.mrf.mxu3  ;;  %1573 = vmatpush.bf16.msra.mxu2 %v3328_v14 }
 0x204   :  { %v950_v5 = vadd.f32 %v943_v0, %v700_v48  ;;  %v906_v7 = vpop.f32.mrf.mxu0  ;;  %v919_v8 = vpop.f32.mrf.mxu1  ;;  %v949_v35 = vadd.f32 %v930_v63, %v699_v30 }
 0x205   :  { %v3897_v8 = vld [vmem:[#allocation4 + $0xec] sm:$0xf0] }
 0x206   :  { %v3067_v17 = vmul.f32 -1.442695, %v950_v5 }
 0x207   :  { %v4031_v21 = vpop.eup %4030 }
 0x208   :  { %v4033_v23 = vpop.eup %4032  ;;  %v954_v24 = vadd.f32 1.0, %v4031_v21  ;;  %4034 = vpow2.f32 %v3067_v17  ;;  %v3332_v17 = vor.u32 %v3896_v15, %v3329_v16  ;;  %v3304_v21 = vor.u32 %v3893_v19, %v3303_v18 }
 0x209   :  { %v973_v26 = vadd.f32 1.0, %v4033_v23  ;;  %v3311_v23 = vld [vmem:[#allocation4 + $0xc8] sm:$0xf]  ;;  %v3240_v16 = vor.u32 %v3877_v12, %v3239_v6 }
 0x20a   :  { %4036 = vrcp.f32 %v954_v24  ;;  %v966_v40 = vand.u32 2147483648, %v954_v24  ;;  %v964_v43 = vand.u32 2147483647, %v954_v24  ;;  %vm960_vm10 = vweird.f32 %v954_v24  ;;  %1586 = vmatpush.bf16.msra.mxu3 %v3332_v17  ;;  %v3241_v17 = vld [vmem:[#allocation4 + $0x50] sm:$0xf0] }
 0x20b   :  { %4038 = vrcp.f32 %v973_v26  ;;  %v932_v28 = vpop.f32.mrf.mxu2  ;;  %v945_v29 = vpop.f32.mrf.mxu3  ;;  %v985_v41 = vand.u32 2147483648, %v973_v26  ;;  %v983_v39 = vand.u32 2147483647, %v973_v26  ;;  %vm979_vm11 = vweird.f32 %v973_v26 }
 0x20c   :  { %v967_v47 = vor.u32 1.1754944e-38, %v966_v40  ;;  %vm965_vm14 = vcmp.eq.f32.partialorder %v964_v43, 8.507059e+37  ;;  %v3892_v28 = vld [vmem:[#allocation4 + $0xcc] sm:$0xf]  ;;  %v3313_v29 = vld [vmem:[#allocation4 + $0xd8] sm:$0xf0]  ;;  %v3244_v19 = vor.u32 %v3875_v13, %v3241_v17 }
 0x20d   :  { %v986_v50 = vor.u32 1.1754944e-38, %v985_v41  ;;  %vm984_vm15 = vcmp.eq.f32.partialorder %v983_v39, 8.507059e+37  ;;  %v3316_v30 = vor.u32 %v3892_v28, %v3313_v29  ;;  %v3888_v40 = vld [vmem:[#allocation4 + $0xac] sm:$0xf]  ;;  %v3297_v41 = vld [vmem:[#allocation4 + $0xb8] sm:$0xf0] }
 0x20e   :  { %v4035_v31 = vpop.eup %4034  ;;  %v3300_v43 = vor.u32 %v3888_v40, %v3297_v41  ;;  %v3885_v39 = vld [vmem:[#allocation4 + $0x8c] sm:$0xf0] }
 0x20f   :  { %v993_v32 = vadd.f32 1.0, %v4035_v31  ;;  %v3287_v31 = vld [vmem:[#allocation4 + $0xa0] sm:$0xf]  ;;  %1587 = vmatpush.bf16.msra.mxu3 %v3316_v30  ;;  %v3871_v30 = vld [vmem:[#allocation4 + $0x24] sm:$0xf] }
 0x210   :  { %v4037_v33 = vpop.eup %4036 }
 0x211   :  { %v4039_v36 = vpop.eup %4038  ;;  %v956_v37 = vmul.f32 %v4037_v33, %v954_v24  ;;  %4040 = vrcp.f32 %v993_v32  ;;  %vm961_vm8 = vweird.f32 %v4037_v33  ;;  %v1005_v63 = vand.u32 2147483648, %v993_v32  ;;  %v3894_v24 = vld [vmem:[#allocation4 + $0xd4] sm:$0xf0] }
 0x212   :  { %v975_v57 = vmul.f32 %v4039_v36, %v973_v26  ;;  %4042 = vtanh.f32 %v949_v35  ;;  %vm980_vm9 = vweird.f32 %v4039_v36  ;;  %vm962_vm12 = vmor %vm960_vm10, %vm961_vm8  ;;  %vm999_vm1 = vweird.f32 %v993_v32 }
 0x213   :  { %v957_v34 = vsub.f32 1.0, %v956_v37  ;;  %vm981_vm13 = vmor %vm979_vm11, %vm980_vm9  ;;  %v1003_v0 = vand.u32 2147483647, %v993_v32  ;;  %v1006_v2 = vor.u32 1.1754944e-38, %v1005_v63  ;;  %v3312_v26 = vor.u32 %v3894_v24, %v3311_v23  ;;  %v3295_v37 = vld [vmem:[#allocation4 + $0xa8] sm:$0xf]  ;;  %1588 = vmatpush.bf16.msra.mxu3 %v3300_v43 }
 0x214   :  { %v976_v38 = vsub.f32 1.0, %v975_v57  ;;  %v3890_v57 = vld [vmem:[#allocation4 + $0xb4] sm:$0xf0]  ;;  %v3257_v63 = vld [vmem:[#allocation4 + $0x70] sm:$0xf0] }
 0x215   :  { %v958_v42 = vmul.f32 %v4037_v33, %v957_v34  ;;  %vm1004_vm3 = vcmp.eq.f32.partialorder %v1003_v0, 8.507059e+37  ;;  %1574 = vmatpush.bf16.msra.mxu2 %v3312_v26  ;;  %v3263_v0 = vld [vmem:[#allocation4 + $0x68] sm:$0xf]  ;;  %v3249_v24 = vld [vmem:[#allocation4 + $0x58] sm:$0xf0] }
 0x216   :  { %v977_v44 = vmul.f32 %v4039_v36, %v976_v38  ;;  %v3296_v38 = vor.u32 %v3890_v57, %v3295_v37  ;;  %v3873_v26 = vld [vmem:[#allocation4 + $0x2c] sm:$0xf0]  ;;  %v3252_v28 = vor.u32 %v3876_v22, %v3249_v24  ;;  %v3874_v37 = vld [vmem:[#allocation4 + $0x34] sm:$0xf0]  ;;  %v3872_v57 = vld [vmem:[#allocation4 + $0x2c] sm:$0xf] }
 0x217   :  { %v4041_v45 = vpop.eup %4040  ;;  %v959_v46 = vadd.f32 %v4037_v33, %v958_v42  ;;  %v3069_v42 = vld [vmem:[%s4333_s0 + $0x30] sm:$0xff]  ;;  %v3224_v29 = vor.u32 %v3873_v26, %v3223_v25 }
 0x218   :  { %v978_v48 = vadd.f32 %v4039_v36, %v977_v44  ;;  %v995_v49 = vmul.f32 %v4041_v45, %v993_v32  ;;  %v4043_v52 = vpop.eup %4042  ;;  %vm1000_vm0 = vweird.f32 %v4041_v45  ;;  %v3889_v32 = vld [vmem:[#allocation4 + $0xac] sm:$0xf0]  ;;  %v3271_v44 = vld [vmem:[#allocation4 + $0x80] sm:$0xf] }
 0x219   :  { %v963_v51 = vsel %vm962_vm12, %v4037_v33, %v959_v46  ;;  %vm1001_vm2 = vmor %vm999_vm1, %vm1000_vm0  ;;  %v3887_v33 = vld [vmem:[#allocation4 + $0xa4] sm:$0xf]  ;;  %v3288_v35 = vor.u32 %v3889_v32, %v3287_v31  ;;  %1575 = vmatpush.bf16.msra.mxu2 %v3296_v38  ;;  %v3272_v46 = vor.u32 %v3885_v39, %v3271_v44  ;;  %v3225_v31 = vld [vmem:[#allocation4 + $0x30] sm:$0xf0] }
 0x21a   :  { %v968_v53 = vsel %vm965_vm14, %v967_v47, %v963_v51  ;;  %v982_v54 = vsel %vm981_vm13, %v4039_v36, %v978_v48  ;;  %v996_v55 = vsub.f32 1.0, %v995_v49  ;;  %v3289_v36 = vld [vmem:[#allocation4 + $0xb0] sm:$0xf0]  ;;  %v3279_v48 = vld [vmem:[#allocation4 + $0x88] sm:$0xf] }
 0x21b   :  { %v987_v56 = vsel %vm984_vm15, %v986_v50, %v982_v54  ;;  %v1011_v58 = vmul.f32 %v4043_v52, %v968_v53  ;;  %v3292_v34 = vor.u32 %v3887_v33, %v3289_v36  ;;  %v3273_v47 = vld [vmem:[#allocation4 + $0x90] sm:$0xf0]  ;;  %v3886_v49 = vld [vmem:[#allocation4 + $0x94] sm:$0xf0]  ;;  %v3884_v52 = vld [vmem:[#allocation4 + $0x8c] sm:$0xf]  ;;  %v1023_v54 = vunpack.c.l.bf16 %v3069_v42 }
 0x21c   :  { %v1010_v59 = vmul.f32 %v987_v56, %v4226_v27  ;;  %v997_v60 = vmul.f32 %v4041_v45, %v996_v55  ;;  %v3319_v27 = vld [vmem:[#allocation4 + $0xe0] sm:$0xf]  ;;  %v3280_v51 = vor.u32 %v3886_v49, %v3279_v48  ;;  %v3281_v53 = vld [vmem:[#allocation4 + $0x98] sm:$0xf0]  ;;  %v1024_v55 = vunpack.c.h.bf16 %v3069_v42  ;;  %v3231_v32 = vld [vmem:[#allocation4 + $0x28] sm:$0xf] }
 0x21d   :  { %v3320_v10 = vor.u32 %v3897_v8, %v3319_v27  ;;  %1562 = vmatpush.bf16.msra.mxu1 %v3292_v34  ;;  %v3284_v56 = vor.u32 %v3884_v52, %v3281_v53  ;;  %v3265_v27 = vld [vmem:[#allocation4 + $0x78] sm:$0xf0]  ;;  %v3228_v36 = vor.u32 %v3871_v30, %v3225_v31  ;;  %v3232_v42 = vor.u32 %v3874_v37, %v3231_v32  ;;  %v3207_v44 = vld [vmem:[#allocation4] sm:$0xf]  ;;  %v3869_v39 = vld [vmem:[#allocation4 + $0xc] sm:$0xf0] }
 0x21e   :  { %v4243_v61 = vadd.f32 %v1011_v58, %v1010_v59  ;;  %v998_v62 = vadd.f32 %v4041_v45, %v997_v60  ;;  %1576 = vmatpush.bf16.msra.mxu2 %v3280_v51  ;;  %v3255_v58 = vld [vmem:[#allocation4 + $0x60] sm:$0xf]  ;;  %v3881_v59 = vld [vmem:[#allocation4 + $0x6c] sm:$0xf0]  ;;  %v3879_v60 = vld [vmem:[#allocation4 + $0x64] sm:$0xf] }
 0x21f   :  { %1547 = vmatpush.bf16.msra.mxu0 %v3320_v10  ;;  %1589 = vmatpush.bf16.msra.mxu3 %v3284_v56  ;;  %v4255_v10 = vld [vmem:[%s4333_s0 + $0x38] sm:$0xff]  ;;  %v3215_v48 = vld [vmem:[#allocation4 + $0x8] sm:$0xf]  ;;  %v3868_v52 = vld [vmem:[#allocation4 + $0xc] sm:$0xf] }
 0x220   :  { %4044 = vtanh.f32 %v4243_v61  ;;  %v1002_v1 = vsel %vm1001_vm2, %v4041_v45, %v998_v62  ;;  %v3883_v45 = vld [vmem:[#allocation4 + $0x84] sm:$0xf]  ;;  %v3256_v62 = vor.u32 %v3881_v59, %v3255_v58  ;;  %v1026_v18 = vunpack.c.h.bf16 %v4255_v10  ;;  %v3233_v34 = vld [vmem:[#allocation4 + $0x38] sm:$0xf0]  ;;  %v3870_v49 = vld [vmem:[#allocation4 + $0x14] sm:$0xf0] }
 0x221   :  { %v1007_v4 = vsel %vm1004_vm3, %v1006_v2, %v1002_v1  ;;  %v3276_v50 = vor.u32 %v3883_v45, %v3273_v47  ;;  %v3882_v1 = vld [vmem:[#allocation4 + $0x74] sm:$0xf0]  ;;  %v3236_v43 = vor.u32 %v3872_v57, %v3233_v34  ;;  %v3867_v45 = vld [vmem:[#allocation4 + $0x4] sm:$0xf]  ;;  %v3209_v47 = vld [vmem:[#allocation4 + $0x10] sm:$0xf0] }
 0x222   :  { %v3212_v51 = vor.u32 %v3867_v45, %v3209_v47  ;;  %v3217_v53 = vld [vmem:[#allocation4 + $0x18] sm:$0xf0]  ;;  %v3930_v45 = vld [vmem:[#allocation4 + $0xf4] sm:$0xf0] }
 0x223   :  { %1548 = vmatpush.bf16.msra.mxu0 %v3304_v21  ;;  %1563 = vmatpush.bf16.msra.mxu1 %v3276_v50  ;;  %v3878_v21 = vld [vmem:[#allocation4 + $0x54] sm:$0xf0]  ;;  %v3220_v59 = vor.u32 %v3868_v52, %v3217_v53  ;;  %v3925_v52 = vld [vmem:[#allocation4 + $0xcc] sm:$0xf0]  ;;  %v3923_v53 = vld [vmem:[#allocation4 + $0xc4] sm:$0xf] }
 0x224   :  { %v3248_v23 = vor.u32 %v3878_v21, %v3247_v20 }
 0x226   :  { %v4045_v3 = vpop.eup %4044 }
 0x227   :  { %v1014_v5 = vmul.f32 %v4045_v3, %v1007_v4  ;;  %1549 = vmatpush.bf16.msra.mxu0 %v3288_v35  ;;  %v3260_v4 = vor.u32 %v3879_v60, %v3257_v63 }
 0x229   :  { %v1017_v7 = vpack.c.bf16 %v1014_v5, %v1014_v5  ;;  %v3264_v5 = vor.u32 %v3882_v1, %v3263_v0  ;;  %1564 = vmatpush.bf16.msra.mxu1 %v3260_v4  ;;  %v1025_v0 = vunpack.c.l.bf16 %v4255_v10 }
 0x22b   :  { %3068 = vst [vmem:[%s4337_s4 + $0x8] sm:$0xf] %v1017_v7  ;;  %1229 = vmatmul.bf16.vlgmr.msrb.gmra.mxu0 %v1017_v7  ;;  %1242 = vmatmul.bf16.vlgmr.msrb.gmra.mxu1 %v1017_v7 }
 0x22c   :  { %1255 = vmatmul.bf16.vlgmr.msrb.gmra.mxu2 %v1017_v7  ;;  %1268 = vmatmul.bf16.vlgmr.msrb.gmra.mxu3 %v1017_v7  ;;  %v3880_v7 = vld [vmem:[#allocation4 + $0x6c] sm:$0xf] }
 0x22d   :  { %1550 = vmatpush.bf16.msra.mxu0 %v3272_v46  ;;  %v3268_v11 = vor.u32 %v3880_v7, %v3265_v27  ;;  %1577 = vmatpush.bf16.msra.mxu2 %v3264_v5  ;;  %v3208_v46 = vor.u32 %v3869_v39, %v3207_v44  ;;  %v3455_v44 = vld [vmem:[#allocation4 + $0xf0] sm:$0xf0]  ;;  %v3461_v39 = vld [vmem:[#allocation4 + $0xe8] sm:$0xf] }
 0x22e   :  { %1565 = vmatpush.bf16.msra.mxu1 %v3244_v19  ;;  %v3462_v47 = vor.u32 %v3930_v45, %v3461_v39  ;;  %v3373_v39 = vld [vmem:[#allocation4 + $0x40] sm:$0xf]  ;;  %v3909_v45 = vld [vmem:[#allocation4 + $0x4c] sm:$0xf0] }
 0x22f   :  { %1590 = vmatpush.bf16.msra.mxu3 %v3268_v11 }
 0x231   :  { %1551 = vmatpush.bf16.msra.mxu0 %v3256_v62  ;;  %1578 = vmatpush.bf16.msra.mxu2 %v3248_v23 }
 0x232   :  { %1566 = vmatpush.bf16.msra.mxu1 %v3228_v36 }
 0x233   :  { %1591 = vmatpush.bf16.msra.mxu3 %v3252_v28 }
 0x235   :  { %1552 = vmatpush.bf16.msra.mxu0 %v3240_v16  ;;  %1579 = vmatpush.bf16.msra.mxu2 %v3232_v42  ;;  %v3927_v42 = vld [vmem:[#allocation4 + $0xe4] sm:$0xf] }
 0x236   :  { %1567 = vmatpush.bf16.msra.mxu1 %v3212_v51  ;;  %v3437_v51 = vld [vmem:[#allocation4 + $0xc0] sm:$0xf] }
 0x237   :  { %1592 = vmatpush.bf16.msra.mxu3 %v3236_v43 }
 0x239   :  { %1553 = vmatpush.bf16.msra.mxu0 %v3224_v29 }
 0x23b   :  { %1593 = vmatpush.bf16.msra.mxu3 %v3220_v59 }
 0x23d   :  { %1554 = vmatpush.bf16.msra.mxu0 %v3208_v46  ;;  %v3458_v46 = vor.u32 %v3927_v42, %v3455_v44 }
 0x23f   :  { %1886 = vmatpush.bf16.msrb.mxu1 %v3458_v46  ;;  %v3907_v46 = vld [vmem:[#allocation4 + $0x44] sm:$0xf] }
 0x2a8   :  { %v1230_v2 = vpop.f32.mrf.mxu0  ;;  %v1243_v3 = vpop.f32.mrf.mxu1 }
 0x2a9   :  { %v1273_v8 = vadd.f32 %v1230_v2, %v1023_v54  ;;  %v1274_v9 = vadd.f32 %v1243_v3, %v1024_v55  ;;  %v3216_v55 = vor.u32 %v3870_v49, %v3215_v48  ;;  %v3928_v48 = vld [vmem:[#allocation4 + $0xec] sm:$0xf]  ;;  %v3463_v49 = vld [vmem:[#allocation4 + $0xf8] sm:$0xf0] }
 0x2ab   :  { %v3199_v14 = vmul.f32 -1.442695, %v1273_v8  ;;  %v3200_v15 = vmul.f32 -1.442695, %v1274_v9  ;;  %1580 = vmatpush.bf16.msra.mxu2 %v3216_v55  ;;  %v3439_v55 = vld [vmem:[#allocation4 + $0xd0] sm:$0xf0] }
 0x2ac   :  { %v3442_v59 = vor.u32 %v3923_v53, %v3439_v55  ;;  %v3381_v53 = vld [vmem:[#allocation4 + $0x48] sm:$0xf]  ;;  %v3908_v55 = vld [vmem:[#allocation4 + $0x4c] sm:$0xf] }
 0x2ad   :  { %4046 = vpow2.f32 %v3199_v14 }
 0x2ae   :  { %4048 = vpow2.f32 %v3200_v15  ;;  %1887 = vmatpush.bf16.msrb.mxu1 %v3442_v59  ;;  %v3357_v59 = vld [vmem:[#allocation4 + $0x20] sm:$0xf] }
 0x2af   :  { %v1256_v33 = vpop.f32.mrf.mxu2  ;;  %v1269_v35 = vpop.f32.mrf.mxu3  ;;  %1899 = vmatpush.bf16.msrb.mxu2 %v3462_v47 }
 0x2b0   :  { %v1276_v38 = vadd.f32 %v1269_v35, %v1026_v18  ;;  %v1232_v40 = vpop.f32.mrf.mxu0  ;;  %v1245_v41 = vpop.f32.mrf.mxu1  ;;  %v1275_v4 = vadd.f32 %v1256_v33, %v1025_v0 }
 0x2b1   :  { %v3929_v41 = vld [vmem:[#allocation4 + $0xec] sm:$0xf0] }
 0x2b2   :  { %v3201_v50 = vmul.f32 -1.442695, %v1276_v38 }
 0x2b3   :  { %v4047_v54 = vpop.eup %4046 }
 0x2b4   :  { %v4049_v56 = vpop.eup %4048  ;;  %v1280_v58 = vadd.f32 1.0, %v4047_v54  ;;  %4050 = vpow2.f32 %v3201_v50  ;;  %v3466_v50 = vor.u32 %v3928_v48, %v3463_v49  ;;  %v3438_v54 = vor.u32 %v3925_v52, %v3437_v51 }
 0x2b5   :  { %v1299_v60 = vadd.f32 1.0, %v4049_v56  ;;  %v3445_v56 = vld [vmem:[#allocation4 + $0xc8] sm:$0xf]  ;;  %v3374_v49 = vor.u32 %v3909_v45, %v3373_v39 }
 0x2b6   :  { %4052 = vrcp.f32 %v1280_v58  ;;  %v1292_v11 = vand.u32 2147483648, %v1280_v58  ;;  %v1290_v13 = vand.u32 2147483647, %v1280_v58  ;;  %vm1286_vm6 = vweird.f32 %v1280_v58  ;;  %1912 = vmatpush.bf16.msrb.mxu3 %v3466_v50  ;;  %v3375_v50 = vld [vmem:[#allocation4 + $0x50] sm:$0xf0] }
 0x2b7   :  { %4054 = vrcp.f32 %v1299_v60  ;;  %v1258_v62 = vpop.f32.mrf.mxu2  ;;  %v1271_v63 = vpop.f32.mrf.mxu3  ;;  %v1311_v6 = vand.u32 2147483648, %v1299_v60  ;;  %v1309_v10 = vand.u32 2147483647, %v1299_v60  ;;  %vm1305_vm7 = vweird.f32 %v1299_v60 }
 0x2b8   :  { %v1293_v17 = vor.u32 1.1754944e-38, %v1292_v11  ;;  %vm1291_vm10 = vcmp.eq.f32.partialorder %v1290_v13, 8.507059e+37  ;;  %v3924_v62 = vld [vmem:[#allocation4 + $0xcc] sm:$0xf]  ;;  %v3447_v63 = vld [vmem:[#allocation4 + $0xd8] sm:$0xf0]  ;;  %v3378_v52 = vor.u32 %v3907_v46, %v3375_v50 }
 0x2b9   :  { %v1312_v20 = vor.u32 1.1754944e-38, %v1311_v6  ;;  %vm1310_vm11 = vcmp.eq.f32.partialorder %v1309_v10, 8.507059e+37  ;;  %v3450_v0 = vor.u32 %v3924_v62, %v3447_v63  ;;  %v3920_v11 = vld [vmem:[#allocation4 + $0xac] sm:$0xf]  ;;  %v3431_v6 = vld [vmem:[#allocation4 + $0xb8] sm:$0xf0] }
 0x2ba   :  { %v4051_v1 = vpop.eup %4050  ;;  %v3434_v13 = vor.u32 %v3920_v11, %v3431_v6  ;;  %v3917_v10 = vld [vmem:[#allocation4 + $0x8c] sm:$0xf0] }
 0x2bb   :  { %v1319_v2 = vadd.f32 1.0, %v4051_v1  ;;  %v3421_v1 = vld [vmem:[#allocation4 + $0xa0] sm:$0xf]  ;;  %1913 = vmatpush.bf16.msrb.mxu3 %v3450_v0  ;;  %v3903_v0 = vld [vmem:[#allocation4 + $0x24] sm:$0xf] }
 0x2bc   :  { %v4053_v3 = vpop.eup %4052 }
 0x2bd   :  { %v4055_v5 = vpop.eup %4054  ;;  %v1282_v7 = vmul.f32 %v4053_v3, %v1280_v58  ;;  %4056 = vrcp.f32 %v1319_v2  ;;  %vm1287_vm4 = vweird.f32 %v4053_v3  ;;  %v1331_v33 = vand.u32 2147483648, %v1319_v2  ;;  %v3926_v58 = vld [vmem:[#allocation4 + $0xd4] sm:$0xf0] }
 0x2be   :  { %v1301_v27 = vmul.f32 %v4055_v5, %v1299_v60  ;;  %4058 = vtanh.f32 %v1275_v4  ;;  %vm1306_vm5 = vweird.f32 %v4055_v5  ;;  %vm1288_vm8 = vmor %vm1286_vm6, %vm1287_vm4  ;;  %vm1325_vm13 = vweird.f32 %v1319_v2 }
 0x2bf   :  { %v1283_v8 = vsub.f32 1.0, %v1282_v7  ;;  %vm1307_vm9 = vmor %vm1305_vm7, %vm1306_vm5  ;;  %v1329_v35 = vand.u32 2147483647, %v1319_v2  ;;  %v1332_v37 = vor.u32 1.1754944e-38, %v1331_v33  ;;  %v3446_v60 = vor.u32 %v3926_v58, %v3445_v56  ;;  %v3429_v7 = vld [vmem:[#allocation4 + $0xa8] sm:$0xf]  ;;  %1914 = vmatpush.bf16.msrb.mxu3 %v3434_v13 }
 0x2c0   :  { %v1302_v9 = vsub.f32 1.0, %v1301_v27  ;;  %v3922_v27 = vld [vmem:[#allocation4 + $0xb4] sm:$0xf0]  ;;  %v3391_v33 = vld [vmem:[#allocation4 + $0x70] sm:$0xf0] }
 0x2c1   :  { %v1284_v12 = vmul.f32 %v4053_v3, %v1283_v8  ;;  %vm1330_vm15 = vcmp.eq.f32.partialorder %v1329_v35, 8.507059e+37  ;;  %1900 = vmatpush.bf16.msrb.mxu2 %v3446_v60  ;;  %v3397_v35 = vld [vmem:[#allocation4 + $0x68] sm:$0xf]  ;;  %v3383_v58 = vld [vmem:[#allocation4 + $0x58] sm:$0xf0] }
 0x2c2   :  { %v1303_v14 = vmul.f32 %v4055_v5, %v1302_v9  ;;  %v3430_v9 = vor.u32 %v3922_v27, %v3429_v7  ;;  %v3905_v60 = vld [vmem:[#allocation4 + $0x2c] sm:$0xf0]  ;;  %v3386_v62 = vor.u32 %v3908_v55, %v3383_v58  ;;  %v3906_v7 = vld [vmem:[#allocation4 + $0x34] sm:$0xf0]  ;;  %v3904_v27 = vld [vmem:[#allocation4 + $0x2c] sm:$0xf] }
 0x2c3   :  { %v4057_v15 = vpop.eup %4056  ;;  %v1285_v16 = vadd.f32 %v4053_v3, %v1284_v12  ;;  %v3203_v12 = vld [vmem:[%s4333_s0 + $0x40] sm:$0xff]  ;;  %v3358_v63 = vor.u32 %v3905_v60, %v3357_v59 }
 0x2c4   :  { %v1304_v18 = vadd.f32 %v4055_v5, %v1303_v14  ;;  %v1321_v19 = vmul.f32 %v4057_v15, %v1319_v2  ;;  %v4059_v22 = vpop.eup %4058  ;;  %vm1326_vm12 = vweird.f32 %v4057_v15  ;;  %v3921_v2 = vld [vmem:[#allocation4 + $0xac] sm:$0xf0]  ;;  %v3405_v14 = vld [vmem:[#allocation4 + $0x80] sm:$0xf] }
 0x2c5   :  { %v1289_v21 = vsel %vm1288_vm8, %v4053_v3, %v1285_v16  ;;  %vm1327_vm14 = vmor %vm1325_vm13, %vm1326_vm12  ;;  %v3919_v3 = vld [vmem:[#allocation4 + $0xa4] sm:$0xf]  ;;  %v3422_v4 = vor.u32 %v3921_v2, %v3421_v1  ;;  %1901 = vmatpush.bf16.msrb.mxu2 %v3430_v9  ;;  %v3406_v16 = vor.u32 %v3917_v10, %v3405_v14  ;;  %v3359_v1 = vld [vmem:[#allocation4 + $0x30] sm:$0xf0] }
 0x2c6   :  { %v1294_v23 = vsel %vm1291_vm10, %v1293_v17, %v1289_v21  ;;  %v1308_v24 = vsel %vm1307_vm9, %v4055_v5, %v1304_v18  ;;  %v1322_v25 = vsub.f32 1.0, %v1321_v19  ;;  %v3423_v5 = vld [vmem:[#allocation4 + $0xb0] sm:$0xf0]  ;;  %v3413_v18 = vld [vmem:[#allocation4 + $0x88] sm:$0xf] }
 0x2c7   :  { %v1313_v26 = vsel %vm1310_vm11, %v1312_v20, %v1308_v24  ;;  %v1337_v28 = vmul.f32 %v4059_v22, %v1294_v23  ;;  %v3426_v8 = vor.u32 %v3919_v3, %v3423_v5  ;;  %v3407_v17 = vld [vmem:[#allocation4 + $0x90] sm:$0xf0]  ;;  %v3918_v19 = vld [vmem:[#allocation4 + $0x94] sm:$0xf0]  ;;  %v3916_v22 = vld [vmem:[#allocation4 + $0x8c] sm:$0xf]  ;;  %v1349_v24 = vunpack.c.l.bf16 %v3203_v12 }
 0x2c8   :  { %v1336_v29 = vmul.f32 %v1313_v26, %v4243_v61  ;;  %v1323_v30 = vmul.f32 %v4057_v15, %v1322_v25  ;;  %v3453_v61 = vld [vmem:[#allocation4 + $0xe0] sm:$0xf]  ;;  %v3414_v21 = vor.u32 %v3918_v19, %v3413_v18  ;;  %v3415_v23 = vld [vmem:[#allocation4 + $0x98] sm:$0xf0]  ;;  %v1350_v25 = vunpack.c.h.bf16 %v3203_v12  ;;  %v3365_v2 = vld [vmem:[#allocation4 + $0x28] sm:$0xf] }
 0x2c9   :  { %v3454_v43 = vor.u32 %v3929_v41, %v3453_v61  ;;  %1888 = vmatpush.bf16.msrb.mxu1 %v3426_v8  ;;  %v3418_v26 = vor.u32 %v3916_v22, %v3415_v23  ;;  %v3399_v61 = vld [vmem:[#allocation4 + $0x78] sm:$0xf0]  ;;  %v3362_v5 = vor.u32 %v3903_v0, %v3359_v1  ;;  %v3366_v12 = vor.u32 %v3906_v7, %v3365_v2  ;;  %v3341_v14 = vld [vmem:[#allocation4] sm:$0xf]  ;;  %v3901_v10 = vld [vmem:[#allocation4 + $0xc] sm:$0xf0] }
 0x2ca   :  { %v4260_v31 = vadd.f32 %v1337_v28, %v1336_v29  ;;  %v1324_v32 = vadd.f32 %v4057_v15, %v1323_v30  ;;  %1902 = vmatpush.bf16.msrb.mxu2 %v3414_v21  ;;  %v3389_v28 = vld [vmem:[#allocation4 + $0x60] sm:$0xf]  ;;  %v3913_v29 = vld [vmem:[#allocation4 + $0x6c] sm:$0xf0]  ;;  %v3911_v30 = vld [vmem:[#allocation4 + $0x64] sm:$0xf] }
 0x2cb   :  { %1873 = vmatpush.bf16.msrb.mxu0 %v3454_v43  ;;  %1915 = vmatpush.bf16.msrb.mxu3 %v3418_v26  ;;  %v4272_v43 = vld [vmem:[%s4333_s0 + $0x48] sm:$0xff]  ;;  %v3367_v8 = vld [vmem:[#allocation4 + $0x38] sm:$0xf0]  ;;  %v3902_v19 = vld [vmem:[#allocation4 + $0x14] sm:$0xf0] }
 0x2cc   :  { %4060 = vtanh.f32 %v4260_v31  ;;  %v1328_v36 = vsel %vm1327_vm14, %v4057_v15, %v1324_v32  ;;  %v3915_v15 = vld [vmem:[#allocation4 + $0x84] sm:$0xf]  ;;  %v3390_v32 = vor.u32 %v3913_v29, %v3389_v28  ;;  %v1352_v51 = vunpack.c.h.bf16 %v4272_v43  ;;  %v3349_v18 = vld [vmem:[#allocation4 + $0x8] sm:$0xf]  ;;  %v3900_v22 = vld [vmem:[#allocation4 + $0xc] sm:$0xf] }
 0x2cd   :  { %v1333_v34 = vsel %vm1330_vm15, %v1332_v37, %v1328_v36  ;;  %v3410_v20 = vor.u32 %v3915_v15, %v3407_v17  ;;  %v3914_v36 = vld [vmem:[#allocation4 + $0x74] sm:$0xf0]  ;;  %v3370_v13 = vor.u32 %v3904_v27, %v3367_v8  ;;  %v3899_v15 = vld [vmem:[#allocation4 + $0x4] sm:$0xf]  ;;  %v3343_v17 = vld [vmem:[#allocation4 + $0x10] sm:$0xf0] }
 0x2ce   :  { %v3346_v21 = vor.u32 %v3899_v15, %v3343_v17  ;;  %v3351_v23 = vld [vmem:[#allocation4 + $0x18] sm:$0xf0]  ;;  %v3962_v15 = vld [vmem:[#allocation4 + $0xf4] sm:$0xf0] }
 0x2cf   :  { %1874 = vmatpush.bf16.msrb.mxu0 %v3438_v54  ;;  %1889 = vmatpush.bf16.msrb.mxu1 %v3410_v20  ;;  %v3910_v54 = vld [vmem:[#allocation4 + $0x54] sm:$0xf0]  ;;  %v3354_v29 = vor.u32 %v3900_v22, %v3351_v23  ;;  %v3957_v22 = vld [vmem:[#allocation4 + $0xcc] sm:$0xf0]  ;;  %v3955_v23 = vld [vmem:[#allocation4 + $0xc4] sm:$0xf] }
 0x2d0   :  { %v3382_v56 = vor.u32 %v3910_v54, %v3381_v53 }
 0x2d2   :  { %v4061_v57 = vpop.eup %4060 }
 0x2d3   :  { %v1340_v38 = vmul.f32 %v4061_v57, %v1333_v34  ;;  %1875 = vmatpush.bf16.msrb.mxu0 %v3422_v4  ;;  %v3394_v34 = vor.u32 %v3911_v30, %v3391_v33 }
 0x2d5   :  { %v1343_v40 = vpack.c.bf16 %v1340_v38, %v1340_v38  ;;  %v3398_v38 = vor.u32 %v3914_v36, %v3397_v35  ;;  %1890 = vmatpush.bf16.msrb.mxu1 %v3394_v34  ;;  %v1351_v35 = vunpack.c.l.bf16 %v4272_v43 }
 0x2d7   :  { %3202 = vst [vmem:[%s4337_s4 + $0xc] sm:$0xf] %v1343_v40  ;;  %1555 = vmatmul.bf16.vlgmr.msra.gmra.mxu0 %v1343_v40  ;;  %1568 = vmatmul.bf16.vlgmr.msra.gmra.mxu1 %v1343_v40 }
 0x2d8   :  { %1581 = vmatmul.bf16.vlgmr.msra.gmra.mxu2 %v1343_v40  ;;  %1594 = vmatmul.bf16.vlgmr.msra.gmra.mxu3 %v1343_v40  ;;  %v3912_v40 = vld [vmem:[#allocation4 + $0x6c] sm:$0xf] }
 0x2d9   :  { %1876 = vmatpush.bf16.msrb.mxu0 %v3406_v16  ;;  %v3402_v44 = vor.u32 %v3912_v40, %v3399_v61  ;;  %1903 = vmatpush.bf16.msrb.mxu2 %v3398_v38  ;;  %v3342_v16 = vor.u32 %v3901_v10, %v3341_v14  ;;  %v3589_v14 = vld [vmem:[#allocation4 + $0xf0] sm:$0xf0]  ;;  %v3595_v10 = vld [vmem:[#allocation4 + $0xe8] sm:$0xf] }
 0x2da   :  { %1891 = vmatpush.bf16.msrb.mxu1 %v3378_v52  ;;  %v3596_v17 = vor.u32 %v3962_v15, %v3595_v10  ;;  %v3507_v10 = vld [vmem:[#allocation4 + $0x40] sm:$0xf]  ;;  %v3941_v15 = vld [vmem:[#allocation4 + $0x4c] sm:$0xf0] }
 0x2db   :  { %1916 = vmatpush.bf16.msrb.mxu3 %v3402_v44 }
 0x2dd   :  { %1877 = vmatpush.bf16.msrb.mxu0 %v3390_v32  ;;  %1904 = vmatpush.bf16.msrb.mxu2 %v3382_v56 }
 0x2de   :  { %1892 = vmatpush.bf16.msrb.mxu1 %v3362_v5 }
 0x2df   :  { %1917 = vmatpush.bf16.msrb.mxu3 %v3386_v62 }
 0x2e1   :  { %1878 = vmatpush.bf16.msrb.mxu0 %v3374_v49  ;;  %1905 = vmatpush.bf16.msrb.mxu2 %v3366_v12  ;;  %v3959_v12 = vld [vmem:[#allocation4 + $0xe4] sm:$0xf] }
 0x2e2   :  { %1893 = vmatpush.bf16.msrb.mxu1 %v3346_v21  ;;  %v3571_v21 = vld [vmem:[#allocation4 + $0xc0] sm:$0xf] }
 0x2e3   :  { %1918 = vmatpush.bf16.msrb.mxu3 %v3370_v13 }
 0x2e5   :  { %1879 = vmatpush.bf16.msrb.mxu0 %v3358_v63 }
 0x2e7   :  { %1919 = vmatpush.bf16.msrb.mxu3 %v3354_v29 }
 0x2e9   :  { %1880 = vmatpush.bf16.msrb.mxu0 %v3342_v16  ;;  %v3592_v16 = vor.u32 %v3959_v12, %v3589_v14 }
 0x2eb   :  { %2212 = vmatpush.bf16.msra.mxu1 %v3592_v16  ;;  %v3939_v16 = vld [vmem:[#allocation4 + $0x44] sm:$0xf] }
 0x354   :  { %v1556_v37 = vpop.f32.mrf.mxu0  ;;  %v1569_v57 = vpop.f32.mrf.mxu1 }
 0x355   :  { %v1599_v41 = vadd.f32 %v1556_v37, %v1349_v24  ;;  %v1600_v42 = vadd.f32 %v1569_v57, %v1350_v25  ;;  %v3350_v25 = vor.u32 %v3902_v19, %v3349_v18  ;;  %v3960_v18 = vld [vmem:[#allocation4 + $0xec] sm:$0xf]  ;;  %v3597_v19 = vld [vmem:[#allocation4 + $0xf8] sm:$0xf0] }
 0x357   :  { %v3333_v47 = vmul.f32 -1.442695, %v1599_v41  ;;  %v3334_v48 = vmul.f32 -1.442695, %v1600_v42  ;;  %1906 = vmatpush.bf16.msrb.mxu2 %v3350_v25  ;;  %v3573_v25 = vld [vmem:[#allocation4 + $0xd0] sm:$0xf0] }
 0x358   :  { %v3576_v29 = vor.u32 %v3955_v23, %v3573_v25  ;;  %v3515_v23 = vld [vmem:[#allocation4 + $0x48] sm:$0xf]  ;;  %v3940_v25 = vld [vmem:[#allocation4 + $0x4c] sm:$0xf] }
 0x359   :  { %4062 = vpow2.f32 %v3333_v47 }
 0x35a   :  { %4064 = vpow2.f32 %v3334_v48  ;;  %2213 = vmatpush.bf16.msra.mxu1 %v3576_v29  ;;  %v3491_v29 = vld [vmem:[#allocation4 + $0x20] sm:$0xf] }
 0x35b   :  { %v1582_v3 = vpop.f32.mrf.mxu2  ;;  %v1595_v4 = vpop.f32.mrf.mxu3  ;;  %2225 = vmatpush.bf16.msra.mxu2 %v3596_v17 }
 0x35c   :  { %v1602_v9 = vadd.f32 %v1595_v4, %v1352_v51  ;;  %v1558_v11 = vpop.f32.mrf.mxu0  ;;  %v1571_v6 = vpop.f32.mrf.mxu1  ;;  %v1601_v34 = vadd.f32 %v1582_v3, %v1351_v35 }
 0x35d   :  { %v3961_v6 = vld [vmem:[#allocation4 + $0xec] sm:$0xf0] }
 0x35e   :  { %v3335_v20 = vmul.f32 -1.442695, %v1602_v9 }
 0x35f   :  { %v4063_v24 = vpop.eup %4062 }
 0x360   :  { %v4065_v26 = vpop.eup %4064  ;;  %v1606_v28 = vadd.f32 1.0, %v4063_v24  ;;  %4066 = vpow2.f32 %v3335_v20  ;;  %v3600_v20 = vor.u32 %v3960_v18, %v3597_v19  ;;  %v3572_v24 = vor.u32 %v3957_v22, %v3571_v21 }
 0x361   :  { %v1625_v30 = vadd.f32 1.0, %v4065_v26  ;;  %v3579_v26 = vld [vmem:[#allocation4 + $0xc8] sm:$0xf]  ;;  %v3508_v19 = vor.u32 %v3941_v15, %v3507_v10 }
 0x362   :  { %4068 = vrcp.f32 %v1606_v28  ;;  %v1618_v44 = vand.u32 2147483648, %v1606_v28  ;;  %v1616_v46 = vand.u32 2147483647, %v1606_v28  ;;  %vm1612_vm2 = vweird.f32 %v1606_v28  ;;  %2238 = vmatpush.bf16.msra.mxu3 %v3600_v20  ;;  %v3509_v20 = vld [vmem:[#allocation4 + $0x50] sm:$0xf0] }
 0x363   :  { %4070 = vrcp.f32 %v1625_v30  ;;  %v1584_v32 = vpop.f32.mrf.mxu2  ;;  %v1597_v33 = vpop.f32.mrf.mxu3  ;;  %v1637_v39 = vand.u32 2147483648, %v1625_v30  ;;  %v1635_v43 = vand.u32 2147483647, %v1625_v30  ;;  %vm1631_vm3 = vweird.f32 %v1625_v30 }
 0x364   :  { %v1619_v50 = vor.u32 1.1754944e-38, %v1618_v44  ;;  %vm1617_vm6 = vcmp.eq.f32.partialorder %v1616_v46, 8.507059e+37  ;;  %v3956_v32 = vld [vmem:[#allocation4 + $0xcc] sm:$0xf]  ;;  %v3581_v33 = vld [vmem:[#allocation4 + $0xd8] sm:$0xf0]  ;;  %v3512_v22 = vor.u32 %v3939_v16, %v3509_v20 }
 0x365   :  { %v1638_v53 = vor.u32 1.1754944e-38, %v1637_v39  ;;  %vm1636_vm7 = vcmp.eq.f32.partialorder %v1635_v43, 8.507059e+37  ;;  %v3584_v35 = vor.u32 %v3956_v32, %v3581_v33  ;;  %v3952_v44 = vld [vmem:[#allocation4 + $0xac] sm:$0xf]  ;;  %v3565_v39 = vld [vmem:[#allocation4 + $0xb8] sm:$0xf0] }
 0x366   :  { %v4067_v36 = vpop.eup %4066  ;;  %v3568_v46 = vor.u32 %v3952_v44, %v3565_v39  ;;  %v3949_v43 = vld [vmem:[#allocation4 + $0x8c] sm:$0xf0] }
 0x367   :  { %v1645_v37 = vadd.f32 1.0, %v4067_v36  ;;  %v3555_v36 = vld [vmem:[#allocation4 + $0xa0] sm:$0xf]  ;;  %2239 = vmatpush.bf16.msra.mxu3 %v3584_v35  ;;  %v3935_v35 = vld [vmem:[#allocation4 + $0x24] sm:$0xf] }
 0x368   :  { %v4069_v57 = vpop.eup %4068 }
 0x369   :  { %v4071_v38 = vpop.eup %4070  ;;  %v1608_v40 = vmul.f32 %v4069_v57, %v1606_v28  ;;  %4072 = vrcp.f32 %v1645_v37  ;;  %vm1613_vm0 = vweird.f32 %v4069_v57  ;;  %v1657_v3 = vand.u32 2147483648, %v1645_v37  ;;  %v3958_v28 = vld [vmem:[#allocation4 + $0xd4] sm:$0xf0] }
 0x36a   :  { %v1627_v61 = vmul.f32 %v4071_v38, %v1625_v30  ;;  %4074 = vtanh.f32 %v1601_v34  ;;  %vm1632_vm1 = vweird.f32 %v4071_v38  ;;  %vm1614_vm4 = vmor %vm1612_vm2, %vm1613_vm0  ;;  %vm1651_vm9 = vweird.f32 %v1645_v37 }
 0x36b   :  { %v1609_v41 = vsub.f32 1.0, %v1608_v40  ;;  %vm1633_vm5 = vmor %vm1631_vm3, %vm1632_vm1  ;;  %v1655_v4 = vand.u32 2147483647, %v1645_v37  ;;  %v1658_v7 = vor.u32 1.1754944e-38, %v1657_v3  ;;  %v3580_v30 = vor.u32 %v3958_v28, %v3579_v26  ;;  %v3563_v40 = vld [vmem:[#allocation4 + $0xa8] sm:$0xf]  ;;  %2240 = vmatpush.bf16.msra.mxu3 %v3568_v46 }
 0x36c   :  { %v1628_v42 = vsub.f32 1.0, %v1627_v61  ;;  %v3954_v61 = vld [vmem:[#allocation4 + $0xb4] sm:$0xf0]  ;;  %v3525_v3 = vld [vmem:[#allocation4 + $0x70] sm:$0xf0] }
 0x36d   :  { %v1610_v45 = vmul.f32 %v4069_v57, %v1609_v41  ;;  %vm1656_vm11 = vcmp.eq.f32.partialorder %v1655_v4, 8.507059e+37  ;;  %2226 = vmatpush.bf16.msra.mxu2 %v3580_v30  ;;  %v3531_v4 = vld [vmem:[#allocation4 + $0x68] sm:$0xf]  ;;  %v3517_v28 = vld [vmem:[#allocation4 + $0x58] sm:$0xf0] }
 0x36e   :  { %v1629_v47 = vmul.f32 %v4071_v38, %v1628_v42  ;;  %v3564_v42 = vor.u32 %v3954_v61, %v3563_v40  ;;  %v3937_v30 = vld [vmem:[#allocation4 + $0x2c] sm:$0xf0]  ;;  %v3520_v32 = vor.u32 %v3940_v25, %v3517_v28  ;;  %v3938_v40 = vld [vmem:[#allocation4 + $0x34] sm:$0xf0]  ;;  %v3936_v61 = vld [vmem:[#allocation4 + $0x2c] sm:$0xf] }
 0x36f   :  { %v4073_v48 = vpop.eup %4072  ;;  %v1611_v49 = vadd.f32 %v4069_v57, %v1610_v45  ;;  %v3337_v45 = vld [vmem:[%s4333_s0 + $0x50] sm:$0xff]  ;;  %v3492_v33 = vor.u32 %v3937_v30, %v3491_v29 }
 0x370   :  { %v1630_v51 = vadd.f32 %v4071_v38, %v1629_v47  ;;  %v1647_v52 = vmul.f32 %v4073_v48, %v1645_v37  ;;  %v4075_v55 = vpop.eup %4074  ;;  %vm1652_vm8 = vweird.f32 %v4073_v48  ;;  %v3953_v37 = vld [vmem:[#allocation4 + $0xac] sm:$0xf0]  ;;  %v3539_v47 = vld [vmem:[#allocation4 + $0x80] sm:$0xf] }
 0x371   :  { %v1615_v54 = vsel %vm1614_vm4, %v4069_v57, %v1611_v49  ;;  %vm1653_vm10 = vmor %vm1651_vm9, %vm1652_vm8  ;;  %v3951_v57 = vld [vmem:[#allocation4 + $0xa4] sm:$0xf]  ;;  %v3556_v34 = vor.u32 %v3953_v37, %v3555_v36  ;;  %2227 = vmatpush.bf16.msra.mxu2 %v3564_v42  ;;  %v3540_v49 = vor.u32 %v3949_v43, %v3539_v47  ;;  %v3493_v36 = vld [vmem:[#allocation4 + $0x30] sm:$0xf0] }
 0x372   :  { %v1620_v56 = vsel %vm1617_vm6, %v1619_v50, %v1615_v54  ;;  %v1634_v58 = vsel %vm1633_vm5, %v4071_v38, %v1630_v51  ;;  %v1648_v59 = vsub.f32 1.0, %v1647_v52  ;;  %v3557_v38 = vld [vmem:[#allocation4 + $0xb0] sm:$0xf0]  ;;  %v3547_v51 = vld [vmem:[#allocation4 + $0x88] sm:$0xf] }
 0x373   :  { %v1639_v60 = vsel %vm1636_vm7, %v1638_v53, %v1634_v58  ;;  %v1663_v62 = vmul.f32 %v4075_v55, %v1620_v56  ;;  %v3560_v41 = vor.u32 %v3951_v57, %v3557_v38  ;;  %v3541_v50 = vld [vmem:[#allocation4 + $0x90] sm:$0xf0]  ;;  %v3950_v52 = vld [vmem:[#allocation4 + $0x94] sm:$0xf0]  ;;  %v3948_v55 = vld [vmem:[#allocation4 + $0x8c] sm:$0xf]  ;;  %v1675_v58 = vunpack.c.l.bf16 %v3337_v45 }
 0x374   :  { %v1662_v63 = vmul.f32 %v1639_v60, %v4260_v31  ;;  %v1649_v0 = vmul.f32 %v4073_v48, %v1648_v59  ;;  %v3587_v31 = vld [vmem:[#allocation4 + $0xe0] sm:$0xf]  ;;  %v3548_v54 = vor.u32 %v3950_v52, %v3547_v51  ;;  %v3549_v56 = vld [vmem:[#allocation4 + $0x98] sm:$0xf0]  ;;  %v1676_v59 = vunpack.c.h.bf16 %v3337_v45  ;;  %v3499_v37 = vld [vmem:[#allocation4 + $0x28] sm:$0xf] }
 0x375   :  { %v3588_v13 = vor.u32 %v3961_v6, %v3587_v31  ;;  %2214 = vmatpush.bf16.msra.mxu1 %v3560_v41  ;;  %v3552_v60 = vor.u32 %v3948_v55, %v3549_v56  ;;  %v3533_v31 = vld [vmem:[#allocation4 + $0x78] sm:$0xf0]  ;;  %v3496_v38 = vor.u32 %v3935_v35, %v3493_v36  ;;  %v3500_v45 = vor.u32 %v3938_v40, %v3499_v37  ;;  %v3475_v47 = vld [vmem:[#allocation4] sm:$0xf]  ;;  %v3933_v43 = vld [vmem:[#allocation4 + $0xc] sm:$0xf0] }
 0x376   :  { %v4277_v1 = vadd.f32 %v1663_v62, %v1662_v63  ;;  %v1650_v2 = vadd.f32 %v4073_v48, %v1649_v0  ;;  %2228 = vmatpush.bf16.msra.mxu2 %v3548_v54  ;;  %v3523_v62 = vld [vmem:[#allocation4 + $0x60] sm:$0xf]  ;;  %v3945_v63 = vld [vmem:[#allocation4 + $0x6c] sm:$0xf0]  ;;  %v3943_v0 = vld [vmem:[#allocation4 + $0x64] sm:$0xf] }
 0x377   :  { %2199 = vmatpush.bf16.msra.mxu0 %v3588_v13  ;;  %2241 = vmatpush.bf16.msra.mxu3 %v3552_v60  ;;  %v4289_v13 = vld [vmem:[%s4333_s0 + $0x58] sm:$0xff]  ;;  %v3483_v51 = vld [vmem:[#allocation4 + $0x8] sm:$0xf]  ;;  %v3932_v55 = vld [vmem:[#allocation4 + $0xc] sm:$0xf] }
 0x378   :  { %4076 = vtanh.f32 %v4277_v1  ;;  %v1654_v5 = vsel %vm1653_vm10, %v4073_v48, %v1650_v2  ;;  %v3947_v48 = vld [vmem:[#allocation4 + $0x84] sm:$0xf]  ;;  %v3524_v2 = vor.u32 %v3945_v63, %v3523_v62  ;;  %v1678_v21 = vunpack.c.h.bf16 %v4289_v13  ;;  %v3501_v41 = vld [vmem:[#allocation4 + $0x38] sm:$0xf0]  ;;  %v3934_v52 = vld [vmem:[#allocation4 + $0x14] sm:$0xf0] }
 0x379   :  { %v1659_v8 = vsel %vm1656_vm11, %v1658_v7, %v1654_v5  ;;  %v3544_v53 = vor.u32 %v3947_v48, %v3541_v50  ;;  %v3946_v5 = vld [vmem:[#allocation4 + $0x74] sm:$0xf0]  ;;  %v3504_v46 = vor.u32 %v3936_v61, %v3501_v41  ;;  %v3931_v48 = vld [vmem:[#allocation4 + $0x4] sm:$0xf]  ;;  %v3477_v50 = vld [vmem:[#allocation4 + $0x10] sm:$0xf0] }
 0x37a   :  { %v3480_v54 = vor.u32 %v3931_v48, %v3477_v50  ;;  %v3485_v56 = vld [vmem:[#allocation4 + $0x18] sm:$0xf0]  ;;  %v3994_v48 = vld [vmem:[#allocation4 + $0xf4] sm:$0xf0] }
 0x37b   :  { %2200 = vmatpush.bf16.msra.mxu0 %v3572_v24  ;;  %2215 = vmatpush.bf16.msra.mxu1 %v3544_v53  ;;  %v3942_v24 = vld [vmem:[#allocation4 + $0x54] sm:$0xf0]  ;;  %v3488_v63 = vor.u32 %v3932_v55, %v3485_v56  ;;  %v3989_v55 = vld [vmem:[#allocation4 + $0xcc] sm:$0xf0]  ;;  %v3987_v56 = vld [vmem:[#allocation4 + $0xc4] sm:$0xf] }
 0x37c   :  { %v3516_v26 = vor.u32 %v3942_v24, %v3515_v23 }
 0x37e   :  { %v4077_v27 = vpop.eup %4076 }
 0x37f   :  { %v1666_v9 = vmul.f32 %v4077_v27, %v1659_v8  ;;  %2201 = vmatpush.bf16.msra.mxu0 %v3556_v34  ;;  %v3528_v8 = vor.u32 %v3943_v0, %v3525_v3 }
 0x381   :  { %v1669_v11 = vpack.c.bf16 %v1666_v9, %v1666_v9  ;;  %v3532_v9 = vor.u32 %v3946_v5, %v3531_v4  ;;  %2216 = vmatpush.bf16.msra.mxu1 %v3528_v8  ;;  %v1677_v4 = vunpack.c.l.bf16 %v4289_v13 }
 0x383   :  { %3336 = vst [vmem:[%s4337_s4 + $0x10] sm:$0xf] %v1669_v11  ;;  %1881 = vmatmul.bf16.vlgmr.msrb.gmra.mxu0 %v1669_v11  ;;  %1894 = vmatmul.bf16.vlgmr.msrb.gmra.mxu1 %v1669_v11 }
 0x384   :  { %1907 = vmatmul.bf16.vlgmr.msrb.gmra.mxu2 %v1669_v11  ;;  %1920 = vmatmul.bf16.vlgmr.msrb.gmra.mxu3 %v1669_v11  ;;  %v3944_v11 = vld [vmem:[#allocation4 + $0x6c] sm:$0xf] }
 0x385   :  { %2202 = vmatpush.bf16.msra.mxu0 %v3540_v49  ;;  %v3536_v14 = vor.u32 %v3944_v11, %v3533_v31  ;;  %2229 = vmatpush.bf16.msra.mxu2 %v3532_v9  ;;  %v3476_v49 = vor.u32 %v3933_v43, %v3475_v47  ;;  %v3723_v47 = vld [vmem:[#allocation4 + $0xf0] sm:$0xf0]  ;;  %v3729_v43 = vld [vmem:[#allocation4 + $0xe8] sm:$0xf] }
 0x386   :  { %2217 = vmatpush.bf16.msra.mxu1 %v3512_v22  ;;  %v3730_v50 = vor.u32 %v3994_v48, %v3729_v43  ;;  %v3641_v43 = vld [vmem:[#allocation4 + $0x40] sm:$0xf]  ;;  %v3973_v48 = vld [vmem:[#allocation4 + $0x4c] sm:$0xf0] }
 0x387   :  { %2242 = vmatpush.bf16.msra.mxu3 %v3536_v14 }
 0x389   :  { %2203 = vmatpush.bf16.msra.mxu0 %v3524_v2  ;;  %2230 = vmatpush.bf16.msra.mxu2 %v3516_v26 }
 0x38a   :  { %2218 = vmatpush.bf16.msra.mxu1 %v3496_v38 }
 0x38b   :  { %2243 = vmatpush.bf16.msra.mxu3 %v3520_v32 }
 0x38d   :  { %2204 = vmatpush.bf16.msra.mxu0 %v3508_v19  ;;  %2231 = vmatpush.bf16.msra.mxu2 %v3500_v45  ;;  %v3991_v45 = vld [vmem:[#allocation4 + $0xe4] sm:$0xf] }
 0x38e   :  { %2219 = vmatpush.bf16.msra.mxu1 %v3480_v54  ;;  %v3705_v54 = vld [vmem:[#allocation4 + $0xc0] sm:$0xf] }
 0x38f   :  { %2244 = vmatpush.bf16.msra.mxu3 %v3504_v46 }
 0x391   :  { %2205 = vmatpush.bf16.msra.mxu0 %v3492_v33 }
 0x393   :  { %2245 = vmatpush.bf16.msra.mxu3 %v3488_v63 }
 0x395   :  { %2206 = vmatpush.bf16.msra.mxu0 %v3476_v49  ;;  %v3726_v49 = vor.u32 %v3991_v45, %v3723_v47 }
 0x397   :  { %2538 = vmatpush.bf16.msrb.mxu1 %v3726_v49  ;;  %v3971_v49 = vld [vmem:[#allocation4 + $0x44] sm:$0xf] }
 0x400   :  { %v1882_v7 = vpop.f32.mrf.mxu0  ;;  %v1895_v27 = vpop.f32.mrf.mxu1 }
 0x401   :  { %v1925_v6 = vadd.f32 %v1882_v7, %v1675_v58  ;;  %v1926_v12 = vadd.f32 %v1895_v27, %v1676_v59  ;;  %v3484_v59 = vor.u32 %v3934_v52, %v3483_v51  ;;  %v3992_v51 = vld [vmem:[#allocation4 + $0xec] sm:$0xf]  ;;  %v3731_v52 = vld [vmem:[#allocation4 + $0xf8] sm:$0xf0] }
 0x403   :  { %v3467_v17 = vmul.f32 -1.442695, %v1925_v6  ;;  %v3468_v18 = vmul.f32 -1.442695, %v1926_v12  ;;  %2232 = vmatpush.bf16.msra.mxu2 %v3484_v59  ;;  %v3707_v59 = vld [vmem:[#allocation4 + $0xd0] sm:$0xf0] }
 0x404   :  { %v3710_v63 = vor.u32 %v3987_v56, %v3707_v59  ;;  %v3649_v56 = vld [vmem:[#allocation4 + $0x48] sm:$0xf]  ;;  %v3972_v59 = vld [vmem:[#allocation4 + $0x4c] sm:$0xf] }
 0x405   :  { %4078 = vpow2.f32 %v3467_v17 }
 0x406   :  { %4080 = vpow2.f32 %v3468_v18  ;;  %2539 = vmatpush.bf16.msrb.mxu1 %v3710_v63  ;;  %v3625_v63 = vld [vmem:[#allocation4 + $0x20] sm:$0xf] }
 0x407   :  { %v1908_v57 = vpop.f32.mrf.mxu2  ;;  %v1921_v34 = vpop.f32.mrf.mxu3  ;;  %2551 = vmatpush.bf16.msrb.mxu2 %v3730_v50 }
 0x408   :  { %v1928_v42 = vadd.f32 %v1921_v34, %v1678_v21  ;;  %v1884_v44 = vpop.f32.mrf.mxu0  ;;  %v1897_v39 = vpop.f32.mrf.mxu1  ;;  %v1927_v8 = vadd.f32 %v1908_v57, %v1677_v4 }
 0x409   :  { %v3993_v39 = vld [vmem:[#allocation4 + $0xec] sm:$0xf0] }
 0x40a   :  { %v3469_v53 = vmul.f32 -1.442695, %v1928_v42 }
 0x40b   :  { %v4079_v58 = vpop.eup %4078 }
 0x40c   :  { %v4081_v60 = vpop.eup %4080  ;;  %v1932_v62 = vadd.f32 1.0, %v4079_v58  ;;  %4082 = vpow2.f32 %v3469_v53  ;;  %v3734_v53 = vor.u32 %v3992_v51, %v3731_v52  ;;  %v3706_v58 = vor.u32 %v3989_v55, %v3705_v54 }
 0x40d   :  { %v1951_v0 = vadd.f32 1.0, %v4081_v60  ;;  %v3713_v60 = vld [vmem:[#allocation4 + $0xc8] sm:$0xf]  ;;  %v3642_v52 = vor.u32 %v3973_v48, %v3641_v43 }
 0x40e   :  { %4084 = vrcp.f32 %v1932_v62  ;;  %v1944_v14 = vand.u32 2147483648, %v1932_v62  ;;  %v1942_v16 = vand.u32 2147483647, %v1932_v62  ;;  %vm1938_vm14 = vweird.f32 %v1932_v62  ;;  %2564 = vmatpush.bf16.msrb.mxu3 %v3734_v53  ;;  %v3643_v53 = vld [vmem:[#allocation4 + $0x50] sm:$0xf0] }
 0x40f   :  { %4086 = vrcp.f32 %v1951_v0  ;;  %v1910_v2 = vpop.f32.mrf.mxu2  ;;  %v1923_v3 = vpop.f32.mrf.mxu3  ;;  %v1963_v10 = vand.u32 2147483648, %v1951_v0  ;;  %v1961_v13 = vand.u32 2147483647, %v1951_v0  ;;  %vm1957_vm15 = vweird.f32 %v1951_v0 }
 0x410   :  { %v1945_v20 = vor.u32 1.1754944e-38, %v1944_v14  ;;  %vm1943_vm2 = vcmp.eq.f32.partialorder %v1942_v16, 8.507059e+37  ;;  %v3988_v2 = vld [vmem:[#allocation4 + $0xcc] sm:$0xf]  ;;  %v3715_v3 = vld [vmem:[#allocation4 + $0xd8] sm:$0xf0]  ;;  %v3646_v55 = vor.u32 %v3971_v49, %v3643_v53 }
 0x411   :  { %v1964_v23 = vor.u32 1.1754944e-38, %v1963_v10  ;;  %vm1962_vm3 = vcmp.eq.f32.partialorder %v1961_v13, 8.507059e+37  ;;  %v3718_v4 = vor.u32 %v3988_v2, %v3715_v3  ;;  %v3984_v14 = vld [vmem:[#allocation4 + $0xac] sm:$0xf]  ;;  %v3699_v10 = vld [vmem:[#allocation4 + $0xb8] sm:$0xf0] }
 0x412   :  { %v4083_v5 = vpop.eup %4082  ;;  %v3702_v16 = vor.u32 %v3984_v14, %v3699_v10  ;;  %v3981_v13 = vld [vmem:[#allocation4 + $0x8c] sm:$0xf0] }
 0x413   :  { %v1971_v7 = vadd.f32 1.0, %v4083_v5  ;;  %v3689_v5 = vld [vmem:[#allocation4 + $0xa0] sm:$0xf]  ;;  %2565 = vmatpush.bf16.msrb.mxu3 %v3718_v4  ;;  %v3967_v4 = vld [vmem:[#allocation4 + $0x24] sm:$0xf] }
 0x414   :  { %v4085_v27 = vpop.eup %4084 }
 0x415   :  { %v4087_v9 = vpop.eup %4086  ;;  %v1934_v11 = vmul.f32 %v4085_v27, %v1932_v62  ;;  %4088 = vrcp.f32 %v1971_v7  ;;  %vm1939_vm12 = vweird.f32 %v4085_v27  ;;  %v1983_v57 = vand.u32 2147483648, %v1971_v7  ;;  %v3990_v62 = vld [vmem:[#allocation4 + $0xd4] sm:$0xf0] }
 0x416   :  { %v1953_v31 = vmul.f32 %v4087_v9, %v1951_v0  ;;  %4090 = vtanh.f32 %v1927_v8  ;;  %vm1958_vm13 = vweird.f32 %v4087_v9  ;;  %vm1940_vm0 = vmor %vm1938_vm14, %vm1939_vm12  ;;  %vm1977_vm5 = vweird.f32 %v1971_v7 }
 0x417   :  { %v1935_v6 = vsub.f32 1.0, %v1934_v11  ;;  %vm1959_vm1 = vmor %vm1957_vm15, %vm1958_vm13  ;;  %v1981_v34 = vand.u32 2147483647, %v1971_v7  ;;  %v1984_v40 = vor.u32 1.1754944e-38, %v1983_v57  ;;  %v3714_v0 = vor.u32 %v3990_v62, %v3713_v60  ;;  %v3697_v11 = vld [vmem:[#allocation4 + $0xa8] sm:$0xf]  ;;  %2566 = vmatpush.bf16.msrb.mxu3 %v3702_v16 }
 0x418   :  { %v1954_v12 = vsub.f32 1.0, %v1953_v31  ;;  %v3986_v31 = vld [vmem:[#allocation4 + $0xb4] sm:$0xf0]  ;;  %v3659_v57 = vld [vmem:[#allocation4 + $0x70] sm:$0xf0] }
 0x419   :  { %v1936_v15 = vmul.f32 %v4085_v27, %v1935_v6  ;;  %vm1982_vm7 = vcmp.eq.f32.partialorder %v1981_v34, 8.507059e+37  ;;  %2552 = vmatpush.bf16.msrb.mxu2 %v3714_v0  ;;  %v3665_v34 = vld [vmem:[#allocation4 + $0x68] sm:$0xf]  ;;  %v3651_v62 = vld [vmem:[#allocation4 + $0x58] sm:$0xf0] }
 0x41a   :  { %v1955_v17 = vmul.f32 %v4087_v9, %v1954_v12  ;;  %v3698_v12 = vor.u32 %v3986_v31, %v3697_v11  ;;  %v3969_v0 = vld [vmem:[#allocation4 + $0x2c] sm:$0xf0]  ;;  %v3654_v2 = vor.u32 %v3972_v59, %v3651_v62  ;;  %v3970_v11 = vld [vmem:[#allocation4 + $0x34] sm:$0xf0]  ;;  %v3968_v31 = vld [vmem:[#allocation4 + $0x2c] sm:$0xf] }
 0x41b   :  { %v4089_v18 = vpop.eup %4088  ;;  %v1937_v19 = vadd.f32 %v4085_v27, %v1936_v15  ;;  %v3471_v15 = vld [vmem:[%s4333_s0 + $0x60] sm:$0xff]  ;;  %v3626_v3 = vor.u32 %v3969_v0, %v3625_v63 }
 0x41c   :  { %v1956_v21 = vadd.f32 %v4087_v9, %v1955_v17  ;;  %v1973_v22 = vmul.f32 %v4089_v18, %v1971_v7  ;;  %v4091_v25 = vpop.eup %4090  ;;  %vm1978_vm4 = vweird.f32 %v4089_v18  ;;  %v3985_v7 = vld [vmem:[#allocation4 + $0xac] sm:$0xf0]  ;;  %v3673_v17 = vld [vmem:[#allocation4 + $0x80] sm:$0xf] }
 0x41d   :  { %v1941_v24 = vsel %vm1940_vm0, %v4085_v27, %v1937_v19  ;;  %vm1979_vm6 = vmor %vm1977_vm5, %vm1978_vm4  ;;  %v3983_v27 = vld [vmem:[#allocation4 + $0xa4] sm:$0xf]  ;;  %v3690_v8 = vor.u32 %v3985_v7, %v3689_v5  ;;  %2553 = vmatpush.bf16.msrb.mxu2 %v3698_v12  ;;  %v3674_v19 = vor.u32 %v3981_v13, %v3673_v17  ;;  %v3627_v5 = vld [vmem:[#allocation4 + $0x30] sm:$0xf0] }
 0x41e   :  { %v1946_v26 = vsel %vm1943_vm2, %v1945_v20, %v1941_v24  ;;  %v1960_v28 = vsel %vm1959_vm1, %v4087_v9, %v1956_v21  ;;  %v1974_v29 = vsub.f32 1.0, %v1973_v22  ;;  %v3691_v9 = vld [vmem:[#allocation4 + $0xb0] sm:$0xf0]  ;;  %v3681_v21 = vld [vmem:[#allocation4 + $0x88] sm:$0xf] }
 0x41f   :  { %v1965_v30 = vsel %vm1962_vm3, %v1964_v23, %v1960_v28  ;;  %v1989_v32 = vmul.f32 %v4091_v25, %v1946_v26  ;;  %v3694_v6 = vor.u32 %v3983_v27, %v3691_v9  ;;  %v3675_v20 = vld [vmem:[#allocation4 + $0x90] sm:$0xf0]  ;;  %v3982_v22 = vld [vmem:[#allocation4 + $0x94] sm:$0xf0]  ;;  %v3980_v25 = vld [vmem:[#allocation4 + $0x8c] sm:$0xf]  ;;  %v2001_v28 = vunpack.c.l.bf16 %v3471_v15 }
 0x420   :  { %v1988_v33 = vmul.f32 %v1965_v30, %v4277_v1  ;;  %v1975_v35 = vmul.f32 %v4089_v18, %v1974_v29  ;;  %v3721_v1 = vld [vmem:[#allocation4 + $0xe0] sm:$0xf]  ;;  %v3682_v24 = vor.u32 %v3982_v22, %v3681_v21  ;;  %v3683_v26 = vld [vmem:[#allocation4 + $0x98] sm:$0xf0]  ;;  %v2002_v29 = vunpack.c.h.bf16 %v3471_v15  ;;  %v3633_v7 = vld [vmem:[#allocation4 + $0x28] sm:$0xf] }
 0x421   :  { %v3722_v46 = vor.u32 %v3993_v39, %v3721_v1  ;;  %2540 = vmatpush.bf16.msrb.mxu1 %v3694_v6  ;;  %v3686_v30 = vor.u32 %v3980_v25, %v3683_v26  ;;  %v3667_v1 = vld [vmem:[#allocation4 + $0x78] sm:$0xf0]  ;;  %v3630_v9 = vor.u32 %v3967_v4, %v3627_v5  ;;  %v3634_v15 = vor.u32 %v3970_v11, %v3633_v7  ;;  %v3609_v17 = vld [vmem:[#allocation4] sm:$0xf]  ;;  %v3965_v13 = vld [vmem:[#allocation4 + $0xc] sm:$0xf0] }
 0x422   :  { %v4294_v36 = vadd.f32 %v1989_v32, %v1988_v33  ;;  %v1976_v37 = vadd.f32 %v4089_v18, %v1975_v35  ;;  %2554 = vmatpush.bf16.msrb.mxu2 %v3682_v24  ;;  %v3657_v32 = vld [vmem:[#allocation4 + $0x60] sm:$0xf]  ;;  %v3977_v33 = vld [vmem:[#allocation4 + $0x6c] sm:$0xf0]  ;;  %v3975_v35 = vld [vmem:[#allocation4 + $0x64] sm:$0xf] }
 0x423   :  { %2525 = vmatpush.bf16.msrb.mxu0 %v3722_v46  ;;  %2567 = vmatpush.bf16.msrb.mxu3 %v3686_v30  ;;  %v4306_v46 = vld [vmem:[%s4333_s0 + $0x68] sm:$0xff]  ;;  %v3635_v6 = vld [vmem:[#allocation4 + $0x38] sm:$0xf0]  ;;  %v3966_v22 = vld [vmem:[#allocation4 + $0x14] sm:$0xf0] }
 0x424   :  { %4092 = vtanh.f32 %v4294_v36  ;;  %v1980_v38 = vsel %vm1979_vm6, %v4089_v18, %v1976_v37  ;;  %v3979_v18 = vld [vmem:[#allocation4 + $0x84] sm:$0xf]  ;;  %v3658_v37 = vor.u32 %v3977_v33, %v3657_v32  ;;  %v2004_v54 = vunpack.c.h.bf16 %v4306_v46  ;;  %v3617_v21 = vld [vmem:[#allocation4 + $0x8] sm:$0xf]  ;;  %v3964_v25 = vld [vmem:[#allocation4 + $0xc] sm:$0xf] }
 0x425   :  { %v1985_v41 = vsel %vm1982_vm7, %v1984_v40, %v1980_v38  ;;  %v3678_v23 = vor.u32 %v3979_v18, %v3675_v20  ;;  %v3978_v38 = vld [vmem:[#allocation4 + $0x74] sm:$0xf0]  ;;  %v3638_v16 = vor.u32 %v3968_v31, %v3635_v6  ;;  %v3963_v18 = vld [vmem:[#allocation4 + $0x4] sm:$0xf]  ;;  %v3611_v20 = vld [vmem:[#allocation4 + $0x10] sm:$0xf0] }
 0x426   :  { %v3614_v24 = vor.u32 %v3963_v18, %v3611_v20  ;;  %v3619_v26 = vld [vmem:[#allocation4 + $0x18] sm:$0xf0] }
 0x427   :  { %2526 = vmatpush.bf16.msrb.mxu0 %v3706_v58  ;;  %2541 = vmatpush.bf16.msrb.mxu1 %v3678_v23  ;;  %v3974_v58 = vld [vmem:[#allocation4 + $0x54] sm:$0xf0]  ;;  %v3622_v33 = vor.u32 %v3964_v25, %v3619_v26 }
 0x428   :  { %v3650_v60 = vor.u32 %v3974_v58, %v3649_v56 }
 0x42a   :  { %v4093_v61 = vpop.eup %4092 }
 0x42b   :  { %v1992_v42 = vmul.f32 %v4093_v61, %v1985_v41  ;;  %2527 = vmatpush.bf16.msrb.mxu0 %v3690_v8  ;;  %v3662_v41 = vor.u32 %v3975_v35, %v3659_v57 }
 0x42d   :  { %v1995_v44 = vpack.c.bf16 %v1992_v42, %v1992_v42  ;;  %v3666_v42 = vor.u32 %v3978_v38, %v3665_v34  ;;  %2542 = vmatpush.bf16.msrb.mxu1 %v3662_v41  ;;  %v2003_v34 = vunpack.c.l.bf16 %v4306_v46 }
 0x42f   :  { %3470 = vst [vmem:[%s4337_s4 + $0x14] sm:$0xf] %v1995_v44  ;;  %2207 = vmatmul.bf16.vlgmr.msra.gmra.mxu0 %v1995_v44  ;;  %2220 = vmatmul.bf16.vlgmr.msra.gmra.mxu1 %v1995_v44 }
 0x430   :  { %2233 = vmatmul.bf16.vlgmr.msra.gmra.mxu2 %v1995_v44  ;;  %2246 = vmatmul.bf16.vlgmr.msra.gmra.mxu3 %v1995_v44  ;;  %v3976_v44 = vld [vmem:[#allocation4 + $0x6c] sm:$0xf] }
 0x431   :  { %2528 = vmatpush.bf16.msrb.mxu0 %v3674_v19  ;;  %v3670_v47 = vor.u32 %v3976_v44, %v3667_v1  ;;  %2555 = vmatpush.bf16.msrb.mxu2 %v3666_v42  ;;  %v3610_v19 = vor.u32 %v3965_v13, %v3609_v17 }
 0x432   :  { %2543 = vmatpush.bf16.msrb.mxu1 %v3646_v55 }
 0x433   :  { %2568 = vmatpush.bf16.msrb.mxu3 %v3670_v47 }
 0x435   :  { %2529 = vmatpush.bf16.msrb.mxu0 %v3658_v37  ;;  %2556 = vmatpush.bf16.msrb.mxu2 %v3650_v60 }
 0x436   :  { %2544 = vmatpush.bf16.msrb.mxu1 %v3630_v9 }
 0x437   :  { %2569 = vmatpush.bf16.msrb.mxu3 %v3654_v2 }
 0x439   :  { %2530 = vmatpush.bf16.msrb.mxu0 %v3642_v52  ;;  %2557 = vmatpush.bf16.msrb.mxu2 %v3634_v15 }
 0x43a   :  { %2545 = vmatpush.bf16.msrb.mxu1 %v3614_v24 }
 0x43b   :  { %2570 = vmatpush.bf16.msrb.mxu3 %v3638_v16 }
 0x43d   :  { %2531 = vmatpush.bf16.msrb.mxu0 %v3626_v3 }
 0x43f   :  { %2571 = vmatpush.bf16.msrb.mxu3 %v3622_v33 }
 0x441   :  { %2532 = vmatpush.bf16.msrb.mxu0 %v3610_v19  ;;  %v3606_v19 = vld [vmem:[%s4333_s0 + $0x78] sm:$0xff] }
 0x4ac   :  { %v2208_v40 = vpop.f32.mrf.mxu0  ;;  %v2221_v61 = vpop.f32.mrf.mxu1 }
 0x4ad   :  { %v2251_v39 = vadd.f32 %v2208_v40, %v2001_v28  ;;  %v2252_v45 = vadd.f32 %v2221_v61, %v2002_v29  ;;  %v3618_v29 = vor.u32 %v3966_v22, %v3617_v21  ;;  %v2330_v22 = vunpack.c.h.bf16 %v3606_v19 }
 0x4af   :  { %v3601_v50 = vmul.f32 -1.442695, %v2251_v39  ;;  %v3602_v51 = vmul.f32 -1.442695, %v2252_v45  ;;  %2558 = vmatpush.bf16.msrb.mxu2 %v3618_v29 }
 0x4b1   :  { %4094 = vpow2.f32 %v3601_v50 }
 0x4b2   :  { %4096 = vpow2.f32 %v3602_v51 }
 0x4b3   :  { %v2234_v27 = vpop.f32.mrf.mxu2  ;;  %v2247_v8 = vpop.f32.mrf.mxu3 }
 0x4b4   :  { %v2254_v12 = vadd.f32 %v2247_v8, %v2004_v54  ;;  %v2210_v14 = vpop.f32.mrf.mxu0  ;;  %v2223_v10 = vpop.f32.mrf.mxu1  ;;  %v2253_v41 = vadd.f32 %v2234_v27, %v2003_v34  ;;  %v2329_v34 = vunpack.c.l.bf16 %v3606_v19 }
 0x4b6   :  { %v3603_v23 = vmul.f32 -1.442695, %v2254_v12 }
 0x4b7   :  { %v4095_v28 = vpop.eup %4094 }
 0x4b8   :  { %v4097_v30 = vpop.eup %4096  ;;  %v2258_v32 = vadd.f32 1.0, %v4095_v28  ;;  %4098 = vpow2.f32 %v3603_v23 }
 0x4b9   :  { %v2277_v35 = vadd.f32 1.0, %v4097_v30 }
 0x4ba   :  { %4100 = vrcp.f32 %v2258_v32  ;;  %v2270_v47 = vand.u32 2147483648, %v2258_v32  ;;  %v2268_v49 = vand.u32 2147483647, %v2258_v32  ;;  %vm2264_vm10 = vweird.f32 %v2258_v32 }
 0x4bb   :  { %4102 = vrcp.f32 %v2277_v35  ;;  %v2236_v37 = vpop.f32.mrf.mxu2  ;;  %v2249_v57 = vpop.f32.mrf.mxu3  ;;  %v2289_v43 = vand.u32 2147483648, %v2277_v35  ;;  %v2287_v46 = vand.u32 2147483647, %v2277_v35  ;;  %vm2283_vm11 = vweird.f32 %v2277_v35 }
 0x4bc   :  { %v2271_v53 = vor.u32 1.1754944e-38, %v2270_v47  ;;  %vm2269_vm14 = vcmp.eq.f32.partialorder %v2268_v49, 8.507059e+37 }
 0x4bd   :  { %v2290_v56 = vor.u32 1.1754944e-38, %v2289_v43  ;;  %vm2288_vm15 = vcmp.eq.f32.partialorder %v2287_v46, 8.507059e+37 }
 0x4be   :  { %v4099_v38 = vpop.eup %4098 }
 0x4bf   :  { %v2297_v40 = vadd.f32 1.0, %v4099_v38 }
 0x4c0   :  { %v4101_v61 = vpop.eup %4100 }
 0x4c1   :  { %v4103_v42 = vpop.eup %4102  ;;  %v2260_v44 = vmul.f32 %v4101_v61, %v2258_v32  ;;  %4104 = vrcp.f32 %v2297_v40  ;;  %vm2265_vm8 = vweird.f32 %v4101_v61  ;;  %v2309_v27 = vand.u32 2147483648, %v2297_v40 }
 0x4c2   :  { %v2279_v1 = vmul.f32 %v4103_v42, %v2277_v35  ;;  %4106 = vtanh.f32 %v2253_v41  ;;  %vm2284_vm9 = vweird.f32 %v4103_v42  ;;  %vm2266_vm12 = vmor %vm2264_vm10, %vm2265_vm8  ;;  %vm2303_vm1 = vweird.f32 %v2297_v40 }
 0x4c3   :  { %v2261_v39 = vsub.f32 1.0, %v2260_v44  ;;  %vm2285_vm13 = vmor %vm2283_vm11, %vm2284_vm9  ;;  %v2307_v8 = vand.u32 2147483647, %v2297_v40  ;;  %v2310_v11 = vor.u32 1.1754944e-38, %v2309_v27 }
 0x4c4   :  { %v2280_v45 = vsub.f32 1.0, %v2279_v1 }
 0x4c5   :  { %v2262_v48 = vmul.f32 %v4101_v61, %v2261_v39  ;;  %vm2308_vm3 = vcmp.eq.f32.partialorder %v2307_v8, 8.507059e+37 }
 0x4c6   :  { %v2281_v50 = vmul.f32 %v4103_v42, %v2280_v45 }
 0x4c7   :  { %v4105_v51 = vpop.eup %4104  ;;  %v2263_v52 = vadd.f32 %v4101_v61, %v2262_v48 }
 0x4c8   :  { %v2282_v54 = vadd.f32 %v4103_v42, %v2281_v50  ;;  %v2299_v55 = vmul.f32 %v4105_v51, %v2297_v40  ;;  %v4107_v59 = vpop.eup %4106  ;;  %vm2304_vm0 = vweird.f32 %v4105_v51 }
 0x4c9   :  { %v2267_v58 = vsel %vm2266_vm12, %v4101_v61, %v2263_v52  ;;  %vm2305_vm2 = vmor %vm2303_vm1, %vm2304_vm0 }
 0x4ca   :  { %v2272_v60 = vsel %vm2269_vm14, %v2271_v53, %v2267_v58  ;;  %v2286_v62 = vsel %vm2285_vm13, %v4103_v42, %v2282_v54  ;;  %v2300_v63 = vsub.f32 1.0, %v2299_v55 }
 0x4cb   :  { %v2291_v0 = vsel %vm2288_vm15, %v2290_v56, %v2286_v62  ;;  %v2315_v2 = vmul.f32 %v4107_v59, %v2272_v60 }
 0x4cc   :  { %v2314_v3 = vmul.f32 %v2291_v0, %v4294_v36  ;;  %v2301_v4 = vmul.f32 %v4105_v51, %v2300_v63  ;;  %v3605_v36 = vld [vmem:[%s4333_s0 + $0x70] sm:$0xff] }
 0x4cd   :  { %v2327_v10 = vunpack.c.l.bf16 %v3605_v36  ;;  %v2328_v15 = vunpack.c.h.bf16 %v3605_v36 }
 0x4ce   :  { %v4311_v5 = vadd.f32 %v2315_v2, %v2314_v3  ;;  %v2302_v7 = vadd.f32 %v4105_v51, %v2301_v4 }
 0x4d0   :  { %4108 = vtanh.f32 %v4311_v5  ;;  %v2306_v9 = vsel %vm2305_vm2, %v4105_v51, %v2302_v7 }
 0x4d1   :  { %v2311_v6 = vsel %vm2308_vm3, %v2310_v11, %v2306_v9 }
 0x4d6   :  { %v4109_v31 = vpop.eup %4108 }
 0x4d7   :  { %v2318_v12 = vmul.f32 %v4109_v31, %v2311_v6 }
 0x4d9   :  { %v2321_v14 = vpack.c.bf16 %v2318_v12, %v2318_v12 }
 0x4db   :  { %3604 = vst [vmem:[%s4337_s4 + $0x18] sm:$0xf] %v2321_v14  ;;  %2533 = vmatmul.bf16.vlgmr.msrb.gmra.mxu0 %v2321_v14  ;;  %2546 = vmatmul.bf16.vlgmr.msrb.gmra.mxu1 %v2321_v14 }
 0x4dc   :  { %2559 = vmatmul.bf16.vlgmr.msrb.gmra.mxu2 %v2321_v14  ;;  %2572 = vmatmul.bf16.vlgmr.msrb.gmra.mxu3 %v2321_v14 }
 0x558   :  { %v2534_v16 = vpop.f32.mrf.mxu0  ;;  %v2547_v17 = vpop.f32.mrf.mxu1 }
 0x559   :  { %v2577_v13 = vadd.f32 %v2534_v16, %v2327_v10  ;;  %v2578_v18 = vadd.f32 %v2547_v17, %v2328_v15 }
 0x55b   :  { %v3735_v20 = vmul.f32 -1.442695, %v2577_v13  ;;  %v3736_v21 = vmul.f32 -1.442695, %v2578_v18 }
 0x55d   :  { %4110 = vpow2.f32 %v3735_v20 }
 0x55e   :  { %4112 = vpow2.f32 %v3736_v21 }
 0x55f   :  { %v2560_v23 = vpop.f32.mrf.mxu2  ;;  %v2573_v24 = vpop.f32.mrf.mxu3 }
 0x560   :  { %v2580_v25 = vadd.f32 %v2573_v24, %v2330_v22  ;;  %v2536_v26 = vpop.f32.mrf.mxu0  ;;  %v2549_v28 = vpop.f32.mrf.mxu1  ;;  %v2579_v41 = vadd.f32 %v2560_v23, %v2329_v34 }
 0x562   :  { %v3737_v29 = vmul.f32 -1.442695, %v2580_v25 }
 0x563   :  { %v4111_v30 = vpop.eup %4110 }
 0x564   :  { %v4113_v32 = vpop.eup %4112  ;;  %v2584_v33 = vadd.f32 1.0, %v4111_v30  ;;  %4114 = vpow2.f32 %v3737_v29 }
 0x565   :  { %v2603_v35 = vadd.f32 1.0, %v4113_v32 }
 0x566   :  { %4116 = vrcp.f32 %v2584_v33  ;;  %v2596_v47 = vand.u32 2147483648, %v2584_v33  ;;  %v2594_v49 = vand.u32 2147483647, %v2584_v33  ;;  %vm2590_vm6 = vweird.f32 %v2584_v33 }
 0x567   :  { %4118 = vrcp.f32 %v2603_v35  ;;  %v2562_v37 = vpop.f32.mrf.mxu2  ;;  %v2575_v57 = vpop.f32.mrf.mxu3  ;;  %v2615_v43 = vand.u32 2147483648, %v2603_v35  ;;  %v2613_v46 = vand.u32 2147483647, %v2603_v35  ;;  %vm2609_vm7 = vweird.f32 %v2603_v35 }
 0x568   :  { %v2597_v53 = vor.u32 1.1754944e-38, %v2596_v47  ;;  %vm2595_vm10 = vcmp.eq.f32.partialorder %v2594_v49, 8.507059e+37 }
 0x569   :  { %v2616_v56 = vor.u32 1.1754944e-38, %v2615_v43  ;;  %vm2614_vm11 = vcmp.eq.f32.partialorder %v2613_v46, 8.507059e+37 }
 0x56a   :  { %v4115_v38 = vpop.eup %4114 }
 0x56b   :  { %v2623_v40 = vadd.f32 1.0, %v4115_v38 }
 0x56c   :  { %v4117_v61 = vpop.eup %4116 }
 0x56d   :  { %v4119_v42 = vpop.eup %4118  ;;  %v2586_v44 = vmul.f32 %v4117_v61, %v2584_v33  ;;  %4120 = vrcp.f32 %v2623_v40  ;;  %vm2591_vm4 = vweird.f32 %v4117_v61  ;;  %v2635_v8 = vand.u32 2147483648, %v2623_v40 }
 0x56e   :  { %v2605_v1 = vmul.f32 %v4119_v42, %v2603_v35  ;;  %4122 = vtanh.f32 %v2579_v41  ;;  %vm2610_vm5 = vweird.f32 %v4119_v42  ;;  %vm2592_vm8 = vmor %vm2590_vm6, %vm2591_vm4  ;;  %vm2629_vm13 = vweird.f32 %v2623_v40 }
 0x56f   :  { %v2587_v39 = vsub.f32 1.0, %v2586_v44  ;;  %vm2611_vm9 = vmor %vm2609_vm7, %vm2610_vm5  ;;  %v2633_v9 = vand.u32 2147483647, %v2623_v40  ;;  %v2636_v31 = vor.u32 1.1754944e-38, %v2635_v8 }
 0x570   :  { %v2606_v45 = vsub.f32 1.0, %v2605_v1 }
 0x571   :  { %v2588_v48 = vmul.f32 %v4117_v61, %v2587_v39  ;;  %vm2634_vm15 = vcmp.eq.f32.partialorder %v2633_v9, 8.507059e+37 }
 0x572   :  { %v2607_v50 = vmul.f32 %v4119_v42, %v2606_v45 }
 0x573   :  { %v4121_v51 = vpop.eup %4120  ;;  %v2589_v52 = vadd.f32 %v4117_v61, %v2588_v48 }
 0x574   :  { %v2608_v54 = vadd.f32 %v4119_v42, %v2607_v50  ;;  %v2625_v55 = vmul.f32 %v4121_v51, %v2623_v40  ;;  %v4123_v59 = vpop.eup %4122  ;;  %vm2630_vm12 = vweird.f32 %v4121_v51 }
 0x575   :  { %v2593_v58 = vsel %vm2592_vm8, %v4117_v61, %v2589_v52  ;;  %vm2631_vm14 = vmor %vm2629_vm13, %vm2630_vm12 }
 0x576   :  { %v2598_v60 = vsel %vm2595_vm10, %v2597_v53, %v2593_v58  ;;  %v2612_v62 = vsel %vm2611_vm9, %v4119_v42, %v2608_v54  ;;  %v2626_v63 = vsub.f32 1.0, %v2625_v55 }
 0x577   :  { %v2617_v0 = vsel %vm2614_vm11, %v2616_v56, %v2612_v62  ;;  %v2641_v2 = vmul.f32 %v4123_v59, %v2598_v60 }
 0x578   :  { %v2640_v3 = vmul.f32 %v2617_v0, %v4311_v5  ;;  %v2627_v4 = vmul.f32 %v4121_v51, %v2626_v63 }
 0x57a   :  { %v2642_v7 = vadd.f32 %v2641_v2, %v2640_v3  ;;  %v2628_v27 = vadd.f32 %v4121_v51, %v2627_v4 }
 0x57c   :  { %4124 = vtanh.f32 %v2642_v7  ;;  %2656 = vst [vmem:[%s4339_s6] sm:$0xff] %v2642_v7  ;;  %v2632_v11 = vsel %vm2631_vm14, %v4121_v51, %v2628_v27 }
 0x57d   :  { %v2637_v12 = vsel %vm2634_vm15, %v2636_v31, %v2632_v11 }
 0x582   :  { %v4125_v6 = vpop.eup %4124 }
 0x583   :  { %v2644_v14 = vmul.f32 %v4125_v6, %v2637_v12 }
 0x585   :  { %v2647_v5 = vpack.c.bf16 %v2644_v14, %v2644_v14  ;;  %2654 = vst [vmem:[%s4338_s5] sm:$0xff] %v2644_v14 }
 0x587   :  { %3738 = vst [vmem:[%s4337_s4 + $0x1c] sm:$0xf] %v2647_v5 }
 0x588   :  { %2669 = vsyncpa [#allocation5], 1 }

</bundles_post_ra>
